<compile_context>
chip_gen: v7x
topology: tpu7x:2x2x1
jax: 0.10.0
libtpu: 0.0.40
codegen_flags: <defaults>
</compile_context>

<pallas_src>
import functools

import jax
import jax.numpy as jnp
from jax import lax
from jax.experimental import pallas as pl
from jax.experimental.pallas import tpu as pltpu

EPS = 1e-5
LANE = 128


def _round_up(x, m):
    return (x + m - 1) // m * m


def _vmem_limit_bytes():
    """Generation-gated scoped-VMEM limit (3/4 of physical, capped)."""
    try:
        cap = int(pltpu.get_tpu_info().vmem_capacity_bytes)
    except Exception:
        cap = 64 * 1024 * 1024  # safe on every generation
    return min(cap * 3 // 4, 112 * 1024 * 1024)


def _pick_tile(n, bytes_per_unit, budget, multiple=1):
    """Largest divisor of n (multiple of `multiple`) whose footprint fits."""
    best = multiple
    t = multiple
    while t <= n:
        if n % t == 0 and t * bytes_per_unit <= budget:
            best = t
        t += multiple
    return best


# ---------------------------------------------------------------------------
# Kernel 1: [BN-affine + ReLU of the previous layer] -> conv3x3 (pad=1)
#           + per-(batch, row-tile) BatchNorm sum / sum-of-squares.
# ---------------------------------------------------------------------------
def _fused_conv_kernel(x_ref, xu_ref, xd_ref, w_ref, sc_ref, sh_ref,
                       y_ref, st_ref, *, mxu_dtype, apply_act):
    # x_ref : (1, th, W, cin)   current row tile of the (un-padded) input
    # xu_ref: (1, 1,  W, cin)   row directly above the tile (clamped at i==0)
    # xd_ref: (1, 1,  W, cin)   row directly below the tile (clamped at last)
    # w_ref : (3, 3*cin, cout)  folded 3x3 weights, K packed kx-major
    # sc/sh : (1, cin)          BN scale/shift of the *previous* layer
    # y_ref : (1, th, W, cout)  pre-BN conv output of *this* layer
    # st_ref: (1, 1, 2, cout)   per-(batch, row-tile) [sum, sumsq]
    i = pl.program_id(1)
    n_rows = pl.num_programs(1)
    th, W, cin = x_ref.shape[1], x_ref.shape[2], x_ref.shape[3]
    cout = y_ref.shape[3]
    M = th * W

    if apply_act:
        sc = sc_ref[...].reshape(1, 1, cin)
        sh = sh_ref[...].reshape(1, 1, cin)

    def activate(t):
        t = t.astype(jnp.float32)
        if apply_act:  # fused BatchNorm affine + ReLU of the previous layer
            t = jnp.maximum(t * sc + sh, 0.0)
        return t

    xc = activate(x_ref[0])                                    # (th, W, cin)
    xu = activate(xu_ref[0]) * jnp.where(i > 0, 1.0, 0.0)      # top halo row
    xd = activate(xd_ref[0]) * jnp.where(i < n_rows - 1, 1.0, 0.0)

    # Column masks: zero the source column that would wrap around in the roll.
    col = lax.broadcasted_iota(jnp.int32, (th, W, 1), 1)
    not_first = col > 0          # zero col 0   before the dx=+1 (right) roll
    not_last = col < W - 1       # zero col W-1 before the dx=-1 (left) roll

    bases = (
        jnp.concatenate([xu, xc[:th - 1]], axis=0),   # ky = 0  (rows h-1)
        xc,                                           # ky = 1  (rows h)
        jnp.concatenate([xc[1:], xd], axis=0),        # ky = 2  (rows h+1)
    )

    acc = None
    for r in range(3):
        base = bases[r]
        srcl = jnp.where(not_last, base, 0.0).reshape(M, cin)
        srcr = jnp.where(not_first, base, 0.0).reshape(M, cin)
        # Rolls stay f32 (always-supported sublane rotate); MXU operands bf16.
        left = pltpu.roll(srcl, 1, 0).astype(mxu_dtype)        # in[., w-1]
        right = pltpu.roll(srcr, M - 1, 0).astype(mxu_dtype)   # in[., w+1]
        lhs = jnp.concatenate(
            [left, base.reshape(M, cin).astype(mxu_dtype), right], axis=-1)
        part = jnp.dot(lhs, w_ref[r], preferred_element_type=jnp.float32)
        acc = part if acc is None else acc + part               # (M, cout) f32

    y_ref[...] = acc.reshape(1, th, W, cout).astype(y_ref.dtype)

    # Partial BatchNorm statistics for this (batch, row-tile).
    # TODO(synk): E[x^2]-mean^2 can cancel for large activation means; a
    # centered / Welford second pass would be more robust.
    s = jnp.sum(acc, axis=0, keepdims=True)
    ss = jnp.sum(acc * acc, axis=0, keepdims=True)
    st_ref[...] = jnp.concatenate([s, ss], axis=0).reshape(1, 1, 2, cout)


def conv_bn_fused(x, w_fold, scale_in, shift_in, *, th, apply_act,
                  compute_dtype, vmem_limit):
    B, H, W, cin = x.shape
    cout = w_fold.shape[-1]
    n_rows = H // th
    kern = functools.partial(_fused_conv_kernel, mxu_dtype=compute_dtype,
                             apply_act=apply_act)
    return pl.pallas_call(
        kern,
        grid=(B, n_rows),
        in_specs=[
            pl.BlockSpec((1, th, W, cin), lambda b, i: (b, i, 0, 0)),
            pl.BlockSpec((1, 1, W, cin),
                         lambda b, i: (b, jnp.maximum(i * th - 1, 0), 0, 0)),
            pl.BlockSpec((1, 1, W, cin),
                         lambda b, i: (b, jnp.minimum((i + 1) * th, H - 1),
                                       0, 0)),
            pl.BlockSpec((3, 3 * cin, cout), lambda b, i: (0, 0, 0)),
            pl.BlockSpec((1, cin), lambda b, i: (0, 0)),
            pl.BlockSpec((1, cin), lambda b, i: (0, 0)),
        ],
        out_specs=(
            pl.BlockSpec((1, th, W, cout), lambda b, i: (b, i, 0, 0)),
            pl.BlockSpec((1, 1, 2, cout), lambda b, i: (b, i, 0, 0)),
        ),
        out_shape=(
            jax.ShapeDtypeStruct((B, H, W, cout), compute_dtype),
            jax.ShapeDtypeStruct((B, n_rows, 2, cout), jnp.float32),
        ),
        compiler_params=pltpu.CompilerParams(
            dimension_semantics=("parallel", "parallel"),
            vmem_limit_bytes=vmem_limit),
    )(x, x, x, w_fold, scale_in, shift_in)


# ---------------------------------------------------------------------------
# Kernel 2 (epilogue): BN affine + ReLU + MaxPool2d(2,2) with argmax.
# Input is viewed as (B, Ho, 2, Wo, 2*C) so window corners are a leading-dim
# index plus a 128-aligned lane slice (no strided gathers).
# ---------------------------------------------------------------------------
def _bn_relu_pool_kernel(y_ref, sc2_ref, sh2_ref, o_ref, idx_ref, *, W):
    i = pl.program_id(1)
    tho = y_ref.shape[1]
    cp = y_ref.shape[-1] // 2

    sc = sc2_ref[...].reshape(1, 1, 1, -1)
    sh = sh2_ref[...].reshape(1, 1, 1, -1)
    y = jnp.maximum(y_ref[0].astype(jnp.float32) * sc + sh, 0.0)

    r0, r1 = y[:, 0], y[:, 1]
    v00, v01 = r0[:, :, :cp], r0[:, :, cp:]
    v10, v11 = r1[:, :, :cp], r1[:, :, cp:]
    m = jnp.maximum(jnp.maximum(v00, v01), jnp.maximum(v10, v11))

    wo = v00.shape[1]
    h_l = lax.broadcasted_iota(jnp.int32, (tho, wo, 1), 0)
    w_l = lax.broadcasted_iota(jnp.int32, (tho, wo, 1), 1)
    i00 = (2 * (i * tho + h_l)) * W + 2 * w_l
    # PyTorch MaxPool2d tie-break: first occurrence in row-major window order.
    idx = jnp.where(v00 == m, i00,
          jnp.where(v01 == m, i00 + 1,
          jnp.where(v10 == m, i00 + W, i00 + W + 1)))

    o_ref[...] = m[None].astype(o_ref.dtype)
    idx_ref[...] = idx[None].astype(idx_ref.dtype)


def bn_relu_pool_argmax(y, scale, shift, *, tho, vmem_limit):
    B, H, W, C = y.shape
    Ho, Wo = H // 2, W // 2
    y6 = y.reshape(B, Ho, 2, Wo, 2 * C)              # pure row-major view
    sc2 = jnp.concatenate([scale, scale], axis=-1)   # matches 2*C lane order
    sh2 = jnp.concatenate([shift, shift], axis=-1)
    return pl.pallas_call(
        functools.partial(_bn_relu_pool_kernel, W=W),
        grid=(B, Ho // tho),
        in_specs=[
            pl.BlockSpec((1, tho, 2, Wo, 2 * C), lambda b, i: (b, i, 0, 0, 0)),
            pl.BlockSpec((1, 2 * C), lambda b, i: (0, 0)),
            pl.BlockSpec((1, 2 * C), lambda b, i: (0, 0)),
        ],
        out_specs=(
            pl.BlockSpec((1, tho, Wo, C), lambda b, i: (b, i, 0, 0)),
            pl.BlockSpec((1, tho, Wo, C), lambda b, i: (b, i, 0, 0)),
        ),
        out_shape=(
            jax.ShapeDtypeStruct((B, Ho, Wo, C), jnp.float32),
            jax.ShapeDtypeStruct((B, Ho, Wo, C), jnp.int32),
        ),
        compiler_params=pltpu.CompilerParams(
            dimension_semantics=("parallel", "parallel"),
            vmem_limit_bytes=vmem_limit),
    )(y6, sc2, sh2)


# ---------------------------------------------------------------------------
# BatchNorm batch-stat finalization (tiny per-channel math, plain XLA).
# ---------------------------------------------------------------------------
def _bn_scale_shift(stats, gamma_p, beta_p, count):
    s = jnp.sum(stats[:, :, 0, :], axis=(0, 1))
    ss = jnp.sum(stats[:, :, 1, :], axis=(0, 1))
    mean = s / count
    var = jnp.maximum(ss / count - mean * mean, 0.0)   # biased variance
    inv = lax.rsqrt(var + EPS)
    scale = gamma_p * inv
    shift = beta_p - mean * scale
    return scale.reshape(1, -1), shift.reshape(1, -1)


# ---------------------------------------------------------------------------
# SegnetLayer_Encoder forward
# ---------------------------------------------------------------------------
def segnet_layer_encoder(x_nchw, params, layer_size, *,
                         compute_dtype=jnp.bfloat16):
    B, Cin, H, W = x_nchw.shape
    assert H % 2 == 0 and W % 2 == 0, "MaxPool2d(2,2) path assumes even H, W"
    n_convs = 2 if layer_size == 2 else 3
    out_size = params["conv1"]["w"].shape[0]
    cout_p = _round_up(out_size, LANE)
    cin_p = _round_up(Cin, LANE)
    isz = jnp.dtype(compute_dtype).itemsize

    vmem_limit = _vmem_limit_bytes()
    tile_budget = vmem_limit // 4

    # Channels-last, lane-padded, compute-dtype activations.  (BN statistics
    # and the scale/shift math stay f32 throughout.)
    x = jnp.transpose(x_nchw, (0, 2, 3, 1)).astype(jnp.float32)
    x = jnp.pad(x, ((0, 0), (0, 0), (0, 0), (0, cin_p - Cin)))
    x = x.astype(compute_dtype)

    count = float(B * H * W)
    scale = jnp.ones((1, cin_p), jnp.float32)    # dummies for the first layer
    shift = jnp.zeros((1, cin_p), jnp.float32)

    for li in range(n_convs):
        p = params[f"conv{li + 1}"]
        o, ci = p["w"].shape[0], p["w"].shape[1]
        ci_p = cin_p if li == 0 else cout_p

        # OIHW -> (ky, kx, cin, cout), pad channels, fold to (3, 3*cin_p, Cp)
        # with the K axis packed kx-major / channel-minor.
        wk = jnp.transpose(p["w"], (2, 3, 1, 0))
        wk = jnp.pad(wk, ((0, 0), (0, 0), (0, ci_p - ci), (0, cout_p - o)))
        wk = wk.reshape(3, 3 * ci_p, cout_p).astype(compute_dtype)
        gp = jnp.pad(p["gamma"], (0, cout_p - o)).astype(jnp.float32)
        be = jnp.pad(p["beta"], (0, cout_p - o)).astype(jnp.float32)
        # Conv bias intentionally dropped: exactly absorbed by training-mode BN.

        # Row-tile: per-row VMEM footprint (double-buffered tiles + in-kernel
        # f32 activated tile, masked-roll temps, bf16 lhs slab, f32 acc).
        per_row = W * (ci_p * (2 * isz + 4 + 2 * 4 + 3 * isz)
                       + cout_p * (2 * isz + 4))
        fixed = 2 * 9 * ci_p * cout_p * isz + (2 << 20)
        th = _pick_tile(H, per_row, max(tile_budget - fixed, 2 * per_row),
                        multiple=2)
        # TODO(synk): for very wide layers (Cp >= 512 on v7x) split K across a
        # third grid axis instead of shrinking th.

        y, stats = conv_bn_fused(x, wk, scale, shift, th=th,
                                 apply_act=(li > 0),
                                 compute_dtype=compute_dtype,
                                 vmem_limit=vmem_limit)
        scale, shift = _bn_scale_shift(stats, gp, be, count)
        x = y

    # Last layer's BN + ReLU is fused into the maxpool/argmax epilogue.
    Ho, Wo = H // 2, W // 2
    per_row_pool = Wo * cout_p * (4 * 2 * isz + 10 * 4)
    tho = _pick_tile(Ho, per_row_pool, tile_budget, multiple=1)
    pooled, idx = bn_relu_pool_argmax(x, scale, shift, tho=tho,
                                      vmem_limit=vmem_limit)

    pooled = jnp.transpose(pooled[:, :, :, :out_size], (0, 3, 1, 2))
    # TODO(synk): PyTorch returns int64 indices; the TPU kernel emits int32.
    idx = jnp.transpose(idx[:, :, :, :out_size], (0, 3, 1, 2))
    return pooled, idx, (B, out_size, H, W)


# ---------------------------------------------------------------------------
# Deterministic parameter init (mirrors nn.Conv2d / BatchNorm2d shapes).
# ---------------------------------------------------------------------------
def init_params(key, in_size, out_size, layer_size):
    n_convs = 2 if layer_size == 2 else 3
    params = {}
    cin = in_size
    for i in range(n_convs):
        key, k1, k2, k3, k4 = jax.random.split(key, 5)
        fan_in = cin * 9
        params[f"conv{i + 1}"] = dict(
            w=jax.random.normal(k1, (out_size, cin, 3, 3), jnp.float32)
              * (1.0 / jnp.sqrt(fan_in)),
            b=0.1 * jax.random.normal(k2, (out_size,), jnp.float32),
            gamma=1.0 + 0.1 * jax.random.normal(k3, (out_size,), jnp.float32),
            beta=0.1 * jax.random.normal(k4, (out_size,), jnp.float32),
        )
        cin = out_size
    return params


# ---------------------------------------------------------------------------
# Pure-JAX reference (correctness check only)
# ---------------------------------------------------------------------------
def ref_forward(x_nchw, params, layer_size):
    x = x_nchw
    n_convs = 2 if layer_size == 2 else 3
    for i in range(n_convs):
        p = params[f"conv{i + 1}"]
        y = jax.lax.conv_general_dilated(
            x, p["w"], window_strides=(1, 1), padding=((1, 1), (1, 1)),
            dimension_numbers=("NCHW", "OIHW", "NCHW"),
            precision=lax.Precision.HIGHEST)
        y = y + p["b"][None, :, None, None]
        mean = jnp.mean(y, axis=(0, 2, 3), keepdims=True)
        var = jnp.mean((y - mean) ** 2, axis=(0, 2, 3), keepdims=True)
        y = ((y - mean) * jax.lax.rsqrt(var + EPS)
             * p["gamma"][None, :, None, None] + p["beta"][None, :, None, None])
        x = jnp.maximum(y, 0.0)
    unpooled = x.shape
    _, _, H, W = x.shape
    v00 = x[:, :, 0::2, 0::2]
    v01 = x[:, :, 0::2, 1::2]
    v10 = x[:, :, 1::2, 0::2]
    v11 = x[:, :, 1::2, 1::2]
    m = jnp.maximum(jnp.maximum(v00, v01), jnp.maximum(v10, v11))
    ho = jax.lax.broadcasted_iota(jnp.int32, m.shape, 2)
    wo = jax.lax.broadcasted_iota(jnp.int32, m.shape, 3)
    i00 = (2 * ho) * W + (2 * wo)
    idx = jnp.where(v00 == m, i00,
          jnp.where(v01 == m, i00 + 1,
          jnp.where(v10 == m, i00 + W, i00 + W + 1)))
    return m, idx, unpooled, x


if __name__ == "__main__":
    B, in_size, out_size, H, W = 2, 4, 8, 16, 16
    layer_size = 3

    key = jax.random.PRNGKey(0)
    key, kx = jax.random.split(key)
    x = jax.random.normal(kx, (B, in_size, H, W), jnp.float32)
    params = init_params(key, in_size, out_size, layer_size)

    ref_out, ref_idx, ref_shape, ref_act = ref_forward(x, params, layer_size)

    # ----- verification path: f32 storage + f32 MXU -----
    fwd32 = jax.jit(functools.partial(
        segnet_layer_encoder, layer_size=layer_size,
        compute_dtype=jnp.float32))
    pooled32, idx32, unpooled_shape = fwd32(x, params)
    pooled32 = jax.block_until_ready(pooled32)
    idx32 = jax.block_until_ready(idx32)

    assert pooled32.shape == (B, out_size, H // 2, W // 2)
    assert idx32.shape == (B, out_size, H // 2, W // 2)
    assert tuple(int(v) for v in unpooled_shape) == tuple(ref_shape)
    assert jnp.allclose(pooled32, ref_out, rtol=2e-2, atol=2e-2)

    # Every index must lie inside its own 2x2 window ...
    ho_grid = jnp.arange(H // 2).reshape(1, 1, -1, 1)
    wo_grid = jnp.arange(W // 2).reshape(1, 1, 1, -1)
    assert bool(jnp.all((idx32 // W) // 2 == ho_grid))
    assert bool(jnp.all((idx32 % W) // 2 == wo_grid))
    # ... and point at a maximal element of that window.
    flat_act = ref_act.reshape(B, out_size, H * W)
    gathered = jnp.take_along_axis(
        flat_act, idx32.reshape(B, out_size, -1), axis=-1).reshape(ref_out.shape)
    assert jnp.allclose(gathered, ref_out, rtol=2e-2, atol=2e-2)

    # ----- production path: bf16 MXU + bf16 activation storage (smoke) -----
    fwd_bf16 = jax.jit(functools.partial(
        segnet_layer_encoder, layer_size=layer_size,
        compute_dtype=jnp.bfloat16))
    pooled_bf, idx_bf, _ = fwd_bf16(x, params)
    pooled_bf = jax.block_until_ready(pooled_bf)
    assert pooled_bf.shape == (B, out_size, H // 2, W // 2)
    assert jnp.allclose(pooled_bf, ref_out, rtol=1e-1, atol=1e-1)

    print("KERNEL_OK")
</pallas_src>

<mosaic_0001>
module attributes {stable_mosaic.version = 11 : i64} {
  func.func @_fused_conv_kernel(%arg0: i32, %arg1: i32, %arg2: memref<1x16x16x128xf32, #tpu.memory_space<vmem>>, %arg3: memref<1x1x16x128xf32, #tpu.memory_space<vmem>>, %arg4: memref<1x1x16x128xf32, #tpu.memory_space<vmem>>, %arg5: memref<3x384x128xf32, #tpu.memory_space<vmem>>, %arg6: memref<1x128xf32, #tpu.memory_space<vmem>>, %arg7: memref<1x128xf32, #tpu.memory_space<vmem>>, %arg8: memref<1x16x16x128xf32, #tpu.memory_space<vmem>>, %arg9: memref<1x1x2x128xf32, #tpu.memory_space<vmem>>) attributes {dimension_semantics = [#tpu.dimension_semantics<parallel>, #tpu.dimension_semantics<parallel>], iteration_bounds = array<i64: 2, 1>, scalar_prefetch = 0 : i64, scratch_operands = 0 : i64, tpu.core_type = #tpu.core_type<tc>, window_params = [{transform_indices = @transform_0, window_bounds = array<i64: 1, 16, 16, 128>}, {transform_indices = @transform_1, window_bounds = array<i64: 1, 1, 16, 128>}, {transform_indices = @transform_2, window_bounds = array<i64: 1, 1, 16, 128>}, {pipeline_mode = #tpu.pipeline_mode<synchronous>, transform_indices = @transform_3, window_bounds = array<i64: 3, 384, 128>}, {pipeline_mode = #tpu.pipeline_mode<synchronous>, transform_indices = @transform_4, window_bounds = array<i64: 1, 128>}, {pipeline_mode = #tpu.pipeline_mode<synchronous>, transform_indices = @transform_5, window_bounds = array<i64: 1, 128>}, {transform_indices = @transform_6, window_bounds = array<i64: 1, 16, 16, 128>}, {transform_indices = @transform_7, window_bounds = array<i64: 1, 1, 2, 128>}]} {
    %c0 = arith.constant 0 : index
    %c0_0 = arith.constant 0 : index
    %c0_1 = arith.constant 0 : index
    %c0_2 = arith.constant 0 : index
    %0 = vector.load %arg2[%c0, %c0_0, %c0_1, %c0_2] : memref<1x16x16x128xf32, #tpu.memory_space<vmem>>, vector<1x16x16x128xf32>
    %1 = vector.shape_cast %0 : vector<1x16x16x128xf32> to vector<16x16x128xf32>
    %c0_3 = arith.constant 0 : index
    %c0_4 = arith.constant 0 : index
    %c0_5 = arith.constant 0 : index
    %c0_6 = arith.constant 0 : index
    %2 = vector.load %arg3[%c0_3, %c0_4, %c0_5, %c0_6] : memref<1x1x16x128xf32, #tpu.memory_space<vmem>>, vector<1x1x16x128xf32>
    %3 = vector.shape_cast %2 : vector<1x1x16x128xf32> to vector<1x16x128xf32>
    %c0_i32 = arith.constant 0 : i32
    %4 = arith.cmpi sgt, %arg1, %c0_i32 : i32
    %cst = arith.constant 1.000000e+00 : f32
    %cst_7 = arith.constant 0.000000e+00 : f32
    %5 = arith.select %4, %cst, %cst_7 : f32
    %6 = vector.broadcast %5 : f32 to vector<1x16x128xf32>
    %7 = arith.mulf %3, %6 : vector<1x16x128xf32>
    %c0_8 = arith.constant 0 : index
    %c0_9 = arith.constant 0 : index
    %c0_10 = arith.constant 0 : index
    %c0_11 = arith.constant 0 : index
    %8 = vector.load %arg4[%c0_8, %c0_9, %c0_10, %c0_11] : memref<1x1x16x128xf32, #tpu.memory_space<vmem>>, vector<1x1x16x128xf32>
    %9 = vector.shape_cast %8 : vector<1x1x16x128xf32> to vector<1x16x128xf32>
    %c0_i32_12 = arith.constant 0 : i32
    %10 = arith.cmpi slt, %arg1, %c0_i32_12 : i32
    %cst_13 = arith.constant 1.000000e+00 : f32
    %cst_14 = arith.constant 0.000000e+00 : f32
    %11 = arith.select %10, %cst_13, %cst_14 : f32
    %12 = vector.broadcast %11 : f32 to vector<1x16x128xf32>
    %13 = arith.mulf %9, %12 : vector<1x16x128xf32>
    %14 = tpu.iota {dimensions = array<i32: 1>} : vector<16x16x1xi32>
    %c0_i32_15 = arith.constant 0 : i32
    %15 = vector.broadcast %c0_i32_15 : i32 to vector<16x16x1xi32>
    %16 = arith.cmpi sgt, %14, %15 : vector<16x16x1xi32>
    %c15_i32 = arith.constant 15 : i32
    %17 = vector.broadcast %c15_i32 : i32 to vector<16x16x1xi32>
    %18 = arith.cmpi slt, %14, %17 : vector<16x16x1xi32>
    %19 = vector.extract_strided_slice %1 {offsets = [0, 0, 0], sizes = [15, 16, 128], strides = [1, 1, 1]} : vector<16x16x128xf32> to vector<15x16x128xf32>
    %20 = tpu.concatenate %7, %19 in 0 : vector<1x16x128xf32>, vector<15x16x128xf32> -> vector<16x16x128xf32>
    %21 = vector.extract_strided_slice %1 {offsets = [1, 0, 0], sizes = [15, 16, 128], strides = [1, 1, 1]} : vector<16x16x128xf32> to vector<15x16x128xf32>
    %22 = tpu.concatenate %21, %13 in 0 : vector<15x16x128xf32>, vector<1x16x128xf32> -> vector<16x16x128xf32>
    %cst_16 = arith.constant 0.000000e+00 : f32
    %23 = vector.shape_cast %18 : vector<16x16x1xi1> to vector<16x16x1xi1>
    %24 = vector.broadcast %23 : vector<16x16x1xi1> to vector<16x16x128xi1>
    %25 = vector.broadcast %cst_16 : f32 to vector<16x16x128xf32>
    %26 = arith.select %24, %20, %25 : vector<16x16x128xi1>, vector<16x16x128xf32>
    %27 = vector.shape_cast %26 : vector<16x16x128xf32> to vector<256x128xf32>
    %cst_17 = arith.constant 0.000000e+00 : f32
    %28 = vector.shape_cast %16 : vector<16x16x1xi1> to vector<16x16x1xi1>
    %29 = vector.broadcast %28 : vector<16x16x1xi1> to vector<16x16x128xi1>
    %30 = vector.broadcast %cst_17 : f32 to vector<16x16x128xf32>
    %31 = arith.select %29, %20, %30 : vector<16x16x128xi1>, vector<16x16x128xf32>
    %32 = vector.shape_cast %31 : vector<16x16x128xf32> to vector<256x128xf32>
    %c1_i32 = arith.constant 1 : i32
    %33 = tpu.dynamic_rotate %27 by %c1_i32 dim 0 : vector<256x128xf32>, i32 -> vector<256x128xf32>
    %c255_i32 = arith.constant 255 : i32
    %34 = tpu.dynamic_rotate %32 by %c255_i32 dim 0 : vector<256x128xf32>, i32 -> vector<256x128xf32>
    %35 = vector.shape_cast %20 : vector<16x16x128xf32> to vector<256x128xf32>
    %36 = tpu.concatenate %33, %35, %34 in 1 : vector<256x128xf32>, vector<256x128xf32>, vector<256x128xf32> -> vector<256x384xf32>
    %c0_18 = arith.constant 0 : index
    %c0_19 = arith.constant 0 : index
    %c0_20 = arith.constant 0 : index
    %37 = vector.load %arg5[%c0_18, %c0_19, %c0_20] : memref<3x384x128xf32, #tpu.memory_space<vmem>>, vector<1x384x128xf32>
    %38 = vector.shape_cast %37 : vector<1x384x128xf32> to vector<384x128xf32>
    %cst_21 = arith.constant dense<0.000000e+00> : vector<256x128xf32>
    %39 = tpu.matmul %36, %38, %cst_21 {dimension_numbers = #tpu.dot_dimension_numbers<[1], [0], [0], [1], [0, 0, 1, 1], [], []>} : vector<256x384xf32>, vector<384x128xf32>, vector<256x128xf32> -> vector<256x128xf32>
    %cst_22 = arith.constant 0.000000e+00 : f32
    %40 = vector.shape_cast %18 : vector<16x16x1xi1> to vector<16x16x1xi1>
    %41 = vector.broadcast %40 : vector<16x16x1xi1> to vector<16x16x128xi1>
    %42 = vector.broadcast %cst_22 : f32 to vector<16x16x128xf32>
    %43 = arith.select %41, %1, %42 : vector<16x16x128xi1>, vector<16x16x128xf32>
    %44 = vector.shape_cast %43 : vector<16x16x128xf32> to vector<256x128xf32>
    %cst_23 = arith.constant 0.000000e+00 : f32
    %45 = vector.shape_cast %16 : vector<16x16x1xi1> to vector<16x16x1xi1>
    %46 = vector.broadcast %45 : vector<16x16x1xi1> to vector<16x16x128xi1>
    %47 = vector.broadcast %cst_23 : f32 to vector<16x16x128xf32>
    %48 = arith.select %46, %1, %47 : vector<16x16x128xi1>, vector<16x16x128xf32>
    %49 = vector.shape_cast %48 : vector<16x16x128xf32> to vector<256x128xf32>
    %c1_i32_24 = arith.constant 1 : i32
    %50 = tpu.dynamic_rotate %44 by %c1_i32_24 dim 0 : vector<256x128xf32>, i32 -> vector<256x128xf32>
    %c255_i32_25 = arith.constant 255 : i32
    %51 = tpu.dynamic_rotate %49 by %c255_i32_25 dim 0 : vector<256x128xf32>, i32 -> vector<256x128xf32>
    %52 = vector.shape_cast %1 : vector<16x16x128xf32> to vector<256x128xf32>
    %53 = tpu.concatenate %50, %52, %51 in 1 : vector<256x128xf32>, vector<256x128xf32>, vector<256x128xf32> -> vector<256x384xf32>
    %c1 = arith.constant 1 : index
    %c0_26 = arith.constant 0 : index
    %c0_27 = arith.constant 0 : index
    %54 = vector.load %arg5[%c1, %c0_26, %c0_27] : memref<3x384x128xf32, #tpu.memory_space<vmem>>, vector<1x384x128xf32>
    %55 = vector.shape_cast %54 : vector<1x384x128xf32> to vector<384x128xf32>
    %cst_28 = arith.constant dense<0.000000e+00> : vector<256x128xf32>
    %56 = tpu.matmul %53, %55, %cst_28 {dimension_numbers = #tpu.dot_dimension_numbers<[1], [0], [0], [1], [0, 0, 1, 1], [], []>} : vector<256x384xf32>, vector<384x128xf32>, vector<256x128xf32> -> vector<256x128xf32>
    %57 = arith.addf %39, %56 : vector<256x128xf32>
    %cst_29 = arith.constant 0.000000e+00 : f32
    %58 = vector.shape_cast %18 : vector<16x16x1xi1> to vector<16x16x1xi1>
    %59 = vector.broadcast %58 : vector<16x16x1xi1> to vector<16x16x128xi1>
    %60 = vector.broadcast %cst_29 : f32 to vector<16x16x128xf32>
    %61 = arith.select %59, %22, %60 : vector<16x16x128xi1>, vector<16x16x128xf32>
    %62 = vector.shape_cast %61 : vector<16x16x128xf32> to vector<256x128xf32>
    %cst_30 = arith.constant 0.000000e+00 : f32
    %63 = vector.shape_cast %16 : vector<16x16x1xi1> to vector<16x16x1xi1>
    %64 = vector.broadcast %63 : vector<16x16x1xi1> to vector<16x16x128xi1>
    %65 = vector.broadcast %cst_30 : f32 to vector<16x16x128xf32>
    %66 = arith.select %64, %22, %65 : vector<16x16x128xi1>, vector<16x16x128xf32>
    %67 = vector.shape_cast %66 : vector<16x16x128xf32> to vector<256x128xf32>
    %c1_i32_31 = arith.constant 1 : i32
    %68 = tpu.dynamic_rotate %62 by %c1_i32_31 dim 0 : vector<256x128xf32>, i32 -> vector<256x128xf32>
    %c255_i32_32 = arith.constant 255 : i32
    %69 = tpu.dynamic_rotate %67 by %c255_i32_32 dim 0 : vector<256x128xf32>, i32 -> vector<256x128xf32>
    %70 = vector.shape_cast %22 : vector<16x16x128xf32> to vector<256x128xf32>
    %71 = tpu.concatenate %68, %70, %69 in 1 : vector<256x128xf32>, vector<256x128xf32>, vector<256x128xf32> -> vector<256x384xf32>
    %c2 = arith.constant 2 : index
    %c0_33 = arith.constant 0 : index
    %c0_34 = arith.constant 0 : index
    %72 = vector.load %arg5[%c2, %c0_33, %c0_34] : memref<3x384x128xf32, #tpu.memory_space<vmem>>, vector<1x384x128xf32>
    %73 = vector.shape_cast %72 : vector<1x384x128xf32> to vector<384x128xf32>
    %cst_35 = arith.constant dense<0.000000e+00> : vector<256x128xf32>
    %74 = tpu.matmul %71, %73, %cst_35 {dimension_numbers = #tpu.dot_dimension_numbers<[1], [0], [0], [1], [0, 0, 1, 1], [], []>} : vector<256x384xf32>, vector<384x128xf32>, vector<256x128xf32> -> vector<256x128xf32>
    %75 = arith.addf %57, %74 : vector<256x128xf32>
    %76 = vector.shape_cast %75 : vector<256x128xf32> to vector<1x16x16x128xf32>
    %c0_36 = arith.constant 0 : index
    %c0_37 = arith.constant 0 : index
    %c0_38 = arith.constant 0 : index
    %c0_39 = arith.constant 0 : index
    %77 = vector.load %arg8[%c0_36, %c0_37, %c0_38, %c0_39] : memref<1x16x16x128xf32, #tpu.memory_space<vmem>>, vector<1x16x16x128xf32>
    tpu.vector_store %arg8[%c0_36, %c0_37, %c0_38, %c0_39], %76 {strides = array<i32>} : memref<1x16x16x128xf32, #tpu.memory_space<vmem>>, vector<1x16x16x128xf32>,
    %cst_40 = arith.constant dense<0.000000e+00> : vector<128xf32>
    %78 = vector.multi_reduction <add>, %75, %cst_40 [0] : vector<256x128xf32> to vector<128xf32>
    %79 = vector.shape_cast %78 : vector<128xf32> to vector<1x128xf32>
    %80 = arith.mulf %75, %75 : vector<256x128xf32>
    %cst_41 = arith.constant dense<0.000000e+00> : vector<128xf32>
    %81 = vector.multi_reduction <add>, %80, %cst_41 [0] : vector<256x128xf32> to vector<128xf32>
    %82 = vector.shape_cast %81 : vector<128xf32> to vector<1x128xf32>
    %83 = tpu.concatenate %79, %82 in 0 : vector<1x128xf32>, vector<1x128xf32> -> vector<2x128xf32>
    %84 = vector.shape_cast %83 : vector<2x128xf32> to vector<1x1x2x128xf32>
    %c0_42 = arith.constant 0 : index
    %c0_43 = arith.constant 0 : index
    %c0_44 = arith.constant 0 : index
    %c0_45 = arith.constant 0 : index
    %85 = vector.load %arg9[%c0_42, %c0_43, %c0_44, %c0_45] : memref<1x1x2x128xf32, #tpu.memory_space<vmem>>, vector<1x1x2x128xf32>
    tpu.vector_store %arg9[%c0_42, %c0_43, %c0_44, %c0_45], %84 {strides = array<i32>} : memref<1x1x2x128xf32, #tpu.memory_space<vmem>>, vector<1x1x2x128xf32>,
    return
  }
  func.func @transform_0(%arg0: i32, %arg1: i32) -> (i32, i32, i32, i32) {
    %c0_i32 = arith.constant 0 : i32
    %c0_i32_0 = arith.constant 0 : i32
    %c0_i32_1 = arith.constant 0 : i32
    return %arg0, %arg1, %c0_i32, %c0_i32_0 : i32, i32, i32, i32
  }
  func.func @transform_1(%arg0: i32, %arg1: i32) -> (i32, i32, i32, i32) {
    %c16_i32 = arith.constant 16 : i32
    %0 = arith.muli %arg1, %c16_i32 : i32
    %c1_i32 = arith.constant 1 : i32
    %1 = arith.subi %0, %c1_i32 : i32
    %c0_i32 = arith.constant 0 : i32
    %2 = arith.maxsi %1, %c0_i32 : i32
    %c0_i32_0 = arith.constant 0 : i32
    %c0_i32_1 = arith.constant 0 : i32
    %c0_i32_2 = arith.constant 0 : i32
    return %arg0, %2, %c0_i32_0, %c0_i32_1 : i32, i32, i32, i32
  }
  func.func @transform_2(%arg0: i32, %arg1: i32) -> (i32, i32, i32, i32) {
    %c1_i32 = arith.constant 1 : i32
    %0 = arith.addi %arg1, %c1_i32 : i32
    %c16_i32 = arith.constant 16 : i32
    %1 = arith.muli %0, %c16_i32 : i32
    %c15_i32 = arith.constant 15 : i32
    %2 = arith.minsi %1, %c15_i32 : i32
    %c0_i32 = arith.constant 0 : i32
    %c0_i32_0 = arith.constant 0 : i32
    %c0_i32_1 = arith.constant 0 : i32
    return %arg0, %2, %c0_i32, %c0_i32_0 : i32, i32, i32, i32
  }
  func.func @transform_3(%arg0: i32, %arg1: i32) -> (i32, i32, i32) {
    %c0_i32 = arith.constant 0 : i32
    %c0_i32_0 = arith.constant 0 : i32
    %c0_i32_1 = arith.constant 0 : i32
    %c0_i32_2 = arith.constant 0 : i32
    return %c0_i32, %c0_i32_0, %c0_i32_1 : i32, i32, i32
  }
  func.func @transform_4(%arg0: i32, %arg1: i32) -> (i32, i32) {
    %c0_i32 = arith.constant 0 : i32
    %c0_i32_0 = arith.constant 0 : i32
    %c0_i32_1 = arith.constant 0 : i32
    return %c0_i32, %c0_i32_0 : i32, i32
  }
  func.func @transform_5(%arg0: i32, %arg1: i32) -> (i32, i32) {
    %c0_i32 = arith.constant 0 : i32
    %c0_i32_0 = arith.constant 0 : i32
    %c0_i32_1 = arith.constant 0 : i32
    return %c0_i32, %c0_i32_0 : i32, i32
  }
  func.func @transform_6(%arg0: i32, %arg1: i32) -> (i32, i32, i32, i32) {
    %c0_i32 = arith.constant 0 : i32
    %c0_i32_0 = arith.constant 0 : i32
    %c0_i32_1 = arith.constant 0 : i32
    return %arg0, %arg1, %c0_i32, %c0_i32_0 : i32, i32, i32, i32
  }
  func.func @transform_7(%arg0: i32, %arg1: i32) -> (i32, i32, i32, i32) {
    %c0_i32 = arith.constant 0 : i32
    %c0_i32_0 = arith.constant 0 : i32
    %c0_i32_1 = arith.constant 0 : i32
    return %arg0, %arg1, %c0_i32, %c0_i32_0 : i32, i32, i32, i32
  }
}

module attributes {stable_mosaic.version = 11 : i64} {
  func.func @_fused_conv_kernel(%arg0: i32, %arg1: i32, %arg2: memref<1x16x16x128xf32, #tpu.memory_space<vmem>>, %arg3: memref<1x1x16x128xf32, #tpu.memory_space<vmem>>, %arg4: memref<1x1x16x128xf32, #tpu.memory_space<vmem>>, %arg5: memref<3x384x128xf32, #tpu.memory_space<vmem>>, %arg6: memref<1x128xf32, #tpu.memory_space<vmem>>, %arg7: memref<1x128xf32, #tpu.memory_space<vmem>>, %arg8: memref<1x16x16x128xf32, #tpu.memory_space<vmem>>, %arg9: memref<1x1x2x128xf32, #tpu.memory_space<vmem>>) attributes {dimension_semantics = [#tpu.dimension_semantics<parallel>, #tpu.dimension_semantics<parallel>], iteration_bounds = array<i64: 2, 1>, scalar_prefetch = 0 : i64, scratch_operands = 0 : i64, tpu.core_type = #tpu.core_type<tc>, window_params = [{transform_indices = @transform_0, window_bounds = array<i64: 1, 16, 16, 128>}, {transform_indices = @transform_1, window_bounds = array<i64: 1, 1, 16, 128>}, {transform_indices = @transform_2, window_bounds = array<i64: 1, 1, 16, 128>}, {pipeline_mode = #tpu.pipeline_mode<synchronous>, transform_indices = @transform_3, window_bounds = array<i64: 3, 384, 128>}, {pipeline_mode = #tpu.pipeline_mode<synchronous>, transform_indices = @transform_4, window_bounds = array<i64: 1, 128>}, {pipeline_mode = #tpu.pipeline_mode<synchronous>, transform_indices = @transform_5, window_bounds = array<i64: 1, 128>}, {transform_indices = @transform_6, window_bounds = array<i64: 1, 16, 16, 128>}, {transform_indices = @transform_7, window_bounds = array<i64: 1, 1, 2, 128>}]} {
    %c0 = arith.constant 0 : index
    %c0_0 = arith.constant 0 : index
    %0 = vector.load %arg6[%c0, %c0_0] : memref<1x128xf32, #tpu.memory_space<vmem>>, vector<1x128xf32>
    %1 = vector.shape_cast %0 : vector<1x128xf32> to vector<1x1x128xf32>
    %c0_1 = arith.constant 0 : index
    %c0_2 = arith.constant 0 : index
    %2 = vector.load %arg7[%c0_1, %c0_2] : memref<1x128xf32, #tpu.memory_space<vmem>>, vector<1x128xf32>
    %3 = vector.shape_cast %2 : vector<1x128xf32> to vector<1x1x128xf32>
    %c0_3 = arith.constant 0 : index
    %c0_4 = arith.constant 0 : index
    %c0_5 = arith.constant 0 : index
    %c0_6 = arith.constant 0 : index
    %4 = vector.load %arg2[%c0_3, %c0_4, %c0_5, %c0_6] : memref<1x16x16x128xf32, #tpu.memory_space<vmem>>, vector<1x16x16x128xf32>
    %5 = vector.shape_cast %4 : vector<1x16x16x128xf32> to vector<16x16x128xf32>
    %6 = vector.broadcast %1 : vector<1x1x128xf32> to vector<16x16x128xf32>
    %7 = arith.mulf %5, %6 : vector<16x16x128xf32>
    %8 = vector.broadcast %3 : vector<1x1x128xf32> to vector<16x16x128xf32>
    %9 = arith.addf %7, %8 : vector<16x16x128xf32>
    %cst = arith.constant 0.000000e+00 : f32
    %10 = vector.broadcast %cst : f32 to vector<16x16x128xf32>
    %11 = arith.maximumf %9, %10 : vector<16x16x128xf32>
    %c0_7 = arith.constant 0 : index
    %c0_8 = arith.constant 0 : index
    %c0_9 = arith.constant 0 : index
    %c0_10 = arith.constant 0 : index
    %12 = vector.load %arg3[%c0_7, %c0_8, %c0_9, %c0_10] : memref<1x1x16x128xf32, #tpu.memory_space<vmem>>, vector<1x1x16x128xf32>
    %13 = vector.shape_cast %12 : vector<1x1x16x128xf32> to vector<1x16x128xf32>
    %14 = vector.broadcast %1 : vector<1x1x128xf32> to vector<1x16x128xf32>
    %15 = arith.mulf %13, %14 : vector<1x16x128xf32>
    %16 = vector.broadcast %3 : vector<1x1x128xf32> to vector<1x16x128xf32>
    %17 = arith.addf %15, %16 : vector<1x16x128xf32>
    %cst_11 = arith.constant 0.000000e+00 : f32
    %18 = vector.broadcast %cst_11 : f32 to vector<1x16x128xf32>
    %19 = arith.maximumf %17, %18 : vector<1x16x128xf32>
    %c0_i32 = arith.constant 0 : i32
    %20 = arith.cmpi sgt, %arg1, %c0_i32 : i32
    %cst_12 = arith.constant 1.000000e+00 : f32
    %cst_13 = arith.constant 0.000000e+00 : f32
    %21 = arith.select %20, %cst_12, %cst_13 : f32
    %22 = vector.broadcast %21 : f32 to vector<1x16x128xf32>
    %23 = arith.mulf %19, %22 : vector<1x16x128xf32>
    %c0_14 = arith.constant 0 : index
    %c0_15 = arith.constant 0 : index
    %c0_16 = arith.constant 0 : index
    %c0_17 = arith.constant 0 : index
    %24 = vector.load %arg4[%c0_14, %c0_15, %c0_16, %c0_17] : memref<1x1x16x128xf32, #tpu.memory_space<vmem>>, vector<1x1x16x128xf32>
    %25 = vector.shape_cast %24 : vector<1x1x16x128xf32> to vector<1x16x128xf32>
    %26 = vector.broadcast %1 : vector<1x1x128xf32> to vector<1x16x128xf32>
    %27 = arith.mulf %25, %26 : vector<1x16x128xf32>
    %28 = vector.broadcast %3 : vector<1x1x128xf32> to vector<1x16x128xf32>
    %29 = arith.addf %27, %28 : vector<1x16x128xf32>
    %cst_18 = arith.constant 0.000000e+00 : f32
    %30 = vector.broadcast %cst_18 : f32 to vector<1x16x128xf32>
    %31 = arith.maximumf %29, %30 : vector<1x16x128xf32>
    %c0_i32_19 = arith.constant 0 : i32
    %32 = arith.cmpi slt, %arg1, %c0_i32_19 : i32
    %cst_20 = arith.constant 1.000000e+00 : f32
    %cst_21 = arith.constant 0.000000e+00 : f32
    %33 = arith.select %32, %cst_20, %cst_21 : f32
    %34 = vector.broadcast %33 : f32 to vector<1x16x128xf32>
    %35 = arith.mulf %31, %34 : vector<1x16x128xf32>
    %36 = tpu.iota {dimensions = array<i32: 1>} : vector<16x16x1xi32>
    %c0_i32_22 = arith.constant 0 : i32
    %37 = vector.broadcast %c0_i32_22 : i32 to vector<16x16x1xi32>
    %38 = arith.cmpi sgt, %36, %37 : vector<16x16x1xi32>
    %c15_i32 = arith.constant 15 : i32
    %39 = vector.broadcast %c15_i32 : i32 to vector<16x16x1xi32>
    %40 = arith.cmpi slt, %36, %39 : vector<16x16x1xi32>
    %41 = vector.extract_strided_slice %11 {offsets = [0, 0, 0], sizes = [15, 16, 128], strides = [1, 1, 1]} : vector<16x16x128xf32> to vector<15x16x128xf32>
    %42 = tpu.concatenate %23, %41 in 0 : vector<1x16x128xf32>, vector<15x16x128xf32> -> vector<16x16x128xf32>
    %43 = vector.extract_strided_slice %11 {offsets = [1, 0, 0], sizes = [15, 16, 128], strides = [1, 1, 1]} : vector<16x16x128xf32> to vector<15x16x128xf32>
    %44 = tpu.concatenate %43, %35 in 0 : vector<15x16x128xf32>, vector<1x16x128xf32> -> vector<16x16x128xf32>
    %cst_23 = arith.constant 0.000000e+00 : f32
    %45 = vector.shape_cast %40 : vector<16x16x1xi1> to vector<16x16x1xi1>
    %46 = vector.broadcast %45 : vector<16x16x1xi1> to vector<16x16x128xi1>
    %47 = vector.broadcast %cst_23 : f32 to vector<16x16x128xf32>
    %48 = arith.select %46, %42, %47 : vector<16x16x128xi1>, vector<16x16x128xf32>
    %49 = vector.shape_cast %48 : vector<16x16x128xf32> to vector<256x128xf32>
    %cst_24 = arith.constant 0.000000e+00 : f32
    %50 = vector.shape_cast %38 : vector<16x16x1xi1> to vector<16x16x1xi1>
    %51 = vector.broadcast %50 : vector<16x16x1xi1> to vector<16x16x128xi1>
    %52 = vector.broadcast %cst_24 : f32 to vector<16x16x128xf32>
    %53 = arith.select %51, %42, %52 : vector<16x16x128xi1>, vector<16x16x128xf32>
    %54 = vector.shape_cast %53 : vector<16x16x128xf32> to vector<256x128xf32>
    %c1_i32 = arith.constant 1 : i32
    %55 = tpu.dynamic_rotate %49 by %c1_i32 dim 0 : vector<256x128xf32>, i32 -> vector<256x128xf32>
    %c255_i32 = arith.constant 255 : i32
    %56 = tpu.dynamic_rotate %54 by %c255_i32 dim 0 : vector<256x128xf32>, i32 -> vector<256x128xf32>
    %57 = vector.shape_cast %42 : vector<16x16x128xf32> to vector<256x128xf32>
    %58 = tpu.concatenate %55, %57, %56 in 1 : vector<256x128xf32>, vector<256x128xf32>, vector<256x128xf32> -> vector<256x384xf32>
    %c0_25 = arith.constant 0 : index
    %c0_26 = arith.constant 0 : index
    %c0_27 = arith.constant 0 : index
    %59 = vector.load %arg5[%c0_25, %c0_26, %c0_27] : memref<3x384x128xf32, #tpu.memory_space<vmem>>, vector<1x384x128xf32>
    %60 = vector.shape_cast %59 : vector<1x384x128xf32> to vector<384x128xf32>
    %cst_28 = arith.constant dense<0.000000e+00> : vector<256x128xf32>
    %61 = tpu.matmul %58, %60, %cst_28 {dimension_numbers = #tpu.dot_dimension_numbers<[1], [0], [0], [1], [0, 0, 1, 1], [], []>} : vector<256x384xf32>, vector<384x128xf32>, vector<256x128xf32> -> vector<256x128xf32>
    %cst_29 = arith.constant 0.000000e+00 : f32
    %62 = vector.shape_cast %40 : vector<16x16x1xi1> to vector<16x16x1xi1>
    %63 = vector.broadcast %62 : vector<16x16x1xi1> to vector<16x16x128xi1>
    %64 = vector.broadcast %cst_29 : f32 to vector<16x16x128xf32>
    %65 = arith.select %63, %11, %64 : vector<16x16x128xi1>, vector<16x16x128xf32>
    %66 = vector.shape_cast %65 : vector<16x16x128xf32> to vector<256x128xf32>
    %cst_30 = arith.constant 0.000000e+00 : f32
    %67 = vector.shape_cast %38 : vector<16x16x1xi1> to vector<16x16x1xi1>
    %68 = vector.broadcast %67 : vector<16x16x1xi1> to vector<16x16x128xi1>
    %69 = vector.broadcast %cst_30 : f32 to vector<16x16x128xf32>
    %70 = arith.select %68, %11, %69 : vector<16x16x128xi1>, vector<16x16x128xf32>
    %71 = vector.shape_cast %70 : vector<16x16x128xf32> to vector<256x128xf32>
    %c1_i32_31 = arith.constant 1 : i32
    %72 = tpu.dynamic_rotate %66 by %c1_i32_31 dim 0 : vector<256x128xf32>, i32 -> vector<256x128xf32>
    %c255_i32_32 = arith.constant 255 : i32
    %73 = tpu.dynamic_rotate %71 by %c255_i32_32 dim 0 : vector<256x128xf32>, i32 -> vector<256x128xf32>
    %74 = vector.shape_cast %11 : vector<16x16x128xf32> to vector<256x128xf32>
    %75 = tpu.concatenate %72, %74, %73 in 1 : vector<256x128xf32>, vector<256x128xf32>, vector<256x128xf32> -> vector<256x384xf32>
    %c1 = arith.constant 1 : index
    %c0_33 = arith.constant 0 : index
    %c0_34 = arith.constant 0 : index
    %76 = vector.load %arg5[%c1, %c0_33, %c0_34] : memref<3x384x128xf32, #tpu.memory_space<vmem>>, vector<1x384x128xf32>
    %77 = vector.shape_cast %76 : vector<1x384x128xf32> to vector<384x128xf32>
    %cst_35 = arith.constant dense<0.000000e+00> : vector<256x128xf32>
    %78 = tpu.matmul %75, %77, %cst_35 {dimension_numbers = #tpu.dot_dimension_numbers<[1], [0], [0], [1], [0, 0, 1, 1], [], []>} : vector<256x384xf32>, vector<384x128xf32>, vector<256x128xf32> -> vector<256x128xf32>
    %79 = arith.addf %61, %78 : vector<256x128xf32>
    %cst_36 = arith.constant 0.000000e+00 : f32
    %80 = vector.shape_cast %40 : vector<16x16x1xi1> to vector<16x16x1xi1>
    %81 = vector.broadcast %80 : vector<16x16x1xi1> to vector<16x16x128xi1>
    %82 = vector.broadcast %cst_36 : f32 to vector<16x16x128xf32>
    %83 = arith.select %81, %44, %82 : vector<16x16x128xi1>, vector<16x16x128xf32>
    %84 = vector.shape_cast %83 : vector<16x16x128xf32> to vector<256x128xf32>
    %cst_37 = arith.constant 0.000000e+00 : f32
    %85 = vector.shape_cast %38 : vector<16x16x1xi1> to vector<16x16x1xi1>
    %86 = vector.broadcast %85 : vector<16x16x1xi1> to vector<16x16x128xi1>
    %87 = vector.broadcast %cst_37 : f32 to vector<16x16x128xf32>
    %88 = arith.select %86, %44, %87 : vector<16x16x128xi1>, vector<16x16x128xf32>
    %89 = vector.shape_cast %88 : vector<16x16x128xf32> to vector<256x128xf32>
    %c1_i32_38 = arith.constant 1 : i32
    %90 = tpu.dynamic_rotate %84 by %c1_i32_38 dim 0 : vector<256x128xf32>, i32 -> vector<256x128xf32>
    %c255_i32_39 = arith.constant 255 : i32
    %91 = tpu.dynamic_rotate %89 by %c255_i32_39 dim 0 : vector<256x128xf32>, i32 -> vector<256x128xf32>
    %92 = vector.shape_cast %44 : vector<16x16x128xf32> to vector<256x128xf32>
    %93 = tpu.concatenate %90, %92, %91 in 1 : vector<256x128xf32>, vector<256x128xf32>, vector<256x128xf32> -> vector<256x384xf32>
    %c2 = arith.constant 2 : index
    %c0_40 = arith.constant 0 : index
    %c0_41 = arith.constant 0 : index
    %94 = vector.load %arg5[%c2, %c0_40, %c0_41] : memref<3x384x128xf32, #tpu.memory_space<vmem>>, vector<1x384x128xf32>
    %95 = vector.shape_cast %94 : vector<1x384x128xf32> to vector<384x128xf32>
    %cst_42 = arith.constant dense<0.000000e+00> : vector<256x128xf32>
    %96 = tpu.matmul %93, %95, %cst_42 {dimension_numbers = #tpu.dot_dimension_numbers<[1], [0], [0], [1], [0, 0, 1, 1], [], []>} : vector<256x384xf32>, vector<384x128xf32>, vector<256x128xf32> -> vector<256x128xf32>
    %97 = arith.addf %79, %96 : vector<256x128xf32>
    %98 = vector.shape_cast %97 : vector<256x128xf32> to vector<1x16x16x128xf32>
    %c0_43 = arith.constant 0 : index
    %c0_44 = arith.constant 0 : index
    %c0_45 = arith.constant 0 : index
    %c0_46 = arith.constant 0 : index
    %99 = vector.load %arg8[%c0_43, %c0_44, %c0_45, %c0_46] : memref<1x16x16x128xf32, #tpu.memory_space<vmem>>, vector<1x16x16x128xf32>
    tpu.vector_store %arg8[%c0_43, %c0_44, %c0_45, %c0_46], %98 {strides = array<i32>} : memref<1x16x16x128xf32, #tpu.memory_space<vmem>>, vector<1x16x16x128xf32>,
    %cst_47 = arith.constant dense<0.000000e+00> : vector<128xf32>
    %100 = vector.multi_reduction <add>, %97, %cst_47 [0] : vector<256x128xf32> to vector<128xf32>
    %101 = vector.shape_cast %100 : vector<128xf32> to vector<1x128xf32>
    %102 = arith.mulf %97, %97 : vector<256x128xf32>
    %cst_48 = arith.constant dense<0.000000e+00> : vector<128xf32>
    %103 = vector.multi_reduction <add>, %102, %cst_48 [0] : vector<256x128xf32> to vector<128xf32>
    %104 = vector.shape_cast %103 : vector<128xf32> to vector<1x128xf32>
    %105 = tpu.concatenate %101, %104 in 0 : vector<1x128xf32>, vector<1x128xf32> -> vector<2x128xf32>
    %106 = vector.shape_cast %105 : vector<2x128xf32> to vector<1x1x2x128xf32>
    %c0_49 = arith.constant 0 : index
    %c0_50 = arith.constant 0 : index
    %c0_51 = arith.constant 0 : index
    %c0_52 = arith.constant 0 : index
    %107 = vector.load %arg9[%c0_49, %c0_50, %c0_51, %c0_52] : memref<1x1x2x128xf32, #tpu.memory_space<vmem>>, vector<1x1x2x128xf32>
    tpu.vector_store %arg9[%c0_49, %c0_50, %c0_51, %c0_52], %106 {strides = array<i32>} : memref<1x1x2x128xf32, #tpu.memory_space<vmem>>, vector<1x1x2x128xf32>,
    return
  }
  func.func @transform_0(%arg0: i32, %arg1: i32) -> (i32, i32, i32, i32) {
    %c0_i32 = arith.constant 0 : i32
    %c0_i32_0 = arith.constant 0 : i32
    %c0_i32_1 = arith.constant 0 : i32
    return %arg0, %arg1, %c0_i32, %c0_i32_0 : i32, i32, i32, i32
  }
  func.func @transform_1(%arg0: i32, %arg1: i32) -> (i32, i32, i32, i32) {
    %c16_i32 = arith.constant 16 : i32
    %0 = arith.muli %arg1, %c16_i32 : i32
    %c1_i32 = arith.constant 1 : i32
    %1 = arith.subi %0, %c1_i32 : i32
    %c0_i32 = arith.constant 0 : i32
    %2 = arith.maxsi %1, %c0_i32 : i32
    %c0_i32_0 = arith.constant 0 : i32
    %c0_i32_1 = arith.constant 0 : i32
    %c0_i32_2 = arith.constant 0 : i32
    return %arg0, %2, %c0_i32_0, %c0_i32_1 : i32, i32, i32, i32
  }
  func.func @transform_2(%arg0: i32, %arg1: i32) -> (i32, i32, i32, i32) {
    %c1_i32 = arith.constant 1 : i32
    %0 = arith.addi %arg1, %c1_i32 : i32
    %c16_i32 = arith.constant 16 : i32
    %1 = arith.muli %0, %c16_i32 : i32
    %c15_i32 = arith.constant 15 : i32
    %2 = arith.minsi %1, %c15_i32 : i32
    %c0_i32 = arith.constant 0 : i32
    %c0_i32_0 = arith.constant 0 : i32
    %c0_i32_1 = arith.constant 0 : i32
    return %arg0, %2, %c0_i32, %c0_i32_0 : i32, i32, i32, i32
  }
  func.func @transform_3(%arg0: i32, %arg1: i32) -> (i32, i32, i32) {
    %c0_i32 = arith.constant 0 : i32
    %c0_i32_0 = arith.constant 0 : i32
    %c0_i32_1 = arith.constant 0 : i32
    %c0_i32_2 = arith.constant 0 : i32
    return %c0_i32, %c0_i32_0, %c0_i32_1 : i32, i32, i32
  }
  func.func @transform_4(%arg0: i32, %arg1: i32) -> (i32, i32) {
    %c0_i32 = arith.constant 0 : i32
    %c0_i32_0 = arith.constant 0 : i32
    %c0_i32_1 = arith.constant 0 : i32
    return %c0_i32, %c0_i32_0 : i32, i32
  }
  func.func @transform_5(%arg0: i32, %arg1: i32) -> (i32, i32) {
    %c0_i32 = arith.constant 0 : i32
    %c0_i32_0 = arith.constant 0 : i32
    %c0_i32_1 = arith.constant 0 : i32
    return %c0_i32, %c0_i32_0 : i32, i32
  }
  func.func @transform_6(%arg0: i32, %arg1: i32) -> (i32, i32, i32, i32) {
    %c0_i32 = arith.constant 0 : i32
    %c0_i32_0 = arith.constant 0 : i32
    %c0_i32_1 = arith.constant 0 : i32
    return %arg0, %arg1, %c0_i32, %c0_i32_0 : i32, i32, i32, i32
  }
  func.func @transform_7(%arg0: i32, %arg1: i32) -> (i32, i32, i32, i32) {
    %c0_i32 = arith.constant 0 : i32
    %c0_i32_0 = arith.constant 0 : i32
    %c0_i32_1 = arith.constant 0 : i32
    return %arg0, %arg1, %c0_i32, %c0_i32_0 : i32, i32, i32, i32
  }
}

module attributes {stable_mosaic.version = 11 : i64} {
  func.func @_bn_relu_pool_kernel(%arg0: i32, %arg1: i32, %arg2: memref<1x8x2x8x256xf32, #tpu.memory_space<vmem>>, %arg3: memref<1x256xf32, #tpu.memory_space<vmem>>, %arg4: memref<1x256xf32, #tpu.memory_space<vmem>>, %arg5: memref<1x8x8x128xf32, #tpu.memory_space<vmem>>, %arg6: memref<1x8x8x128xi32, #tpu.memory_space<vmem>>) attributes {dimension_semantics = [#tpu.dimension_semantics<parallel>, #tpu.dimension_semantics<parallel>], iteration_bounds = array<i64: 2, 1>, scalar_prefetch = 0 : i64, scratch_operands = 0 : i64, tpu.core_type = #tpu.core_type<tc>, window_params = [{transform_indices = @transform_0, window_bounds = array<i64: 1, 8, 2, 8, 256>}, {pipeline_mode = #tpu.pipeline_mode<synchronous>, transform_indices = @transform_1, window_bounds = array<i64: 1, 256>}, {pipeline_mode = #tpu.pipeline_mode<synchronous>, transform_indices = @transform_2, window_bounds = array<i64: 1, 256>}, {transform_indices = @transform_3, window_bounds = array<i64: 1, 8, 8, 128>}, {transform_indices = @transform_4, window_bounds = array<i64: 1, 8, 8, 128>}]} {
    %c0 = arith.constant 0 : index
    %c0_0 = arith.constant 0 : index
    %0 = vector.load %arg3[%c0, %c0_0] : memref<1x256xf32, #tpu.memory_space<vmem>>, vector<1x256xf32>
    %1 = vector.shape_cast %0 : vector<1x256xf32> to vector<1x1x1x256xf32>
    %c0_1 = arith.constant 0 : index
    %c0_2 = arith.constant 0 : index
    %2 = vector.load %arg4[%c0_1, %c0_2] : memref<1x256xf32, #tpu.memory_space<vmem>>, vector<1x256xf32>
    %3 = vector.shape_cast %2 : vector<1x256xf32> to vector<1x1x1x256xf32>
    %c0_3 = arith.constant 0 : index
    %c0_4 = arith.constant 0 : index
    %c0_5 = arith.constant 0 : index
    %c0_6 = arith.constant 0 : index
    %c0_7 = arith.constant 0 : index
    %4 = vector.load %arg2[%c0_3, %c0_4, %c0_5, %c0_6, %c0_7] : memref<1x8x2x8x256xf32, #tpu.memory_space<vmem>>, vector<1x8x2x8x256xf32>
    %5 = vector.shape_cast %4 : vector<1x8x2x8x256xf32> to vector<8x2x8x256xf32>
    %6 = vector.broadcast %1 : vector<1x1x1x256xf32> to vector<8x2x8x256xf32>
    %7 = arith.mulf %5, %6 : vector<8x2x8x256xf32>
    %8 = vector.broadcast %3 : vector<1x1x1x256xf32> to vector<8x2x8x256xf32>
    %9 = arith.addf %7, %8 : vector<8x2x8x256xf32>
    %cst = arith.constant 0.000000e+00 : f32
    %10 = vector.broadcast %cst : f32 to vector<8x2x8x256xf32>
    %11 = arith.maximumf %9, %10 : vector<8x2x8x256xf32>
    %12 = vector.extract_strided_slice %11 {offsets = [0, 0, 0, 0], sizes = [8, 1, 8, 256], strides = [1, 1, 1, 1]} : vector<8x2x8x256xf32> to vector<8x1x8x256xf32>
    %13 = vector.shape_cast %12 : vector<8x1x8x256xf32> to vector<8x8x256xf32>
    %14 = vector.extract_strided_slice %11 {offsets = [0, 1, 0, 0], sizes = [8, 1, 8, 256], strides = [1, 1, 1, 1]} : vector<8x2x8x256xf32> to vector<8x1x8x256xf32>
    %15 = vector.shape_cast %14 : vector<8x1x8x256xf32> to vector<8x8x256xf32>
    %16 = vector.extract_strided_slice %13 {offsets = [0, 0, 0], sizes = [8, 8, 128], strides = [1, 1, 1]} : vector<8x8x256xf32> to vector<8x8x128xf32>
    %17 = vector.extract_strided_slice %13 {offsets = [0, 0, 128], sizes = [8, 8, 128], strides = [1, 1, 1]} : vector<8x8x256xf32> to vector<8x8x128xf32>
    %18 = vector.extract_strided_slice %15 {offsets = [0, 0, 0], sizes = [8, 8, 128], strides = [1, 1, 1]} : vector<8x8x256xf32> to vector<8x8x128xf32>
    %19 = vector.extract_strided_slice %15 {offsets = [0, 0, 128], sizes = [8, 8, 128], strides = [1, 1, 1]} : vector<8x8x256xf32> to vector<8x8x128xf32>
    %20 = arith.maximumf %16, %17 : vector<8x8x128xf32>
    %21 = arith.maximumf %18, %19 : vector<8x8x128xf32>
    %22 = arith.maximumf %20, %21 : vector<8x8x128xf32>
    %23 = tpu.iota {dimensions = array<i32: 0>} : vector<8x8x1xi32>
    %24 = tpu.iota {dimensions = array<i32: 1>} : vector<8x8x1xi32>
    %c8_i32 = arith.constant 8 : i32
    %25 = arith.muli %arg1, %c8_i32 : i32
    %26 = vector.broadcast %25 : i32 to vector<8x8x1xi32>
    %27 = arith.addi %26, %23 : vector<8x8x1xi32>
    %c2_i32 = arith.constant 2 : i32
    %28 = vector.broadcast %c2_i32 : i32 to vector<8x8x1xi32>
    %29 = arith.muli %28, %27 : vector<8x8x1xi32>
    %c16_i32 = arith.constant 16 : i32
    %30 = vector.broadcast %c16_i32 : i32 to vector<8x8x1xi32>
    %31 = arith.muli %29, %30 : vector<8x8x1xi32>
    %c2_i32_8 = arith.constant 2 : i32
    %32 = vector.broadcast %c2_i32_8 : i32 to vector<8x8x1xi32>
    %33 = arith.muli %32, %24 : vector<8x8x1xi32>
    %34 = arith.addi %31, %33 : vector<8x8x1xi32>
    %35 = arith.cmpf oeq, %16, %22 : vector<8x8x128xf32>
    %36 = arith.cmpf oeq, %17, %22 : vector<8x8x128xf32>
    %c1_i32 = arith.constant 1 : i32
    %37 = vector.broadcast %c1_i32 : i32 to vector<8x8x1xi32>
    %38 = arith.addi %34, %37 : vector<8x8x1xi32>
    %39 = arith.cmpf oeq, %18, %22 : vector<8x8x128xf32>
    %c16_i32_9 = arith.constant 16 : i32
    %40 = vector.broadcast %c16_i32_9 : i32 to vector<8x8x1xi32>
    %41 = arith.addi %34, %40 : vector<8x8x1xi32>
    %c16_i32_10 = arith.constant 16 : i32
    %42 = vector.broadcast %c16_i32_10 : i32 to vector<8x8x1xi32>
    %43 = arith.addi %34, %42 : vector<8x8x1xi32>
    %c1_i32_11 = arith.constant 1 : i32
    %44 = vector.broadcast %c1_i32_11 : i32 to vector<8x8x1xi32>
    %45 = arith.addi %43, %44 : vector<8x8x1xi32>
    %46 = vector.shape_cast %41 : vector<8x8x1xi32> to vector<8x8x1xi32>
    %47 = vector.broadcast %46 : vector<8x8x1xi32> to vector<8x8x128xi32>
    %48 = vector.shape_cast %45 : vector<8x8x1xi32> to vector<8x8x1xi32>
    %49 = vector.broadcast %48 : vector<8x8x1xi32> to vector<8x8x128xi32>
    %50 = arith.select %39, %47, %49 : vector<8x8x128xi1>, vector<8x8x128xi32>
    %51 = vector.shape_cast %38 : vector<8x8x1xi32> to vector<8x8x1xi32>
    %52 = vector.broadcast %51 : vector<8x8x1xi32> to vector<8x8x128xi32>
    %53 = arith.select %36, %52, %50 : vector<8x8x128xi1>, vector<8x8x128xi32>
    %54 = vector.shape_cast %34 : vector<8x8x1xi32> to vector<8x8x1xi32>
    %55 = vector.broadcast %54 : vector<8x8x1xi32> to vector<8x8x128xi32>
    %56 = arith.select %35, %55, %53 : vector<8x8x128xi1>, vector<8x8x128xi32>
    %57 = vector.shape_cast %22 : vector<8x8x128xf32> to vector<1x8x8x128xf32>
    %c0_12 = arith.constant 0 : index
    %c0_13 = arith.constant 0 : index
    %c0_14 = arith.constant 0 : index
    %c0_15 = arith.constant 0 : index
    %58 = vector.load %arg5[%c0_12, %c0_13, %c0_14, %c0_15] : memref<1x8x8x128xf32, #tpu.memory_space<vmem>>, vector<1x8x8x128xf32>
    tpu.vector_store %arg5[%c0_12, %c0_13, %c0_14, %c0_15], %57 {strides = array<i32>} : memref<1x8x8x128xf32, #tpu.memory_space<vmem>>, vector<1x8x8x128xf32>,
    %59 = vector.shape_cast %56 : vector<8x8x128xi32> to vector<1x8x8x128xi32>
    %c0_16 = arith.constant 0 : index
    %c0_17 = arith.constant 0 : index
    %c0_18 = arith.constant 0 : index
    %c0_19 = arith.constant 0 : index
    %60 = vector.load %arg6[%c0_16, %c0_17, %c0_18, %c0_19] : memref<1x8x8x128xi32, #tpu.memory_space<vmem>>, vector<1x8x8x128xi32>
    tpu.vector_store %arg6[%c0_16, %c0_17, %c0_18, %c0_19], %59 {strides = array<i32>} : memref<1x8x8x128xi32, #tpu.memory_space<vmem>>, vector<1x8x8x128xi32>,
    return
  }
  func.func @transform_0(%arg0: i32, %arg1: i32) -> (i32, i32, i32, i32, i32) {
    %c0_i32 = arith.constant 0 : i32
    %c0_i32_0 = arith.constant 0 : i32
    %c0_i32_1 = arith.constant 0 : i32
    %c0_i32_2 = arith.constant 0 : i32
    return %arg0, %arg1, %c0_i32, %c0_i32_0, %c0_i32_1 : i32, i32, i32, i32, i32
  }
  func.func @transform_1(%arg0: i32, %arg1: i32) -> (i32, i32) {
    %c0_i32 = arith.constant 0 : i32
    %c0_i32_0 = arith.constant 0 : i32
    %c0_i32_1 = arith.constant 0 : i32
    return %c0_i32, %c0_i32_0 : i32, i32
  }
  func.func @transform_2(%arg0: i32, %arg1: i32) -> (i32, i32) {
    %c0_i32 = arith.constant 0 : i32
    %c0_i32_0 = arith.constant 0 : i32
    %c0_i32_1 = arith.constant 0 : i32
    return %c0_i32, %c0_i32_0 : i32, i32
  }
  func.func @transform_3(%arg0: i32, %arg1: i32) -> (i32, i32, i32, i32) {
    %c0_i32 = arith.constant 0 : i32
    %c0_i32_0 = arith.constant 0 : i32
    %c0_i32_1 = arith.constant 0 : i32
    return %arg0, %arg1, %c0_i32, %c0_i32_0 : i32, i32, i32, i32
  }
  func.func @transform_4(%arg0: i32, %arg1: i32) -> (i32, i32, i32, i32) {
    %c0_i32 = arith.constant 0 : i32
    %c0_i32_0 = arith.constant 0 : i32
    %c0_i32_1 = arith.constant 0 : i32
    return %arg0, %arg1, %c0_i32, %c0_i32_0 : i32, i32, i32, i32
  }
}

</mosaic_0001>

<bundles_post_ra>
// kernel: segnet_layer_encoder.7
= control target key start
LH: loop header
LB: loop body
LE: loop exit
PB: predicated region body
PF: predicated region fallthrough
CT: control target
= control target key end

     0   :  { %s793_s15 = smov 0   ;;  %s795_s16 = smov 0   ;;  %s1258_s0 = inlined_call_operand.vmem [shape: f32[2,8,2,8,256], index: 0, kind: input, shape index: {}]   ;;  %s1259_s1 = inlined_call_operand.vmem [shape: f32[1,256], index: 1, kind: input, shape index: {}]   ;;  %s1260_s2 = inlined_call_operand.vmem [shape: f32[1,256], index: 2, kind: input, shape index: {}]   ;;  %s1261_s3 = inlined_call_operand.vmem [shape: f32[2,8,8,128], index: 3, kind: output, shape index: {0}]   ;;  %s1262_s4 = inlined_call_operand.vmem [shape: s32[2,8,8,128], index: 4, kind: output, shape index: {1}]  }
   0x1   :  { %s797_s17 = smov 0  }
   0x2 LB: > { %s27_s18 = sadd.s32 1, %s762_s16  ;;  %p708_p0 = scmp.ge.s32.totalorder %s766_s17, 1  ;;  %s766_s17 = sphi %s797_s17, %s15_s17   ;;  %s762_s16 = sphi %s795_s16, %s1292_s16   ;;  %s758_s15 = sphi %s793_s15, %s1291_s15  }
   0x3   : > { %p29_p1 = scmp.ge.s32.totalorder %s27_s18, 2  ;;  %p189_p2 = scmp.lt.s32.totalorder %s766_s17, 3 }
   0x5   : > { %s1294_s18 = smov (%p29_p1, %s27_s18), 0  ;;  %p190_p3 = pnand %p708_p0, %p189_p2 }
   0x6   : > { %p234_p4 = scmp.lt.s32.totalorder (!%p190_p3), %s758_s15, 1  ;;  %v299_v0 = vlaneseq (!%p190_p3)  ;;  %v264_v2 = vld [vmem:[%s1259_s1] sm:$0x3] (!%p190_p3) }
   0x7   : > { %193 = sbr.rel (%p190_p3) target bundleno = 73 (0x49), region = 32  ;;  %v265_v3 = vld [vmem:[%s1260_s2] sm:$0x3] (!%p190_p3) }
   0x8   : > { %v300_v1 = vshrl.u32 (!%p190_p3), %v299_v0, 7 }
   0xa   : > { %v301_v4 = vsub.s32 (!%p190_p3), 0, %v300_v1  ;;  %v305_v5 = vsub.s32 (!%p190_p3), 1, %v300_v1  ;;  %v825_v6 = vmul.u32 (!%p190_p3), 2, %v300_v1 }
   0xc   : > { %v830_v10 = vrot.slane (!%p190_p3), %v264_v2, %v301_v4  ;;  %v832_v11 = vrot.slane (!%p190_p3), %v264_v2, %v305_v5  ;;  %v834_v12 = vrot.slane (!%p190_p3), %v265_v3, %v301_v4  ;;  %v836_v13 = vrot.slane (!%p190_p3), %v265_v3, %v305_v5 }
   0xd   : > { %v842_v17 = vadd.s32 (!%p190_p3), 1, %v825_v6  ;;  %v845_v18 = vadd.s32 (!%p190_p3), 16, %v825_v6 }
   0xe   : > { %s1296_s15 = smov (!%p234_p4, %s758_s15), 1 }
   0xf   : > { %s717_s23 = sshll.u32 %s1296_s15, 8  ;;  %s718_s27 = sshll.u32 %s1296_s15, 6 }
  0x10   : > { %s823_s26 = scalar_lea.vmem %s1258_s0, %s717_s23  ;;  %s903_s30 = scalar_lea.vmem %s1261_s3, %s718_s27 }
  0x11   : > { %v266_v7 = vld [vmem:[%s823_s26] sm:$0xff]  ;;  %v267_v8 = vld [vmem:[%s823_s26 + $0x8] sm:$0xff]  ;;  %v268_v9 = vld [vmem:[%s823_s26 + $0x10] sm:$0xff]  ;;  %s1107_s7 = scalar_lea.vmem %s1262_s4, %s718_s27 }
  0x12   : > { %v269_v14 = vld [vmem:[%s823_s26 + $0x18] sm:$0xff]  ;;  %v270_v15 = vld [vmem:[%s823_s26 + $0x20] sm:$0xff]  ;;  %v271_v16 = vld [vmem:[%s823_s26 + $0x28] sm:$0xff]  ;;  %v309_v19 = vmul.f32 %v830_v10, %v266_v7  ;;  %v310_v20 = vmul.f32 %v832_v11, %v267_v8  ;;  %v311_v21 = vmul.f32 %v830_v10, %v268_v9 }
  0x13   : > { %v312_v22 = vmul.f32 %v832_v11, %v269_v14  ;;  %v272_v23 = vld [vmem:[%s823_s26 + $0x30] sm:$0xff]  ;;  %v273_v24 = vld [vmem:[%s823_s26 + $0x38] sm:$0xff]  ;;  %v313_v25 = vmul.f32 %v830_v10, %v270_v15  ;;  %v314_v26 = vmul.f32 %v832_v11, %v271_v16  ;;  %v274_v37 = vld [vmem:[%s823_s26 + $0x40] sm:$0xff] }
  0x14   : > { %v315_v27 = vmul.f32 %v830_v10, %v272_v23  ;;  %v316_v28 = vmul.f32 %v832_v11, %v273_v24  ;;  %v858_v29 = vadd.f32 %v834_v12, %v309_v19  ;;  %v861_v30 = vadd.f32 %v836_v13, %v310_v20  ;;  %v275_v38 = vld [vmem:[%s823_s26 + $0x48] sm:$0xff]  ;;  %v276_v43 = vld [vmem:[%s823_s26 + $0x50] sm:$0xff]  ;;  %v277_v44 = vld [vmem:[%s823_s26 + $0x58] sm:$0xff] }
  0x15   : > { %v864_v31 = vadd.f32 %v834_v12, %v311_v21  ;;  %v355_v32 = vadd.f32 %v836_v13, %v312_v22  ;;  %v869_v33 = vadd.f32 %v834_v12, %v313_v25  ;;  %v872_v34 = vadd.f32 %v836_v13, %v314_v26  ;;  %v278_v49 = vld [vmem:[%s823_s26 + $0x60] sm:$0xff]  ;;  %v279_v54 = vld [vmem:[%s823_s26 + $0x68] sm:$0xff]  ;;  %v280_v59 = vld [vmem:[%s823_s26 + $0x70] sm:$0xff] }
  0x16   : > { %v875_v35 = vadd.f32 %v834_v12, %v315_v27  ;;  %v359_v36 = vadd.f32 %v836_v13, %v316_v28  ;;  %v384_v39 = vmax.f32 %v858_v29, 0.0  ;;  %v385_v40 = vmax.f32 %v861_v30, 0.0  ;;  %v281_v60 = vld [vmem:[%s823_s26 + $0x78] sm:$0xff]  ;;  %v282_v5 = vld [vmem:[%s823_s26 + $0x80] sm:$0xff]  ;;  %v283_v15 = vld [vmem:[%s823_s26 + $0x88] sm:$0xff] }
  0x17   : > { %v386_v41 = vmax.f32 %v864_v31, 0.0  ;;  %v387_v42 = vmax.f32 %v355_v32, 0.0  ;;  %v388_v45 = vmax.f32 %v869_v33, 0.0  ;;  %v389_v46 = vmax.f32 %v872_v34, 0.0  ;;  %v284_v22 = vld [vmem:[%s823_s26 + $0x90] sm:$0xff]  ;;  %v285_v23 = vld [vmem:[%s823_s26 + $0x98] sm:$0xff] }
  0x18   : > { %v390_v47 = vmax.f32 %v875_v35, 0.0  ;;  %v391_v48 = vmax.f32 %v359_v36, 0.0  ;;  %v416_v50 = vmax.f32 %v384_v39, %v385_v40  ;;  %v317_v52 = vmul.f32 %v830_v10, %v274_v37 }
  0x19   : > { %v424_v51 = vmax.f32 %v386_v41, %v387_v42  ;;  %v318_v53 = vmul.f32 %v832_v11, %v275_v38  ;;  %v417_v55 = vmax.f32 %v388_v45, %v389_v46  ;;  %v319_v57 = vmul.f32 %v830_v10, %v276_v43  ;;  %v286_v38 = vld [vmem:[%s823_s26 + $0xa0] sm:$0xff] }
  0x1a   : > { %v425_v56 = vmax.f32 %v390_v47, %v391_v48  ;;  %v320_v58 = vmul.f32 %v832_v11, %v277_v44  ;;  %v918_v62 = vadd.f32 %v834_v12, %v317_v52  ;;  %v321_v0 = vmul.f32 %v830_v10, %v278_v49  ;;  %v287_v49 = vld [vmem:[%s823_s26 + $0xa8] sm:$0xff] }
  0x1b   : > { %v915_v61 = vmax.f32 %v416_v50, %v424_v51  ;;  %v921_v63 = vadd.f32 %v836_v13, %v318_v53  ;;  %v927_v2 = vadd.f32 %v834_v12, %v319_v57  ;;  %v322_v4 = vmul.f32 %v832_v11, %v279_v54  ;;  %v288_v50 = vld [vmem:[%s823_s26 + $0xb0] sm:$0xff] }
  0x1c   : > { %v924_v1 = vmax.f32 %v417_v55, %v425_v56  ;;  %v363_v3 = vadd.f32 %v836_v13, %v320_v58  ;;  %v392_v7 = vmax.f32 %v918_v62, 0.0  ;;  %v323_v9 = vmul.f32 %v830_v10, %v280_v59  ;;  %v289_v55 = vld [vmem:[%s823_s26 + $0xb8] sm:$0xff] }
  0x1d   : > { %548 = vst [vmem:[%s903_s30] sm:$0xff] %v915_v61  ;;  %v393_v8 = vmax.f32 %v921_v63, 0.0  ;;  %v324_v14 = vmul.f32 %v832_v11, %v281_v60  ;;  %v394_v16 = vmax.f32 %v927_v2, 0.0  ;;  %v943_v20 = vadd.f32 %v834_v12, %v321_v0 }
  0x1e   : > { %549 = vst [vmem:[%s903_s30 + $0x8] sm:$0xff] %v924_v1  ;;  %v395_v19 = vmax.f32 %v363_v3, 0.0  ;;  %v946_v21 = vadd.f32 %v836_v13, %v322_v4  ;;  %v955_v25 = vadd.f32 %v834_v12, %v323_v9  ;;  %v325_v27 = vmul.f32 %v830_v10, %v282_v5  ;;  %v290_v5 = vld [vmem:[%s823_s26 + $0xc0] sm:$0xff]  ;;  %v291_v9 = vld [vmem:[%s823_s26 + $0xc8] sm:$0xff] }
  0x1f   : > { %v418_v24 = vmax.f32 %v392_v7, %v393_v8  ;;  %v367_v26 = vadd.f32 %v836_v13, %v324_v14  ;;  %v396_v32 = vmax.f32 %v943_v20, 0.0  ;;  %v326_v37 = vmul.f32 %v832_v11, %v283_v15 }
  0x20   : > { %v426_v28 = vmax.f32 %v394_v16, %v395_v19  ;;  %v397_v36 = vmax.f32 %v946_v21, 0.0  ;;  %v398_v42 = vmax.f32 %v955_v25, 0.0  ;;  %v327_v44 = vmul.f32 %v830_v10, %v284_v22 }
  0x21   : > { %v399_v43 = vmax.f32 %v367_v26, 0.0  ;;  %v328_v48 = vmul.f32 %v832_v11, %v285_v23  ;;  %v977_v53 = vadd.f32 %v834_v12, %v325_v27  ;;  %v980_v54 = vadd.f32 %v836_v13, %v326_v37  ;;  %v292_v23 = vld [vmem:[%s823_s26 + $0xd0] sm:$0xff]  ;;  %v293_v37 = vld [vmem:[%s823_s26 + $0xd8] sm:$0xff] }
  0x22   : > { %v970_v51 = vmax.f32 %v418_v24, %v426_v28  ;;  %v419_v52 = vmax.f32 %v396_v32, %v397_v36  ;;  %v986_v57 = vadd.f32 %v834_v12, %v327_v44  ;;  %v329_v59 = vmul.f32 %v830_v10, %v286_v38 }
  0x23   : > { %v427_v56 = vmax.f32 %v398_v42, %v399_v43  ;;  %v371_v58 = vadd.f32 %v836_v13, %v328_v48  ;;  %v400_v60 = vmax.f32 %v977_v53, 0.0  ;;  %v1263_v0 = vmax.f32 %v980_v54, 0.0 }
  0x24   : > { %550 = vst [vmem:[%s903_s30 + $0x10] sm:$0xff] %v970_v51  ;;  %v330_v3 = vmul.f32 %v832_v11, %v287_v49  ;;  %v331_v4 = vmul.f32 %v830_v10, %v288_v50  ;;  %v1266_v15 = vmax.f32 %v986_v57, 0.0  ;;  %v332_v22 = vmul.f32 %v832_v11, %v289_v55  ;;  %v294_v49 = vld [vmem:[%s823_s26 + $0xe0] sm:$0xff] }
  0x25   : > { %v998_v14 = vmax.f32 %v419_v52, %v427_v56  ;;  %v403_v19 = vmax.f32 %v371_v58, 0.0  ;;  %v420_v24 = vmax.f32 %v400_v60, %v1263_v0  ;;  %v1008_v26 = vadd.f32 %v834_v12, %v329_v59  ;;  %v295_v58 = vld [vmem:[%s823_s26 + $0xe8] sm:$0xff] }
  0x26   : > { %v1011_v27 = vadd.f32 %v836_v13, %v330_v3  ;;  %v1014_v28 = vadd.f32 %v834_v12, %v331_v4  ;;  %v375_v43 = vadd.f32 %v836_v13, %v332_v22  ;;  %v333_v44 = vmul.f32 %v830_v10, %v290_v5 }
  0x27   : > { %551 = vst [vmem:[%s903_s30 + $0x18] sm:$0xff] %v998_v14  ;;  %v428_v38 = vmax.f32 %v1266_v15, %v403_v19  ;;  %v334_v48 = vmul.f32 %v832_v11, %v291_v9  ;;  %v1264_v50 = vmax.f32 %v1008_v26, 0.0  ;;  %v335_v56 = vmul.f32 %v830_v10, %v292_v23  ;;  %v296_v9 = vld [vmem:[%s823_s26 + $0xf0] sm:$0xff]  ;;  %v297_v19 = vld [vmem:[%s823_s26 + $0xf8] sm:$0xff] }
  0x28   : > { %v1265_v52 = vmax.f32 %v1011_v27, 0.0  ;;  %v1267_v55 = vmax.f32 %v1014_v28, 0.0  ;;  %v407_v3 = vmax.f32 %v375_v43, 0.0  ;;  %v336_v4 = vmul.f32 %v832_v11, %v293_v37 }
  0x29   : > { %v1030_v59 = vmax.f32 %v420_v24, %v428_v38  ;;  %v1034_v5 = vadd.f32 %v834_v12, %v333_v44  ;;  %v1043_v0 = vadd.f32 %v836_v13, %v334_v48  ;;  %v1046_v23 = vadd.f32 %v834_v12, %v335_v56 }
  0x2a   : > { %v421_v22 = vmax.f32 %v1264_v50, %v1265_v52  ;;  %v337_v24 = vmul.f32 %v830_v10, %v294_v49  ;;  %v429_v37 = vmax.f32 %v1267_v55, %v407_v3  ;;  %v379_v38 = vadd.f32 %v836_v13, %v336_v4 }
  0x2b   : > { %552 = vst [vmem:[%s903_s30 + $0x20] sm:$0xff] %v1030_v59  ;;  %v408_v43 = vmax.f32 %v1034_v5, 0.0  ;;  %v338_v44 = vmul.f32 %v832_v11, %v295_v58  ;;  %v409_v48 = vmax.f32 %v1043_v0, 0.0  ;;  %v410_v50 = vmax.f32 %v1046_v23, 0.0 }
  0x2c   : > { %v339_v56 = vmul.f32 %v830_v10, %v296_v9  ;;  %v340_v49 = vmul.f32 %v832_v11, %v297_v19  ;;  %v1060_v52 = vmax.f32 %v421_v22, %v429_v37  ;;  %v411_v15 = vmax.f32 %v379_v38, 0.0 }
  0x2d   : > { %v1063_v3 = vadd.f32 %v834_v12, %v337_v24  ;;  %v1066_v4 = vadd.f32 %v836_v13, %v338_v44  ;;  %v422_v58 = vmax.f32 %v408_v43, %v409_v48  ;;  %v469_v11 = vadd.s32 32, %v825_v6 }
  0x2e   : > { %v1073_v55 = vadd.f32 %v834_v12, %v339_v56  ;;  %v383_v10 = vadd.f32 %v836_v13, %v340_v49  ;;  %553 = vst [vmem:[%s903_s30 + $0x28] sm:$0xff] %v1060_v52  ;;  %v430_v9 = vmax.f32 %v410_v50, %v411_v15  ;;  %vm484_vm0 = vcmp.eq.f32.partialorder %v385_v40, %v915_v61 }
  0x2f   : > { %v412_v19 = vmax.f32 %v1063_v3, 0.0  ;;  %v413_v22 = vmax.f32 %v1066_v4, 0.0  ;;  %vm500_vm1 = vcmp.eq.f32.partialorder %v386_v41, %v915_v61  ;;  %v516_v13 = vadd.s32 1, %v845_v18 }
  0x30   : > { %v414_v12 = vmax.f32 %v1073_v55, 0.0  ;;  %v415_v24 = vmax.f32 %v383_v10, 0.0  ;;  %v1091_v37 = vmax.f32 %v422_v58, %v430_v9  ;;  %vm476_vm2 = vcmp.eq.f32.partialorder %v384_v39, %v915_v61 }
  0x31   : > { %v423_v15 = vmax.f32 %v412_v19, %v413_v22  ;;  %v524_v31 = vsel %vm500_vm1, %v845_v18, %v516_v13  ;;  %vm1116_vm3 = vcmp.eq.f32.partialorder %v388_v45, %v924_v1  ;;  %v509_v39 = vadd.s32 16, %v469_v11 }
  0x32   : > { %v431_v30 = vmax.f32 %v414_v12, %v415_v24  ;;  %554 = vst [vmem:[%s903_s30 + $0x30] sm:$0xff] %v1091_v37  ;;  %v532_v40 = vsel %vm484_vm0, %v842_v17, %v524_v31  ;;  %v470_v41 = vadd.s32 64, %v825_v6  ;;  %v493_v44 = vadd.s32 1, %v469_v11 }
  0x33   : > { %v540_v38 = vsel %vm476_vm2, %v825_v6, %v532_v40  ;;  %vm1127_vm4 = vcmp.eq.f32.partialorder %v390_v47, %v924_v1  ;;  %vm485_vm5 = vcmp.eq.f32.partialorder %v389_v46, %v924_v1  ;;  %v517_v18 = vadd.s32 1, %v509_v39 }
  0x34   : > { %v1121_v61 = vmax.f32 %v423_v15, %v431_v30  ;;  %556 = vst [vmem:[%s1107_s7] sm:$0xff] %v540_v38  ;;  %v510_v33 = vadd.s32 16, %v470_v41  ;;  %v471_v45 = vadd.s32 96, %v825_v6  ;;  %vm1141_vm6 = vcmp.eq.f32.partialorder %v392_v7, %v970_v51 }
  0x35   : > { %v494_v47 = vadd.s32 1, %v470_v41  ;;  %vm1148_vm7 = vcmp.eq.f32.partialorder %v394_v16, %v970_v51  ;;  %v472_v46 = vadd.s32 128, %v825_v6  ;;  %v525_v1 = vsel %vm1127_vm4, %v509_v39, %v517_v18 }
  0x36   : > { %555 = vst [vmem:[%s903_s30 + $0x38] sm:$0xff] %v1121_v61  ;;  %vm486_vm8 = vcmp.eq.f32.partialorder %v393_v8, %v970_v51  ;;  %v518_v62 = vadd.s32 1, %v510_v33  ;;  %v511_v7 = vadd.s32 16, %v471_v45  ;;  %v533_v56 = vsel %vm485_vm5, %v493_v44, %v525_v1 }
  0x37   : > { %vm1161_vm9 = vcmp.eq.f32.partialorder %v396_v32, %v998_v14  ;;  %v495_v16 = vadd.s32 1, %v471_v45  ;;  %vm1168_vm10 = vcmp.eq.f32.partialorder %v398_v42, %v998_v14  ;;  %v541_v63 = vsel %vm1116_vm3, %v469_v11, %v533_v56 }
  0x38   : > { %v526_v8 = vsel %vm1148_vm7, %v510_v33, %v518_v62  ;;  %vm487_vm11 = vcmp.eq.f32.partialorder %v397_v36, %v998_v14  ;;  %v519_v20 = vadd.s32 1, %v511_v7  ;;  %557 = vst [vmem:[%s1107_s7 + $0x8] sm:$0xff] %v541_v63  ;;  %vm1183_vm12 = vcmp.eq.f32.partialorder %v400_v60, %v1030_v59 }
  0x39   : > { %v534_v32 = vsel %vm486_vm8, %v494_v47, %v526_v8  ;;  %v512_v42 = vadd.s32 16, %v472_v46  ;;  %v473_v51 = vadd.s32 160, %v825_v6  ;;  %v496_v36 = vadd.s32 1, %v472_v46 }
  0x3a   : > { %v542_v58 = vsel %vm1141_vm6, %v470_v41, %v534_v32  ;;  %v527_v21 = vsel %vm1168_vm10, %v511_v7, %v519_v20  ;;  %v1282_v14 = vmax.f32 %v986_v57, 0.0  ;;  %v1285_v10 = vmax.f32 %v980_v54, 0.0 }
  0x3b   : > { %558 = vst [vmem:[%s1107_s7 + $0x10] sm:$0xff] %v542_v58  ;;  %v535_v60 = vsel %vm487_vm11, %v495_v16, %v527_v21  ;;  %v520_v11 = vadd.s32 1, %v512_v42  ;;  %v513_v9 = vadd.s32 16, %v473_v51  ;;  %v497_v13 = vadd.s32 1, %v473_v51 }
  0x3c   : > { %vm1195_vm13 = vcmp.eq.f32.partialorder %v1282_v14, %v1030_v59  ;;  %vm488_vm14 = vcmp.eq.f32.partialorder %v1285_v10, %v1030_v59  ;;  %v543_v24 = vsel %vm1161_vm9, %v471_v45, %v535_v60  ;;  %v1286_v57 = vmax.f32 %v1014_v28, 0.0 }
  0x3d   : > { %v474_v30 = vadd.s32 192, %v825_v6  ;;  %559 = vst [vmem:[%s1107_s7 + $0x18] sm:$0xff] %v543_v24  ;;  %v528_v54 = vsel %vm1195_vm13, %v512_v42, %v520_v11  ;;  %v1289_v59 = vmax.f32 %v1011_v27, 0.0  ;;  %v521_v31 = vadd.s32 1, %v513_v9 }
  0x3e   : > { %vm1208_vm15 = vcmp.eq.f32.partialorder %v1286_v57, %v1060_v52  ;;  %v475_v40 = vadd.s32 224, %v825_v6  ;;  %v536_v29 = vsel %vm488_vm14, %v496_v36, %v528_v54  ;;  %v1290_v28 = vmax.f32 %v1008_v26, 0.0 }
  0x3f   : > { %vm489_vm0 = vcmp.eq.f32.partialorder %v1289_v59, %v1060_v52  ;;  %v514_v39 = vadd.s32 16, %v474_v30  ;;  %v544_v41 = vsel %vm1183_vm12, %v472_v46, %v536_v29  ;;  %v529_v38 = vsel %vm1208_vm15, %v513_v9, %v521_v31 }
  0x40   : > { %vm481_vm1 = vcmp.eq.f32.partialorder %v1290_v28, %v1060_v52  ;;  %v498_v44 = vadd.s32 1, %v474_v30  ;;  %vm506_vm2 = vcmp.eq.f32.partialorder %v410_v50, %v1091_v37  ;;  %560 = vst [vmem:[%s1107_s7 + $0x20] sm:$0xff] %v544_v41  ;;  %v537_v6 = vsel %vm489_vm0, %v497_v13, %v529_v38 }
  0x41   : > { %vm490_vm3 = vcmp.eq.f32.partialorder %v409_v48, %v1091_v37  ;;  %v522_v26 = vadd.s32 1, %v514_v39  ;;  %v515_v27 = vadd.s32 16, %v475_v40  ;;  %v545_v52 = vsel %vm481_vm1, %v473_v51, %v537_v6 }
  0x42   : > { %vm482_vm4 = vcmp.eq.f32.partialorder %v408_v43, %v1091_v37  ;;  %v499_v17 = vadd.s32 1, %v475_v40  ;;  %vm507_vm5 = vcmp.eq.f32.partialorder %v414_v12, %v1121_v61  ;;  %561 = vst [vmem:[%s1107_s7 + $0x28] sm:$0xff] %v545_v52  ;;  %vm491_vm6 = vcmp.eq.f32.partialorder %v413_v22, %v1121_v61 }
  0x43   : > { %v530_v50 = vsel %vm506_vm2, %v514_v39, %v522_v26  ;;  %v523_v0 = vadd.s32 1, %v515_v27  ;;  %vm483_vm7 = vcmp.eq.f32.partialorder %v412_v19, %v1121_v61 }
  0x44   : > { %v538_v23 = vsel %vm490_vm3, %v498_v44, %v530_v50 }
  0x45   : > { %v546_v48 = vsel %vm482_vm4, %v474_v30, %v538_v23  ;;  %v531_v5 = vsel %vm507_vm5, %v515_v27, %v523_v0 }
  0x46   : > { %562 = vst [vmem:[%s1107_s7 + $0x30] sm:$0xff] %v546_v48  ;;  %v539_v43 = vsel %vm491_vm6, %v499_v17, %v531_v5 }
  0x47   : > { %v547_v37 = vsel %vm483_vm7, %v475_v40, %v539_v43 }
  0x48   : > { %563 = vst [vmem:[%s1107_s7 + $0x38] sm:$0xff] %v547_v37 }
  0x49 PF: > { %s15_s17 = sadd.s32 1, %s766_s17   ;;  %s1291_s15 = smov %s762_s16 }
  0x4a   : > { %p12_p5 = scmp.ge.s32.totalorder %s15_s17, 4   ;;  %s1292_s16 = smov %s1294_s18 }
  0x4c   :  { %14 = sbr.rel (!%p12_p5) target bundleno = 2 (0x2), region = 74 }

// kernel: segnet_layer_encoder.4
= control target key start
LH: loop header
LB: loop body
LE: loop exit
PB: predicated region body
PF: predicated region fallthrough
CT: control target
= control target key end

     0   :  { %s3459_s24 = smov 0   ;;  %s3461_s25 = smov 0   ;;  %s5232_s0 = inlined_call_operand.vmem [shape: f32[2,16,16,128], index: 0, kind: input, shape index: {}, may-alias: {0,1,2}]   ;;  %s5233_s1 = inlined_call_operand.vmem [shape: f32[2,16,16,128], index: 1, kind: input, shape index: {}, may-alias: {0,1,2}]   ;;  %s5234_s2 = inlined_call_operand.vmem [shape: f32[2,16,16,128], index: 2, kind: input, shape index: {}, may-alias: {0,1,2}]   ;;  %s5235_s3 = inlined_call_operand.vmem [shape: f32[3,384,128], index: 3, kind: input, shape index: {}]   ;;  %s5236_s4 = inlined_call_operand.vmem [shape: f32[1,128], index: 4, kind: input, shape index: {}]   ;;  %s5237_s5 = inlined_call_operand.vmem [shape: f32[1,128], index: 5, kind: input, shape index: {}]   ;;  %s5238_s6 = inlined_call_operand.vmem [shape: f32[2,16,16,128], index: 6, kind: output, shape index: {0}]   ;;  %s5239_s7 = inlined_call_operand.vmem [shape: f32[2,1,2,128], index: 7, kind: output, shape index: {1}]  }
   0x1   :  { %s3463_s26 = smov 0  }
   0x2 LB: > { %s30_s4 = sadd.s32 1, %s3412_s25  ;;  %p2601_p0 = scmp.ge.s32.totalorder %s3416_s26, 1  ;;  %s3416_s26 = sphi %s3463_s26, %s18_s26   ;;  %s3412_s25 = sphi %s3461_s25, %s5387_s25   ;;  %s3408_s24 = sphi %s3459_s24, %s5386_s24  }
   0x3   : > { %p32_p1 = scmp.ge.s32.totalorder %s30_s4, 2  ;;  %p328_p2 = scmp.lt.s32.totalorder %s3416_s26, 3 }
   0x5   : > { %s5389_s4 = smov (%p32_p1, %s30_s4), 0  ;;  %p329_p3 = pnand %p2601_p0, %p328_p2 }
   0x7   : > { %332 = sbr.rel (%p329_p3) target bundleno = 600 (0x258), region = 44 }
   0xe   : > { %v2611_v0 = vld [vmem:[%s5235_s3 + $0x180] sm:$0xff]  ;;  %v2612_v1 = vld [vmem:[%s5235_s3 + $0x188] sm:$0xff]  ;;  %p404_p4 = scmp.lt.s32.totalorder %s3408_s24, 1  ;;  %v512_v3 = vlaneseq  ;;  %v5240_v4 = vmov 0.0|0.0   ;;  %v2613_v7 = vld [vmem:[%s5235_s3 + $0x190] sm:$0xff]  ;;  %vm2415_vm4 = vcmask 1040384  }
   0xf   : > { %v2643_v2 = vld [vmem:[%s5235_s3 + $0x280] sm:$0xff]  ;;  %3099 = vmatprep.subr.bf16.mxu0 %v5240_v4  ;;  %v3100_v5 = vpack.c.bf16 %v2612_v1, %v2611_v0  ;;  %v2644_v6 = vld [vmem:[%s5235_s3 + $0x288] sm:$0xff]  ;;  %v2614_v8 = vld [vmem:[%s5235_s3 + $0x198] sm:$0xff] }
  0x10   : > { %v3147_v9 = vpack.c.bf16 %v2644_v6, %v2643_v2  ;;  %v2645_v10 = vld [vmem:[%s5235_s3 + $0x290] sm:$0xff]  ;;  %v2646_v11 = vld [vmem:[%s5235_s3 + $0x298] sm:$0xff]  ;;  %s5391_s24 = smov (!%p404_p4, %s3408_s24), 1  ;;  %v3103_v12 = vpack.c.bf16 %v2614_v8, %v2613_v7  ;;  %v2647_v14 = vld [vmem:[%s5235_s3 + $0x2a0] sm:$0xff]  ;;  %v3520_v18 = vshrl.u32 %v512_v3, 7 }
  0x11   : > { %3101 = vmatpush1.bf16.msra.mxu0 %v3100_v5  ;;  %v3151_v13 = vpack.c.bf16 %v2646_v11, %v2645_v10  ;;  %v2648_v15 = vld [vmem:[%s5235_s3 + $0x2a8] sm:$0xff]  ;;  %v2615_v16 = vld [vmem:[%s5235_s3 + $0x1a0] sm:$0xff]  ;;  %s3518_s29 = sshll.u32 %s5391_s24, 8  ;;  %v2649_v21 = vld [vmem:[%s5235_s3 + $0x2b0] sm:$0xff] }
  0x12   : > { %3148 = vmatprep.subr.bf16.mxu1 %v3147_v9  ;;  %3102 = vmatprep.subr.bf16.mxu0 %v5240_v4  ;;  %v2616_v17 = vld [vmem:[%s5235_s3 + $0x1a8] sm:$0xff]  ;;  %v3155_v19 = vpack.c.bf16 %v2648_v15, %v2647_v14  ;;  %v2650_v22 = vld [vmem:[%s5235_s3 + $0x2b8] sm:$0xff]  ;;  %s3532_s13 = scalar_lea.vmem %s5232_s0, %s3518_s29  ;;  %v2617_v23 = vld [vmem:[%s5235_s3 + $0x1b0] sm:$0xff]  ;;  %vm515_vm0 = vcmp.gt.s32.totalorder %v3520_v18, 0  ;;  %vm688_vm1 = vcmp.lt.s32.totalorder %v3520_v18, 7  ;;  %s426_s17 = scalar_lea.vmem %s5233_s1, %s3518_s29  ;;  %vm623_vm3 = vcmp.lt.s32.totalorder %v3520_v18, 1 }
  0x13   : > { %3150 = vmatpush3.bf16.msra.mxu1 %v3147_v9  ;;  %v3106_v20 = vpack.c.bf16 %v2616_v17, %v2615_v16  ;;  %v2618_v24 = vld [vmem:[%s5235_s3 + $0x1b8] sm:$0xff]  ;;  %v3159_v25 = vpack.c.bf16 %v2650_v22, %v2649_v21  ;;  %v3543_v26 = vld [vmem:[%s3532_s13] sm:$0xff]  ;;  %v2652_v29 = vld [vmem:[%s5235_s3 + $0x2c8] sm:$0xff]  ;;  %s2712_s18 = sadd.s32 240, %s3518_s29  ;;  %s5147_s16 = scalar_lea.vmem %s5238_s6, %s3518_s29 }
  0x14   : > { %3152 = vmatprep.subr.bf16.mxu1 %v3151_v13  ;;  %v3109_v27 = vpack.c.bf16 %v2618_v24, %v2617_v23  ;;  %v2651_v28 = vld [vmem:[%s5235_s3 + $0x2c0] sm:$0xff]  ;;  %v3552_v30 = vld [vmem:[%s3532_s13 + $0x8] sm:$0xff]  ;;  %v561_v31 = vsel %vm515_vm0, %v3543_v26, 0.0  ;;  %896 = vmatprep.mubr.f32.mxu0 %v3543_v26  ;;  %v2653_v39 = vld [vmem:[%s5235_s3 + $0x2d0] sm:$0xff]  ;;  %s4684_s27 = scalar_lea.vmem %s5234_s2, %s2712_s18  ;;  %s2610_s29 = sshll.u32 %s5391_s24, 1 }
  0x15   : > { %3104 = vmatpush1.bf16.msra.mxu0 %v3103_v12  ;;  %v2619_v32 = vld [vmem:[%s5235_s3 + $0x1c0] sm:$0xff]  ;;  %v2620_v33 = vld [vmem:[%s5235_s3 + $0x1c8] sm:$0xff]  ;;  %v3566_v34 = vrot.slane %v561_v31, 1  ;;  %v659_v35 = vrot.slane %v3552_v30, 1  ;;  %v3163_v36 = vpack.c.bf16 %v2652_v29, %v2651_v28  ;;  %v2654_v40 = vld [vmem:[%s5235_s3 + $0x2d8] sm:$0xff]  ;;  %s465_s19 = scalar_lea.vmem %s5239_s7, %s2610_s29 }
  0x16   : > { %3105 = vmatprep.subr.bf16.mxu0 %v5240_v4  ;;  %v3112_v38 = vpack.c.bf16 %v2620_v33, %v2619_v32  ;;  %v2621_v41 = vld [vmem:[%s5235_s3 + $0x1d0] sm:$0xff]  ;;  %v2622_v42 = vld [vmem:[%s5235_s3 + $0x1d8] sm:$0xff]  ;;  %v3167_v43 = vpack.c.bf16 %v2654_v40, %v2653_v39  ;;  %v2655_v45 = vld [vmem:[%s5235_s3 + $0x2e0] sm:$0xff] }
  0x17   : > { %3154 = vmatpush3.bf16.msra.mxu1 %v3151_v13  ;;  %v3572_v37 = vsel %vm688_vm1, %v3566_v34, %v659_v35  ;;  %v3115_v44 = vpack.c.bf16 %v2622_v42, %v2621_v41  ;;  %v2656_v46 = vld [vmem:[%s5235_s3 + $0x2e8] sm:$0xff]  ;;  %v2623_v47 = vld [vmem:[%s5235_s3 + $0x1e0] sm:$0xff]  ;;  %v2657_v51 = vld [vmem:[%s5235_s3 + $0x2f0] sm:$0xff] }
  0x18   : > { %3156 = vmatprep.subr.bf16.mxu1 %v3155_v19  ;;  %5305 = vst [vmem:[#allocation2_spill] sm:$0xff] %v3572_v37  ;;  %2891 = vmatprep.mubr.f32.mxu1 %v3572_v37  ;;  %v2624_v48 = vld [vmem:[%s5235_s3 + $0x1e8] sm:$0xff]  ;;  %v3171_v49 = vpack.c.bf16 %v2656_v46, %v2655_v45  ;;  %v2658_v52 = vld [vmem:[%s5235_s3 + $0x2f8] sm:$0xff]  ;;  %v3608_v53 = vld [vmem:[%s3532_s13 + $0x10] sm:$0xff] }
  0x19   : > { %3107 = vmatpush1.bf16.msra.mxu0 %v3106_v20  ;;  %v3118_v50 = vpack.c.bf16 %v2624_v48, %v2623_v47  ;;  %v2625_v54 = vld [vmem:[%s5235_s3 + $0x1f0] sm:$0xff]  ;;  %v2626_v55 = vld [vmem:[%s5235_s3 + $0x1f8] sm:$0xff]  ;;  %v3175_v56 = vpack.c.bf16 %v2658_v52, %v2657_v51  ;;  %v563_v57 = vsel %vm515_vm0, %v3608_v53, 0.0  ;;  %v3624_v60 = vld [vmem:[%s3532_s13 + $0x20] sm:$0xff] }
  0x1a   : > { %3108 = vmatprep.subr.bf16.mxu0 %v5240_v4  ;;  %v3121_v58 = vpack.c.bf16 %v2626_v55, %v2625_v54  ;;  %v3621_v59 = vld [vmem:[%s3532_s13 + $0x18] sm:$0xff]  ;;  %v2627_v61 = vld [vmem:[%s5235_s3 + $0x200] sm:$0xff]  ;;  %v2628_v62 = vld [vmem:[%s5235_s3 + $0x208] sm:$0xff]  ;;  %v3633_v63 = vrot.slane %v563_v57, 1  ;;  %v565_v3 = vsel %vm515_vm0, %v3624_v60, 0.0 }
  0x1b   : > { %3158 = vmatpush3.bf16.msra.mxu1 %v3155_v19  ;;  %v721_v0 = vld [vmem:[%s5235_s3] sm:$0xff]  ;;  %v722_v1 = vld [vmem:[%s5235_s3 + $0x8] sm:$0xff]  ;;  %v661_v2 = vrot.slane %v3621_v59, 1  ;;  %v3124_v5 = vpack.c.bf16 %v2628_v62, %v2627_v61  ;;  %v3649_v7 = vld [vmem:[%s3532_s13 + $0x30] sm:$0xff]  ;;  %v662_v12 = vrot.slane %v565_v3, 1 }
  0x1c   : > { %3160 = vmatprep.subr.bf16.mxu1 %v3159_v25  ;;  %5306 = vst [vmem:[#allocation3_spill] sm:$0xff] %v3633_v63  ;;  %v3646_v6 = vld [vmem:[%s3532_s13 + $0x28] sm:$0xff]  ;;  %v2629_v8 = vld [vmem:[%s5235_s3 + $0x210] sm:$0xff]  ;;  %v2630_v9 = vld [vmem:[%s5235_s3 + $0x218] sm:$0xff]  ;;  %v3661_v10 = vsel %vm688_vm1, %v659_v35, %v3633_v63  ;;  %v3180_v11 = vpack.c.bf16 %v722_v1, %v721_v0  ;;  %v567_v17 = vsel %vm515_vm0, %v3649_v7, 0.0 }
  0x1d   : > { %3110 = vmatpush1.bf16.msra.mxu0 %v3109_v27  ;;  %5307 = vst [vmem:[#allocation4_spill] sm:$0xff] %v3661_v10  ;;  %v3667_v13 = vsel %vm688_vm1, %v3633_v63, %v661_v2  ;;  %v723_v14 = vld [vmem:[%s5235_s3 + $0x10] sm:$0xff]  ;;  %v724_v15 = vld [vmem:[%s5235_s3 + $0x18] sm:$0xff]  ;;  %v663_v16 = vrot.slane %v3646_v6, 1  ;;  %v3127_v19 = vpack.c.bf16 %v2630_v9, %v2629_v8  ;;  %v3683_v21 = vld [vmem:[%s3532_s13 + $0x40] sm:$0xff]  ;;  %v3696_v24 = vsel %vm688_vm1, %v661_v2, %v662_v12 }
  0x1e   : > { %3111 = vmatprep.subr.bf16.mxu0 %v5240_v4  ;;  %5308 = vst [vmem:[#allocation5_spill] sm:$0xff] %v3667_v13  ;;  %v3680_v20 = vld [vmem:[%s3532_s13 + $0x38] sm:$0xff]  ;;  %v2631_v22 = vld [vmem:[%s5235_s3 + $0x220] sm:$0xff]  ;;  %v2632_v23 = vld [vmem:[%s5235_s3 + $0x228] sm:$0xff]  ;;  %v664_v27 = vrot.slane %v567_v17, 1  ;;  %v569_v33 = vsel %vm515_vm0, %v3683_v21, 0.0 }
  0x1f   : > { %3162 = vmatpush3.bf16.msra.mxu1 %v3159_v25  ;;  %5309 = vst [vmem:[#allocation6_spill] sm:$0xff] %v3696_v24  ;;  %v3183_v25 = vpack.c.bf16 %v724_v15, %v723_v14  ;;  %v3701_v28 = vsel %vm688_vm1, %v662_v12, %v663_v16  ;;  %v725_v29 = vld [vmem:[%s5235_s3 + $0x20] sm:$0xff]  ;;  %v726_v31 = vld [vmem:[%s5235_s3 + $0x28] sm:$0xff]  ;;  %v665_v32 = vrot.slane %v3680_v20, 1  ;;  %v3130_v35 = vpack.c.bf16 %v2632_v23, %v2631_v22  ;;  %v2633_v39 = vld [vmem:[%s5235_s3 + $0x230] sm:$0xff] }
  0x20   : > { %3164 = vmatprep.subr.bf16.mxu1 %v3163_v36  ;;  %5310 = vst [vmem:[#allocation7_spill] sm:$0xff] %v3701_v28  ;;  %v2634_v40 = vld [vmem:[%s5235_s3 + $0x238] sm:$0xff]  ;;  %v3730_v41 = vsel %vm688_vm1, %v663_v16, %v664_v27  ;;  %v3186_v42 = vpack.c.bf16 %v726_v31, %v725_v29  ;;  %v727_v45 = vld [vmem:[%s5235_s3 + $0x30] sm:$0xff]  ;;  %v3751_v51 = vld [vmem:[%s3532_s13 + $0x60] sm:$0xff]  ;;  %v3801_v15 = vadd.s32 8, %v3520_v18 }
  0x21   : > { %3113 = vmatpush1.bf16.msra.mxu0 %v3112_v38  ;;  %v3717_v38 = vld [vmem:[%s3532_s13 + $0x50] sm:$0xff]  ;;  %5311 = vst [vmem:[#allocation8_spill] sm:$0xff] %v3730_v41  ;;  %v728_v46 = vld [vmem:[%s5235_s3 + $0x38] sm:$0xff]  ;;  %v2635_v52 = vld [vmem:[%s5235_s3 + $0x240] sm:$0xff]  ;;  %v573_v1 = vsel %vm515_vm0, %v3751_v51, 0.0 }
  0x22   : > { %3114 = vmatprep.subr.bf16.mxu0 %v5240_v4  ;;  %v571_v48 = vsel %vm515_vm0, %v3717_v38, 0.0  ;;  %v2636_v54 = vld [vmem:[%s5235_s3 + $0x248] sm:$0xff]  ;;  %v729_v61 = vld [vmem:[%s5235_s3 + $0x40] sm:$0xff]  ;;  %v2637_v8 = vld [vmem:[%s5235_s3 + $0x250] sm:$0xff]  ;;  %v670_v14 = vrot.slane %v573_v1, 1  ;;  %vm518_vm2 = vcmp.lt.s32.totalorder %v3801_v15, 15 }
  0x23   : > { %3166 = vmatpush3.bf16.msra.mxu1 %v3163_v36  ;;  %v3714_v36 = vld [vmem:[%s3532_s13 + $0x48] sm:$0xff]  ;;  %v668_v57 = vrot.slane %v571_v48, 1  ;;  %v3136_v2 = vpack.c.bf16 %v2636_v54, %v2635_v52  ;;  %v2638_v9 = vld [vmem:[%s5235_s3 + $0x258] sm:$0xff]  ;;  %v731_v17 = vld [vmem:[%s5235_s3 + $0x50] sm:$0xff] }
  0x24   : > { %3168 = vmatprep.subr.bf16.mxu1 %v3167_v43  ;;  %v667_v47 = vrot.slane %v3714_v36, 1  ;;  %v730_v62 = vld [vmem:[%s5235_s3 + $0x48] sm:$0xff]  ;;  %v3822_v29 = vld [vmem:[%s3532_s13 + $0x80] sm:$0xff]  ;;  %v3860_v52 = vld [vmem:[%s3532_s13 + $0x90] sm:$0xff] }
  0x25   : > { %3116 = vmatpush1.bf16.msra.mxu0 %v3115_v44  ;;  %v3735_v44 = vsel %vm688_vm1, %v664_v27, %v665_v32  ;;  %v3782_v3 = vld [vmem:[%s3532_s13 + $0x68] sm:$0xff]  ;;  %v3192_v12 = vpack.c.bf16 %v730_v62, %v729_v61  ;;  %v3819_v27 = vld [vmem:[%s3532_s13 + $0x78] sm:$0xff]  ;;  %v2639_v31 = vld [vmem:[%s5235_s3 + $0x260] sm:$0xff] }
  0x26   : > { %3117 = vmatprep.subr.bf16.mxu0 %v5240_v4  ;;  %5312 = vst [vmem:[#allocation9_spill] sm:$0xff] %v3735_v44  ;;  %v671_v22 = vrot.slane %v3782_v3, 1  ;;  %v2641_v54 = vld [vmem:[%s5235_s3 + $0x270] sm:$0xff]  ;;  %v753_v1 = vld [vmem:[%s5235_s3 + $0x100] sm:$0xff] }
  0x27   : > { %3170 = vmatpush3.bf16.msra.mxu1 %v3167_v43  ;;  %v666_v43 = vrot.slane %v569_v33, 1  ;;  %v3961_v63 = vld [vmem:[%s3532_s13 + $0xb0] sm:$0xff] }
  0x28   : > { %3172 = vmatprep.subr.bf16.mxu1 %v3171_v49  ;;  %v3364_v15 = vld [vmem:[%s3532_s13 + $0x10] sm:$0xff] }
  0x29   : > { %3119 = vmatpush1.bf16.msra.mxu0 %v3118_v50  ;;  %v3748_v50 = vld [vmem:[%s3532_s13 + $0x58] sm:$0xff]  ;;  %v3764_v55 = vsel %vm688_vm1, %v665_v32, %v666_v43  ;;  %v2640_v32 = vld [vmem:[%s5235_s3 + $0x268] sm:$0xff] }
  0x2a   : > { %3120 = vmatprep.subr.bf16.mxu0 %v5240_v4  ;;  %5313 = vst [vmem:[#allocation10_spill] sm:$0xff] %v3764_v55  ;;  %v669_v0 = vrot.slane %v3748_v50, 1  ;;  %v3142_v48 = vpack.c.bf16 %v2640_v32, %v2639_v31  ;;  %v3912_v31 = vld [vmem:[%s3532_s13 + $0xa0] sm:$0xff] }
  0x2b   : > { %3174 = vmatpush3.bf16.msra.mxu1 %v3171_v49  ;;  %v3133_v49 = vpack.c.bf16 %v2634_v40, %v2633_v39  ;;  %v3838_v40 = vld [vmem:[%s3532_s13 + $0xf8] sm:$0xff]  ;;  %v498_v32 = vld [vmem:[%s426_s17] sm:$0xff] }
  0x2c   : > { %3176 = vmatprep.subr.bf16.mxu1 %v3175_v56  ;;  %v3806_v16 = vsel %vm688_vm1, %v668_v57, %v669_v0  ;;  %v3835_v33 = vsel %vm688_vm1, %v669_v0, %v670_v14 }
  0x2d   : > { %3122 = vmatpush1.bf16.msra.mxu0 %v3121_v58  ;;  %v3769_v58 = vsel %vm688_vm1, %v666_v43, %v667_v47  ;;  %5316 = vst [vmem:[#allocation13_spill] sm:$0xff] %v3806_v16  ;;  %5317 = vst [vmem:[#allocation14_spill] sm:$0xff] %v3835_v33  ;;  %v733_v43 = vld [vmem:[%s5235_s3 + $0x60] sm:$0xff] }
  0x2e   : > { %3123 = vmatprep.subr.bf16.mxu0 %v5240_v4  ;;  %5314 = vst [vmem:[#allocation11_spill] sm:$0xff] %v3769_v58 }
  0x2f   : > { %3178 = vmatpush3.bf16.msra.mxu1 %v3175_v56  ;;  %v3189_v56 = vpack.c.bf16 %v728_v46, %v727_v45  ;;  %v734_v45 = vld [vmem:[%s5235_s3 + $0x68] sm:$0xff]  ;;  %v673_v46 = vrot.slane %v3819_v27, 1 }
  0x30   : > { %3179 = vmatprep.subr.bf16.mxu1 %v5240_v4  ;;  %v3198_v62 = vpack.c.bf16 %v734_v45, %v733_v43 }
  0x31   : > { %3125 = vmatpush1.bf16.msra.mxu0 %v3124_v5  ;;  %v3785_v5 = vld [vmem:[%s3532_s13 + $0x70] sm:$0xff] }
  0x32   : > { %2892 = vmatmul.mubr.f32.vlgmr.msra.gmra.mrb[0].mxu1 %v3661_v10  ;;  %3126 = vmatprep.subr.bf16.mxu0 %v5240_v4  ;;  %v575_v23 = vsel %vm515_vm0, %v3785_v5, 0.0  ;;  %v764_v10 = vld [vmem:[%s5235_s3 + $0x158] sm:$0xff] }
  0x33   : > { %3181 = vmatpush1.bf16.msra.mxu1 %v3180_v11  ;;  %2894 = vmatprep.mubr.f32.mxu1 %v3667_v13  ;;  %v3798_v11 = vsel %vm688_vm1, %v667_v47, %v668_v57  ;;  %v672_v39 = vrot.slane %v575_v23, 1  ;;  %v577_v47 = vsel %vm515_vm0, %v3822_v29, 0.0  ;;  %v770_v57 = vsel %vm518_vm2, %v3838_v40, 0.0 }
  0x34   : > { %3182 = vmatprep.subr.bf16.mxu1 %v5240_v4  ;;  %5315 = vst [vmem:[#allocation12_spill] sm:$0xff] %v3798_v11  ;;  %v674_v0 = vrot.slane %v577_v47, 1  ;;  %v3907_v23 = vrot.slane %v3543_v26, 7 }
  0x35   : > { %3128 = vmatpush1.bf16.msra.mxu0 %v3127_v19  ;;  %v732_v19 = vld [vmem:[%s5235_s3 + $0x58] sm:$0xff]  ;;  %v3880_v61 = vsel %vm688_vm1, %v671_v22, %v672_v39 }
  0x36   : > { %2895 = vmatmul.mubr.f32.gmra.mrb[2].mxu1 %v3696_v24  ;;  %3129 = vmatprep.subr.bf16.mxu0 %v5240_v4  ;;  %5319 = vst [vmem:[#allocation16_spill] sm:$0xff] %v3880_v61  ;;  %v3925_v45 = vsel %vm688_vm1, %v673_v46, %v674_v0 }
  0x37   : > { %3184 = vmatpush1.bf16.msra.mxu1 %v3183_v25  ;;  %2897 = vmatprep.mubr.f32.mxu1 %v3701_v28  ;;  %v3139_v25 = vpack.c.bf16 %v2638_v9, %v2637_v8  ;;  %v3891_v8 = vsel %vm688_vm1, %v672_v39, %v673_v46  ;;  %v735_v9 = vld [vmem:[%s5235_s3 + $0x70] sm:$0xff]  ;;  %v3920_v39 = vsel %vm518_vm2, %v3552_v30, 0.0  ;;  %5322 = vst [vmem:[#allocation19_spill] sm:$0xff] %v3925_v45  ;;  %v761_v28 = vld [vmem:[%s5235_s3 + $0x140] sm:$0xff] }
  0x38   : > { %3185 = vmatprep.subr.bf16.mxu1 %v5240_v4  ;;  %5320 = vst [vmem:[#allocation17_spill] sm:$0xff] %v3891_v8 }
  0x39   : > { %3131 = vmatpush1.bf16.msra.mxu0 %v3130_v35  ;;  %v3195_v35 = vpack.c.bf16 %v732_v19, %v731_v17  ;;  %v579_v17 = vsel %vm515_vm0, %v3860_v52, 0.0  ;;  %v3904_v19 = vld [vmem:[%s3532_s13 + $0x98] sm:$0xff] }
  0x3a   : > { %2898 = vmatmul.mubr.f32.gmra.mrb[4].mxu1 %v3730_v41  ;;  %3132 = vmatprep.subr.bf16.mxu0 %v5240_v4 }
  0x3b   : > { %3187 = vmatpush1.bf16.msra.mxu1 %v3186_v42  ;;  %2900 = vmatprep.mubr.f32.mxu1 %v3735_v44  ;;  %v3844_v42 = vsel %vm688_vm1, %v670_v14, %v671_v22 }
  0x3c   : > { %3188 = vmatprep.subr.bf16.mxu1 %v5240_v4  ;;  %5318 = vst [vmem:[#allocation15_spill] sm:$0xff] %v3844_v42 }
  0x3d   : > { %3134 = vmatpush1.bf16.msra.mxu0 %v3133_v49  ;;  %v3857_v49 = vld [vmem:[%s3532_s13 + $0x88] sm:$0xff] }
  0x3e   : > { %2901 = vmatmul.mubr.f32.gmra.mrb[6].mxu1 %v3764_v55  ;;  %3135 = vmatprep.subr.bf16.mxu0 %v5240_v4  ;;  %v675_v14 = vrot.slane %v3857_v49, 1 }
  0x3f   : > { %3190 = vmatpush1.bf16.msra.mxu1 %v3189_v56  ;;  %2903 = vmatprep.mubr.f32.mxu1 %v3769_v58  ;;  %v2642_v56 = vld [vmem:[%s5235_s3 + $0x278] sm:$0xff]  ;;  %v4027_v58 = vsel %vm518_vm2, %v3621_v59, 0.0 }
  0x40   : > { %3191 = vmatprep.subr.bf16.mxu1 %v5240_v4  ;;  %v3145_v22 = vpack.c.bf16 %v2642_v56, %v2641_v54  ;;  %v677_v54 = vrot.slane %v3904_v19, 1  ;;  %v755_v56 = vld [vmem:[%s5235_s3 + $0x110] sm:$0xff]  ;;  %v3937_v46 = vsel %vm688_vm1, %v674_v0, %v675_v14 }
  0x41   : > { %3137 = vmatpush1.bf16.msra.mxu0 %v3136_v2  ;;  %v754_v2 = vld [vmem:[%s5235_s3 + $0x108] sm:$0xff]  ;;  %5323 = vst [vmem:[#allocation20_spill] sm:$0xff] %v3937_v46 }
  0x42   : > { %2904 = vmatmul.mubr.f32.gmra.mrb[8].mxu1 %v3798_v11  ;;  %3138 = vmatprep.subr.bf16.mxu0 %v5240_v4  ;;  %v3227_v43 = vpack.c.bf16 %v754_v2, %v753_v1  ;;  %v738_v1 = vld [vmem:[%s5235_s3 + $0x88] sm:$0xff]  ;;  %v581_v2 = vsel %vm515_vm0, %v3912_v31, 0.0 }
  0x43   : > { %3193 = vmatpush1.bf16.msra.mxu1 %v3192_v12  ;;  %2906 = vmatprep.mubr.f32.mxu1 %v3806_v16  ;;  %v736_v12 = vld [vmem:[%s5235_s3 + $0x78] sm:$0xff] }
  0x44   : > { %3194 = vmatprep.subr.bf16.mxu1 %v5240_v4  ;;  %v3201_v47 = vpack.c.bf16 %v736_v12, %v735_v9  ;;  %v3948_v9 = vmul.f32 0.0, %v498_v32 }
  0x45   : > { %3140 = vmatpush1.bf16.msra.mxu0 %v3139_v25  ;;  %v3909_v25 = vrot.slane %v770_v57, 7  ;;  %v756_v57 = vld [vmem:[%s5235_s3 + $0x118] sm:$0xff] }
  0x46   : > { %2907 = vmatmul.mubr.f32.gmra.mrb[10].mxu1 %v3835_v33  ;;  %3141 = vmatprep.subr.bf16.mxu0 %v5240_v4  ;;  %v3967_v32 = vsel %vm515_vm0, %v3948_v9, 0.0  ;;  %v4015_v33 = vld [vmem:[%s3532_s13 + $0xc0] sm:$0xff] }
  0x47   : > { %3196 = vmatpush1.bf16.msra.mxu1 %v3195_v35  ;;  %2909 = vmatprep.mubr.f32.mxu1 %v3844_v42  ;;  %5321 = vst [vmem:[#allocation18_spill] sm:$0xff] %v3909_v25  ;;  %v499_v35 = vld [vmem:[%s426_s17 + $0x8] sm:$0xff]  ;;  %v777_v0 = vsel %vm623_vm3, %v3909_v25, %v3907_v23  ;;  %5324 = vst [vmem:[#allocation21_spill] sm:$0xff] %v3967_v32  ;;  %v4012_v42 = vld [vmem:[%s3532_s13 + $0xb8] sm:$0xff]  ;;  %v5330_v16 = vrot.slane %v3967_v32, 1 }
  0x48   : > { %3197 = vmatprep.subr.bf16.mxu1 %v5240_v4  ;;  %v3950_v12 = vmul.f32 0.0, %v499_v35  ;;  %v759_v32 = vld [vmem:[%s5235_s3 + $0x130] sm:$0xff] }
  0x49   : > { %3143 = vmatpush1.bf16.msra.mxu0 %v3142_v48  ;;  %v676_v48 = vrot.slane %v579_v17, 1  ;;  %v594_v17 = vrot.slane %v3920_v39, 7 }
  0x4a   : > { %2910 = vmatmul.mubr.f32.gmra.mrb[12].mxu1 %v3880_v61  ;;  %3144 = vmatprep.subr.bf16.mxu0 %v5240_v4  ;;  %v678_v61 = vrot.slane %v581_v2, 1 }
  0x4b   : > { %3199 = vmatpush1.bf16.msra.mxu1 %v3198_v62  ;;  %2912 = vmatprep.mubr.f32.mxu1 %v3891_v8  ;;  %v737_v62 = vld [vmem:[%s5235_s3 + $0x80] sm:$0xff]  ;;  %v3231_v8 = vpack.c.bf16 %v756_v57, %v755_v56  ;;  %v3973_v35 = vsel %vm688_vm1, %v675_v14, %v676_v48  ;;  %v758_v57 = vld [vmem:[%s5235_s3 + $0x128] sm:$0xff]  ;;  %v3985_v14 = vsel %vm688_vm1, %v676_v48, %v677_v54 }
  0x4c   : > { %3200 = vmatprep.subr.bf16.mxu1 %v5240_v4  ;;  %v3958_v4 = vld [vmem:[%s3532_s13 + $0xa8] sm:$0xff]  ;;  %5325 = vst [vmem:[#allocation22_spill] sm:$0xff] %v3973_v35  ;;  %v3204_v39 = vpack.c.bf16 %v738_v1, %v737_v62  ;;  %v757_v56 = vld [vmem:[%s5235_s3 + $0x120] sm:$0xff]  ;;  %5327 = vst [vmem:[#allocation23_spill] sm:$0xff] %v3985_v14  ;;  %v4006_v48 = vsel %vm623_vm3, %v3907_v23, %v594_v17 }
  0x4d   : > { %3146 = vmatpush1.bf16.msra.mxu0 %v3145_v22  ;;  %v657_v22 = vrot.slane %v3950_v12, 1  ;;  %v739_v62 = vld [vmem:[%s5235_s3 + $0x90] sm:$0xff]  ;;  %v740_v1 = vld [vmem:[%s5235_s3 + $0x98] sm:$0xff]  ;;  %v679_v2 = vrot.slane %v3958_v4, 1  ;;  %v3235_v55 = vpack.c.bf16 %v758_v57, %v757_v56  ;;  %v742_v56 = vld [vmem:[%s5235_s3 + $0xa8] sm:$0xff]  ;;  %v681_v57 = vrot.slane %v4012_v42, 1 }
  0x4e   : > { %2913 = vmatmul.mubr.f32.gmra.mrb[14].mxu1 %v3925_v45  ;;  %3228 = vmatprep.subr.bf16.mxu0 %v3227_v43  ;;  %v4009_v45 = vrot.slane %v3608_v53, 7 }
  0x4f   : > { %3202 = vmatpush1.bf16.msra.mxu1 %v3201_v47  ;;  %2915 = vmatprep.mubr.f32.mxu1 %v3937_v46  ;;  %v5326_v46 = vmov 0.0|0.0   ;;  %v4000_v47 = vsel %vm688_vm1, %v657_v22, %v3566_v34  ;;  %v4021_v11 = vsel %vm688_vm1, %v5330_v16, %v657_v22  ;;  %v3207_v16 = vpack.c.bf16 %v740_v1, %v739_v62 }
  0x50   : > { %897 = vmatmul.mubr.f32.vlgmr.msra.gmra.mrb[0].mxu0 %v777_v0  ;;  %3203 = vmatprep.subr.bf16.mxu1 %v5326_v46  ;;  %v583_v0 = vsel %vm515_vm0, %v3961_v63, 0.0  ;;  %5328 = vst [vmem:[#allocation24_spill] sm:$0xff] %v4000_v47  ;;  %5329 = vst [vmem:[#allocation25_spill] sm:$0xff] %v4009_v45  ;;  %v585_v62 = vsel %vm515_vm0, %v4015_v33, 0.0  ;;  %v596_v1 = vrot.slane %v4027_v58, 7 }
  0x51   : > { %901 = vmatprep.mubr.f32.mxu0 %v3552_v30  ;;  %3230 = vmatpush3.bf16.msra.mxu0 %v3227_v43  ;;  %5331 = vst [vmem:[#allocation26_spill] sm:$0xff] %v4021_v11  ;;  %v4032_v43 = vsel %vm688_vm1, %v677_v54, %v678_v61  ;;  %v680_v22 = vrot.slane %v583_v0, 1  ;;  %v741_v54 = vld [vmem:[%s5235_s3 + $0xa0] sm:$0xff]  ;;  %v4064_v0 = vld [vmem:[%s3532_s13 + $0xc8] sm:$0xff]  ;;  %v682_v58 = vrot.slane %v585_v62, 1  ;;  %v4105_v62 = vld [vmem:[%s3532_s13 + $0xd8] sm:$0xff] }
  0x52   : > { %2916 = vmatmul.mubr.f32.gmra.mrb[16].mxu1 %v3973_v35  ;;  %3232 = vmatprep.subr.bf16.mxu0 %v3231_v8  ;;  %5332 = vst [vmem:[#allocation27_spill] sm:$0xff] %v4032_v43  ;;  %v760_v35 = vld [vmem:[%s5235_s3 + $0x138] sm:$0xff] }
  0x53   : > { %3205 = vmatpush1.bf16.msra.mxu1 %v3204_v39  ;;  %2918 = vmatprep.mubr.f32.mxu1 %v3985_v14  ;;  %v4044_v39 = vsel %vm688_vm1, %v678_v61, %v679_v2  ;;  %v4060_v61 = vsel %vm623_vm3, %v594_v17, %v4009_v45  ;;  %v4067_v14 = vld [vmem:[%s3532_s13 + $0xd0] sm:$0xff]  ;;  %v3239_v44 = vpack.c.bf16 %v760_v35, %v759_v32 }
  0x54   : > { %902 = vmatmul.mubr.f32.gmra.mrb[2].mxu0 %v4006_v48  ;;  %3206 = vmatprep.subr.bf16.mxu1 %v5326_v46  ;;  %5333 = vst [vmem:[#allocation28_spill] sm:$0xff] %v4044_v39  ;;  %v4073_v41 = vsel %vm688_vm1, %v679_v2, %v680_v22  ;;  %v3210_v17 = vpack.c.bf16 %v742_v56, %v741_v54  ;;  %v743_v35 = vld [vmem:[%s5235_s3 + $0xb0] sm:$0xff]  ;;  %v744_v2 = vld [vmem:[%s5235_s3 + $0xb8] sm:$0xff]  ;;  %v587_v54 = vsel %vm515_vm0, %v4067_v14, 0.0  ;;  %v597_v56 = vrot.slane %v3624_v60, 7 }
  0x55   : > { %906 = vmatprep.mubr.f32.mxu0 %v3608_v53  ;;  %3234 = vmatpush3.bf16.msra.mxu0 %v3231_v8  ;;  %5334 = vst [vmem:[#allocation29_spill] sm:$0xff] %v4073_v41  ;;  %v762_v8 = vld [vmem:[%s5235_s3 + $0x148] sm:$0xff]  ;;  %v4085_v32 = vsel %vm688_vm1, %v680_v22, %v681_v57  ;;  %v4101_v22 = vsel %vm623_vm3, %v4009_v45, %v596_v1 }
  0x56   : > { %2919 = vmatmul.mubr.f32.gmra.mrb[18].mxu1 %v4032_v43  ;;  %3236 = vmatprep.subr.bf16.mxu0 %v3235_v55  ;;  %5335 = vst [vmem:[#allocation30_spill] sm:$0xff] %v4085_v32  ;;  %v4114_v43 = vsel %vm518_vm2, %v3646_v6, 0.0  ;;  %v3243_v24 = vpack.c.bf16 %v762_v8, %v761_v28  ;;  %v4119_v45 = vsel %vm688_vm1, %v681_v57, %v682_v58  ;;  %v745_v57 = vld [vmem:[%s5235_s3 + $0xc0] sm:$0xff]  ;;  %v685_v8 = vrot.slane %v4105_v62, 1 }
  0x57   : > { %3208 = vmatpush1.bf16.msra.mxu1 %v3207_v16  ;;  %2921 = vmatprep.mubr.f32.mxu1 %v4044_v39  ;;  %v683_v16 = vrot.slane %v4064_v0, 1  ;;  %v4108_v39 = vld [vmem:[%s3532_s13 + $0xe0] sm:$0xff]  ;;  %5336 = vst [vmem:[#allocation31_spill] sm:$0xff] %v4119_v45  ;;  %v3213_v13 = vpack.c.bf16 %v744_v2, %v743_v35  ;;  %v598_v2 = vrot.slane %v4114_v43, 7 }
  0x58   : > { %907 = vmatmul.mubr.f32.gmra.mrb[4].mxu0 %v4060_v61  ;;  %3209 = vmatprep.subr.bf16.mxu1 %v5326_v46  ;;  %v589_v35 = vsel %vm515_vm0, %v4108_v39, 0.0  ;;  %v765_v43 = vld [vmem:[%s5235_s3 + $0x160] sm:$0xff] }
  0x59   : > { %911 = vmatprep.mubr.f32.mxu0 %v3621_v59  ;;  %3238 = vmatpush3.bf16.msra.mxu0 %v3235_v55  ;;  %v684_v55 = vrot.slane %v587_v54, 1  ;;  %v4131_v28 = vsel %vm688_vm1, %v682_v58, %v683_v16  ;;  %v4146_v58 = vsel %vm623_vm3, %v596_v1, %v597_v56  ;;  %v4150_v54 = vld [vmem:[%s3532_s13 + $0xe8] sm:$0xff]  ;;  %v686_v11 = vrot.slane %v589_v35, 1 }
  0x5a   : > { %2922 = vmatmul.mubr.f32.gmra.mrb[20].mxu1 %v4073_v41  ;;  %3240 = vmatprep.subr.bf16.mxu0 %v3239_v44  ;;  %v763_v41 = vld [vmem:[%s5235_s3 + $0x150] sm:$0xff]  ;;  %5337 = vst [vmem:[#allocation32_spill] sm:$0xff] %v4131_v28  ;;  %v532_v35 = vsel %vm518_vm2, %v3680_v20, 0.0 }
  0x5b   : > { %3211 = vmatpush1.bf16.msra.mxu1 %v3210_v17  ;;  %2924 = vmatprep.mubr.f32.mxu1 %v4085_v32  ;;  %v746_v17 = vld [vmem:[%s5235_s3 + $0xc8] sm:$0xff]  ;;  %v4153_v32 = vld [vmem:[%s3532_s13 + $0xf0] sm:$0xff]  ;;  %v3247_v37 = vpack.c.bf16 %v764_v10, %v763_v41  ;;  %v4159_v47 = vsel %vm688_vm1, %v683_v16, %v684_v55  ;;  %v4171_v10 = vsel %vm688_vm1, %v684_v55, %v685_v8  ;;  %v748_v41 = vld [vmem:[%s5235_s3 + $0xd8] sm:$0xff]  ;;  %v4180_v16 = vrot.slane %v4150_v54, 1 }
  0x5c   : > { %912 = vmatmul.mubr.f32.gmra.mrb[6].mxu0 %v4101_v22  ;;  %3212 = vmatprep.subr.bf16.mxu1 %v5326_v46  ;;  %5338 = vst [vmem:[#allocation33_spill] sm:$0xff] %v4159_v47  ;;  %v3216_v1 = vpack.c.bf16 %v746_v17, %v745_v57  ;;  %5339 = vst [vmem:[#allocation34_spill] sm:$0xff] %v4171_v10  ;;  %v771_v57 = vsel %vm515_vm0, %v4153_v32, 0.0  ;;  %v4188_v55 = vsel %vm623_vm3, %v597_v56, %v598_v2 }
  0x5d   : > { %916 = vmatprep.mubr.f32.mxu0 %v3624_v60  ;;  %3242 = vmatpush3.bf16.msra.mxu0 %v3239_v44  ;;  %v766_v44 = vld [vmem:[%s5235_s3 + $0x168] sm:$0xff]  ;;  %5340 = vst [vmem:[#allocation35_spill] sm:$0xff] %v4180_v16  ;;  %v599_v17 = vrot.slane %v3649_v7, 7  ;;  %v778_v25 = vrot.slane %v771_v57, 1 }
  0x5e   : > { %2925 = vmatmul.mubr.f32.gmra.mrb[22].mxu1 %v4119_v45  ;;  %3244 = vmatprep.subr.bf16.mxu0 %v3243_v24  ;;  %v4198_v45 = vsel %vm688_vm1, %v685_v8, %v686_v11  ;;  %v749_v8 = vld [vmem:[%s5235_s3 + $0xe0] sm:$0xff] }
  0x5f   : > { %3214 = vmatpush1.bf16.msra.mxu1 %v3213_v13  ;;  %2927 = vmatprep.mubr.f32.mxu1 %v4131_v28  ;;  %v747_v13 = vld [vmem:[%s5235_s3 + $0xd0] sm:$0xff]  ;;  %v3251_v28 = vpack.c.bf16 %v766_v44, %v765_v43  ;;  %v750_v43 = vld [vmem:[%s5235_s3 + $0xe8] sm:$0xff]  ;;  %v4220_v44 = vrot.slane %v3838_v40, 1  ;;  %v4232_v57 = vsel %vm688_vm1, %v4180_v16, %v778_v25 }
  0x60   : > { %917 = vmatmul.mubr.f32.gmra.mrb[8].mxu0 %v4146_v58  ;;  %3215 = vmatprep.subr.bf16.mxu1 %v5326_v46  ;;  %v3219_v56 = vpack.c.bf16 %v748_v41, %v747_v13  ;;  %v4225_v13 = vsel %vm623_vm3, %v598_v2, %v599_v17  ;;  %v600_v41 = vrot.slane %v532_v35, 7  ;;  %5342 = vst [vmem:[#allocation37_spill] sm:$0xff] %v4232_v57  ;;  %v752_v2 = vld [vmem:[%s5235_s3 + $0xf8] sm:$0xff]  ;;  %v554_v35 = vsel %vm518_vm2, %v4150_v54, 0.0 }
  0x61   : > { %921 = vmatprep.mubr.f32.mxu0 %v3646_v6  ;;  %3246 = vmatpush3.bf16.msra.mxu0 %v3243_v24  ;;  %v767_v24 = vld [vmem:[%s5235_s3 + $0x170] sm:$0xff]  ;;  %5341 = vst [vmem:[#allocation36_spill] sm:$0xff] %v4220_v44 }
  0x62   : > { %2928 = vmatmul.mubr.f32.gmra.mrb[24].mxu1 %v4159_v47  ;;  %3248 = vmatprep.subr.bf16.mxu0 %v3247_v37  ;;  %v768_v47 = vld [vmem:[%s5235_s3 + $0x178] sm:$0xff] }
  0x63   : > { %3217 = vmatpush1.bf16.msra.mxu1 %v3216_v1  ;;  %2930 = vmatprep.mubr.f32.mxu1 %v4171_v10  ;;  %v4211_v1 = vsel %vm688_vm1, %v686_v11, %v4180_v16  ;;  %v3255_v11 = vpack.c.bf16 %v768_v47, %v767_v24  ;;  %v3222_v10 = vpack.c.bf16 %v750_v43, %v749_v8  ;;  %v751_v47 = vld [vmem:[%s5235_s3 + $0xf0] sm:$0xff]  ;;  %v534_v24 = vsel %vm518_vm2, %v3714_v36, 0.0 }
  0x64   : > { %922 = vmatmul.mubr.f32.gmra.mrb[10].mxu0 %v4188_v55  ;;  %3218 = vmatprep.subr.bf16.mxu1 %v5326_v46  ;;  %v782_v8 = vsel %vm688_vm1, %v4220_v44, %v3566_v34  ;;  %v591_v43 = vrot.slane %v3948_v9, 7  ;;  %v4266_v16 = vrot.slane %v554_v35, 7  ;;  %v524_v34 = vsel %vm518_vm2, %v3950_v12, 0.0  ;;  %v2691_v35 = vld [vmem:[%s5235_s3 + $0x400] sm:$0xff] }
  0x65   : > { %926 = vmatprep.mubr.f32.mxu0 %v3649_v7  ;;  %3250 = vmatpush3.bf16.msra.mxu0 %v3247_v37  ;;  %v4239_v37 = vsel %vm688_vm1, %v778_v25, %v4220_v44  ;;  %v601_v25 = vrot.slane %v3683_v21, 7  ;;  %v2692_v44 = vld [vmem:[%s5235_s3 + $0x408] sm:$0xff] }
  0x66   : > { %2931 = vmatmul.mubr.f32.gmra.mrb[26].mxu1 %v4198_v45  ;;  %3252 = vmatprep.subr.bf16.mxu0 %v3251_v28  ;;  %5343 = vst [vmem:[#allocation38_spill] sm:$0xff] %v4239_v37 }
  0x67   : > { %3220 = vmatpush1.bf16.msra.mxu1 %v3219_v56  ;;  %2933 = vmatprep.mubr.f32.mxu1 %v4211_v1  ;;  %v4253_v56 = vsel %vm623_vm3, %v599_v17, %v600_v41  ;;  %v3225_v17 = vpack.c.bf16 %v752_v2, %v751_v47  ;;  %v4282_v47 = vsel %vm623_vm3, %v600_v41, %v601_v25  ;;  %v602_v2 = vrot.slane %v534_v24, 7 }
  0x68   : > { %927 = vmatmul.mubr.f32.gmra.mrb[12].mxu0 %v4225_v13  ;;  %3221 = vmatprep.subr.bf16.mxu1 %v5326_v46  ;;  %v4294_v24 = vpack.c.bf16 %v2692_v44, %v2691_v35  ;;  %v603_v44 = vrot.slane %v3717_v38, 7 }
  0x69   : > { %931 = vmatprep.mubr.f32.mxu0 %v3680_v20  ;;  %3254 = vmatpush3.bf16.msra.mxu0 %v3251_v28  ;;  %v2659_v28 = vld [vmem:[%s5235_s3 + $0x300] sm:$0xff] }
  0x6a   : > { %2934 = vmatmul.mubr.f32.gmra.mrb[28].mxu1 %v4232_v57  ;;  %3256 = vmatprep.subr.bf16.mxu0 %v3255_v11  ;;  %v592_v57 = vrot.slane %v524_v34, 7 }
  0x6b   : > { %3223 = vmatpush1.bf16.msra.mxu1 %v3222_v10  ;;  %2936 = vmatprep.mubr.f32.mxu1 %v4239_v37  ;;  %v2660_v10 = vld [vmem:[%s5235_s3 + $0x308] sm:$0xff]  ;;  %v655_v37 = vsel %vm623_vm3, %v4266_v16, %v591_v43 }
  0x6c   : > { %932 = vmatmul.mubr.f32.gmra.mrb[14].mxu0 %v4253_v56  ;;  %3224 = vmatprep.subr.bf16.mxu1 %v5326_v46  ;;  %v3260_v41 = vpack.c.bf16 %v2660_v10, %v2659_v28  ;;  %v654_v28 = vsel %vm623_vm3, %v591_v43, %v592_v57  ;;  %v653_v34 = vsel %vm623_vm3, %v592_v57, %v3907_v23  ;;  %v605_v23 = vrot.slane %v3751_v51, 7 }
  0x6d   : > { %936 = vmatprep.mubr.f32.mxu0 %v3683_v21  ;;  %3258 = vmatpush3.bf16.msra.mxu0 %v3255_v11  ;;  %v2661_v11 = vld [vmem:[%s5235_s3 + $0x310] sm:$0xff]  ;;  %v538_v57 = vsel %vm518_vm2, %v3782_v3, 0.0 }
  0x6e   : > { %2937 = vmatmul.mubr.f32.gmra.mrb[30].mxu1 %v782_v8  ;;  %v4307_v8 = vsel %vm623_vm3, %v601_v25, %v602_v2  ;;  %3308 = vmatprep.subr.bf16.mxu0 %v4294_v24  ;;  %v2663_v25 = vld [vmem:[%s5235_s3 + $0x320] sm:$0xff] }
  0x6f   : > { %3226 = vmatpush1.bf16.msra.mxu1 %v3225_v17  ;;  %1346 = vmatprep.mubr.f32.mxu1 %v3948_v9  ;;  %v2662_v9 = vld [vmem:[%s5235_s3 + $0x318] sm:$0xff]  ;;  %v536_v17 = vsel %vm518_vm2, %v3748_v50, 0.0 }
  0x70   : > { %937 = vmatmul.mubr.f32.gmra.mrb[16].mxu0 %v4282_v47  ;;  %3259 = vmatprep.subr.bf16.mxu1 %v5326_v46  ;;  %v3263_v10 = vpack.c.bf16 %v2662_v9, %v2661_v11  ;;  %v604_v43 = vrot.slane %v536_v17, 7  ;;  %v2667_v9 = vld [vmem:[%s5235_s3 + $0x340] sm:$0xff] }
  0x71   : > { %941 = vmatprep.mubr.f32.mxu0 %v3714_v36 }
  0x72   : > { %1347 = vmatmul.mubr.f32.vlgmr.msra.gmra.mrb[32].mxu1 %v655_v37  ;;  %v2664_v37 = vld [vmem:[%s5235_s3 + $0x328] sm:$0xff]  ;;  %v4363_v17 = vsel %vm623_vm3, %v604_v43, %v605_v23 }
  0x73   : > { %3261 = vmatpush1.bf16.msra.mxu1 %v3260_v41  ;;  %1351 = vmatprep.mubr.f32.mxu1 %v3950_v12  ;;  %v4328_v12 = vsel %vm623_vm3, %v602_v2, %v603_v44  ;;  %v3266_v35 = vpack.c.bf16 %v2664_v37, %v2663_v25  ;;  %v2665_v41 = vld [vmem:[%s5235_s3 + $0x330] sm:$0xff]  ;;  %v2666_v2 = vld [vmem:[%s5235_s3 + $0x338] sm:$0xff]  ;;  %v540_v37 = vsel %vm518_vm2, %v3819_v27, 0.0 }
  0x74   : > { %942 = vmatmul.mubr.f32.gmra.mrb[18].mxu0 %v4307_v8  ;;  %3262 = vmatprep.subr.bf16.mxu1 %v5326_v46  ;;  %v3269_v11 = vpack.c.bf16 %v2666_v2, %v2665_v41  ;;  %v2670_v25 = vld [vmem:[%s5235_s3 + $0x358] sm:$0xff]  ;;  %v2673_v2 = vld [vmem:[%s5235_s3 + $0x370] sm:$0xff] }
  0x75   : > { %946 = vmatprep.mubr.f32.mxu0 %v3717_v38 }
  0x76   : > { %1352 = vmatmul.mubr.f32.gmra.mrb[34].mxu1 %v654_v28 }
  0x77   : > { %1356 = vmatprep.mubr.f32.mxu1 %v3543_v26  ;;  %3264 = vmatpush1.bf16.msra.mxu1 %v3263_v10  ;;  %v4345_v26 = vsel %vm623_vm3, %v603_v44, %v604_v43  ;;  %v2668_v44 = vld [vmem:[%s5235_s3 + $0x348] sm:$0xff]  ;;  %v2669_v10 = vld [vmem:[%s5235_s3 + $0x350] sm:$0xff] }
  0x78   : > { %947 = vmatmul.mubr.f32.gmra.mrb[20].mxu0 %v4328_v12  ;;  %3265 = vmatprep.subr.bf16.mxu1 %v5326_v46  ;;  %v3272_v28 = vpack.c.bf16 %v2668_v44, %v2667_v9  ;;  %v3275_v43 = vpack.c.bf16 %v2670_v25, %v2669_v10  ;;  %v2675_v44 = vld [vmem:[%s5235_s3 + $0x380] sm:$0xff]  ;;  %v2677_v25 = vld [vmem:[%s5235_s3 + $0x390] sm:$0xff] }
  0x79   : > { %951 = vmatprep.mubr.f32.mxu0 %v3748_v50 }
  0x7a   : > { %1357 = vmatmul.mubr.f32.gmra.mrb[36].mxu1 %v653_v34  ;;  %v2671_v34 = vld [vmem:[%s5235_s3 + $0x360] sm:$0xff] }
  0x7b   : > { %1361 = vmatprep.mubr.f32.mxu1 %v3552_v30  ;;  %3267 = vmatpush1.bf16.msra.mxu1 %v3266_v35  ;;  %v606_v30 = vrot.slane %v538_v57, 7 }
  0x7c   : > { %952 = vmatmul.mubr.f32.gmra.mrb[22].mxu0 %v4345_v26  ;;  %3268 = vmatprep.subr.bf16.mxu1 %v5326_v46 }
  0x7d   : > { %956 = vmatprep.mubr.f32.mxu0 %v3751_v51 }
  0x7e   : > { %1362 = vmatmul.mubr.f32.gmra.mrb[38].mxu1 %v4006_v48  ;;  %v4378_v48 = vsel %vm623_vm3, %v605_v23, %v606_v30  ;;  %v2674_v23 = vld [vmem:[%s5235_s3 + $0x378] sm:$0xff] }
  0x7f   : > { %1366 = vmatprep.mubr.f32.mxu1 %v3608_v53  ;;  %3270 = vmatpush1.bf16.msra.mxu1 %v3269_v11  ;;  %v607_v53 = vrot.slane %v3785_v5, 7  ;;  %v542_v11 = vsel %vm518_vm2, %v3857_v49, 0.0  ;;  %v3281_v9 = vpack.c.bf16 %v2674_v23, %v2673_v2  ;;  %v2681_v23 = vld [vmem:[%s5235_s3 + $0x3b0] sm:$0xff] }
  0x80   : > { %957 = vmatmul.mubr.f32.gmra.mrb[24].mxu0 %v4363_v17  ;;  %3271 = vmatprep.subr.bf16.mxu1 %v5326_v46 }
  0x81   : > { %961 = vmatprep.mubr.f32.mxu0 %v3782_v3  ;;  %v4397_v35 = vsel %vm623_vm3, %v606_v30, %v607_v53  ;;  %v2676_v30 = vld [vmem:[%s5235_s3 + $0x388] sm:$0xff] }
  0x82   : > { %1367 = vmatmul.mubr.f32.gmra.mrb[40].mxu1 %v4060_v61  ;;  %v2672_v61 = vld [vmem:[%s5235_s3 + $0x368] sm:$0xff]  ;;  %v3284_v10 = vpack.c.bf16 %v2676_v30, %v2675_v44  ;;  %v2683_v30 = vld [vmem:[%s5235_s3 + $0x3c0] sm:$0xff] }
  0x83   : > { %1371 = vmatprep.mubr.f32.mxu1 %v3621_v59  ;;  %3273 = vmatpush1.bf16.msra.mxu1 %v3272_v28  ;;  %v608_v59 = vrot.slane %v540_v37, 7  ;;  %v3278_v41 = vpack.c.bf16 %v2672_v61, %v2671_v34  ;;  %v2679_v61 = vld [vmem:[%s5235_s3 + $0x3a0] sm:$0xff] }
  0x84   : > { %962 = vmatmul.mubr.f32.gmra.mrb[26].mxu0 %v4378_v48  ;;  %3274 = vmatprep.subr.bf16.mxu1 %v5326_v46 }
  0x85   : > { %966 = vmatprep.mubr.f32.mxu0 %v3785_v5  ;;  %v4412_v57 = vsel %vm623_vm3, %v607_v53, %v608_v59  ;;  %v2678_v53 = vld [vmem:[%s5235_s3 + $0x398] sm:$0xff] }
  0x86   : > { %1372 = vmatmul.mubr.f32.gmra.mrb[42].mxu1 %v4101_v22  ;;  %v3287_v34 = vpack.c.bf16 %v2678_v53, %v2677_v25  ;;  %v2685_v53 = vld [vmem:[%s5235_s3 + $0x3d0] sm:$0xff] }
  0x87   : > { %1376 = vmatprep.mubr.f32.mxu1 %v3624_v60  ;;  %3276 = vmatpush1.bf16.msra.mxu1 %v3275_v43  ;;  %v609_v60 = vrot.slane %v3822_v29, 7  ;;  %v544_v43 = vsel %vm518_vm2, %v3904_v19, 0.0 }
  0x88   : > { %967 = vmatmul.mubr.f32.gmra.mrb[28].mxu0 %v4397_v35  ;;  %3277 = vmatprep.subr.bf16.mxu1 %v5326_v46 }
  0x89   : > { %971 = vmatprep.mubr.f32.mxu0 %v3819_v27  ;;  %v4431_v28 = vsel %vm623_vm3, %v608_v59, %v609_v60  ;;  %v2680_v59 = vld [vmem:[%s5235_s3 + $0x3a8] sm:$0xff] }
  0x8a   : > { %1377 = vmatmul.mubr.f32.gmra.mrb[44].mxu1 %v4146_v58  ;;  %v3290_v2 = vpack.c.bf16 %v2680_v59, %v2679_v61  ;;  %v2687_v59 = vld [vmem:[%s5235_s3 + $0x3e0] sm:$0xff] }
  0x8b   : > { %1381 = vmatprep.mubr.f32.mxu1 %v3646_v6  ;;  %3279 = vmatpush1.bf16.msra.mxu1 %v3278_v41  ;;  %v610_v6 = vrot.slane %v542_v11, 7 }
  0x8c   : > { %972 = vmatmul.mubr.f32.gmra.mrb[30].mxu0 %v4412_v57  ;;  %3280 = vmatprep.subr.bf16.mxu1 %v5326_v46 }
  0x8d   : > { %976 = vmatprep.mubr.f32.mxu0 %v3822_v29  ;;  %v4446_v37 = vsel %vm623_vm3, %v609_v60, %v610_v6  ;;  %v2682_v60 = vld [vmem:[%s5235_s3 + $0x3b8] sm:$0xff] }
  0x8e   : > { %1382 = vmatmul.mubr.f32.gmra.mrb[46].mxu1 %v4188_v55  ;;  %v3293_v44 = vpack.c.bf16 %v2682_v60, %v2681_v23  ;;  %v2689_v60 = vld [vmem:[%s5235_s3 + $0x3f0] sm:$0xff] }
  0x8f   : > { %1386 = vmatprep.mubr.f32.mxu1 %v3649_v7  ;;  %3282 = vmatpush1.bf16.msra.mxu1 %v3281_v9  ;;  %v611_v7 = vrot.slane %v3860_v52, 7  ;;  %v546_v9 = vsel %vm518_vm2, %v3958_v4, 0.0 }
  0x90   : > { %977 = vmatmul.mubr.f32.gmra.mrb[32].mxu0 %v4431_v28  ;;  %3283 = vmatprep.subr.bf16.mxu1 %v5326_v46 }
  0x91   : > { %981 = vmatprep.mubr.f32.mxu0 %v3857_v49  ;;  %v4465_v41 = vsel %vm623_vm3, %v610_v6, %v611_v7  ;;  %v2684_v6 = vld [vmem:[%s5235_s3 + $0x3c8] sm:$0xff] }
  0x92   : > { %1387 = vmatmul.mubr.f32.gmra.mrb[48].mxu1 %v4225_v13  ;;  %v3296_v25 = vpack.c.bf16 %v2684_v6, %v2683_v30 }
  0x93   : > { %1391 = vmatprep.mubr.f32.mxu1 %v3680_v20  ;;  %3285 = vmatpush1.bf16.msra.mxu1 %v3284_v10  ;;  %v612_v20 = vrot.slane %v544_v43, 7 }
  0x94   : > { %982 = vmatmul.mubr.f32.gmra.mrb[34].mxu0 %v4446_v37  ;;  %3286 = vmatprep.subr.bf16.mxu1 %v5326_v46 }
  0x95   : > { %986 = vmatprep.mubr.f32.mxu0 %v3860_v52  ;;  %v4480_v11 = vsel %vm623_vm3, %v611_v7, %v612_v20  ;;  %v2686_v7 = vld [vmem:[%s5235_s3 + $0x3d8] sm:$0xff] }
  0x96   : > { %1392 = vmatmul.mubr.f32.gmra.mrb[50].mxu1 %v4253_v56  ;;  %v3299_v61 = vpack.c.bf16 %v2686_v7, %v2685_v53  ;;  %v621_v7 = vrot.slane %v4108_v39, 7 }
  0x97   : > { %1396 = vmatprep.mubr.f32.mxu1 %v3683_v21  ;;  %3288 = vmatpush1.bf16.msra.mxu1 %v3287_v34  ;;  %v613_v21 = vrot.slane %v3912_v31, 7  ;;  %v548_v34 = vsel %vm518_vm2, %v4012_v42, 0.0 }
  0x98   : > { %987 = vmatmul.mubr.f32.gmra.mrb[36].mxu0 %v4465_v41  ;;  %3289 = vmatprep.subr.bf16.mxu1 %v5326_v46 }
  0x99   : > { %991 = vmatprep.mubr.f32.mxu0 %v3904_v19  ;;  %v4499_v10 = vsel %vm623_vm3, %v612_v20, %v613_v21  ;;  %v2688_v20 = vld [vmem:[%s5235_s3 + $0x3e8] sm:$0xff] }
  0x9a   : > { %1397 = vmatmul.mubr.f32.gmra.mrb[52].mxu1 %v4282_v47  ;;  %v3302_v23 = vpack.c.bf16 %v2688_v20, %v2687_v59  ;;  %v5346_v59 = vld [vmem:[#allocation24_spill] sm:$0xff]  ;;  %v5347_v20 = vld [vmem:[#allocation2_spill] sm:$0xff] }
  0x9b   : > { %1401 = vmatprep.mubr.f32.mxu1 %v3714_v36  ;;  %3291 = vmatpush1.bf16.msra.mxu1 %v3290_v2  ;;  %v614_v36 = vrot.slane %v546_v9, 7 }
  0x9c   : > { %992 = vmatmul.mubr.f32.gmra.mrb[38].mxu0 %v4480_v11  ;;  %3292 = vmatprep.subr.bf16.mxu1 %v5326_v46 }
  0x9d   : > { %996 = vmatprep.mubr.f32.mxu0 %v3912_v31  ;;  %v4514_v43 = vsel %vm623_vm3, %v613_v21, %v614_v36  ;;  %v2690_v21 = vld [vmem:[%s5235_s3 + $0x3f8] sm:$0xff] }
  0x9e   : > { %1402 = vmatmul.mubr.f32.gmra.mrb[54].mxu1 %v4307_v8  ;;  %v3305_v30 = vpack.c.bf16 %v2690_v21, %v2689_v60  ;;  %v5348_v60 = vld [vmem:[#allocation4_spill] sm:$0xff]  ;;  %v5349_v21 = vld [vmem:[#allocation5_spill] sm:$0xff] }
  0x9f   : > { %1406 = vmatprep.mubr.f32.mxu1 %v3717_v38  ;;  %3294 = vmatpush1.bf16.msra.mxu1 %v3293_v44  ;;  %v615_v38 = vrot.slane %v3961_v63, 7  ;;  %v550_v44 = vsel %vm518_vm2, %v4064_v0, 0.0 }
  0xa0   : > { %997 = vmatmul.mubr.f32.gmra.mrb[40].mxu0 %v4499_v10  ;;  %3295 = vmatprep.subr.bf16.mxu1 %v5326_v46 }
  0xa1   : > { %1001 = vmatprep.mubr.f32.mxu0 %v3958_v4  ;;  %v4533_v2 = vsel %vm623_vm3, %v614_v36, %v615_v38  ;;  %v618_v36 = vrot.slane %v550_v44, 7  ;;  %v5350_v44 = vld [vmem:[#allocation6_spill] sm:$0xff] }
  0xa2   : > { %1407 = vmatmul.mubr.f32.gmra.mrb[56].mxu1 %v4328_v12 }
  0xa3   : > { %1411 = vmatprep.mubr.f32.mxu1 %v3748_v50  ;;  %3297 = vmatpush1.bf16.msra.mxu1 %v3296_v25  ;;  %v616_v50 = vrot.slane %v548_v34, 7  ;;  %v552_v25 = vsel %vm518_vm2, %v4105_v62, 0.0  ;;  %v5344_v34 = vld [vmem:[#allocation18_spill] sm:$0xff] }
  0xa4   : > { %1002 = vmatmul.mubr.f32.gmra.mrb[42].mxu0 %v4514_v43  ;;  %3298 = vmatprep.subr.bf16.mxu1 %v5326_v46  ;;  %v620_v53 = vrot.slane %v552_v25, 7  ;;  %v5352_v25 = vld [vmem:[#allocation8_spill] sm:$0xff] }
  0xa5   : > { %1006 = vmatprep.mubr.f32.mxu0 %v3961_v63  ;;  %v4548_v9 = vsel %vm623_vm3, %v615_v38, %v616_v50  ;;  %v773_v38 = vrot.slane %v4153_v32, 7 }
  0xa6   : > { %1412 = vmatmul.mubr.f32.gmra.mrb[58].mxu1 %v4345_v26 }
  0xa7   : > { %1416 = vmatprep.mubr.f32.mxu1 %v3751_v51  ;;  %3300 = vmatpush1.bf16.msra.mxu1 %v3299_v61  ;;  %v617_v51 = vrot.slane %v4015_v33, 7  ;;  %v2696_v61 = vld [vmem:[%s5235_s3 + $0x428] sm:$0xff] }
  0xa8   : > { %1007 = vmatmul.mubr.f32.gmra.mrb[44].mxu0 %v4533_v2  ;;  %3301 = vmatprep.subr.bf16.mxu1 %v5326_v46 }
  0xa9   : > { %1011 = vmatprep.mubr.f32.mxu0 %v4012_v42  ;;  %v4561_v6 = vsel %vm623_vm3, %v616_v50, %v617_v51 }
  0xaa   : > { %1417 = vmatmul.mubr.f32.gmra.mrb[60].mxu1 %v4363_v17 }
  0xab   : > { %1421 = vmatprep.mubr.f32.mxu1 %v3782_v3  ;;  %3303 = vmatpush1.bf16.msra.mxu1 %v3302_v23  ;;  %v4569_v3 = vsel %vm623_vm3, %v617_v51, %v618_v36  ;;  %v2698_v23 = vld [vmem:[%s5235_s3 + $0x438] sm:$0xff]  ;;  %v2700_v51 = vld [vmem:[%s5235_s3 + $0x448] sm:$0xff] }
  0xac   : > { %1012 = vmatmul.mubr.f32.gmra.mrb[46].mxu0 %v4548_v9  ;;  %3304 = vmatprep.subr.bf16.mxu1 %v5326_v46  ;;  %v619_v46 = vrot.slane %v4067_v14, 7 }
  0xad   : > { %1016 = vmatprep.mubr.f32.mxu0 %v4015_v33 }
  0xae   : > { %1422 = vmatmul.mubr.f32.gmra.mrb[62].mxu1 %v4378_v48 }
  0xaf   : > { %1426 = vmatprep.mubr.f32.mxu1 %v3785_v5  ;;  %3306 = vmatpush1.bf16.msra.mxu1 %v3305_v30  ;;  %v4581_v5 = vsel %vm623_vm3, %v618_v36, %v619_v46  ;;  %v5351_v30 = vld [vmem:[#allocation7_spill] sm:$0xff] }
  0xb0   : > { %1017 = vmatmul.mubr.f32.gmra.mrb[48].mxu0 %v4561_v6 }
  0xb1   : > { %1021 = vmatprep.mubr.f32.mxu0 %v4064_v0 }
  0xb2   : > { %1427 = vmatmul.mubr.f32.gmra.mrb[64].mxu1 %v4397_v35 }
  0xb3   : > { %1431 = vmatprep.mubr.f32.mxu1 %v3819_v27  ;;  %v4589_v27 = vsel %vm623_vm3, %v619_v46, %v620_v53  ;;  %v2702_v46 = vld [vmem:[%s5235_s3 + $0x458] sm:$0xff] }
  0xb4   : > { %1022 = vmatmul.mubr.f32.gmra.mrb[50].mxu0 %v4569_v3 }
  0xb5   : > { %1026 = vmatprep.mubr.f32.mxu0 %v4067_v14 }
  0xb6   : > { %1432 = vmatmul.mubr.f32.gmra.mrb[66].mxu1 %v4412_v57 }
  0xb7   : > { %1436 = vmatprep.mubr.f32.mxu1 %v3822_v29  ;;  %v4598_v29 = vsel %vm623_vm3, %v620_v53, %v621_v7  ;;  %v5353_v53 = vld [vmem:[#allocation9_spill] sm:$0xff] }
  0xb8   : > { %1027 = vmatmul.mubr.f32.gmra.mrb[52].mxu0 %v4581_v5 }
  0xb9   : > { %1031 = vmatprep.mubr.f32.mxu0 %v4105_v62 }
  0xba   : > { %1437 = vmatmul.mubr.f32.gmra.mrb[68].mxu1 %v4431_v28 }
  0xbb   : > { %1441 = vmatprep.mubr.f32.mxu1 %v3857_v49  ;;  %v4607_v49 = vsel %vm623_vm3, %v621_v7, %v4266_v16  ;;  %v2703_v7 = vld [vmem:[%s5235_s3 + $0x460] sm:$0xff] }
  0xbc   : > { %1032 = vmatmul.mubr.f32.gmra.mrb[54].mxu0 %v4589_v27 }
  0xbd   : > { %1036 = vmatprep.mubr.f32.mxu0 %v4108_v39 }
  0xbe   : > { %1442 = vmatmul.mubr.f32.gmra.mrb[70].mxu1 %v4446_v37 }
  0xbf   : > { %1446 = vmatprep.mubr.f32.mxu1 %v3860_v52  ;;  %v4617_v52 = vsel %vm623_vm3, %v4266_v16, %v773_v38 }
  0xc0   : > { %1037 = vmatmul.mubr.f32.gmra.mrb[56].mxu0 %v4598_v29 }
  0xc1   : > { %1041 = vmatprep.mubr.f32.mxu0 %v4150_v54 }
  0xc2   : > { %1447 = vmatmul.mubr.f32.gmra.mrb[72].mxu1 %v4465_v41 }
  0xc3   : > { %1451 = vmatprep.mubr.f32.mxu1 %v3904_v19  ;;  %v4626_v19 = vsel %vm623_vm3, %v773_v38, %v5344_v34  ;;  %v2704_v38 = vld [vmem:[%s5235_s3 + $0x468] sm:$0xff] }
  0xc4   : > { %1042 = vmatmul.mubr.f32.gmra.mrb[58].mxu0 %v4607_v49 }
  0xc5   : > { %1046 = vmatprep.mubr.f32.mxu0 %v4153_v32  ;;  %v2693_v32 = vld [vmem:[%s5235_s3 + $0x410] sm:$0xff] }
  0xc6   : > { %1452 = vmatmul.mubr.f32.gmra.mrb[74].mxu1 %v4480_v11 }
  0xc7   : > { %1456 = vmatprep.mubr.f32.mxu1 %v3912_v31  ;;  %v2694_v31 = vld [vmem:[%s5235_s3 + $0x418] sm:$0xff] }
  0xc8   : > { %1047 = vmatmul.mubr.f32.gmra.mrb[60].mxu0 %v4617_v52  ;;  %v3311_v16 = vpack.c.bf16 %v2694_v31, %v2693_v32  ;;  %v5354_v32 = vld [vmem:[#allocation10_spill] sm:$0xff]  ;;  %v5355_v31 = vld [vmem:[#allocation11_spill] sm:$0xff] }
  0xc9   : > { %1051 = vmatprep.mubr.f32.mxu0 %v3838_v40  ;;  %v5345_v40 = vld [vmem:[#allocation26_spill] sm:$0xff] }
  0xca   : > { %1457 = vmatmul.mubr.f32.gmra.mrb[76].mxu1 %v4499_v10 }
  0xcb   : > { %1461 = vmatprep.mubr.f32.mxu1 %v3958_v4  ;;  %v2695_v4 = vld [vmem:[%s5235_s3 + $0x420] sm:$0xff] }
  0xcc   : > { %1052 = vmatmul.mubr.f32.gmra.mrb[62].mxu0 %v4626_v19  ;;  %v3315_v50 = vpack.c.bf16 %v2696_v61, %v2695_v4  ;;  %v2706_v4 = vld [vmem:[%s5235_s3 + $0x478] sm:$0xff]  ;;  %v5356_v61 = vld [vmem:[#allocation12_spill] sm:$0xff] }
  0xcd   : > { %2971 = vmatprep.mubr.f32.mxu0 %v5345_v40  ;;  %v506_v40 = vld [vmem:[%s4684_s27 + $0x8] sm:$0xff] }
  0xce   : > { %1462 = vmatmul.mubr.f32.gmra.mrb[78].mxu1 %v4514_v43 }
  0xcf   : > { %1466 = vmatprep.mubr.f32.mxu1 %v3961_v63  ;;  %v2697_v63 = vld [vmem:[%s5235_s3 + $0x430] sm:$0xff] }
  0xd0   : > { %2972 = vmatmul.mubr.f32.vlgmr.msra.gmra.mrb[64].mxu0 %v5346_v59  ;;  %v4705_v59 = vmul.f32 0.0, %v506_v40  ;;  %v5369_v40 = vld [vmem:[#allocation28_spill] sm:$0xff] }
  0xd1   : > { %2974 = vmatprep.mubr.f32.mxu0 %v5347_v20  ;;  %3310 = vmatpush3.bf16.msra.mxu0 %v4294_v24  ;;  %v3319_v24 = vpack.c.bf16 %v2698_v23, %v2697_v63  ;;  %v5357_v20 = vld [vmem:[#allocation13_spill] sm:$0xff]  ;;  %v5360_v23 = vld [vmem:[#allocation15_spill] sm:$0xff] }
  0xd2   : > { %1467 = vmatmul.mubr.f32.gmra.mrb[80].mxu1 %v4533_v2  ;;  %3312 = vmatprep.subr.bf16.mxu0 %v3311_v16  ;;  %v4714_v63 = vsel %vm518_vm2, %v4705_v59, 0.0 }
  0xd3   : > { %1471 = vmatprep.mubr.f32.mxu1 %v4012_v42  ;;  %v2699_v42 = vld [vmem:[%s5235_s3 + $0x440] sm:$0xff]  ;;  %5359 = vst [vmem:[#allocation26_spill] sm:$0xff] %v4714_v63 }
  0xd4   : > { %2975 = vmatmul.mubr.f32.gmra.mrb[66].mxu0 %v5348_v60  ;;  %v3323_v36 = vpack.c.bf16 %v2700_v51, %v2699_v42  ;;  %v5303_v60 = vrot.slane %v4714_v63, 7  ;;  %v5363_v42 = vld [vmem:[#allocation25_spill] sm:$0xff] }
  0xd5   : > { %2977 = vmatprep.mubr.f32.mxu0 %v5349_v21  ;;  %3314 = vmatpush3.bf16.msra.mxu0 %v3311_v16  ;;  %v3331_v16 = vpack.c.bf16 %v2704_v38, %v2703_v7  ;;  %v3366_v7 = vld [vmem:[%s3532_s13 + $0x20] sm:$0xff]  ;;  %v5368_v38 = vld [vmem:[#allocation27_spill] sm:$0xff] }
  0xd6   : > { %1472 = vmatmul.mubr.f32.gmra.mrb[82].mxu1 %v4548_v9  ;;  %3316 = vmatprep.subr.bf16.mxu0 %v3315_v50  ;;  %v1740_v51 = vsel %vm623_vm3, %v5303_v60, %v5363_v42  ;;  %v3369_v42 = vld [vmem:[%s3532_s13 + $0x38] sm:$0xff] }
  0xd7   : > { %1476 = vmatprep.mubr.f32.mxu1 %v4015_v33  ;;  %v2701_v33 = vld [vmem:[%s5235_s3 + $0x450] sm:$0xff] }
  0xd8   : > { %2978 = vmatmul.mubr.f32.gmra.mrb[68].mxu0 %v5350_v44 }
  0xd9   : > { %2980 = vmatprep.mubr.f32.mxu0 %v5351_v30  ;;  %3318 = vmatpush3.bf16.msra.mxu0 %v3315_v50  ;;  %v5358_v50 = vld [vmem:[#allocation14_spill] sm:$0xff] }
  0xda   : > { %1477 = vmatmul.mubr.f32.gmra.mrb[84].mxu1 %v4561_v6  ;;  %3320 = vmatprep.subr.bf16.mxu0 %v3319_v24 }
  0xdb   : > { %1481 = vmatprep.mubr.f32.mxu1 %v4064_v0  ;;  %v3327_v0 = vpack.c.bf16 %v2702_v46, %v2701_v33  ;;  %v3365_v33 = vld [vmem:[%s3532_s13 + $0x18] sm:$0xff]  ;;  %v5366_v46 = vld [vmem:[#allocation22_spill] sm:$0xff] }
  0xdc   : > { %2981 = vmatmul.mubr.f32.gmra.mrb[70].mxu0 %v5352_v25 }
  0xdd   : > { %2983 = vmatprep.mubr.f32.mxu0 %v5353_v53  ;;  %3322 = vmatpush3.bf16.msra.mxu0 %v3319_v24  ;;  %v5361_v24 = vld [vmem:[#allocation16_spill] sm:$0xff] }
  0xde   : > { %1482 = vmatmul.mubr.f32.gmra.mrb[86].mxu1 %v4569_v3  ;;  %3324 = vmatprep.subr.bf16.mxu0 %v3323_v36 }
  0xdf   : > { %1486 = vmatprep.mubr.f32.mxu1 %v4067_v14  ;;  %v2705_v14 = vld [vmem:[%s5235_s3 + $0x470] sm:$0xff] }
  0xe0   : > { %2984 = vmatmul.mubr.f32.gmra.mrb[72].mxu0 %v5354_v32 }
  0xe1   : > { %2986 = vmatprep.mubr.f32.mxu0 %v5355_v31  ;;  %3326 = vmatpush3.bf16.msra.mxu0 %v3323_v36  ;;  %v5365_v36 = vld [vmem:[#allocation20_spill] sm:$0xff] }
  0xe2   : > { %1487 = vmatmul.mubr.f32.gmra.mrb[88].mxu1 %v4581_v5  ;;  %3328 = vmatprep.subr.bf16.mxu0 %v3327_v0 }
  0xe3   : > { %1491 = vmatprep.mubr.f32.mxu1 %v4105_v62  ;;  %v3335_v62 = vpack.c.bf16 %v2706_v4, %v2705_v14  ;;  %v5370_v14 = vld [vmem:[#allocation29_spill] sm:$0xff]  ;;  %v5371_v4 = vld [vmem:[#allocation30_spill] sm:$0xff] }
  0xe4   : > { %2987 = vmatmul.mubr.f32.gmra.mrb[74].mxu0 %v5356_v61 }
  0xe5   : > { %2989 = vmatprep.mubr.f32.mxu0 %v5357_v20  ;;  %3330 = vmatpush3.bf16.msra.mxu0 %v3327_v0  ;;  %v5367_v0 = vld [vmem:[#allocation23_spill] sm:$0xff] }
  0xe6   : > { %1492 = vmatmul.mubr.f32.gmra.mrb[90].mxu1 %v4589_v27  ;;  %3332 = vmatprep.subr.bf16.mxu0 %v3331_v16 }
  0xe7   : > { %1496 = vmatprep.mubr.f32.mxu1 %v4108_v39  ;;  %v5362_v39 = vld [vmem:[#allocation17_spill] sm:$0xff] }
  0xe8   : > { %2990 = vmatmul.mubr.f32.gmra.mrb[76].mxu0 %v5358_v50 }
  0xe9   : > { %2992 = vmatprep.mubr.f32.mxu0 %v5360_v23  ;;  %3334 = vmatpush3.bf16.msra.mxu0 %v3331_v16  ;;  %v3367_v16 = vld [vmem:[%s3532_s13 + $0x28] sm:$0xff] }
  0xea   : > { %1497 = vmatmul.mubr.f32.gmra.mrb[92].mxu1 %v4598_v29  ;;  %3336 = vmatprep.subr.bf16.mxu0 %v3335_v62 }
  0xeb   : > { %1501 = vmatprep.mubr.f32.mxu1 %v4150_v54  ;;  %v5364_v54 = vld [vmem:[#allocation19_spill] sm:$0xff] }
  0xec   : > { %2993 = vmatmul.mubr.f32.gmra.mrb[78].mxu0 %v5361_v24 }
  0xed   : > { %2995 = vmatprep.mubr.f32.mxu0 %v5362_v39  ;;  %3338 = vmatpush3.bf16.msra.mxu0 %v3335_v62  ;;  %v3368_v62 = vld [vmem:[%s3532_s13 + $0x30] sm:$0xff] }
  0xee   : > { %1502 = vmatmul.mubr.f32.gmra.mrb[94].mxu1 %v4607_v49 }
  0xef   : > { %1859 = vmatprep.mubr.f32.mxu1 %v3364_v15  ;;  %v5373_v15 = vld [vmem:[#allocation32_spill] sm:$0xff] }
  0xf0   : > { %2996 = vmatmul.mubr.f32.gmra.mrb[80].mxu0 %v5364_v54 }
  0xf1   : > { %2998 = vmatprep.mubr.f32.mxu0 %v5365_v36 }
  0xf2   : > { %1860 = vmatmul.mubr.f32.vlgmr.msra.gmra.mrb[96].mxu1 %v1740_v51 }
  0xf3   : > { %1864 = vmatprep.mubr.f32.mxu1 %v3365_v33  ;;  %v5375_v33 = vld [vmem:[#allocation34_spill] sm:$0xff] }
  0xf4   : > { %2999 = vmatmul.mubr.f32.gmra.mrb[82].mxu0 %v5366_v46 }
  0xf5   : > { %3001 = vmatprep.mubr.f32.mxu0 %v5367_v0 }
  0xf6   : > { %1865 = vmatmul.mubr.f32.gmra.mrb[98].mxu1 %v4101_v22  ;;  %v5372_v22 = vld [vmem:[#allocation31_spill] sm:$0xff] }
  0xf7   : > { %1869 = vmatprep.mubr.f32.mxu1 %v3366_v7 }
  0xf8   : > { %3002 = vmatmul.mubr.f32.gmra.mrb[84].mxu0 %v5368_v38 }
  0xf9   : > { %3004 = vmatprep.mubr.f32.mxu0 %v5369_v40 }
  0xfa   : > { %1870 = vmatmul.mubr.f32.gmra.mrb[100].mxu1 %v4146_v58  ;;  %v5374_v58 = vld [vmem:[#allocation33_spill] sm:$0xff] }
  0xfb   : > { %1874 = vmatprep.mubr.f32.mxu1 %v3367_v16 }
  0xfc   : > { %3005 = vmatmul.mubr.f32.gmra.mrb[86].mxu0 %v5370_v14 }
  0xfd   : > { %3007 = vmatprep.mubr.f32.mxu0 %v5371_v4 }
  0xfe   : > { %1875 = vmatmul.mubr.f32.gmra.mrb[102].mxu1 %v4188_v55  ;;  %v3370_v55 = vld [vmem:[%s3532_s13 + $0x40] sm:$0xff] }
  0xff   : > { %1879 = vmatprep.mubr.f32.mxu1 %v3368_v62 }
 0x100   : > { %3008 = vmatmul.mubr.f32.gmra.mrb[88].mxu0 %v5372_v22 }
 0x101   : > { %3010 = vmatprep.mubr.f32.mxu0 %v5373_v15 }
 0x102   : > { %1880 = vmatmul.mubr.f32.gmra.mrb[104].mxu1 %v4225_v13  ;;  %v5376_v13 = vld [vmem:[#allocation21_spill] sm:$0xff] }
 0x103   : > { %1884 = vmatprep.mubr.f32.mxu1 %v3369_v42  ;;  %v5377_v62 = vrot.slane %v5376_v13, 1  ;;  %v5378_v42 = vld [vmem:[#allocation35_spill] sm:$0xff]  ;;  %v3372_v13 = vld [vmem:[%s3532_s13 + $0x50] sm:$0xff] }
 0x104   : > { %3011 = vmatmul.mubr.f32.gmra.mrb[90].mxu0 %v5374_v58 }
 0x105   : > { %v4749_v51 = vpop.f32.mrb[0].mxu1  ;;  %3013 = vmatprep.mubr.f32.mxu0 %v5375_v33  ;;  %v720_v60 = vsel %vm688_vm1, %v5378_v42, %v5377_v62  ;;  %v3377_v42 = vld [vmem:[%s3532_s13 + $0x78] sm:$0xff] }
 0x106   : > { %v1123_v7 = vpop.f32.mrb[1].mxu1  ;;  %1885 = vmatmul.mubr.f32.gmra.mrb[106].mxu1 %v4253_v56  ;;  %v3371_v56 = vld [vmem:[%s3532_s13 + $0x48] sm:$0xff] }
 0x107   : > { %1889 = vmatprep.mubr.f32.mxu1 %v3370_v55 }
 0x108   : > { %3014 = vmatmul.mubr.f32.gmra.mrb[92].mxu0 %v4198_v45 }
 0x109   : > { %v4755_v16 = vpop.f32.mrb[2].mxu1  ;;  %3016 = vmatprep.mubr.f32.mxu0 %v4211_v1 }
 0x10a   : > { %v4763_v63 = vpop.f32.mrb[3].mxu1  ;;  %1890 = vmatmul.mubr.f32.gmra.mrb[108].mxu1 %v4282_v47 }
 0x10b   : > { %1894 = vmatprep.mubr.f32.mxu1 %v3371_v56 }
 0x10c   : > { %3017 = vmatmul.mubr.f32.gmra.mrb[94].mxu0 %v720_v60  ;;  %v3373_v60 = vld [vmem:[%s3532_s13 + $0x58] sm:$0xff] }
 0x10d   : > { %v4767_v55 = vpop.f32.mrb[4].mxu1  ;;  %3051 = vmatprep.mubr.f32.mxu0 %v5349_v21 }
 0x10e   : > { %v4770_v34 = vpop.f32.mrb[5].mxu1  ;;  %1895 = vmatmul.mubr.f32.gmra.mrb[110].mxu1 %v4307_v8 }
 0x10f   : > { %1899 = vmatprep.mubr.f32.mxu1 %v3372_v13  ;;  %v3378_v13 = vld [vmem:[%s3532_s13 + $0x80] sm:$0xff] }
 0x110   : > { %3052 = vmatmul.mubr.f32.vlgmr.msra.gmra.mrb[96].mxu0 %v5350_v44  ;;  %v3374_v44 = vld [vmem:[%s3532_s13 + $0x60] sm:$0xff] }
 0x111   : > { %v4775_v62 = vpop.f32.mrb[6].mxu1  ;;  %3054 = vmatprep.mubr.f32.mxu0 %v5351_v30 }
 0x112   : > { %v4778_v47 = vpop.f32.mrb[7].mxu1  ;;  %1900 = vmatmul.mubr.f32.gmra.mrb[112].mxu1 %v4328_v12 }
 0x113   : > { %1904 = vmatprep.mubr.f32.mxu1 %v3373_v60 }
 0x114   : > { %3055 = vmatmul.mubr.f32.gmra.mrb[98].mxu0 %v5352_v25  ;;  %v3375_v25 = vld [vmem:[%s3532_s13 + $0x68] sm:$0xff] }
 0x115   : > { %v4783_v21 = vpop.f32.mrb[8].mxu1  ;;  %3057 = vmatprep.mubr.f32.mxu0 %v5353_v53 }
 0x116   : > { %v4786_v8 = vpop.f32.mrb[9].mxu1  ;;  %1905 = vmatmul.mubr.f32.gmra.mrb[114].mxu1 %v4345_v26 }
 0x117   : > { %1909 = vmatprep.mubr.f32.mxu1 %v3374_v44 }
 0x118   : > { %3058 = vmatmul.mubr.f32.gmra.mrb[100].mxu0 %v5354_v32  ;;  %v3376_v32 = vld [vmem:[%s3532_s13 + $0x70] sm:$0xff] }
 0x119   : > { %v4791_v30 = vpop.f32.mrb[10].mxu1  ;;  %3060 = vmatprep.mubr.f32.mxu0 %v5355_v31 }
 0x11a   : > { %v4794_v12 = vpop.f32.mrb[11].mxu1  ;;  %1910 = vmatmul.mubr.f32.gmra.mrb[116].mxu1 %v4363_v17 }
 0x11b   : > { %1914 = vmatprep.mubr.f32.mxu1 %v3375_v25 }
 0x11c   : > { %3061 = vmatmul.mubr.f32.gmra.mrb[102].mxu0 %v5356_v61 }
 0x11d   : > { %v4799_v53 = vpop.f32.mrb[12].mxu1  ;;  %3063 = vmatprep.mubr.f32.mxu0 %v5357_v20 }
 0x11e   : > { %v4802_v26 = vpop.f32.mrb[13].mxu1  ;;  %1915 = vmatmul.mubr.f32.gmra.mrb[118].mxu1 %v4378_v48 }
 0x11f   : > { %1919 = vmatprep.mubr.f32.mxu1 %v3376_v32 }
 0x120   : > { %3064 = vmatmul.mubr.f32.gmra.mrb[104].mxu0 %v5358_v50 }
 0x121   : > { %v4807_v31 = vpop.f32.mrb[14].mxu1  ;;  %3066 = vmatprep.mubr.f32.mxu0 %v5360_v23 }
 0x122   : > { %v4810_v17 = vpop.f32.mrb[15].mxu1  ;;  %1920 = vmatmul.mubr.f32.gmra.mrb[120].mxu1 %v4397_v35 }
 0x123   : > { %v898_v61 = vpop.f32.mrb[0].mxu0  ;;  %1924 = vmatprep.mubr.f32.mxu1 %v3377_v42 }
 0x124   : > { %v4814_v20 = vadd.f32 %v1123_v7, %v898_v61  ;;  %3067 = vmatmul.mubr.f32.gmra.mrb[106].mxu0 %v5361_v24  ;;  %v900_v48 = vpop.f32.mrb[1].mxu0  ;;  %v3381_v61 = vld [vmem:[%s3532_s13 + $0x98] sm:$0xff] }
 0x125   : > { %v4817_v56 = vpop.f32.mrb[16].mxu1  ;;  %3069 = vmatprep.mubr.f32.mxu0 %v5362_v39 }
 0x126   : > { %v4820_v50 = vpop.f32.mrb[17].mxu1  ;;  %1925 = vmatmul.mubr.f32.gmra.mrb[122].mxu1 %v4412_v57  ;;  %v3379_v57 = vld [vmem:[%s3532_s13 + $0x88] sm:$0xff] }
 0x127   : > { %v903_v23 = vpop.f32.mrb[2].mxu0  ;;  %1929 = vmatprep.mubr.f32.mxu1 %v3378_v13 }
 0x128   : > { %v4825_v35 = vadd.f32 %v4749_v51, %v903_v23  ;;  %3070 = vmatmul.mubr.f32.gmra.mrb[108].mxu0 %v5364_v54  ;;  %v905_v7 = vpop.f32.mrb[3].mxu0  ;;  %v505_v23 = vld [vmem:[%s4684_s27] sm:$0xff] }
 0x129   : > { %v4828_v24 = vpop.f32.mrb[18].mxu1  ;;  %3072 = vmatprep.mubr.f32.mxu0 %v5365_v36 }
 0x12a   : > { %v4831_v60 = vpop.f32.mrb[19].mxu1  ;;  %1930 = vmatmul.mubr.f32.gmra.mrb[124].mxu1 %v4431_v28  ;;  %v3380_v28 = vld [vmem:[%s3532_s13 + $0x90] sm:$0xff] }
 0x12b   : > { %v908_v39 = vpop.f32.mrb[4].mxu0  ;;  %1934 = vmatprep.mubr.f32.mxu1 %v3379_v57 }
 0x12c   : > { %v4836_v44 = vadd.f32 %v4763_v63, %v908_v39  ;;  %3073 = vmatmul.mubr.f32.gmra.mrb[110].mxu0 %v5366_v46  ;;  %v910_v51 = vpop.f32.mrb[5].mxu0  ;;  %v3383_v39 = vld [vmem:[%s3532_s13 + $0xa8] sm:$0xff] }
 0x12d   : > { %v4839_v54 = vpop.f32.mrb[20].mxu1  ;;  %3075 = vmatprep.mubr.f32.mxu0 %v5367_v0 }
 0x12e   : > { %v4842_v25 = vpop.f32.mrb[21].mxu1  ;;  %1935 = vmatmul.mubr.f32.gmra.mrb[126].mxu1 %v4446_v37 }
 0x12f   : > { %v913_v36 = vpop.f32.mrb[6].mxu0  ;;  %1939 = vmatprep.mubr.f32.mxu1 %v3380_v28 }
 0x130   : > { %v4847_v32 = vadd.f32 %v4755_v16, %v913_v36  ;;  %3076 = vmatmul.mubr.f32.gmra.mrb[112].mxu0 %v5368_v38  ;;  %v915_v63 = vpop.f32.mrb[7].mxu0  ;;  %v3384_v36 = vld [vmem:[%s3532_s13 + $0xb0] sm:$0xff] }
 0x131   : > { %v4850_v46 = vpop.f32.mrb[22].mxu1  ;;  %3078 = vmatprep.mubr.f32.mxu0 %v5369_v40 }
 0x132   : > { %v4853_v0 = vpop.f32.mrb[23].mxu1  ;;  %1940 = vmatmul.mubr.f32.gmra.mrb[128].mxu1 %v4465_v41  ;;  %v3382_v41 = vld [vmem:[%s3532_s13 + $0xa0] sm:$0xff] }
 0x133   : > { %v918_v37 = vpop.f32.mrb[8].mxu0  ;;  %1944 = vmatprep.mubr.f32.mxu1 %v3381_v61  ;;  %v3385_v61 = vld [vmem:[%s3532_s13 + $0xb8] sm:$0xff] }
 0x134   : > { %v4858_v42 = vadd.f32 %v4770_v34, %v918_v37  ;;  %v920_v16 = vpop.f32.mrb[9].mxu0  ;;  %3079 = vmatmul.mubr.f32.gmra.mrb[114].mxu0 %v5370_v14 }
 0x135   : > { %v4861_v38 = vpop.f32.mrb[24].mxu1  ;;  %3081 = vmatprep.mubr.f32.mxu0 %v5371_v4 }
 0x136   : > { %v4864_v40 = vpop.f32.mrb[25].mxu1  ;;  %1945 = vmatmul.mubr.f32.gmra.mrb[130].mxu1 %v4480_v11  ;;  %v4879_v11 = vmul.f32 0.0, %v505_v23 }
 0x137   : > { %v923_v48 = vpop.f32.mrb[10].mxu0  ;;  %1949 = vmatprep.mubr.f32.mxu1 %v3382_v41  ;;  %v5380_v41 = vld [vmem:[#allocation38_spill] sm:$0xff] }
 0x138   : > { %v4870_v13 = vadd.f32 %v4767_v55, %v923_v48  ;;  %v925_v34 = vpop.f32.mrb[11].mxu0  ;;  %3082 = vmatmul.mubr.f32.gmra.mrb[116].mxu0 %v5372_v22 }
 0x139   : > { %v4873_v14 = vpop.f32.mrb[26].mxu1  ;;  %3084 = vmatprep.mubr.f32.mxu0 %v5373_v15 }
 0x13a   : > { %v4876_v4 = vpop.f32.mrb[27].mxu1  ;;  %1950 = vmatmul.mubr.f32.gmra.mrb[132].mxu1 %v4499_v10  ;;  %v1734_v10 = vsel %vm515_vm0, %v4879_v11, 0.0 }
 0x13b   : > { %v928_v7 = vpop.f32.mrb[12].mxu0  ;;  %1954 = vmatprep.mubr.f32.mxu1 %v3383_v39  ;;  %v3386_v39 = vld [vmem:[%s3532_s13 + $0xc0] sm:$0xff] }
 0x13c   : > { %v4883_v55 = vadd.f32 %v4778_v47, %v928_v7  ;;  %v930_v57 = vpop.f32.mrb[13].mxu0  ;;  %3085 = vmatmul.mubr.f32.gmra.mrb[118].mxu0 %v5374_v58 }
 0x13d   : > { %v4886_v22 = vpop.f32.mrb[28].mxu1  ;;  %3087 = vmatprep.mubr.f32.mxu0 %v5375_v33  ;;  %v1741_v33 = vrot.slane %v1734_v10, 1 }
 0x13e   : > { %v4889_v15 = vpop.f32.mrb[29].mxu1  ;;  %1955 = vmatmul.mubr.f32.gmra.mrb[134].mxu1 %v4514_v43  ;;  %v1742_v43 = vrot.slane %v4705_v59, 1 }
 0x13f   : > { %v933_v51 = vpop.f32.mrb[14].mxu0  ;;  %1959 = vmatprep.mubr.f32.mxu1 %v3384_v36  ;;  %v5382_v36 = vld [vmem:[#allocation3_spill] sm:$0xff] }
 0x140   : > { %v4897_v47 = vadd.f32 %v4775_v62, %v933_v51  ;;  %v935_v58 = vpop.f32.mrb[15].mxu0  ;;  %3088 = vmatmul.mubr.f32.gmra.mrb[120].mxu0 %v4198_v45  ;;  %v5379_v45 = vld [vmem:[#allocation37_spill] sm:$0xff] }
 0x141   : > { %v4900_v28 = vpop.f32.mrb[30].mxu1  ;;  %3090 = vmatprep.mubr.f32.mxu0 %v4211_v1  ;;  %v5381_v1 = vld [vmem:[#allocation36_spill] sm:$0xff] }
 0x142   : > { %v4903_v63 = vpop.f32.mrb[31].mxu1  ;;  %1960 = vmatmul.mubr.f32.gmra.mrb[136].mxu1 %v4533_v2  ;;  %v1744_v23 = vsel %vm688_vm1, %v5381_v1, %v1741_v33 }
 0x143   : > { %v938_v37 = vpop.f32.mrb[16].mxu0  ;;  %1964 = vmatprep.mubr.f32.mxu1 %v3385_v61 }
 0x144   : > { %v4909_v62 = vadd.f32 %v4786_v8, %v938_v37  ;;  %v940_v16 = vpop.f32.mrb[17].mxu0  ;;  %3091 = vmatmul.mubr.f32.gmra.mrb[122].mxu0 %v5379_v45  ;;  %v1743_v8 = vsel %vm688_vm1, %v1741_v33, %v1742_v43  ;;  %v3387_v37 = vld [vmem:[%s3532_s13 + $0xc8] sm:$0xff] }
 0x145   : > { %v1348_v48 = vpop.f32.mrb[32].mxu1  ;;  %3093 = vmatprep.mubr.f32.mxu0 %v5380_v41 }
 0x146   : > { %v4917_v2 = vadd.f32 %v1348_v48, %v4814_v20  ;;  %v1350_v34 = vpop.f32.mrb[33].mxu1  ;;  %1965 = vmatmul.mubr.f32.gmra.mrb[138].mxu1 %v4548_v9  ;;  %v1745_v20 = vsel %vm688_vm1, %v1742_v43, %v5382_v36  ;;  %v3388_v48 = vld [vmem:[%s3532_s13 + $0xd0] sm:$0xff] }
 0x147   : > { %v943_v7 = vpop.f32.mrb[18].mxu0  ;;  %1969 = vmatprep.mubr.f32.mxu1 %v3386_v39  ;;  %v3389_v34 = vld [vmem:[%s3532_s13 + $0xd8] sm:$0xff] }
 0x148   : > { %v4924_v57 = vadd.f32 %v4783_v21, %v943_v7  ;;  %v945_v10 = vpop.f32.mrb[19].mxu0  ;;  %3094 = vmatmul.mubr.f32.gmra.mrb[124].mxu0 %v1744_v23 }
 0x149   : > { %v1353_v51 = vpop.f32.mrb[34].mxu1  ;;  %3096 = vmatprep.mubr.f32.mxu0 %v1743_v8  ;;  %v3390_v10 = vld [vmem:[%s3532_s13 + $0xe0] sm:$0xff] }
 0x14a   : > { %v4930_v9 = vadd.f32 %v1353_v51, %v4825_v35  ;;  %v1355_v58 = vpop.f32.mrb[35].mxu1  ;;  %1970 = vmatmul.mubr.f32.gmra.mrb[140].mxu1 %v4561_v6 }
 0x14b   : > { %v948_v33 = vpop.f32.mrb[20].mxu0  ;;  %1974 = vmatprep.mubr.f32.mxu1 %v3387_v37  ;;  %v3391_v58 = vld [vmem:[%s3532_s13 + $0xe8] sm:$0xff] }
 0x14c   : > { %v4935_v21 = vadd.f32 %v4794_v12, %v948_v33  ;;  %v950_v61 = vpop.f32.mrb[21].mxu0  ;;  %3097 = vmatmul.mubr.f32.gmra.mrb[126].mxu0 %v1745_v20 }
 0x14d   : > { %v1358_v16 = vpop.f32.mrb[36].mxu1 }
 0x14e   : > { %v4938_v45 = vadd.f32 %v1358_v16, %v4836_v44  ;;  %v1360_v43 = vpop.f32.mrb[37].mxu1  ;;  %1975 = vmatmul.mubr.f32.gmra.mrb[142].mxu1 %v4569_v3  ;;  %v3392_v16 = vld [vmem:[%s3532_s13 + $0xf0] sm:$0xff] }
 0x14f   : > { %v953_v35 = vpop.f32.mrb[22].mxu0  ;;  %1979 = vmatprep.mubr.f32.mxu1 %v3388_v48 }
 0x150   : > { %v4943_v6 = vadd.f32 %v4791_v30, %v953_v35  ;;  %v955_v41 = vpop.f32.mrb[23].mxu0 }
 0x151   : > { %v1363_v12 = vpop.f32.mrb[38].mxu1 }
 0x152   : > { %v4946_v1 = vadd.f32 %v1363_v12, %v4847_v32  ;;  %v1365_v23 = vpop.f32.mrb[39].mxu1  ;;  %1980 = vmatmul.mubr.f32.gmra.mrb[144].mxu1 %v4581_v5  ;;  %v3393_v12 = vld [vmem:[%s3532_s13 + $0xf8] sm:$0xff] }
 0x153   : > { %v958_v44 = vpop.f32.mrb[24].mxu0  ;;  %1984 = vmatprep.mubr.f32.mxu1 %v3389_v34 }
 0x154   : > { %v4951_v3 = vadd.f32 %v4802_v26, %v958_v44  ;;  %v960_v8 = vpop.f32.mrb[25].mxu0 }
 0x155   : > { %v1368_v7 = vpop.f32.mrb[40].mxu1  ;;  %v5383_v8 = vld [vmem:[#allocation18_spill] sm:$0xff] }
 0x156   : > { %v4954_v30 = vadd.f32 %v1368_v7, %v4858_v42  ;;  %v1370_v39 = vpop.f32.mrb[41].mxu1  ;;  %1985 = vmatmul.mubr.f32.gmra.mrb[146].mxu1 %v4589_v27 }
 0x157   : > { %v963_v32 = vpop.f32.mrb[26].mxu0  ;;  %1989 = vmatprep.mubr.f32.mxu1 %v3390_v10 }
 0x158   : > { %v4959_v5 = vadd.f32 %v4799_v53, %v963_v32  ;;  %v965_v51 = vpop.f32.mrb[27].mxu0 }
 0x159   : > { %v1373_v36 = vpop.f32.mrb[42].mxu1 }
 0x15a   : > { %v4962_v26 = vadd.f32 %v1373_v36, %v4870_v13  ;;  %v1375_v20 = vpop.f32.mrb[43].mxu1  ;;  %1990 = vmatmul.mubr.f32.gmra.mrb[148].mxu1 %v4598_v29 }
 0x15b   : > { %v968_v42 = vpop.f32.mrb[28].mxu0  ;;  %1994 = vmatprep.mubr.f32.mxu1 %v3391_v58 }
 0x15c   : > { %v4967_v27 = vadd.f32 %v4810_v17, %v968_v42  ;;  %v970_v33 = vpop.f32.mrb[29].mxu0 }
 0x15d   : > { %v1378_v37 = vpop.f32.mrb[44].mxu1 }
 0x15e   : > { %v4970_v53 = vadd.f32 %v1378_v37, %v4883_v55  ;;  %v1380_v61 = vpop.f32.mrb[45].mxu1  ;;  %1995 = vmatmul.mubr.f32.gmra.mrb[150].mxu1 %v4607_v49  ;;  %v1736_v55 = vrot.slane %v4879_v11, 7 }
 0x15f   : > { %v973_v13 = vpop.f32.mrb[30].mxu0  ;;  %1999 = vmatprep.mubr.f32.mxu1 %v3392_v16 }
 0x160   : > { %v1199_v29 = vadd.f32 %v4807_v31, %v973_v13  ;;  %v975_v43 = vpop.f32.mrb[31].mxu0 }
 0x161   : > { %v1383_v35 = vpop.f32.mrb[46].mxu1 }
 0x162   : > { %v4976_v48 = vadd.f32 %v1383_v35, %v4897_v47  ;;  %v1385_v17 = vpop.f32.mrb[47].mxu1  ;;  %2000 = vmatmul.mubr.f32.gmra.mrb[152].mxu1 %v4617_v52  ;;  %v1739_v52 = vsel %vm623_vm3, %v5383_v8, %v1736_v55 }
 0x163   : > { %v978_v41 = vpop.f32.mrb[32].mxu0  ;;  %2004 = vmatprep.mubr.f32.mxu1 %v3393_v12 }
 0x164   : > { %v1204_v49 = vadd.f32 %v4820_v50, %v978_v41  ;;  %v980_v23 = vpop.f32.mrb[33].mxu0 }
 0x165   : > { %v1388_v44 = vpop.f32.mrb[48].mxu1 }
 0x166   : > { %v4983_v34 = vadd.f32 %v1388_v44, %v4909_v62  ;;  %v1390_v31 = vpop.f32.mrb[49].mxu1  ;;  %2005 = vmatmul.mubr.f32.gmra.mrb[154].mxu1 %v4626_v19  ;;  %v5384_v19 = vld [vmem:[#allocation26_spill] sm:$0xff] }
 0x167   : > { %v983_v47 = vpop.f32.mrb[34].mxu0  ;;  %2009 = vmatprep.mubr.f32.mxu1 %v4879_v11  ;;  %v5385_v51 = vrot.slane %v5384_v19, 7 }
 0x168   : > { %v1209_v7 = vadd.f32 %v4817_v56, %v983_v47  ;;  %v985_v39 = vpop.f32.mrb[35].mxu0 }
 0x169   : > { %v1393_v32 = vpop.f32.mrb[50].mxu1  ;;  %v1738_v11 = vsel %vm623_vm3, %v1736_v55, %v5385_v51 }
 0x16a   : > { %v4992_v50 = vadd.f32 %v1393_v32, %v4924_v57  ;;  %v1395_v10 = vpop.f32.mrb[51].mxu1  ;;  %2010 = vmatmul.mubr.f32.gmra.mrb[156].mxu1 %v1739_v52 }
 0x16b   : > { %v988_v62 = vpop.f32.mrb[36].mxu0  ;;  %2014 = vmatprep.mubr.f32.mxu1 %v4705_v59 }
 0x16c   : > { %v1214_v36 = vadd.f32 %v4831_v60, %v988_v62  ;;  %v990_v20 = vpop.f32.mrb[37].mxu0 }
 0x16d   : > { %v1398_v42 = vpop.f32.mrb[52].mxu1 }
 0x16e   : > { %v5001_v56 = vadd.f32 %v1398_v42, %v4935_v21  ;;  %v1400_v58 = vpop.f32.mrb[53].mxu1  ;;  %2015 = vmatmul.mubr.f32.gmra.mrb[158].mxu1 %v1738_v11 }
 0x16f   : > { %v993_v57 = vpop.f32.mrb[38].mxu0 }
 0x170   : > { %v1219_v33 = vadd.f32 %v4828_v24, %v993_v57  ;;  %v995_v37 = vpop.f32.mrb[39].mxu0 }
 0x171   : > { %v1403_v61 = vpop.f32.mrb[54].mxu1 }
 0x172   : > { %v5005_v59 = vadd.f32 %v1403_v61, %v4943_v6  ;;  %v1405_v13 = vpop.f32.mrb[55].mxu1 }
 0x173   : > { %v998_v18 = vpop.f32.mrb[40].mxu0 }
 0x174   : > { %v1224_v16 = vadd.f32 %v4842_v25, %v998_v18  ;;  %v1000_v60 = vpop.f32.mrb[41].mxu0 }
 0x175   : > { %v1408_v43 = vpop.f32.mrb[56].mxu1 }
 0x176   : > { %v5009_v35 = vadd.f32 %v1408_v43, %v4951_v3  ;;  %v1410_v21 = vpop.f32.mrb[57].mxu1 }
 0x177   : > { %v1003_v17 = vpop.f32.mrb[42].mxu0 }
 0x178   : > { %v1229_v41 = vadd.f32 %v4839_v54, %v1003_v17  ;;  %v1005_v12 = vpop.f32.mrb[43].mxu0 }
 0x179   : > { %v1413_v24 = vpop.f32.mrb[58].mxu1 }
 0x17a   : > { %v5013_v55 = vadd.f32 %v1413_v24, %v4959_v5  ;;  %v1415_v6 = vpop.f32.mrb[59].mxu1 }
 0x17b   : > { %v1008_v23 = vpop.f32.mrb[44].mxu0 }
 0x17c   : > { %v1234_v44 = vadd.f32 %v4853_v0, %v1008_v23  ;;  %v1010_v31 = vpop.f32.mrb[45].mxu0 }
 0x17d   : > { %v1418_v25 = vpop.f32.mrb[60].mxu1 }
 0x17e   : > { %v5017_v47 = vadd.f32 %v1418_v25, %v4967_v27  ;;  %v1420_v3 = vpop.f32.mrb[61].mxu1 }
 0x17f   : > { %v1013_v8 = vpop.f32.mrb[46].mxu0 }
 0x180   : > { %v1239_v52 = vadd.f32 %v4850_v46, %v1013_v8  ;;  %v1015_v39 = vpop.f32.mrb[47].mxu0 }
 0x181   : > { %v1423_v54 = vpop.f32.mrb[62].mxu1 }
 0x182   : > { %v5020_v32 = vadd.f32 %v1423_v54, %v1199_v29  ;;  %v1425_v10 = vpop.f32.mrb[63].mxu1 }
 0x183   : > { %v1018_v5 = vpop.f32.mrb[48].mxu0 }
 0x184   : > { %v1244_v62 = vadd.f32 %v4864_v40, %v1018_v5  ;;  %v1020_v19 = vpop.f32.mrb[49].mxu0 }
 0x185   : > { %v1428_v51 = vpop.f32.mrb[64].mxu1 }
 0x186   : > { %v5023_v0 = vadd.f32 %v1428_v51, %v1204_v49  ;;  %v1430_v11 = vpop.f32.mrb[65].mxu1 }
 0x187   : > { %v1023_v20 = vpop.f32.mrb[50].mxu0 }
 0x188   : > { %v1249_v27 = vadd.f32 %v4861_v38, %v1023_v20  ;;  %v1025_v42 = vpop.f32.mrb[51].mxu0 }
 0x189   : > { %v1433_v58 = vpop.f32.mrb[66].mxu1 }
 0x18a   : > { %v5026_v57 = vadd.f32 %v1433_v58, %v1209_v7  ;;  %v1435_v46 = vpop.f32.mrb[67].mxu1 }
 0x18b   : > { %v1028_v37 = vpop.f32.mrb[52].mxu0 }
 0x18c   : > { %v1254_v29 = vadd.f32 %v4876_v4, %v1028_v37  ;;  %v1030_v61 = vpop.f32.mrb[53].mxu0 }
 0x18d   : > { %v1438_v13 = vpop.f32.mrb[68].mxu1 }
 0x18e   : > { %v5029_v18 = vadd.f32 %v1438_v13, %v1214_v36  ;;  %v1440_v40 = vpop.f32.mrb[69].mxu1 }
 0x18f   : > { %v1033_v60 = vpop.f32.mrb[54].mxu0 }
 0x190   : > { %v1259_v49 = vadd.f32 %v4873_v14, %v1033_v60  ;;  %v1035_v43 = vpop.f32.mrb[55].mxu0 }
 0x191   : > { %v1443_v21 = vpop.f32.mrb[70].mxu1 }
 0x192   : > { %v5032_v17 = vadd.f32 %v1443_v21, %v1219_v33  ;;  %v1445_v38 = vpop.f32.mrb[71].mxu1 }
 0x193   : > { %v1038_v12 = vpop.f32.mrb[56].mxu0 }
 0x194   : > { %v1264_v7 = vadd.f32 %v4889_v15, %v1038_v12  ;;  %v1040_v24 = vpop.f32.mrb[57].mxu0 }
 0x195   : > { %v1448_v6 = vpop.f32.mrb[72].mxu1 }
 0x196   : > { %v5035_v23 = vadd.f32 %v1448_v6, %v1224_v16  ;;  %v1450_v4 = vpop.f32.mrb[73].mxu1 }
 0x197   : > { %v1043_v31 = vpop.f32.mrb[58].mxu0 }
 0x198   : > { %v1269_v36 = vadd.f32 %v4886_v22, %v1043_v31  ;;  %v1045_v25 = vpop.f32.mrb[59].mxu0 }
 0x199   : > { %v1453_v3 = vpop.f32.mrb[74].mxu1 }
 0x19a   : > { %v5038_v8 = vadd.f32 %v1453_v3, %v1229_v41  ;;  %v1455_v14 = vpop.f32.mrb[75].mxu1 }
 0x19b   : > { %v1048_v39 = vpop.f32.mrb[60].mxu0 }
 0x19c   : > { %v1274_v33 = vadd.f32 %v4903_v63, %v1048_v39  ;;  %v1050_v54 = vpop.f32.mrb[61].mxu0 }
 0x19d   : > { %v1458_v10 = vpop.f32.mrb[76].mxu1 }
 0x19e   : > { %v5041_v5 = vadd.f32 %v1458_v10, %v1234_v44  ;;  %v1460_v15 = vpop.f32.mrb[77].mxu1 }
 0x19f   : > { %v1053_v19 = vpop.f32.mrb[62].mxu0 }
 0x1a0   : > { %v1279_v16 = vadd.f32 %v4900_v28, %v1053_v19  ;;  %v1055_v51 = vpop.f32.mrb[63].mxu0 }
 0x1a1   : > { %v1463_v11 = vpop.f32.mrb[78].mxu1 }
 0x1a2   : > { %v5044_v20 = vadd.f32 %v1463_v11, %v1239_v52  ;;  %v1465_v22 = vpop.f32.mrb[79].mxu1 }
 0x1a3   : > { %v2973_v42 = vpop.f32.mrb[64].mxu0 }
 0x1a4   : > { %v5047_v41 = vadd.f32 %v2973_v42, %v4930_v9  ;;  %v1573_v58 = vpop.f32.mrb[65].mxu0 }
 0x1a5   : > { %v1468_v46 = vpop.f32.mrb[80].mxu1  ;;  %v5050_v63 = vadd.f32 %v1573_v58, %v4917_v2 }
 0x1a6   : > { %v5052_v44 = vadd.f32 %v1468_v46, %v1244_v62  ;;  %v1470_v37 = vpop.f32.mrb[81].mxu1 }
 0x1a7   : > { %v2976_v61 = vpop.f32.mrb[66].mxu0 }
 0x1a8   : > { %v5055_v28 = vadd.f32 %v2976_v61, %v4946_v1  ;;  %v1583_v13 = vpop.f32.mrb[67].mxu0 }
 0x1a9   : > { %v1473_v52 = vpop.f32.mrb[82].mxu1  ;;  %v5058_v40 = vadd.f32 %v1583_v13, %v4938_v45 }
 0x1aa   : > { %v5060_v60 = vadd.f32 %v1473_v52, %v1249_v27  ;;  %v1475_v9 = vpop.f32.mrb[83].mxu1 }
 0x1ab   : > { %v2979_v43 = vpop.f32.mrb[68].mxu0 }
 0x1ac   : > { %v5063_v21 = vadd.f32 %v2979_v43, %v4962_v26  ;;  %v1593_v2 = vpop.f32.mrb[69].mxu0 }
 0x1ad   : > { %v1478_v62 = vpop.f32.mrb[84].mxu1  ;;  %v5066_v38 = vadd.f32 %v1593_v2, %v4954_v30 }
 0x1ae   : > { %v5068_v12 = vadd.f32 %v1478_v62, %v1254_v29  ;;  %v1480_v1 = vpop.f32.mrb[85].mxu1 }
 0x1af   : > { %v2982_v24 = vpop.f32.mrb[70].mxu0 }
 0x1b0   : > { %v5071_v6 = vadd.f32 %v2982_v24, %v4976_v48  ;;  %v1603_v45 = vpop.f32.mrb[71].mxu0 }
 0x1b1   : > { %v1483_v27 = vpop.f32.mrb[86].mxu1  ;;  %v5074_v4 = vadd.f32 %v1603_v45, %v4970_v53 }
 0x1b2   : > { %v1484_v31 = vadd.f32 %v1483_v27, %v1259_v49  ;;  %v1485_v26 = vpop.f32.mrb[87].mxu1 }
 0x1b3   : > { %v2985_v25 = vpop.f32.mrb[72].mxu0 }
 0x1b4   : > { %v5077_v3 = vadd.f32 %v2985_v25, %v4992_v50  ;;  %v1613_v30 = vpop.f32.mrb[73].mxu0 }
 0x1b5   : > { %v1488_v14 = vpop.f32.mrb[88].mxu1  ;;  %v5080_v29 = vadd.f32 %v1613_v30, %v4983_v34 }
 0x1b6   : > { %v1489_v39 = vadd.f32 %v1488_v14, %v1264_v7  ;;  %v1490_v54 = vpop.f32.mrb[89].mxu1 }
 0x1b7   : > { %v2988_v48 = vpop.f32.mrb[74].mxu0 }
 0x1b8   : > { %v5083_v10 = vadd.f32 %v2988_v48, %v5005_v59  ;;  %v1623_v15 = vpop.f32.mrb[75].mxu0 }
 0x1b9   : > { %v1493_v53 = vpop.f32.mrb[90].mxu1  ;;  %v5086_v49 = vadd.f32 %v1623_v15, %v5001_v56 }
 0x1ba   : > { %v1494_v19 = vadd.f32 %v1493_v53, %v1269_v36  ;;  %v1495_v51 = vpop.f32.mrb[91].mxu1 }
 0x1bb   : > { %v2991_v50 = vpop.f32.mrb[76].mxu0 }
 0x1bc   : > { %v5089_v11 = vadd.f32 %v2991_v50, %v5013_v55  ;;  %v1633_v22 = vpop.f32.mrb[77].mxu0 }
 0x1bd   : > { %v1498_v34 = vpop.f32.mrb[92].mxu1  ;;  %v5092_v7 = vadd.f32 %v1633_v22, %v5009_v35 }
 0x1be   : > { %v1499_v42 = vadd.f32 %v1498_v34, %v1274_v33  ;;  %v1500_v58 = vpop.f32.mrb[93].mxu1 }
 0x1bf   : > { %v2994_v59 = vpop.f32.mrb[78].mxu0 }
 0x1c0   : > { %v5095_v46 = vadd.f32 %v2994_v59, %v5020_v32  ;;  %v1643_v37 = vpop.f32.mrb[79].mxu0 }
 0x1c1   : > { %v1503_v56 = vpop.f32.mrb[94].mxu1  ;;  %v5098_v36 = vadd.f32 %v1643_v37, %v5017_v47 }
 0x1c2   : > { %v1504_v61 = vadd.f32 %v1503_v56, %v1279_v16  ;;  %v1505_v13 = vpop.f32.mrb[95].mxu1 }
 0x1c3   : > { %v2997_v55 = vpop.f32.mrb[80].mxu0 }
 0x1c4   : > { %v5101_v52 = vadd.f32 %v2997_v55, %v5026_v57  ;;  %v1653_v9 = vpop.f32.mrb[81].mxu0 }
 0x1c5   : > { %v5104_v35 = vadd.f32 %v1653_v9, %v5023_v0  ;;  %v1861_v33 = vpop.f32.mrb[96].mxu1 }
 0x1c6   : > { %v1863_v43 = vpop.f32.mrb[97].mxu1 }
 0x1c7   : > { %v3000_v2 = vpop.f32.mrb[82].mxu0 }
 0x1c8   : > { %v5107_v32 = vadd.f32 %v3000_v2, %v5032_v17  ;;  %v1663_v62 = vpop.f32.mrb[83].mxu0 }
 0x1c9   : > { %v5110_v47 = vadd.f32 %v1663_v62, %v5029_v18  ;;  %v1866_v16 = vpop.f32.mrb[98].mxu1 }
 0x1ca   : > { %v1868_v1 = vpop.f32.mrb[99].mxu1 }
 0x1cb   : > { %v3003_v24 = vpop.f32.mrb[84].mxu0 }
 0x1cc   : > { %v5113_v57 = vadd.f32 %v3003_v24, %v5038_v8  ;;  %v1673_v45 = vpop.f32.mrb[85].mxu0 }
 0x1cd   : > { %v5116_v0 = vadd.f32 %v1673_v45, %v5035_v23  ;;  %v1871_v27 = vpop.f32.mrb[100].mxu1 }
 0x1ce   : > { %v1873_v26 = vpop.f32.mrb[101].mxu1 }
 0x1cf   : > { %v3006_v25 = vpop.f32.mrb[86].mxu0 }
 0x1d0   : > { %v5119_v17 = vadd.f32 %v3006_v25, %v5044_v20  ;;  %v1683_v30 = vpop.f32.mrb[87].mxu0 }
 0x1d1   : > { %v5122_v18 = vadd.f32 %v1683_v30, %v5041_v5  ;;  %v1876_v14 = vpop.f32.mrb[102].mxu1 }
 0x1d2   : > { %v1878_v54 = vpop.f32.mrb[103].mxu1 }
 0x1d3   : > { %v3009_v48 = vpop.f32.mrb[88].mxu0 }
 0x1d4   : > { %v5125_v8 = vadd.f32 %v3009_v48, %v5060_v60  ;;  %v1693_v15 = vpop.f32.mrb[89].mxu0 }
 0x1d5   : > { %v5128_v23 = vadd.f32 %v1693_v15, %v5052_v44  ;;  %v1881_v53 = vpop.f32.mrb[104].mxu1 }
 0x1d6   : > { %v1883_v51 = vpop.f32.mrb[105].mxu1 }
 0x1d7   : > { %v3012_v50 = vpop.f32.mrb[90].mxu0 }
 0x1d8   : > { %v5130_v22 = vadd.f32 %v3012_v50, %v1484_v31  ;;  %v1703_v20 = vpop.f32.mrb[91].mxu0 }
 0x1d9   : > { %v5133_v34 = vadd.f32 %v1703_v20, %v5068_v12  ;;  %v1886_v5 = vpop.f32.mrb[106].mxu1 }
 0x1da   : > { %v1888_v58 = vpop.f32.mrb[107].mxu1 }
 0x1db   : > { %v3015_v59 = vpop.f32.mrb[92].mxu0 }
 0x1dc   : > { %v5135_v37 = vadd.f32 %v3015_v59, %v1494_v19  ;;  %v1713_v60 = vpop.f32.mrb[93].mxu0 }
 0x1dd   : > { %v5137_v56 = vadd.f32 %v1713_v60, %v1489_v39  ;;  %v1891_v44 = vpop.f32.mrb[108].mxu1 }
 0x1de   : > { %v1893_v13 = vpop.f32.mrb[109].mxu1 }
 0x1df   : > { %v3018_v55 = vpop.f32.mrb[94].mxu0 }
 0x1e0   : > { %v5139_v9 = vadd.f32 %v3018_v55, %v1504_v61  ;;  %v1723_v31 = vpop.f32.mrb[95].mxu0 }
 0x1e1   : > { %v5141_v43 = vadd.f32 %v1723_v31, %v1499_v42  ;;  %v1896_v2 = vpop.f32.mrb[110].mxu1 }
 0x1e2   : > { %v1898_v12 = vpop.f32.mrb[111].mxu1 }
 0x1e3   : > { %v3053_v62 = vpop.f32.mrb[96].mxu0 }
 0x1e4   : > { %v2092_v1 = vadd.f32 %v3053_v62, %v1866_v16  ;;  %v2086_v24 = vpop.f32.mrb[97].mxu0 }
 0x1e5   : > { %v1901_v39 = vpop.f32.mrb[112].mxu1  ;;  %v2087_v19 = vadd.f32 %v2086_v24, %v1861_v33 }
 0x1e6   : > { %v2246_v61 = vadd.f32 %v2092_v1, %v5047_v41  ;;  %v1903_v45 = vpop.f32.mrb[113].mxu1 }
 0x1e7   : > { %v2245_v42 = vadd.f32 %v2087_v19, %v5050_v63  ;;  %v3056_v26 = vpop.f32.mrb[98].mxu0 }
 0x1e8   : > { %2278 = vst [vmem:[%s5147_s16 + $0x8] sm:$0xff] %v2246_v61  ;;  %v2347_v25 = vmul.f32 %v2246_v61, %v2246_v61  ;;  %v2102_v16 = vadd.f32 %v3056_v26, %v1876_v14  ;;  %v2096_v30 = vpop.f32.mrb[99].mxu0 }
 0x1e9   : > { %2277 = vst [vmem:[%s5147_s16] sm:$0xff] %v2245_v42  ;;  %v2309_v54 = vadd.f32 %v2246_v61, %v2245_v42  ;;  %v2346_v48 = vmul.f32 %v2245_v42, %v2245_v42  ;;  %v1906_v15 = vpop.f32.mrb[114].mxu1  ;;  %v2097_v51 = vadd.f32 %v2096_v30, %v1871_v27 }
 0x1ea   : > { %v2248_v50 = vadd.f32 %v2102_v16, %v5055_v28  ;;  %v1908_v33 = vpop.f32.mrb[115].mxu1 }
 0x1eb   : > { %v2378_v20 = vadd.f32 %v2347_v25, %v2346_v48  ;;  %v2247_v41 = vadd.f32 %v2097_v51, %v5058_v40  ;;  %v3059_v58 = vpop.f32.mrb[100].mxu0 }
 0x1ec   : > { %2280 = vst [vmem:[%s5147_s16 + $0x18] sm:$0xff] %v2248_v50  ;;  %v2112_v63 = vadd.f32 %v3059_v58, %v1886_v5  ;;  %v2106_v59 = vpop.f32.mrb[101].mxu0  ;;  %v2349_v12 = vmul.f32 %v2248_v50, %v2248_v50 }
 0x1ed   : > { %2279 = vst [vmem:[%s5147_s16 + $0x10] sm:$0xff] %v2247_v41  ;;  %v2310_v14 = vadd.f32 %v2309_v54, %v2247_v41  ;;  %v2348_v60 = vmul.f32 %v2247_v41, %v2247_v41  ;;  %v1911_v13 = vpop.f32.mrb[116].mxu1  ;;  %v2107_v55 = vadd.f32 %v2106_v59, %v1881_v53 }
 0x1ee   : > { %v2250_v31 = vadd.f32 %v2112_v63, %v5063_v21  ;;  %v1913_v27 = vpop.f32.mrb[117].mxu1 }
 0x1ef   : > { %v2379_v28 = vadd.f32 %v2378_v20, %v2348_v60  ;;  %v2249_v62 = vadd.f32 %v2107_v55, %v5066_v38  ;;  %v2311_v1 = vadd.f32 %v2310_v14, %v2248_v50  ;;  %v3062_v40 = vpop.f32.mrb[102].mxu0 }
 0x1f0   : > { %2282 = vst [vmem:[%s5147_s16 + $0x28] sm:$0xff] %v2250_v31  ;;  %v2122_v24 = vadd.f32 %v3062_v40, %v1896_v2  ;;  %v2116_v5 = vpop.f32.mrb[103].mxu0  ;;  %v2351_v25 = vmul.f32 %v2250_v31, %v2250_v31 }
 0x1f1   : > { %2281 = vst [vmem:[%s5147_s16 + $0x20] sm:$0xff] %v2249_v62  ;;  %v2312_v19 = vadd.f32 %v2311_v1, %v2249_v62  ;;  %v2350_v61 = vmul.f32 %v2249_v62, %v2249_v62  ;;  %v2380_v45 = vadd.f32 %v2379_v28, %v2349_v12  ;;  %v1916_v42 = vpop.f32.mrb[118].mxu1  ;;  %v2117_v53 = vadd.f32 %v2116_v5, %v1891_v44 }
 0x1f2   : > { %v2252_v21 = vadd.f32 %v2122_v24, %v5071_v6  ;;  %v1918_v26 = vpop.f32.mrb[119].mxu1 }
 0x1f3   : > { %v2381_v16 = vadd.f32 %v2380_v45, %v2350_v61  ;;  %v2251_v38 = vadd.f32 %v2117_v53, %v5074_v4  ;;  %v2313_v30 = vadd.f32 %v2312_v19, %v2250_v31  ;;  %v3065_v54 = vpop.f32.mrb[104].mxu0 }
 0x1f4   : > { %2284 = vst [vmem:[%s5147_s16 + $0x38] sm:$0xff] %v2252_v21  ;;  %v2132_v2 = vadd.f32 %v3065_v54, %v1906_v15  ;;  %v2126_v48 = vpop.f32.mrb[105].mxu0  ;;  %v2353_v58 = vmul.f32 %v2252_v21, %v2252_v21 }
 0x1f5   : > { %2283 = vst [vmem:[%s5147_s16 + $0x30] sm:$0xff] %v2251_v38  ;;  %v2314_v51 = vadd.f32 %v2313_v30, %v2251_v38  ;;  %v2352_v50 = vmul.f32 %v2251_v38, %v2251_v38  ;;  %v2382_v33 = vadd.f32 %v2381_v16, %v2351_v25  ;;  %v1921_v20 = vpop.f32.mrb[120].mxu1  ;;  %v2127_v44 = vadd.f32 %v2126_v48, %v1901_v39 }
 0x1f6   : > { %v2254_v6 = vadd.f32 %v2132_v2, %v5077_v3  ;;  %v1923_v41 = vpop.f32.mrb[121].mxu1 }
 0x1f7   : > { %v2383_v63 = vadd.f32 %v2382_v33, %v2352_v50  ;;  %v2253_v4 = vadd.f32 %v2127_v44, %v5080_v29  ;;  %v2315_v59 = vadd.f32 %v2314_v51, %v2252_v21  ;;  %v3068_v14 = vpop.f32.mrb[106].mxu0 }
 0x1f8   : > { %2286 = vst [vmem:[%s5147_s16 + $0x48] sm:$0xff] %v2254_v6  ;;  %v2142_v15 = vadd.f32 %v3068_v14, %v1916_v42  ;;  %v2136_v60 = vpop.f32.mrb[107].mxu0  ;;  %v2355_v62 = vmul.f32 %v2254_v6, %v2254_v6 }
 0x1f9   : > { %2285 = vst [vmem:[%s5147_s16 + $0x40] sm:$0xff] %v2253_v4  ;;  %v2316_v55 = vadd.f32 %v2315_v59, %v2253_v4  ;;  %v2354_v31 = vmul.f32 %v2253_v4, %v2253_v4  ;;  %v2384_v27 = vadd.f32 %v2383_v63, %v2353_v58  ;;  %v1926_v12 = vpop.f32.mrb[122].mxu1  ;;  %v2137_v39 = vadd.f32 %v2136_v60, %v1911_v13 }
 0x1fa   : > { %v2256_v3 = vadd.f32 %v2142_v15, %v5083_v10  ;;  %v1928_v28 = vpop.f32.mrb[123].mxu1 }
 0x1fb   : > { %v2385_v1 = vadd.f32 %v2384_v27, %v2354_v31  ;;  %v2255_v29 = vadd.f32 %v2137_v39, %v5086_v49  ;;  %v2317_v40 = vadd.f32 %v2316_v55, %v2254_v6  ;;  %v3071_v24 = vpop.f32.mrb[108].mxu0 }
 0x1fc   : > { %2288 = vst [vmem:[%s5147_s16 + $0x58] sm:$0xff] %v2256_v3  ;;  %v2152_v5 = vadd.f32 %v3071_v24, %v1926_v12  ;;  %v2146_v19 = vpop.f32.mrb[109].mxu0  ;;  %v2357_v26 = vmul.f32 %v2256_v3, %v2256_v3 }
 0x1fd   : > { %2287 = vst [vmem:[%s5147_s16 + $0x50] sm:$0xff] %v2255_v29  ;;  %v2318_v61 = vadd.f32 %v2317_v40, %v2255_v29  ;;  %v2356_v45 = vmul.f32 %v2255_v29, %v2255_v29  ;;  %v2386_v42 = vadd.f32 %v2385_v1, %v2355_v62  ;;  %v1931_v53 = vpop.f32.mrb[124].mxu1  ;;  %v2147_v13 = vadd.f32 %v2146_v19, %v1921_v20 }
 0x1fe   : > { %v2258_v10 = vadd.f32 %v2152_v5, %v5089_v11  ;;  %v1933_v21 = vpop.f32.mrb[125].mxu1 }
 0x1ff   : > { %v2387_v25 = vadd.f32 %v2386_v42, %v2356_v45  ;;  %v2257_v49 = vadd.f32 %v2147_v13, %v5092_v7  ;;  %v2319_v16 = vadd.f32 %v2318_v61, %v2256_v3  ;;  %v3074_v38 = vpop.f32.mrb[110].mxu0 }
 0x200   : > { %2290 = vst [vmem:[%s5147_s16 + $0x68] sm:$0xff] %v2258_v10  ;;  %v2156_v30 = vpop.f32.mrb[111].mxu0  ;;  %v2359_v11 = vmul.f32 %v2258_v10, %v2258_v10 }
 0x201   : > { %2289 = vst [vmem:[%s5147_s16 + $0x60] sm:$0xff] %v2257_v49  ;;  %v2320_v54 = vadd.f32 %v2319_v16, %v2257_v49  ;;  %v2358_v2 = vmul.f32 %v2257_v49, %v2257_v49  ;;  %v2388_v48 = vadd.f32 %v2387_v25, %v2357_v26  ;;  %v1936_v51 = vpop.f32.mrb[126].mxu1  ;;  %v2157_v50 = vadd.f32 %v2156_v30, %v1931_v53 }
 0x202   : > { %v2162_v33 = vadd.f32 %v3074_v38, %v1936_v51  ;;  %v1938_v20 = vpop.f32.mrb[127].mxu1 }
 0x203   : > { %v2389_v44 = vadd.f32 %v2388_v48, %v2358_v2  ;;  %v2259_v6 = vadd.f32 %v2157_v50, %v5098_v36  ;;  %v2321_v41 = vadd.f32 %v2320_v54, %v2258_v10  ;;  %v3077_v7 = vpop.f32.mrb[112].mxu0 }
 0x204   : > { %v2260_v58 = vadd.f32 %v2162_v33, %v5095_v46  ;;  %v2166_v63 = vpop.f32.mrb[113].mxu0 }
 0x205   : > { %2291 = vst [vmem:[%s5147_s16 + $0x70] sm:$0xff] %v2259_v6  ;;  %v2322_v4 = vadd.f32 %v2321_v41, %v2259_v6  ;;  %v2360_v59 = vmul.f32 %v2259_v6, %v2259_v6  ;;  %v2390_v14 = vadd.f32 %v2389_v44, %v2359_v11  ;;  %v1941_v15 = vpop.f32.mrb[128].mxu1 }
 0x206   : > { %2292 = vst [vmem:[%s5147_s16 + $0x78] sm:$0xff] %v2260_v58  ;;  %v2167_v60 = vadd.f32 %v2166_v63, %v1941_v15  ;;  %v1943_v55 = vpop.f32.mrb[129].mxu1  ;;  %v2361_v31 = vmul.f32 %v2260_v58, %v2260_v58 }
 0x207   : > { %v2391_v27 = vadd.f32 %v2390_v14, %v2360_v59  ;;  %v2323_v12 = vadd.f32 %v2322_v4, %v2260_v58  ;;  %v3080_v39 = vpop.f32.mrb[114].mxu0 }
 0x208   : > { %v2261_v36 = vadd.f32 %v2167_v60, %v5104_v35  ;;  %v2176_v3 = vpop.f32.mrb[115].mxu0 }
 0x209   : > { %v2392_v28 = vadd.f32 %v2391_v27, %v2361_v31  ;;  %v1946_v46 = vpop.f32.mrb[130].mxu1 }
 0x20a   : > { %2293 = vst [vmem:[%s5147_s16 + $0x80] sm:$0xff] %v2261_v36  ;;  %v2324_v62 = vadd.f32 %v2323_v12, %v2261_v36  ;;  %v2362_v1 = vmul.f32 %v2261_v36, %v2261_v36  ;;  %v2172_v29 = vadd.f32 %v3077_v7, %v1946_v46  ;;  %v1948_v40 = vpop.f32.mrb[131].mxu1 }
 0x20b   : > { %v3083_v24 = vpop.f32.mrb[116].mxu0 }
 0x20c   : > { %v2393_v5 = vadd.f32 %v2392_v28, %v2362_v1  ;;  %v2262_v19 = vadd.f32 %v2172_v29, %v5101_v52  ;;  %v2186_v61 = vpop.f32.mrb[117].mxu0 }
 0x20d   : > { %v1951_v45 = vpop.f32.mrb[132].mxu1 }
 0x20e   : > { %2294 = vst [vmem:[%s5147_s16 + $0x88] sm:$0xff] %v2262_v19  ;;  %v2325_v42 = vadd.f32 %v2324_v62, %v2262_v19  ;;  %v2363_v53 = vmul.f32 %v2262_v19, %v2262_v19  ;;  %v2177_v13 = vadd.f32 %v2176_v3, %v1951_v45  ;;  %v1953_v35 = vpop.f32.mrb[133].mxu1 }
 0x20f   : > { %v3086_v10 = vpop.f32.mrb[118].mxu0 }
 0x210   : > { %v2394_v21 = vadd.f32 %v2393_v5, %v2363_v53  ;;  %v2263_v26 = vadd.f32 %v2177_v13, %v5110_v47  ;;  %v2196_v25 = vpop.f32.mrb[119].mxu0 }
 0x211   : > { %v1956_v49 = vpop.f32.mrb[134].mxu1 }
 0x212   : > { %2295 = vst [vmem:[%s5147_s16 + $0x90] sm:$0xff] %v2263_v26  ;;  %v2326_v16 = vadd.f32 %v2325_v42, %v2263_v26  ;;  %v2364_v38 = vmul.f32 %v2263_v26, %v2263_v26  ;;  %v2182_v30 = vadd.f32 %v3080_v39, %v1956_v49  ;;  %v1958_v54 = vpop.f32.mrb[135].mxu1 }
 0x213   : > { %v3089_v52 = vpop.f32.mrb[120].mxu0 }
 0x214   : > { %v2395_v2 = vadd.f32 %v2394_v21, %v2364_v38  ;;  %v2264_v48 = vadd.f32 %v2182_v30, %v5107_v32  ;;  %v2206_v51 = vpop.f32.mrb[121].mxu0 }
 0x215   : > { %v1961_v50 = vpop.f32.mrb[136].mxu1 }
 0x216   : > { %2296 = vst [vmem:[%s5147_s16 + $0x98] sm:$0xff] %v2264_v48  ;;  %v2327_v33 = vadd.f32 %v2326_v16, %v2264_v48  ;;  %v2365_v20 = vmul.f32 %v2264_v48, %v2264_v48  ;;  %v2187_v11 = vadd.f32 %v2186_v61, %v1961_v50  ;;  %v1963_v44 = vpop.f32.mrb[137].mxu1 }
 0x217   : > { %v3092_v47 = vpop.f32.mrb[122].mxu0 }
 0x218   : > { %v2396_v6 = vadd.f32 %v2395_v2, %v2365_v20  ;;  %v2265_v41 = vadd.f32 %v2187_v11, %v5116_v0  ;;  %v2216_v7 = vpop.f32.mrb[123].mxu0 }
 0x219   : > { %v1966_v58 = vpop.f32.mrb[138].mxu1 }
 0x21a   : > { %2297 = vst [vmem:[%s5147_s16 + $0xa0] sm:$0xff] %v2265_v41  ;;  %v2328_v63 = vadd.f32 %v2327_v33, %v2265_v41  ;;  %v2366_v4 = vmul.f32 %v2265_v41, %v2265_v41  ;;  %v2192_v59 = vadd.f32 %v3083_v24, %v1966_v58  ;;  %v1968_v14 = vpop.f32.mrb[139].mxu1 }
 0x21b   : > { %v5191_v32 = vpop.f32.mrb[124].mxu0 }
 0x21c   : > { %v2397_v15 = vadd.f32 %v2396_v6, %v2366_v4  ;;  %v2266_v60 = vadd.f32 %v2192_v59, %v5113_v57  ;;  %v2226_v55 = vpop.f32.mrb[125].mxu0 }
 0x21d   : > { %v1971_v31 = vpop.f32.mrb[140].mxu1 }
 0x21e   : > { %2298 = vst [vmem:[%s5147_s16 + $0xa8] sm:$0xff] %v2266_v60  ;;  %v2329_v27 = vadd.f32 %v2328_v63, %v2266_v60  ;;  %v2367_v12 = vmul.f32 %v2266_v60, %v2266_v60  ;;  %v2197_v0 = vadd.f32 %v2196_v25, %v1971_v31  ;;  %v1973_v39 = vpop.f32.mrb[141].mxu1 }
 0x21f   : > { %v5195_v36 = vpop.f32.mrb[126].mxu0 }
 0x220   : > { %v2398_v3 = vadd.f32 %v2397_v15, %v2367_v12  ;;  %v2267_v28 = vadd.f32 %v2197_v0, %v5122_v18  ;;  %v2236_v46 = vpop.f32.mrb[127].mxu0 }
 0x221   : > { %v1976_v62 = vpop.f32.mrb[142].mxu1 }
 0x222   : > { %2299 = vst [vmem:[%s5147_s16 + $0xb0] sm:$0xff] %v2267_v28  ;;  %v2330_v1 = vadd.f32 %v2329_v27, %v2267_v28  ;;  %v2368_v29 = vmul.f32 %v2267_v28, %v2267_v28  ;;  %v2202_v57 = vadd.f32 %v3086_v10, %v1976_v62  ;;  %v1978_v40 = vpop.f32.mrb[143].mxu1 }
 0x224   : > { %v2399_v24 = vadd.f32 %v2398_v3, %v2368_v29  ;;  %v2268_v5 = vadd.f32 %v2202_v57, %v5119_v17 }
 0x225   : > { %v1981_v19 = vpop.f32.mrb[144].mxu1 }
 0x226   : > { %2300 = vst [vmem:[%s5147_s16 + $0xb8] sm:$0xff] %v2268_v5  ;;  %v2331_v61 = vadd.f32 %v2330_v1, %v2268_v5  ;;  %v2369_v45 = vmul.f32 %v2268_v5, %v2268_v5  ;;  %v2207_v42 = vadd.f32 %v2206_v51, %v1981_v19  ;;  %v1983_v53 = vpop.f32.mrb[145].mxu1 }
 0x228   : > { %v2400_v13 = vadd.f32 %v2399_v24, %v2369_v45  ;;  %v2269_v18 = vadd.f32 %v2207_v42, %v5128_v23 }
 0x229   : > { %v1986_v35 = vpop.f32.mrb[146].mxu1 }
 0x22a   : > { %2301 = vst [vmem:[%s5147_s16 + $0xc0] sm:$0xff] %v2269_v18  ;;  %v2332_v21 = vadd.f32 %v2331_v61, %v2269_v18  ;;  %v2370_v26 = vmul.f32 %v2269_v18, %v2269_v18  ;;  %v2212_v10 = vadd.f32 %v3089_v52, %v1986_v35  ;;  %v1988_v25 = vpop.f32.mrb[147].mxu1 }
 0x22c   : > { %v2401_v49 = vadd.f32 %v2400_v13, %v2370_v26  ;;  %v2270_v17 = vadd.f32 %v2212_v10, %v5125_v8 }
 0x22d   : > { %v1991_v16 = vpop.f32.mrb[148].mxu1 }
 0x22e   : > { %2302 = vst [vmem:[%s5147_s16 + $0xc8] sm:$0xff] %v2270_v17  ;;  %v2333_v38 = vadd.f32 %v2332_v21, %v2270_v17  ;;  %v2371_v30 = vmul.f32 %v2270_v17, %v2270_v17  ;;  %v2217_v54 = vadd.f32 %v2216_v7, %v1991_v16  ;;  %v1993_v2 = vpop.f32.mrb[149].mxu1 }
 0x230   : > { %v2402_v48 = vadd.f32 %v2401_v49, %v2371_v30  ;;  %v2271_v23 = vadd.f32 %v2217_v54, %v5133_v34 }
 0x231   : > { %v1996_v51 = vpop.f32.mrb[150].mxu1 }
 0x232   : > { %2303 = vst [vmem:[%s5147_s16 + $0xd0] sm:$0xff] %v2271_v23  ;;  %v2334_v50 = vadd.f32 %v2333_v38, %v2271_v23  ;;  %v2372_v33 = vmul.f32 %v2271_v23, %v2271_v23  ;;  %v2222_v52 = vadd.f32 %v3092_v47, %v1996_v51  ;;  %v1998_v20 = vpop.f32.mrb[151].mxu1 }
 0x234   : > { %v2403_v11 = vadd.f32 %v2402_v48, %v2372_v33  ;;  %v2272_v8 = vadd.f32 %v2222_v52, %v5130_v22 }
 0x235   : > { %v2001_v44 = vpop.f32.mrb[152].mxu1 }
 0x236   : > { %2304 = vst [vmem:[%s5147_s16 + $0xd8] sm:$0xff] %v2272_v8  ;;  %v2335_v6 = vadd.f32 %v2334_v50, %v2272_v8  ;;  %v2373_v41 = vmul.f32 %v2272_v8, %v2272_v8  ;;  %v2227_v7 = vadd.f32 %v2226_v55, %v2001_v44  ;;  %v2003_v58 = vpop.f32.mrb[153].mxu1 }
 0x238   : > { %v2404_v63 = vadd.f32 %v2403_v11, %v2373_v41  ;;  %v2273_v34 = vadd.f32 %v2227_v7, %v5137_v56 }
 0x239   : > { %v2006_v4 = vpop.f32.mrb[154].mxu1 }
 0x23a   : > { %2305 = vst [vmem:[%s5147_s16 + $0xe0] sm:$0xff] %v2273_v34  ;;  %v2336_v59 = vadd.f32 %v2335_v6, %v2273_v34  ;;  %v2374_v14 = vmul.f32 %v2273_v34, %v2273_v34  ;;  %v2232_v47 = vadd.f32 %v5191_v32, %v2006_v4  ;;  %v2008_v15 = vpop.f32.mrb[155].mxu1 }
 0x23c   : > { %v2405_v60 = vadd.f32 %v2404_v63, %v2374_v14  ;;  %v2274_v22 = vadd.f32 %v2232_v47, %v5135_v37 }
 0x23d   : > { %v2011_v31 = vpop.f32.mrb[156].mxu1 }
 0x23e   : > { %2306 = vst [vmem:[%s5147_s16 + $0xe8] sm:$0xff] %v2274_v22  ;;  %v2337_v27 = vadd.f32 %v2336_v59, %v2274_v22  ;;  %v2375_v55 = vmul.f32 %v2274_v22, %v2274_v22  ;;  %v2237_v12 = vadd.f32 %v2236_v46, %v2011_v31  ;;  %v2013_v0 = vpop.f32.mrb[157].mxu1 }
 0x240   : > { %v2406_v39 = vadd.f32 %v2405_v60, %v2375_v55  ;;  %v2275_v56 = vadd.f32 %v2237_v12, %v5141_v43 }
 0x241   : > { %v2016_v3 = vpop.f32.mrb[158].mxu1 }
 0x242   : > { %2307 = vst [vmem:[%s5147_s16 + $0xf0] sm:$0xff] %v2275_v56  ;;  %v2338_v28 = vadd.f32 %v2337_v27, %v2275_v56  ;;  %v2376_v62 = vmul.f32 %v2275_v56, %v2275_v56  ;;  %v2242_v32 = vadd.f32 %v5195_v36, %v2016_v3  ;;  %v2018_v1 = vpop.f32.mrb[159].mxu1 }
 0x244   : > { %v2407_v29 = vadd.f32 %v2406_v39, %v2376_v62  ;;  %v2276_v37 = vadd.f32 %v2242_v32, %v5139_v9 }
 0x246   : > { %2308 = vst [vmem:[%s5147_s16 + $0xf8] sm:$0xff] %v2276_v37  ;;  %v2339_v57 = vadd.f32 %v2338_v28, %v2276_v37  ;;  %v2377_v40 = vmul.f32 %v2276_v37, %v2276_v37 }
 0x248   : > { %v2340_v24 = vrot.slane %v2339_v57, 4  ;;  %v2408_v46 = vadd.f32 %v2407_v29, %v2377_v40 }
 0x24a   : > { %v2341_v5 = vadd.f32 %v2340_v24, %v2339_v57  ;;  %v2409_v19 = vrot.slane %v2408_v46, 4 }
 0x24c   : > { %v2342_v61 = vrot.slane %v2341_v5, 2  ;;  %v2410_v43 = vadd.f32 %v2409_v19, %v2408_v46 }
 0x24e   : > { %v2343_v45 = vadd.f32 %v2342_v61, %v2341_v5  ;;  %v2411_v42 = vrot.slane %v2410_v43, 2 }
 0x250   : > { %v2344_v53 = vrot.slane %v2343_v45, 1  ;;  %v2412_v13 = vadd.f32 %v2411_v42, %v2410_v43 }
 0x252   : > { %v2413_v36 = vrot.slane %v2412_v13, 1  ;;  %v2345_v9 = vadd.f32 %v2344_v53, %v2343_v45 }
 0x254   : > { %v2414_v18 = vadd.f32 %v2413_v36, %v2412_v13 }
 0x256   : > { %v2416_v35 = vsel %vm2415_vm4, %v2345_v9, %v2414_v18 }
 0x257   : > { %2417 = vst [vmem:[%s465_s19] sm:$0x3] %v2416_v35 }
 0x258 PF: > { %s18_s26 = sadd.s32 1, %s3416_s26   ;;  %s5386_s24 = smov %s3412_s25 }
 0x259   : > { %p15_p5 = scmp.ge.s32.totalorder %s18_s26, 4   ;;  %s5387_s25 = smov %s5389_s4 }
 0x25b   :  { %17 = sbr.rel (!%p15_p5) target bundleno = 2 (0x2), region = 94 }

// kernel: segnet_layer_encoder.5
= control target key start
LH: loop header
LB: loop body
LE: loop exit
PB: predicated region body
PF: predicated region fallthrough
CT: control target
= control target key end

     0   :  { %s3555_s24 = smov 0   ;;  %s3557_s25 = smov 0   ;;  %s5428_s0 = inlined_call_operand.vmem [shape: f32[2,16,16,128], index: 0, kind: input, shape index: {}, may-alias: {0,1,2}]   ;;  %s5429_s1 = inlined_call_operand.vmem [shape: f32[2,16,16,128], index: 1, kind: input, shape index: {}, may-alias: {0,1,2}]   ;;  %s5430_s2 = inlined_call_operand.vmem [shape: f32[2,16,16,128], index: 2, kind: input, shape index: {}, may-alias: {0,1,2}]   ;;  %s5431_s3 = inlined_call_operand.vmem [shape: f32[3,384,128], index: 3, kind: input, shape index: {}]   ;;  %s5432_s4 = inlined_call_operand.vmem [shape: f32[1,128], index: 4, kind: input, shape index: {}]   ;;  %s5433_s5 = inlined_call_operand.vmem [shape: f32[1,128], index: 5, kind: input, shape index: {}]   ;;  %s5434_s6 = inlined_call_operand.vmem [shape: f32[2,16,16,128], index: 6, kind: output, shape index: {0}]   ;;  %s5435_s7 = inlined_call_operand.vmem [shape: f32[2,1,2,128], index: 7, kind: output, shape index: {1}]  }
   0x1   :  { %s3559_s26 = smov 0  }
   0x2 LB: > { %s30_s27 = sadd.s32 1, %s3508_s25  ;;  %p2723_p0 = scmp.ge.s32.totalorder %s3512_s26, 1  ;;  %s3512_s26 = sphi %s3559_s26, %s18_s26   ;;  %s3508_s25 = sphi %s3557_s25, %s5663_s25   ;;  %s3504_s24 = sphi %s3555_s24, %s5662_s24  }
   0x3   : > { %p32_p1 = scmp.ge.s32.totalorder %s30_s27, 2  ;;  %p328_p2 = scmp.lt.s32.totalorder %s3512_s26, 3 }
   0x5   : > { %s5665_s27 = smov (%p32_p1, %s30_s27), 0  ;;  %p329_p3 = pnand %p2723_p0, %p328_p2 }
   0x7   : > { %332 = sbr.rel (%p329_p3) target bundleno = 600 (0x258), region = 44 }
   0xe   : > { %v2735_v0 = vld [vmem:[%s5431_s3 + $0x180] sm:$0xff]  ;;  %v2736_v1 = vld [vmem:[%s5431_s3 + $0x188] sm:$0xff]  ;;  %p404_p4 = scmp.lt.s32.totalorder %s3504_s24, 1  ;;  %v5441_v3 = vmov 0.0|0.0   ;;  %v2737_v6 = vld [vmem:[%s5431_s3 + $0x190] sm:$0xff]  ;;  %v634_v21 = vlaneseq  ;;  %vm2537_vm4 = vcmask 1040384  }
   0xf   : > { %v2767_v2 = vld [vmem:[%s5431_s3 + $0x280] sm:$0xff]  ;;  %3223 = vmatprep.subr.bf16.mxu0 %v5441_v3  ;;  %v3224_v4 = vpack.c.bf16 %v2736_v1, %v2735_v0  ;;  %v2768_v5 = vld [vmem:[%s5431_s3 + $0x288] sm:$0xff]  ;;  %v2738_v7 = vld [vmem:[%s5431_s3 + $0x198] sm:$0xff] }
  0x10   : > { %v3271_v8 = vpack.c.bf16 %v2768_v5, %v2767_v2  ;;  %v2769_v9 = vld [vmem:[%s5431_s3 + $0x290] sm:$0xff]  ;;  %v2770_v10 = vld [vmem:[%s5431_s3 + $0x298] sm:$0xff]  ;;  %s5667_s24 = smov (!%p404_p4, %s3504_s24), 1  ;;  %v3227_v11 = vpack.c.bf16 %v2738_v7, %v2737_v6  ;;  %v2771_v13 = vld [vmem:[%s5431_s3 + $0x2a0] sm:$0xff]  ;;  %v3653_v32 = vshrl.u32 %v634_v21, 7 }
  0x11   : > { %3225 = vmatpush1.bf16.msra.mxu0 %v3224_v4  ;;  %v3275_v12 = vpack.c.bf16 %v2770_v10, %v2769_v9  ;;  %v2772_v14 = vld [vmem:[%s5431_s3 + $0x2a8] sm:$0xff]  ;;  %v2739_v15 = vld [vmem:[%s5431_s3 + $0x1a0] sm:$0xff]  ;;  %s3614_s10 = sshll.u32 %s5667_s24, 8  ;;  %v2773_v19 = vld [vmem:[%s5431_s3 + $0x2b0] sm:$0xff] }
  0x12   : > { %3272 = vmatprep.subr.bf16.mxu1 %v3271_v8  ;;  %3226 = vmatprep.subr.bf16.mxu0 %v5441_v3  ;;  %v2740_v16 = vld [vmem:[%s5431_s3 + $0x1a8] sm:$0xff]  ;;  %v3279_v17 = vpack.c.bf16 %v2772_v14, %v2771_v13  ;;  %v2774_v20 = vld [vmem:[%s5431_s3 + $0x2b8] sm:$0xff]  ;;  %v2741_v22 = vld [vmem:[%s5431_s3 + $0x1b0] sm:$0xff]  ;;  %s3633_s21 = scalar_lea.vmem %s5428_s0, %s3614_s10  ;;  %vm637_vm0 = vcmp.gt.s32.totalorder %v3653_v32, 0  ;;  %vm810_vm1 = vcmp.lt.s32.totalorder %v3653_v32, 7  ;;  %vm745_vm3 = vcmp.lt.s32.totalorder %v3653_v32, 1  ;;  %s426_s28 = scalar_lea.vmem %s5429_s1, %s3614_s10 }
  0x13   : > { %3274 = vmatpush3.bf16.msra.mxu1 %v3271_v8  ;;  %v3230_v18 = vpack.c.bf16 %v2740_v16, %v2739_v15  ;;  %v2742_v23 = vld [vmem:[%s5431_s3 + $0x1b8] sm:$0xff]  ;;  %v3283_v24 = vpack.c.bf16 %v2774_v20, %v2773_v19  ;;  %v2775_v25 = vld [vmem:[%s5431_s3 + $0x2c0] sm:$0xff]  ;;  %v2776_v26 = vld [vmem:[%s5431_s3 + $0x2c8] sm:$0xff]  ;;  %s2836_s15 = sadd.s32 240, %s3614_s10  ;;  %s5343_s13 = scalar_lea.vmem %s5434_s6, %s3614_s10 }
  0x14   : > { %3276 = vmatprep.subr.bf16.mxu1 %v3275_v12  ;;  %v3644_v27 = vld [vmem:[%s5432_s4] ss:$0 sm:$0xff]  ;;  %v3233_v28 = vpack.c.bf16 %v2742_v23, %v2741_v22  ;;  %v469_v31 = vld [vmem:[%s3633_s21 + $0x8] sm:$0xff]  ;;  %v470_v37 = vld [vmem:[%s3633_s21 + $0x10] sm:$0xff]  ;;  %v3287_v39 = vpack.c.bf16 %v2776_v26, %v2775_v25  ;;  %s4846_s22 = scalar_lea.vmem %s5430_s2, %s2836_s15  ;;  %s2732_s10 = sshll.u32 %s5667_s24, 1 }
  0x15   : > { %3228 = vmatpush1.bf16.msra.mxu0 %v3227_v11  ;;  %v3649_v29 = vld [vmem:[%s5433_s5] ss:$0 sm:$0xff]  ;;  %v2744_v34 = vld [vmem:[%s5431_s3 + $0x1c8] sm:$0xff]  ;;  %v507_v36 = vmul.f32 %v3644_v27, %v469_v31  ;;  %v508_v38 = vmul.f32 %v3644_v27, %v470_v37  ;;  %v471_v42 = vld [vmem:[%s3633_s21 + $0x18] sm:$0xff] }
  0x16   : > { %3229 = vmatprep.subr.bf16.mxu0 %v5441_v3  ;;  %v468_v30 = vld [vmem:[%s3633_s21] sm:$0xff]  ;;  %v2777_v44 = vld [vmem:[%s5431_s3 + $0x2d0] sm:$0xff]  ;;  %v2778_v45 = vld [vmem:[%s5431_s3 + $0x2d8] sm:$0xff]  ;;  %v509_v52 = vmul.f32 %v3644_v27, %v471_v42 }
  0x17   : > { %3278 = vmatpush3.bf16.msra.mxu1 %v3275_v12  ;;  %v2743_v33 = vld [vmem:[%s5431_s3 + $0x1c0] sm:$0xff]  ;;  %v506_v35 = vmul.f32 %v3644_v27, %v468_v30  ;;  %v545_v41 = vadd.f32 %v3649_v29, %v507_v36  ;;  %v2745_v47 = vld [vmem:[%s5431_s3 + $0x1d0] sm:$0xff]  ;;  %v2746_v48 = vld [vmem:[%s5431_s3 + $0x1d8] sm:$0xff]  ;;  %v546_v51 = vadd.f32 %v3649_v29, %v508_v38  ;;  %v3291_v53 = vpack.c.bf16 %v2778_v45, %v2777_v44 }
  0x18   : > { %3280 = vmatprep.subr.bf16.mxu1 %v3279_v17  ;;  %v3236_v43 = vpack.c.bf16 %v2744_v34, %v2743_v33  ;;  %v472_v46 = vld [vmem:[%s3633_s21 + $0x20] sm:$0xff]  ;;  %v2780_v55 = vld [vmem:[%s5431_s3 + $0x2e8] sm:$0xff]  ;;  %v3239_v59 = vpack.c.bf16 %v2746_v48, %v2745_v47  ;;  %v474_v62 = vld [vmem:[%s3633_s21 + $0x30] sm:$0xff]  ;;  %v547_v5 = vadd.f32 %v3649_v29, %v509_v52 }
  0x19   : > { %3231 = vmatpush1.bf16.msra.mxu0 %v3230_v18  ;;  %v544_v40 = vadd.f32 %v3649_v29, %v506_v35  ;;  %v3686_v50 = vmax.f32 %v545_v41, 0.0  ;;  %v2779_v54 = vld [vmem:[%s5431_s3 + $0x2e0] sm:$0xff]  ;;  %v510_v58 = vmul.f32 %v3644_v27, %v472_v46  ;;  %v473_v61 = vld [vmem:[%s3633_s21 + $0x28] sm:$0xff]  ;;  %v3721_v4 = vmax.f32 %v546_v51, 0.0  ;;  %v2781_v7 = vld [vmem:[%s5431_s3 + $0x2f0] sm:$0xff] }
  0x1a   : > { %3232 = vmatprep.subr.bf16.mxu0 %v5441_v3  ;;  %v2747_v63 = vld [vmem:[%s5431_s3 + $0x1e0] sm:$0xff]  ;;  %v2748_v0 = vld [vmem:[%s5431_s3 + $0x1e8] sm:$0xff]  ;;  %v3295_v1 = vpack.c.bf16 %v2780_v55, %v2779_v54  ;;  %v2782_v8 = vld [vmem:[%s5431_s3 + $0x2f8] sm:$0xff]  ;;  %v511_v10 = vmul.f32 %v3644_v27, %v473_v61  ;;  %v512_v11 = vmul.f32 %v3644_v27, %v474_v62  ;;  %v3747_v19 = vmax.f32 %v547_v5, 0.0 }
  0x1b   : > { %3282 = vmatpush3.bf16.msra.mxu1 %v3279_v17  ;;  %v3684_v49 = vmax.f32 %v544_v40, 0.0  ;;  %v781_v57 = vrot.slane %v3686_v50, 1  ;;  %v476_v6 = vld [vmem:[%s3633_s21 + $0x40] sm:$0xff]  ;;  %v548_v9 = vadd.f32 %v3649_v29, %v510_v58  ;;  %v3242_v12 = vpack.c.bf16 %v2748_v0, %v2747_v63  ;;  %v475_v13 = vld [vmem:[%s3633_s21 + $0x38] sm:$0xff]  ;;  %v2749_v14 = vld [vmem:[%s5431_s3 + $0x1f0] sm:$0xff] }
  0x1c   : > { %3284 = vmatprep.subr.bf16.mxu1 %v3283_v24  ;;  %v2750_v15 = vld [vmem:[%s5431_s3 + $0x1f8] sm:$0xff]  ;;  %v514_v16 = vmul.f32 %v3644_v27, %v476_v6  ;;  %v3299_v17 = vpack.c.bf16 %v2782_v8, %v2781_v7  ;;  %v685_v18 = vsel %vm637_vm0, %v3721_v4, 0.0  ;;  %v549_v21 = vadd.f32 %v3649_v29, %v511_v10  ;;  %v478_v25 = vld [vmem:[%s3633_s21 + $0x50] sm:$0xff]  ;;  %v2752_v30 = vld [vmem:[%s5431_s3 + $0x208] sm:$0xff] }
  0x1d   : > { %3234 = vmatpush1.bf16.msra.mxu0 %v3233_v28  ;;  %v683_v56 = vsel %vm637_vm0, %v3684_v49, 0.0  ;;  %1018 = vmatprep.mubr.f32.mxu0 %v3684_v49  ;;  %v3749_v20 = vmax.f32 %v548_v9, 0.0  ;;  %v550_v22 = vadd.f32 %v3649_v29, %v512_v11  ;;  %v513_v23 = vmul.f32 %v3644_v27, %v475_v13  ;;  %v2751_v28 = vld [vmem:[%s5431_s3 + $0x200] sm:$0xff]  ;;  %v844_v35 = vld [vmem:[%s5431_s3 + $0x8] sm:$0xff]  ;;  %v2753_v48 = vld [vmem:[%s5431_s3 + $0x210] sm:$0xff] }
  0x1e   : > { %3235 = vmatprep.subr.bf16.mxu0 %v5441_v3  ;;  %v3703_v60 = vrot.slane %v683_v56, 1  ;;  %v3245_v26 = vpack.c.bf16 %v2750_v15, %v2749_v14  ;;  %v3763_v31 = vrot.slane %v685_v18, 1  ;;  %v552_v33 = vadd.f32 %v3649_v29, %v514_v16  ;;  %v843_v34 = vld [vmem:[%s5431_s3] sm:$0xff]  ;;  %v2754_v51 = vld [vmem:[%s5431_s3 + $0x218] sm:$0xff]  ;;  %v845_v56 = vld [vmem:[%s5431_s3 + $0x10] sm:$0xff] }
  0x1f   : > { %3286 = vmatpush3.bf16.msra.mxu1 %v3283_v24  ;;  %v477_v24 = vld [vmem:[%s3633_s21 + $0x48] sm:$0xff]  ;;  %v783_v36 = vrot.slane %v3747_v19, 1  ;;  %v516_v38 = vmul.f32 %v3644_v27, %v478_v25  ;;  %v687_v40 = vsel %vm637_vm0, %v3749_v20, 0.0  ;;  %v3779_v41 = vmax.f32 %v549_v21, 0.0  ;;  %v480_v45 = vld [vmem:[%s3633_s21 + $0x60] sm:$0xff]  ;;  %v482_v61 = vld [vmem:[%s3633_s21 + $0x70] sm:$0xff] }
  0x20   : > { %3288 = vmatprep.subr.bf16.mxu1 %v3287_v39  ;;  %5532 = vst [vmem:[#allocation2_spill] sm:$0xff] %v3703_v60  ;;  %v3719_v2 = vsel %vm810_vm1, %v3703_v60, %v781_v57  ;;  %5534 = vst [vmem:[#allocation4_spill] sm:$0xff] %v3763_v31  ;;  %v515_v37 = vmul.f32 %v3644_v27, %v477_v24  ;;  %v3781_v42 = vmax.f32 %v550_v22, 0.0  ;;  %v3799_v52 = vmax.f32 %v552_v33, 0.0  ;;  %v481_v6 = vld [vmem:[%s3633_s21 + $0x68] sm:$0xff]  ;;  %v2755_v8 = vld [vmem:[%s5431_s3 + $0x220] sm:$0xff] }
  0x21   : > { %3237 = vmatpush1.bf16.msra.mxu0 %v3236_v43  ;;  %5533 = vst [vmem:[#allocation3_spill] sm:$0xff] %v3719_v2  ;;  %3015 = vmatprep.mubr.f32.mxu1 %v3719_v2  ;;  %v551_v43 = vadd.f32 %v3649_v29, %v513_v23  ;;  %v3248_v44 = vpack.c.bf16 %v2752_v30, %v2751_v28  ;;  %v784_v55 = vrot.slane %v687_v40, 1  ;;  %v785_v62 = vrot.slane %v3779_v41, 1  ;;  %v2756_v9 = vld [vmem:[%s5431_s3 + $0x228] sm:$0xff]  ;;  %v847_v15 = vld [vmem:[%s5431_s3 + $0x20] sm:$0xff]  ;;  %v2757_v28 = vld [vmem:[%s5431_s3 + $0x230] sm:$0xff] }
  0x22   : > { %3238 = vmatprep.subr.bf16.mxu0 %v5441_v3  ;;  %v3791_v46 = vsel %vm810_vm1, %v781_v57, %v3763_v31  ;;  %v3304_v47 = vpack.c.bf16 %v844_v35, %v843_v34  ;;  %v3805_v54 = vsel %vm810_vm1, %v3763_v31, %v783_v36  ;;  %v846_v57 = vld [vmem:[%s5431_s3 + $0x18] sm:$0xff]  ;;  %v553_v58 = vadd.f32 %v3649_v29, %v515_v37  ;;  %v848_v16 = vld [vmem:[%s5431_s3 + $0x28] sm:$0xff]  ;;  %v484_v25 = vld [vmem:[%s3633_s21 + $0x80] sm:$0xff] }
  0x23   : > { %3290 = vmatpush3.bf16.msra.mxu1 %v3287_v39  ;;  %v479_v39 = vld [vmem:[%s3633_s21 + $0x58] sm:$0xff]  ;;  %5535 = vst [vmem:[#allocation5_spill] sm:$0xff] %v3791_v46  ;;  %5536 = vst [vmem:[#allocation6_spill] sm:$0xff] %v3805_v54  ;;  %v689_v63 = vsel %vm637_vm0, %v3781_v42, 0.0  ;;  %v3821_v0 = vmax.f32 %v551_v43, 0.0  ;;  %v3251_v5 = vpack.c.bf16 %v2754_v51, %v2753_v48  ;;  %v3307_v7 = vpack.c.bf16 %v846_v57, %v845_v56  ;;  %v486_v56 = vld [vmem:[%s3633_s21 + $0x90] sm:$0xff] }
  0x24   : > { %3292 = vmatprep.subr.bf16.mxu1 %v3291_v53  ;;  %v691_v10 = vsel %vm637_vm0, %v3799_v52, 0.0  ;;  %v3841_v13 = vsel %vm810_vm1, %v783_v36, %v784_v55  ;;  %v786_v14 = vrot.slane %v689_v63, 1  ;;  %v3856_v21 = vsel %vm810_vm1, %v784_v55, %v785_v62  ;;  %v483_v33 = vld [vmem:[%s3633_s21 + $0x78] sm:$0xff]  ;;  %v849_v36 = vld [vmem:[%s5431_s3 + $0x30] sm:$0xff]  ;;  %v2760_v63 = vld [vmem:[%s5431_s3 + $0x248] sm:$0xff] }
  0x25   : > { %3240 = vmatpush1.bf16.msra.mxu0 %v3239_v59  ;;  %v554_v59 = vadd.f32 %v3649_v29, %v516_v38  ;;  %5537 = vst [vmem:[#allocation7_spill] sm:$0xff] %v3841_v13  ;;  %5538 = vst [vmem:[#allocation8_spill] sm:$0xff] %v3856_v21  ;;  %v787_v22 = vrot.slane %v3821_v0, 1  ;;  %v519_v24 = vmul.f32 %v3644_v27, %v481_v6  ;;  %v788_v30 = vrot.slane %v691_v10, 1  ;;  %v2758_v35 = vld [vmem:[%s5431_s3 + $0x238] sm:$0xff]  ;;  %v852_v6 = vld [vmem:[%s5431_s3 + $0x48] sm:$0xff] }
  0x26   : > { %3241 = vmatprep.subr.bf16.mxu0 %v5441_v3  ;;  %v3310_v34 = vpack.c.bf16 %v848_v16, %v847_v15  ;;  %v850_v37 = vld [vmem:[%s5431_s3 + $0x38] sm:$0xff]  ;;  %v3883_v40 = vsel %vm810_vm1, %v785_v62, %v786_v14  ;;  %v521_v55 = vmul.f32 %v3644_v27, %v483_v33  ;;  %v3257_v57 = vpack.c.bf16 %v2758_v35, %v2757_v28  ;;  %v485_v62 = vld [vmem:[%s3633_s21 + $0x88] sm:$0xff] }
  0x27   : > { %3294 = vmatpush3.bf16.msra.mxu1 %v3291_v53  ;;  %v517_v53 = vmul.f32 %v3644_v27, %v479_v39  ;;  %v3851_v18 = vmax.f32 %v554_v59, 0.0  ;;  %5539 = vst [vmem:[#allocation9_spill] sm:$0xff] %v3883_v40  ;;  %v3894_v48 = vsel %vm810_vm1, %v786_v14, %v787_v22  ;;  %v3313_v59 = vpack.c.bf16 %v850_v37, %v849_v36  ;;  %v487_v28 = vld [vmem:[%s3633_s21 + $0x98] sm:$0xff]  ;;  %v853_v36 = vld [vmem:[%s5431_s3 + $0x50] sm:$0xff] }
  0x28   : > { %3296 = vmatprep.subr.bf16.mxu1 %v3295_v1  ;;  %5540 = vst [vmem:[#allocation10_spill] sm:$0xff] %v3894_v48  ;;  %v559_v16 = vadd.f32 %v3649_v29, %v521_v55  ;;  %v2762_v35 = vld [vmem:[%s5431_s3 + $0x258] sm:$0xff]  ;;  %v489_v55 = vld [vmem:[%s3633_s21 + $0xa8] sm:$0xff] }
  0x29   : > { %3243 = vmatpush1.bf16.msra.mxu0 %v3242_v12  ;;  %v555_v11 = vadd.f32 %v3649_v29, %v517_v53  ;;  %v520_v12 = vmul.f32 %v3644_v27, %v482_v61  ;;  %v557_v53 = vadd.f32 %v3649_v29, %v519_v24  ;;  %v2759_v61 = vld [vmem:[%s5431_s3 + $0x240] sm:$0xff] }
  0x2a   : > { %3244 = vmatprep.subr.bf16.mxu0 %v5441_v3  ;;  %v3260_v24 = vpack.c.bf16 %v2760_v63, %v2759_v61 }
  0x2b   : > { %3298 = vmatpush3.bf16.msra.mxu1 %v3295_v1  ;;  %v518_v1 = vmul.f32 %v3644_v27, %v480_v45  ;;  %v3877_v38 = vmax.f32 %v555_v11, 0.0  ;;  %v558_v39 = vadd.f32 %v3649_v29, %v520_v12  ;;  %v522_v45 = vmul.f32 %v3644_v27, %v484_v25 }
  0x2c   : > { %3300 = vmatprep.subr.bf16.mxu1 %v3299_v17  ;;  %v524_v12 = vmul.f32 %v3644_v27, %v486_v56  ;;  %v3935_v15 = vmax.f32 %v557_v53, 0.0  ;;  %v490_v56 = vld [vmem:[%s3633_s21 + $0xb0] sm:$0xff] }
  0x2d   : > { %3246 = vmatpush1.bf16.msra.mxu0 %v3245_v26  ;;  %v556_v23 = vadd.f32 %v3649_v29, %v518_v1  ;;  %v3254_v26 = vpack.c.bf16 %v2756_v9, %v2755_v8  ;;  %v3921_v8 = vmax.f32 %v558_v39, 0.0  ;;  %v560_v11 = vadd.f32 %v3649_v29, %v522_v45 }
  0x2e   : > { %3247 = vmatprep.subr.bf16.mxu0 %v5441_v3 }
  0x2f   : > { %3302 = vmatpush3.bf16.msra.mxu1 %v3299_v17  ;;  %v3849_v17 = vmax.f32 %v553_v58, 0.0  ;;  %v3896_v51 = vmax.f32 %v556_v23, 0.0  ;;  %v3903_v58 = vsel %vm810_vm1, %v787_v22, %v788_v30  ;;  %v523_v22 = vmul.f32 %v3644_v27, %v485_v62  ;;  %v488_v23 = vld [vmem:[%s3633_s21 + $0xa0] sm:$0xff] }
  0x30   : > { %3303 = vmatprep.subr.bf16.mxu1 %v5441_v3  ;;  %5542 = vst [vmem:[#allocation12_spill] sm:$0xff] %v3903_v58  ;;  %v3966_v37 = vsel %vm637_vm0, %v3921_v8, 0.0  ;;  %v3973_v45 = vmax.f32 %v560_v11, 0.0  ;;  %v526_v53 = vmul.f32 %v3644_v27, %v488_v23  ;;  %v525_v62 = vmul.f32 %v3644_v27, %v487_v28  ;;  %v855_v11 = vld [vmem:[%s5431_s3 + $0x60] sm:$0xff] }
  0x31   : > { %3249 = vmatpush1.bf16.msra.mxu0 %v3248_v44  ;;  %v789_v43 = vrot.slane %v3849_v17, 1  ;;  %v693_v44 = vsel %vm637_vm0, %v3851_v18, 0.0  ;;  %5541 = vst [vmem:[#allocation11_spill] sm:$0xff] %v3896_v51  ;;  %v695_v14 = vsel %vm637_vm0, %v3896_v51, 0.0  ;;  %v561_v61 = vadd.f32 %v3649_v29, %v523_v22 }
  0x32   : > { %3016 = vmatmul.mubr.f32.vlgmr.msra.gmra.mrb[0].mxu1 %v3791_v46  ;;  %3250 = vmatprep.subr.bf16.mxu0 %v5441_v3  ;;  %v790_v1 = vrot.slane %v693_v44, 1  ;;  %v854_v44 = vld [vmem:[%s5431_s3 + $0x58] sm:$0xff]  ;;  %v528_v22 = vmul.f32 %v3644_v27, %v490_v56  ;;  %v879_v46 = vld [vmem:[%s5431_s3 + $0x120] sm:$0xff] }
  0x33   : > { %3305 = vmatpush1.bf16.msra.mxu1 %v3304_v47  ;;  %3018 = vmatprep.mubr.f32.mxu1 %v3805_v54  ;;  %v499_v47 = vld [vmem:[%s3633_s21 + $0xf8] sm:$0xff]  ;;  %v3927_v10 = vsel %vm810_vm1, %v788_v30, %v789_v43 }
  0x34   : > { %3306 = vmatprep.subr.bf16.mxu1 %v5441_v3  ;;  %v537_v9 = vmul.f32 %v3644_v27, %v499_v47  ;;  %5543 = vst [vmem:[#allocation13_spill] sm:$0xff] %v3927_v10  ;;  %v3948_v30 = vsel %vm810_vm1, %v789_v43, %v790_v1  ;;  %v792_v43 = vrot.slane %v695_v14, 1  ;;  %v562_v47 = vadd.f32 %v3649_v29, %v524_v12  ;;  %v856_v12 = vld [vmem:[%s5431_s3 + $0x68] sm:$0xff]  ;;  %v866_v54 = vld [vmem:[%s5431_s3 + $0xb8] sm:$0xff] }
  0x35   : > { %3252 = vmatpush1.bf16.msra.mxu0 %v3251_v5  ;;  %v851_v5 = vld [vmem:[%s5431_s3 + $0x40] sm:$0xff]  ;;  %5544 = vst [vmem:[#allocation14_spill] sm:$0xff] %v3948_v30 }
  0x36   : > { %3019 = vmatmul.mubr.f32.gmra.mrb[2].mxu1 %v3841_v13  ;;  %3253 = vmatprep.subr.bf16.mxu0 %v5441_v3  ;;  %v3316_v25 = vpack.c.bf16 %v852_v6, %v851_v5  ;;  %v575_v39 = vadd.f32 %v3649_v29, %v537_v9  ;;  %v794_v5 = vrot.slane %v3966_v37, 1  ;;  %v3319_v6 = vpack.c.bf16 %v854_v44, %v853_v36  ;;  %v2764_v9 = vld [vmem:[%s5431_s3 + $0x268] sm:$0xff]  ;;  %v491_v37 = vld [vmem:[%s3633_s21 + $0xb8] sm:$0xff] }
  0x37   : > { %3308 = vmatpush1.bf16.msra.mxu1 %v3307_v7  ;;  %3021 = vmatprep.mubr.f32.mxu1 %v3856_v21  ;;  %v791_v7 = vrot.slane %v3877_v38, 1  ;;  %v4013_v28 = vmax.f32 %v562_v47, 0.0  ;;  %v4022_v36 = vmax.f32 %v561_v61, 0.0  ;;  %v857_v61 = vld [vmem:[%s5431_s3 + $0x70] sm:$0xff] }
  0x38   : > { %3309 = vmatprep.subr.bf16.mxu1 %v5441_v3  ;;  %v4001_v14 = vmax.f32 %v575_v39, 0.0  ;;  %v492_v39 = vld [vmem:[%s3633_s21 + $0xc0] sm:$0xff] }
  0x39   : > { %3255 = vmatpush1.bf16.msra.mxu0 %v3254_v26  ;;  %v3941_v26 = vadd.s32 8, %v3653_v32  ;;  %v3952_v33 = vsel %vm810_vm1, %v790_v1, %v791_v7  ;;  %v2763_v1 = vld [vmem:[%s5431_s3 + $0x260] sm:$0xff]  ;;  %v4008_v23 = vsel %vm810_vm1, %v791_v7, %v792_v43  ;;  %5549 = vst [vmem:[#allocation19_spill] sm:$0xff] %v4022_v36  ;;  %v563_v7 = vadd.f32 %v3649_v29, %v525_v62 }
  0x3a   : > { %3022 = vmatmul.mubr.f32.gmra.mrb[4].mxu1 %v3883_v40  ;;  %3256 = vmatprep.subr.bf16.mxu0 %v5441_v3  ;;  %5545 = vst [vmem:[#allocation15_spill] sm:$0xff] %v3952_v33  ;;  %5546 = vst [vmem:[#allocation16_spill] sm:$0xff] %v4001_v14  ;;  %v3266_v44 = vpack.c.bf16 %v2764_v9, %v2763_v1  ;;  %v566_v1 = vadd.f32 %v3649_v29, %v528_v22  ;;  %v701_v9 = vsel %vm637_vm0, %v4013_v28, 0.0 }
  0x3b   : > { %3311 = vmatpush1.bf16.msra.mxu1 %v3310_v34  ;;  %3024 = vmatprep.mubr.f32.mxu1 %v3894_v48  ;;  %v2761_v34 = vld [vmem:[%s5431_s3 + $0x250] sm:$0xff]  ;;  %vm640_vm2 = vcmp.lt.s32.totalorder %v3941_v26, 15  ;;  %5547 = vst [vmem:[#allocation17_spill] sm:$0xff] %v4008_v23  ;;  %v797_v22 = vrot.slane %v4022_v36, 1  ;;  %v4065_v31 = vmax.f32 %v563_v7, 0.0 }
  0x3c   : > { %3312 = vmatprep.subr.bf16.mxu1 %v5441_v3  ;;  %v3263_v63 = vpack.c.bf16 %v2762_v35, %v2761_v34  ;;  %v564_v34 = vadd.f32 %v3649_v29, %v526_v53  ;;  %v3322_v53 = vpack.c.bf16 %v856_v12, %v855_v11  ;;  %v892_v62 = vsel %vm640_vm2, %v4001_v14, 0.0 }
  0x3d   : > { %3258 = vmatpush1.bf16.msra.mxu0 %v3257_v57  ;;  %v793_v57 = vrot.slane %v3935_v15, 1  ;;  %v529_v12 = vmul.f32 %v3644_v27, %v491_v37  ;;  %5552 = vst [vmem:[#allocation22_spill] sm:$0xff] %v4065_v31  ;;  %v4071_v37 = vrot.slane %v892_v62, 7 }
  0x3e   : > { %3025 = vmatmul.mubr.f32.gmra.mrb[6].mxu1 %v3903_v58  ;;  %3259 = vmatprep.subr.bf16.mxu0 %v5441_v3  ;;  %v4055_v11 = vmax.f32 %v564_v34, 0.0  ;;  %v4069_v34 = vrot.slane %v3684_v49, 7  ;;  %v497_v58 = vld [vmem:[%s3633_s21 + $0xe8] sm:$0xff] }
  0x3f   : > { %3314 = vmatpush1.bf16.msra.mxu1 %v3313_v59  ;;  %3027 = vmatprep.mubr.f32.mxu1 %v3927_v10  ;;  %v3981_v59 = vmax.f32 %v559_v16, 0.0  ;;  %v527_v16 = vmul.f32 %v3644_v27, %v489_v55  ;;  %v4019_v35 = vsel %vm810_vm1, %v792_v43, %v793_v57  ;;  %v4030_v47 = vsel %vm810_vm1, %v793_v57, %v794_v5  ;;  %v2765_v43 = vld [vmem:[%s5431_s3 + $0x270] sm:$0xff]  ;;  %v2766_v55 = vld [vmem:[%s5431_s3 + $0x278] sm:$0xff]  ;;  %v875_v10 = vld [vmem:[%s5431_s3 + $0x100] sm:$0xff] }
  0x40   : > { %3315 = vmatprep.subr.bf16.mxu1 %v5441_v3  ;;  %5548 = vst [vmem:[#allocation18_spill] sm:$0xff] %v4019_v35  ;;  %5550 = vst [vmem:[#allocation20_spill] sm:$0xff] %v4030_v47  ;;  %v858_v57 = vld [vmem:[%s5431_s3 + $0x78] sm:$0xff]  ;;  %v567_v62 = vadd.f32 %v3649_v29, %v529_v12  ;;  %v899_v12 = vsel %vm745_vm3, %v4071_v37, %v4069_v34 }
  0x41   : > { %3261 = vmatpush1.bf16.msra.mxu0 %v3260_v24  ;;  %v699_v24 = vsel %vm637_vm0, %v3973_v45, 0.0  ;;  %5553 = vst [vmem:[#allocation23_spill] sm:$0xff] %v4071_v37 }
  0x42   : > { %3028 = vmatmul.mubr.f32.gmra.mrb[8].mxu1 %v3948_v30  ;;  %3262 = vmatprep.subr.bf16.mxu0 %v5441_v3  ;;  %v796_v56 = vrot.slane %v699_v24, 1  ;;  %v530_v24 = vmul.f32 %v3644_v27, %v492_v39  ;;  %v4076_v39 = vsel %vm640_vm2, %v3686_v50, 0.0 }
  0x43   : > { %3317 = vmatpush1.bf16.msra.mxu1 %v3316_v25  ;;  %3030 = vmatprep.mubr.f32.mxu1 %v3952_v33  ;;  %v795_v25 = vrot.slane %v3981_v59, 1  ;;  %v496_v33 = vld [vmem:[%s3633_s21 + $0xe0] sm:$0xff] }
  0x44   : > { %3318 = vmatprep.subr.bf16.mxu1 %v5441_v3 }
  0x45   : > { %3264 = vmatpush1.bf16.msra.mxu0 %v3263_v63  ;;  %v565_v63 = vadd.f32 %v3649_v29, %v527_v16  ;;  %v4062_v16 = vsel %vm810_vm1, %v794_v5, %v795_v25  ;;  %v494_v5 = vld [vmem:[%s3633_s21 + $0xd0] sm:$0xff]  ;;  %v4083_v7 = vsel %vm810_vm1, %v795_v25, %v796_v56  ;;  %v703_v25 = vsel %vm637_vm0, %v4055_v11, 0.0 }
  0x46   : > { %3031 = vmatmul.mubr.f32.gmra.mrb[10].mxu1 %v4008_v23  ;;  %3265 = vmatprep.subr.bf16.mxu0 %v5441_v3  ;;  %5551 = vst [vmem:[#allocation21_spill] sm:$0xff] %v4062_v16  ;;  %v3325_v23 = vpack.c.bf16 %v858_v57, %v857_v61  ;;  %5554 = vst [vmem:[#allocation24_spill] sm:$0xff] %v4083_v7  ;;  %v4093_v57 = vmax.f32 %v566_v1, 0.0  ;;  %v532_v1 = vmul.f32 %v3644_v27, %v494_v5  ;;  %v862_v5 = vld [vmem:[%s5431_s3 + $0x98] sm:$0xff] }
  0x47   : > { %3320 = vmatpush1.bf16.msra.mxu1 %v3319_v6  ;;  %3033 = vmatprep.mubr.f32.mxu1 %v4019_v35  ;;  %v3269_v6 = vpack.c.bf16 %v2766_v55, %v2765_v43  ;;  %v493_v35 = vld [vmem:[%s3633_s21 + $0xc8] sm:$0xff]  ;;  %v859_v43 = vld [vmem:[%s5431_s3 + $0x80] sm:$0xff]  ;;  %v4091_v61 = vmax.f32 %v565_v63, 0.0  ;;  %v4105_v63 = vsel %vm810_vm1, %v796_v56, %v797_v22  ;;  %v800_v30 = vrot.slane %v703_v25, 1 }
  0x48   : > { %3321 = vmatprep.subr.bf16.mxu1 %v5441_v3  ;;  %v860_v55 = vld [vmem:[%s5431_s3 + $0x88] sm:$0xff]  ;;  %5556 = vst [vmem:[#allocation26_spill] sm:$0xff] %v4093_v57  ;;  %5558 = vst [vmem:[#allocation27_spill] sm:$0xff] %v4105_v63 }
  0x49   : > { %3267 = vmatpush1.bf16.msra.mxu0 %v3266_v44  ;;  %v798_v44 = vrot.slane %v701_v9, 1  ;;  %5555 = vst [vmem:[#allocation25_spill] sm:$0xff] %v4091_v61  ;;  %v568_v9 = vadd.f32 %v3649_v29, %v530_v24  ;;  %v3328_v24 = vpack.c.bf16 %v860_v55, %v859_v43  ;;  %v801_v43 = vrot.slane %v4091_v61, 1 }
  0x4a   : > { %3034 = vmatmul.mubr.f32.gmra.mrb[12].mxu1 %v4030_v47  ;;  %3268 = vmatprep.subr.bf16.mxu0 %v5441_v3  ;;  %v531_v3 = vmul.f32 %v3644_v27, %v493_v35  ;;  %v5557_v47 = vmov 0.0|0.0   ;;  %v716_v35 = vrot.slane %v4076_v39, 7  ;;  %v705_v39 = vsel %vm637_vm0, %v4093_v57, 0.0 }
  0x4b   : > { %3323 = vmatpush1.bf16.msra.mxu1 %v3322_v53  ;;  %3036 = vmatprep.mubr.f32.mxu1 %v4062_v16  ;;  %v799_v53 = vrot.slane %v4065_v31, 1  ;;  %v495_v16 = vld [vmem:[%s3633_s21 + $0xd8] sm:$0xff]  ;;  %v4119_v56 = vsel %vm810_vm1, %v797_v22, %v798_v44  ;;  %v4132_v22 = vmax.f32 %v567_v62, 0.0  ;;  %v4134_v55 = vmax.f32 %v568_v9, 0.0 }
  0x4c   : > { %3324 = vmatprep.subr.bf16.mxu1 %v5557_v47  ;;  %5559 = vst [vmem:[#allocation28_spill] sm:$0xff] %v4119_v56  ;;  %v569_v25 = vadd.f32 %v3649_v29, %v531_v3  ;;  %v570_v9 = vadd.f32 %v3649_v29, %v532_v1  ;;  %v534_v3 = vmul.f32 %v3644_v27, %v496_v33  ;;  %v498_v1 = vld [vmem:[%s3633_s21 + $0xf0] sm:$0xff]  ;;  %s465_s21 = scalar_lea.vmem %s5435_s7, %s2732_s10 }
  0x4d   : > { %3270 = vmatpush1.bf16.msra.mxu0 %v3269_v6  ;;  %v861_v6 = vld [vmem:[%s5431_s3 + $0x90] sm:$0xff]  ;;  %5560 = vst [vmem:[#allocation29_spill] sm:$0xff] %v4132_v22  ;;  %5561 = vst [vmem:[#allocation30_spill] sm:$0xff] %v4134_v55  ;;  %v4147_v62 = vsel %vm810_vm1, %v798_v44, %v799_v53  ;;  %v4163_v44 = vsel %vm640_vm2, %v3747_v19, 0.0  ;;  %v4170_v33 = vsel %vm810_vm1, %v799_v53, %v800_v30  ;;  %v803_v53 = vrot.slane %v4132_v22, 1 }
  0x4e   : > { %3037 = vmatmul.mubr.f32.gmra.mrb[14].mxu1 %v4083_v7  ;;  %v533_v7 = vmul.f32 %v3644_v27, %v495_v16  ;;  %5562 = vst [vmem:[#allocation31_spill] sm:$0xff] %v4147_v62  ;;  %v4155_v16 = vsel %vm745_vm3, %v4069_v34, %v716_v35  ;;  %5564 = vst [vmem:[#allocation33_spill] sm:$0xff] %v4170_v33  ;;  %v4174_v48 = vsel %vm810_vm1, %v800_v30, %v801_v43 }
  0x4f   : > { %3326 = vmatpush1.bf16.msra.mxu1 %v3325_v23  ;;  %3039 = vmatprep.mubr.f32.mxu1 %v4105_v63  ;;  %v876_v23 = vld [vmem:[%s5431_s3 + $0x108] sm:$0xff]  ;;  %v3331_v63 = vpack.c.bf16 %v862_v5, %v861_v6  ;;  %5565 = vst [vmem:[#allocation34_spill] sm:$0xff] %v4174_v48  ;;  %v802_v6 = vrot.slane %v705_v39, 1  ;;  %v863_v5 = vld [vmem:[%s5431_s3 + $0xa0] sm:$0xff]  ;;  %v707_v30 = vsel %vm637_vm0, %v4134_v55, 0.0  ;;  %v4187_v39 = vmax.f32 %v569_v25, 0.0 }
  0x50   : > { %1019 = vmatmul.mubr.f32.vlgmr.msra.gmra.mrb[0].mxu0 %v899_v12  ;;  %3327 = vmatprep.subr.bf16.mxu1 %v5557_v47  ;;  %v4158_v12 = vrot.slane %v3721_v4, 7  ;;  %v3351_v40 = vpack.c.bf16 %v876_v23, %v875_v10  ;;  %v571_v21 = vadd.f32 %v3649_v29, %v533_v7  ;;  %v877_v10 = vld [vmem:[%s5431_s3 + $0x110] sm:$0xff]  ;;  %v4198_v23 = vmax.f32 %v570_v9, 0.0 }
  0x51   : > { %1023 = vmatprep.mubr.f32.mxu0 %v3686_v50  ;;  %5566 = vst [vmem:[#allocation35_spill] sm:$0xff] %v4187_v39  ;;  %v535_v25 = vmul.f32 %v3644_v27, %v497_v58  ;;  %v536_v7 = vmul.f32 %v3644_v27, %v498_v1  ;;  %v718_v9 = vrot.slane %v4163_v44, 7  ;;  %v4217_v58 = vsel %vm810_vm1, %v801_v43, %v802_v6  ;;  %v865_v1 = vld [vmem:[%s5431_s3 + $0xb0] sm:$0xff] }
  0x52   : > { %5563 = vst [vmem:[#allocation32_spill] sm:$0xff] %v4158_v12  ;;  %3040 = vmatmul.mubr.f32.gmra.mrb[16].mxu1 %v4119_v56  ;;  %v864_v56 = vld [vmem:[%s5431_s3 + $0xa8] sm:$0xff]  ;;  %5567 = vst [vmem:[#allocation36_spill] sm:$0xff] %v4198_v23  ;;  %v4211_v13 = vsel %vm745_vm3, %v716_v35, %v4158_v12  ;;  %3352 = vmatprep.subr.bf16.mxu0 %v3351_v40  ;;  %v4228_v44 = vsel %vm810_vm1, %v802_v6, %v803_v53  ;;  %v804_v43 = vrot.slane %v707_v30, 1 }
  0x53   : > { %3329 = vmatpush1.bf16.msra.mxu1 %v3328_v24  ;;  %3042 = vmatprep.mubr.f32.mxu1 %v4147_v62  ;;  %v878_v24 = vld [vmem:[%s5431_s3 + $0x118] sm:$0xff]  ;;  %v572_v62 = vadd.f32 %v3649_v29, %v534_v3  ;;  %5568 = vst [vmem:[#allocation37_spill] sm:$0xff] %v4217_v58  ;;  %v3334_v3 = vpack.c.bf16 %v864_v56, %v863_v5  ;;  %5569 = vst [vmem:[#allocation38_spill] sm:$0xff] %v4228_v44  ;;  %v805_v56 = vrot.slane %v4187_v39, 1 }
  0x54   : > { %1024 = vmatmul.mubr.f32.gmra.mrb[2].mxu0 %v4155_v16  ;;  %3330 = vmatprep.subr.bf16.mxu1 %v5557_v47  ;;  %v3355_v35 = vpack.c.bf16 %v878_v24, %v877_v10  ;;  %v4231_v5 = vmax.f32 %v571_v21, 0.0  ;;  %v573_v21 = vadd.f32 %v3649_v29, %v535_v25  ;;  %v574_v30 = vadd.f32 %v3649_v29, %v536_v7 }
  0x55   : > { %1028 = vmatprep.mubr.f32.mxu0 %v3721_v4  ;;  %3354 = vmatpush3.bf16.msra.mxu0 %v3351_v40  ;;  %v880_v40 = vld [vmem:[%s5431_s3 + $0x128] sm:$0xff]  ;;  %v4244_v6 = vmax.f32 %v572_v62, 0.0  ;;  %v4252_v10 = vsel %vm745_vm3, %v4158_v12, %v718_v9  ;;  %v719_v24 = vrot.slane %v3749_v20, 7  ;;  %v3337_v2 = vpack.c.bf16 %v866_v54, %v865_v1  ;;  %v867_v1 = vld [vmem:[%s5431_s3 + $0xc0] sm:$0xff] }
  0x56   : > { %3043 = vmatmul.mubr.f32.gmra.mrb[18].mxu1 %v4170_v33  ;;  %5570 = vst [vmem:[#allocation39_spill] sm:$0xff] %v4231_v5  ;;  %v608_v33 = vld [vmem:[%s426_s28] sm:$0xff]  ;;  %3356 = vmatprep.subr.bf16.mxu0 %v3355_v35  ;;  %v4259_v62 = vsel %vm640_vm2, %v3779_v41, 0.0  ;;  %v3359_v7 = vpack.c.bf16 %v880_v40, %v879_v46  ;;  %v4265_v12 = vsel %vm810_vm1, %v803_v53, %v804_v43  ;;  %v868_v46 = vld [vmem:[%s5431_s3 + $0xc8] sm:$0xff]  ;;  %v881_v40 = vld [vmem:[%s5431_s3 + $0x130] sm:$0xff] }
  0x57   : > { %3332 = vmatpush1.bf16.msra.mxu1 %v3331_v63  ;;  %3045 = vmatprep.mubr.f32.mxu1 %v4174_v48  ;;  %v709_v63 = vsel %vm637_vm0, %v4198_v23, 0.0  ;;  %5571 = vst [vmem:[#allocation40_spill] sm:$0xff] %v4244_v6  ;;  %v609_v48 = vld [vmem:[%s426_s28 + $0x8] sm:$0xff]  ;;  %v610_v25 = vmul.f32 %v3644_v27, %v608_v33  ;;  %5572 = vst [vmem:[#allocation41_spill] sm:$0xff] %v4265_v12  ;;  %v807_v33 = vrot.slane %v4231_v5, 1  ;;  %v711_v53 = vsel %vm637_vm0, %v4244_v6, 0.0 }
  0x58   : > { %1029 = vmatmul.mubr.f32.gmra.mrb[4].mxu0 %v4211_v13  ;;  %3333 = vmatprep.subr.bf16.mxu1 %v5557_v47  ;;  %v806_v54 = vrot.slane %v709_v63, 1  ;;  %v882_v63 = vld [vmem:[%s5431_s3 + $0x138] sm:$0xff]  ;;  %v808_v37 = vrot.slane %v711_v53, 1  ;;  %v721_v53 = vrot.slane %v3781_v42, 7 }
  0x59   : > { %1033 = vmatprep.mubr.f32.mxu0 %v3747_v19  ;;  %3358 = vmatpush3.bf16.msra.mxu0 %v3355_v35  ;;  %v4285_v35 = vmax.f32 %v574_v30, 0.0  ;;  %v3340_v30 = vpack.c.bf16 %v868_v46, %v867_v1  ;;  %v3363_v6 = vpack.c.bf16 %v882_v63, %v881_v40  ;;  %v4342_v40 = vsel %vm640_vm2, %v3821_v0, 0.0  ;;  %v5617_v26 = vld [vmem:[#allocation32_spill] sm:$0xff] }
  0x5a   : > { %3046 = vmatmul.mubr.f32.gmra.mrb[20].mxu1 %v4217_v58  ;;  %v4269_v58 = vsel %vm810_vm1, %v804_v43, %v805_v56  ;;  %v611_v43 = vmul.f32 %v3644_v27, %v609_v48  ;;  %3360 = vmatprep.subr.bf16.mxu0 %v3359_v7  ;;  %v612_v27 = vadd.f32 %v3649_v29, %v610_v25  ;;  %v870_v25 = vld [vmem:[%s5431_s3 + $0xd8] sm:$0xff] }
  0x5b   : > { %3335 = vmatpush1.bf16.msra.mxu1 %v3334_v3  ;;  %3048 = vmatprep.mubr.f32.mxu1 %v4228_v44  ;;  %5573 = vst [vmem:[#allocation42_spill] sm:$0xff] %v4269_v58  ;;  %v4283_v3 = vmax.f32 %v573_v21, 0.0  ;;  %5575 = vst [vmem:[#allocation44_spill] sm:$0xff] %v4285_v35  ;;  %v4297_v44 = vsel %vm745_vm3, %v718_v9, %v719_v24  ;;  %v720_v21 = vrot.slane %v4259_v62, 7  ;;  %v883_v9 = vld [vmem:[%s5431_s3 + $0x140] sm:$0xff]  ;;  %v884_v62 = vld [vmem:[%s5431_s3 + $0x148] sm:$0xff] }
  0x5c   : > { %1034 = vmatmul.mubr.f32.gmra.mrb[6].mxu0 %v4252_v10  ;;  %3336 = vmatprep.subr.bf16.mxu1 %v5557_v47  ;;  %v4305_v48 = vsel %vm810_vm1, %v805_v56, %v806_v54  ;;  %v869_v56 = vld [vmem:[%s5431_s3 + $0xd0] sm:$0xff]  ;;  %v893_v1 = vsel %vm637_vm0, %v4285_v35, 0.0  ;;  %v613_v46 = vadd.f32 %v3649_v29, %v611_v43  ;;  %v614_v63 = vmax.f32 %v612_v27, 0.0  ;;  %v872_v27 = vld [vmem:[%s5431_s3 + $0xe8] sm:$0xff]  ;;  %v2815_v35 = vld [vmem:[%s5431_s3 + $0x400] sm:$0xff] }
  0x5d   : > { %5574 = vst [vmem:[#allocation43_spill] sm:$0xff] %v4283_v3  ;;  %1038 = vmatprep.mubr.f32.mxu0 %v3749_v20  ;;  %3362 = vmatpush3.bf16.msra.mxu0 %v3359_v7  ;;  %5576 = vst [vmem:[#allocation45_spill] sm:$0xff] %v4305_v48  ;;  %v4326_v7 = vrot.slane %v4283_v3, 1  ;;  %v4347_v29 = vsel %vm810_vm1, %v807_v33, %v808_v37  ;;  %v900_v43 = vrot.slane %v893_v1, 1  ;;  %v887_v1 = vld [vmem:[%s5431_s3 + $0x160] sm:$0xff] }
  0x5e   : > { %3049 = vmatmul.mubr.f32.gmra.mrb[22].mxu1 %v4265_v12  ;;  %3364 = vmatprep.subr.bf16.mxu0 %v3363_v6  ;;  %5578 = vst [vmem:[#allocation47_spill] sm:$0xff] %v4347_v29  ;;  %v886_v12 = vld [vmem:[%s5431_s3 + $0x158] sm:$0xff] }
  0x5f   : > { %3338 = vmatpush1.bf16.msra.mxu1 %v3337_v2  ;;  %3051 = vmatprep.mubr.f32.mxu1 %v4269_v58  ;;  %v4317_v2 = vsel %vm810_vm1, %v806_v54, %v807_v33  ;;  %v4335_v54 = vsel %vm745_vm3, %v719_v24, %v720_v21  ;;  %v3367_v58 = vpack.c.bf16 %v884_v62, %v883_v9  ;;  %v871_v33 = vld [vmem:[%s5431_s3 + $0xe0] sm:$0xff]  ;;  %v615_v9 = vmax.f32 %v613_v46, 0.0  ;;  %v888_v46 = vld [vmem:[%s5431_s3 + $0x168] sm:$0xff] }
  0x60   : > { %1039 = vmatmul.mubr.f32.gmra.mrb[8].mxu0 %v4297_v44  ;;  %3339 = vmatprep.subr.bf16.mxu1 %v5557_v47  ;;  %5577 = vst [vmem:[#allocation46_spill] sm:$0xff] %v4317_v2  ;;  %v3343_v24 = vpack.c.bf16 %v870_v25, %v869_v56  ;;  %v4374_v62 = vsel %vm745_vm3, %v720_v21, %v721_v53  ;;  %v4378_v56 = vmul.f32 0.0, %v614_v63  ;;  %v676_v63 = vsel %vm640_vm2, %v4283_v3, 0.0 }
  0x61   : > { %1043 = vmatprep.mubr.f32.mxu0 %v3779_v41  ;;  %3366 = vmatpush3.bf16.msra.mxu0 %v3363_v6  ;;  %v4360_v6 = vsel %vm810_vm1, %v808_v37, %v4326_v7  ;;  %v722_v37 = vrot.slane %v4342_v40, 7  ;;  %v4390_v21 = vsel %vm810_vm1, %v4326_v7, %v900_v43  ;;  %v3346_v40 = vpack.c.bf16 %v872_v27, %v871_v33 }
  0x62   : > { %3052 = vmatmul.mubr.f32.gmra.mrb[24].mxu1 %v4305_v48  ;;  %v885_v48 = vld [vmem:[%s5431_s3 + $0x150] sm:$0xff]  ;;  %5579 = vst [vmem:[#allocation48_spill] sm:$0xff] %v4360_v6  ;;  %3368 = vmatprep.subr.bf16.mxu0 %v3367_v58  ;;  %5581 = vst [vmem:[#allocation50_spill] sm:$0xff] %v4390_v21  ;;  %v4413_v33 = vsel %vm637_vm0, %v4378_v56, 0.0  ;;  %v723_v27 = vrot.slane %v3799_v52, 7 }
  0x63   : > { %3341 = vmatpush1.bf16.msra.mxu1 %v3340_v30  ;;  %3054 = vmatprep.mubr.f32.mxu1 %v4317_v2  ;;  %v4369_v30 = vrot.slane %v4001_v14, 1  ;;  %v3371_v25 = vpack.c.bf16 %v886_v12, %v885_v48  ;;  %v874_v48 = vld [vmem:[%s5431_s3 + $0xf8] sm:$0xff]  ;;  %v889_v2 = vld [vmem:[%s5431_s3 + $0x170] sm:$0xff]  ;;  %v2784_v14 = vld [vmem:[%s5431_s3 + $0x308] sm:$0xff] }
  0x64   : > { %1044 = vmatmul.mubr.f32.gmra.mrb[10].mxu0 %v4335_v54  ;;  %3342 = vmatprep.subr.bf16.mxu1 %v5557_v47 }
  0x65   : > { %5580 = vst [vmem:[#allocation49_spill] sm:$0xff] %v4369_v30  ;;  %1048 = vmatprep.mubr.f32.mxu0 %v3781_v42  ;;  %3370 = vmatpush3.bf16.msra.mxu0 %v3367_v58  ;;  %v4397_v12 = vsel %vm810_vm1, %v900_v43, %v4369_v30  ;;  %v873_v58 = vld [vmem:[%s5431_s3 + $0xf0] sm:$0xff]  ;;  %v4418_v43 = vsel %vm745_vm3, %v721_v53, %v722_v37  ;;  %v890_v53 = vld [vmem:[%s5431_s3 + $0x178] sm:$0xff] }
  0x66   : > { %3055 = vmatmul.mubr.f32.gmra.mrb[26].mxu1 %v4347_v29  ;;  %5582 = vst [vmem:[#allocation51_spill] sm:$0xff] %v4397_v12  ;;  %3372 = vmatprep.subr.bf16.mxu0 %v3371_v25  ;;  %v4439_v29 = vrot.slane %v676_v63, 7  ;;  %v5584_v63 = vrot.slane %v4413_v33, 1 }
  0x67   : > { %3344 = vmatpush1.bf16.msra.mxu1 %v3343_v24  ;;  %3057 = vmatprep.mubr.f32.mxu1 %v4360_v6  ;;  %v4408_v24 = vmul.f32 0.0, %v615_v9  ;;  %v3375_v6 = vpack.c.bf16 %v888_v46, %v887_v1  ;;  %v656_v9 = vsel %vm640_vm2, %v3849_v17, 0.0  ;;  %v904_v1 = vsel %vm810_vm1, %v4369_v30, %v3703_v60 }
  0x68   : > { %1049 = vmatmul.mubr.f32.gmra.mrb[12].mxu0 %v4374_v62  ;;  %3345 = vmatprep.subr.bf16.mxu1 %v5557_v47  ;;  %v3349_v46 = vpack.c.bf16 %v874_v48, %v873_v58  ;;  %v3379_v60 = vpack.c.bf16 %v890_v53, %v889_v2  ;;  %v2785_v2 = vld [vmem:[%s5431_s3 + $0x310] sm:$0xff] }
  0x69   : > { %1053 = vmatprep.mubr.f32.mxu0 %v3821_v0  ;;  %3374 = vmatpush3.bf16.msra.mxu0 %v3371_v25  ;;  %v713_v25 = vrot.slane %v4378_v56, 7  ;;  %v646_v58 = vsel %vm640_vm2, %v4408_v24, 0.0  ;;  %v5583_v48 = vrot.slane %v4408_v24, 1 }
  0x6a   : > { %3058 = vmatmul.mubr.f32.gmra.mrb[28].mxu1 %v4390_v21  ;;  %v724_v21 = vrot.slane %v656_v9, 7  ;;  %3376 = vmatprep.subr.bf16.mxu0 %v3375_v6 }
  0x6b   : > { %3347 = vmatpush1.bf16.msra.mxu1 %v3346_v40  ;;  %3060 = vmatprep.mubr.f32.mxu1 %v4397_v12  ;;  %v2783_v40 = vld [vmem:[%s5431_s3 + $0x300] sm:$0xff]  ;;  %v4458_v30 = vsel %vm810_vm1, %v5584_v63, %v5583_v48  ;;  %v4463_v12 = vsel %vm745_vm3, %v722_v37, %v723_v27  ;;  %v2816_v48 = vld [vmem:[%s5431_s3 + $0x408] sm:$0xff]  ;;  %v777_v37 = vsel %vm745_vm3, %v4439_v29, %v713_v25  ;;  %v714_v63 = vrot.slane %v646_v58, 7 }
  0x6c   : > { %1054 = vmatmul.mubr.f32.gmra.mrb[14].mxu0 %v4418_v43  ;;  %3348 = vmatprep.subr.bf16.mxu1 %v5557_v47  ;;  %v3384_v9 = vpack.c.bf16 %v2784_v14, %v2783_v40  ;;  %v725_v14 = vrot.slane %v3851_v18, 7  ;;  %v4489_v53 = vpack.c.bf16 %v2816_v48, %v2815_v35  ;;  %v2787_v35 = vld [vmem:[%s5431_s3 + $0x320] sm:$0xff] }
  0x6d   : > { %1058 = vmatprep.mubr.f32.mxu0 %v3799_v52  ;;  %3378 = vmatpush3.bf16.msra.mxu0 %v3375_v6  ;;  %v2786_v6 = vld [vmem:[%s5431_s3 + $0x318] sm:$0xff]  ;;  %v775_v58 = vsel %vm745_vm3, %v714_v63, %v4069_v34  ;;  %v727_v34 = vrot.slane %v3896_v51, 7 }
  0x6e   : > { %3061 = vmatmul.mubr.f32.gmra.mrb[30].mxu1 %v904_v1  ;;  %3380 = vmatprep.subr.bf16.mxu0 %v3379_v60  ;;  %v658_v1 = vsel %vm640_vm2, %v3877_v38, 0.0  ;;  %v3387_v40 = vpack.c.bf16 %v2786_v6, %v2785_v2  ;;  %v2791_v2 = vld [vmem:[%s5431_s3 + $0x340] sm:$0xff]  ;;  %v2792_v6 = vld [vmem:[%s5431_s3 + $0x348] sm:$0xff] }
  0x6f   : > { %3350 = vmatpush1.bf16.msra.mxu1 %v3349_v46  ;;  %1468 = vmatprep.mubr.f32.mxu1 %v4378_v56  ;;  %v4486_v56 = vsel %vm745_vm3, %v723_v27, %v724_v21  ;;  %v776_v46 = vsel %vm745_vm3, %v713_v25, %v714_v63  ;;  %v2788_v27 = vld [vmem:[%s5431_s3 + $0x328] sm:$0xff]  ;;  %v726_v25 = vrot.slane %v658_v1, 7  ;;  %v3396_v1 = vpack.c.bf16 %v2792_v6, %v2791_v2 }
  0x70   : > { %1059 = vmatmul.mubr.f32.gmra.mrb[16].mxu0 %v4463_v12  ;;  %3383 = vmatprep.subr.bf16.mxu1 %v5557_v47  ;;  %v3390_v48 = vpack.c.bf16 %v2788_v27, %v2787_v35  ;;  %v729_v35 = vrot.slane %v3921_v8, 7  ;;  %v662_v27 = vsel %vm640_vm2, %v3981_v59, 0.0  ;;  %v731_v2 = vrot.slane %v3973_v45, 7 }
  0x71   : > { %1063 = vmatprep.mubr.f32.mxu0 %v3849_v17  ;;  %3382 = vmatpush3.bf16.msra.mxu0 %v3379_v60  ;;  %v4508_v60 = vsel %vm745_vm3, %v724_v21, %v725_v14  ;;  %v2789_v21 = vld [vmem:[%s5431_s3 + $0x330] sm:$0xff]  ;;  %v664_v6 = vsel %vm640_vm2, %v4022_v36, 0.0 }
  0x72   : > { %1469 = vmatmul.mubr.f32.vlgmr.msra.gmra.mrb[32].mxu1 %v777_v37  ;;  %3432 = vmatprep.subr.bf16.mxu0 %v4489_v53  ;;  %v2790_v37 = vld [vmem:[%s5431_s3 + $0x338] sm:$0xff] }
  0x73   : > { %3385 = vmatpush1.bf16.msra.mxu1 %v3384_v9  ;;  %1473 = vmatprep.mubr.f32.mxu1 %v4408_v24  ;;  %v660_v9 = vsel %vm640_vm2, %v3935_v15, 0.0  ;;  %v3393_v63 = vpack.c.bf16 %v2790_v37, %v2789_v21  ;;  %v730_v21 = vrot.slane %v662_v27, 7 }
  0x74   : > { %1064 = vmatmul.mubr.f32.gmra.mrb[18].mxu0 %v4486_v56  ;;  %3386 = vmatprep.subr.bf16.mxu1 %v5557_v47 }
  0x75   : > { %1068 = vmatprep.mubr.f32.mxu0 %v3851_v18  ;;  %v4619_v27 = vsel %vm745_vm3, %v730_v21, %v731_v2 }
  0x76   : > { %1474 = vmatmul.mubr.f32.gmra.mrb[34].mxu1 %v776_v46  ;;  %v2793_v46 = vld [vmem:[%s5431_s3 + $0x350] sm:$0xff] }
  0x77   : > { %1478 = vmatprep.mubr.f32.mxu1 %v3684_v49  ;;  %3388 = vmatpush1.bf16.msra.mxu1 %v3387_v40  ;;  %v4526_v49 = vsel %vm745_vm3, %v725_v14, %v726_v25  ;;  %v4544_v14 = vsel %vm745_vm3, %v726_v25, %v727_v34  ;;  %v2794_v40 = vld [vmem:[%s5431_s3 + $0x358] sm:$0xff] }
  0x78   : > { %1069 = vmatmul.mubr.f32.gmra.mrb[20].mxu0 %v4508_v60  ;;  %3389 = vmatprep.subr.bf16.mxu1 %v5557_v47  ;;  %v3399_v25 = vpack.c.bf16 %v2794_v40, %v2793_v46  ;;  %v2800_v46 = vld [vmem:[%s5431_s3 + $0x388] sm:$0xff]  ;;  %v5585_v40 = vrot.slane %v4413_v33, 1  ;;  %v2802_v33 = vld [vmem:[%s5431_s3 + $0x398] sm:$0xff] }
  0x79   : > { %1073 = vmatprep.mubr.f32.mxu0 %v3877_v38 }
  0x7a   : > { %1479 = vmatmul.mubr.f32.gmra.mrb[36].mxu1 %v775_v58  ;;  %v2795_v58 = vld [vmem:[%s5431_s3 + $0x360] sm:$0xff] }
  0x7b   : > { %1483 = vmatprep.mubr.f32.mxu1 %v3686_v50  ;;  %3391 = vmatpush1.bf16.msra.mxu1 %v3390_v48  ;;  %v728_v50 = vrot.slane %v660_v9, 7  ;;  %v2798_v9 = vld [vmem:[%s5431_s3 + $0x378] sm:$0xff] }
  0x7c   : > { %1074 = vmatmul.mubr.f32.gmra.mrb[22].mxu0 %v4526_v49  ;;  %3392 = vmatprep.subr.bf16.mxu1 %v5557_v47 }
  0x7d   : > { %1078 = vmatprep.mubr.f32.mxu0 %v3896_v51  ;;  %v4578_v48 = vsel %vm745_vm3, %v728_v50, %v729_v35 }
  0x7e   : > { %1484 = vmatmul.mubr.f32.gmra.mrb[38].mxu1 %v4155_v16  ;;  %v4559_v16 = vsel %vm745_vm3, %v727_v34, %v728_v50  ;;  %v2797_v34 = vld [vmem:[%s5431_s3 + $0x370] sm:$0xff] }
  0x7f   : > { %1488 = vmatprep.mubr.f32.mxu1 %v3721_v4  ;;  %3394 = vmatpush1.bf16.msra.mxu1 %v3393_v63  ;;  %v4593_v63 = vsel %vm745_vm3, %v729_v35, %v730_v21  ;;  %v3405_v50 = vpack.c.bf16 %v2798_v9, %v2797_v34  ;;  %v4614_v35 = vsel %vm810_vm1, %v4326_v7, %v5585_v40  ;;  %v2801_v7 = vld [vmem:[%s5431_s3 + $0x390] sm:$0xff]  ;;  %v733_v21 = vrot.slane %v4013_v28, 7  ;;  %v2803_v9 = vld [vmem:[%s5431_s3 + $0x3a0] sm:$0xff]  ;;  %v2806_v40 = vld [vmem:[%s5431_s3 + $0x3b8] sm:$0xff] }
  0x80   : > { %1079 = vmatmul.mubr.f32.gmra.mrb[24].mxu0 %v4544_v14  ;;  %3395 = vmatprep.subr.bf16.mxu1 %v5557_v47  ;;  %v3411_v34 = vpack.c.bf16 %v2802_v33, %v2801_v7  ;;  %v668_v7 = vsel %vm640_vm2, %v4091_v61, 0.0 }
  0x81   : > { %1083 = vmatprep.mubr.f32.mxu0 %v3935_v15 }
  0x82   : > { %1489 = vmatmul.mubr.f32.gmra.mrb[40].mxu1 %v4211_v13  ;;  %v2796_v13 = vld [vmem:[%s5431_s3 + $0x368] sm:$0xff] }
  0x83   : > { %1493 = vmatprep.mubr.f32.mxu1 %v3747_v19  ;;  %3397 = vmatpush1.bf16.msra.mxu1 %v3396_v1  ;;  %v3402_v37 = vpack.c.bf16 %v2796_v13, %v2795_v58  ;;  %v2799_v1 = vld [vmem:[%s5431_s3 + $0x380] sm:$0xff] }
  0x84   : > { %1084 = vmatmul.mubr.f32.gmra.mrb[26].mxu0 %v4559_v16  ;;  %3398 = vmatprep.subr.bf16.mxu1 %v5557_v47  ;;  %v3408_v58 = vpack.c.bf16 %v2800_v46, %v2799_v1  ;;  %v2805_v46 = vld [vmem:[%s5431_s3 + $0x3b0] sm:$0xff] }
  0x85   : > { %1088 = vmatprep.mubr.f32.mxu0 %v3921_v8  ;;  %v3417_v33 = vpack.c.bf16 %v2806_v40, %v2805_v46  ;;  %v737_v40 = vrot.slane %v4093_v57, 7 }
  0x86   : > { %1494 = vmatmul.mubr.f32.gmra.mrb[42].mxu1 %v4252_v10 }
  0x87   : > { %1498 = vmatprep.mubr.f32.mxu1 %v3749_v20  ;;  %3400 = vmatpush1.bf16.msra.mxu1 %v3399_v25  ;;  %v732_v25 = vrot.slane %v664_v6, 7 }
  0x88   : > { %1089 = vmatmul.mubr.f32.gmra.mrb[28].mxu0 %v4578_v48  ;;  %3401 = vmatprep.subr.bf16.mxu1 %v5557_v47 }
  0x89   : > { %1093 = vmatprep.mubr.f32.mxu0 %v3981_v59  ;;  %v4634_v13 = vsel %vm745_vm3, %v731_v2, %v732_v25  ;;  %v2804_v2 = vld [vmem:[%s5431_s3 + $0x3a8] sm:$0xff]  ;;  %v4653_v6 = vsel %vm745_vm3, %v732_v25, %v733_v21 }
  0x8a   : > { %1499 = vmatmul.mubr.f32.gmra.mrb[44].mxu1 %v4297_v44  ;;  %5586 = vst [vmem:[#allocation52_spill] sm:$0xff] %v4653_v6  ;;  %v3414_v1 = vpack.c.bf16 %v2804_v2, %v2803_v9  ;;  %v736_v9 = vrot.slane %v668_v7, 7  ;;  %v670_v7 = vsel %vm640_vm2, %v4132_v22, 0.0 }
  0x8b   : > { %1503 = vmatprep.mubr.f32.mxu1 %v3779_v41  ;;  %3403 = vmatpush1.bf16.msra.mxu1 %v3402_v37  ;;  %v666_v37 = vsel %vm640_vm2, %v4065_v31, 0.0 }
  0x8c   : > { %1094 = vmatmul.mubr.f32.gmra.mrb[30].mxu0 %v4593_v63  ;;  %3404 = vmatprep.subr.bf16.mxu1 %v5557_v47 }
  0x8d   : > { %1098 = vmatprep.mubr.f32.mxu0 %v3973_v45 }
  0x8e   : > { %1504 = vmatmul.mubr.f32.gmra.mrb[46].mxu1 %v4335_v54 }
  0x8f   : > { %1508 = vmatprep.mubr.f32.mxu1 %v3781_v42  ;;  %3406 = vmatpush1.bf16.msra.mxu1 %v3405_v50  ;;  %v734_v50 = vrot.slane %v666_v37, 7  ;;  %v2808_v37 = vld [vmem:[%s5431_s3 + $0x3c8] sm:$0xff] }
  0x90   : > { %1099 = vmatmul.mubr.f32.gmra.mrb[32].mxu0 %v4619_v27  ;;  %3407 = vmatprep.subr.bf16.mxu1 %v5557_v47 }
  0x91   : > { %1103 = vmatprep.mubr.f32.mxu0 %v4022_v36  ;;  %v4668_v25 = vsel %vm745_vm3, %v733_v21, %v734_v50  ;;  %v2807_v21 = vld [vmem:[%s5431_s3 + $0x3c0] sm:$0xff] }
  0x92   : > { %1509 = vmatmul.mubr.f32.gmra.mrb[48].mxu1 %v4374_v62  ;;  %v3420_v2 = vpack.c.bf16 %v2808_v37, %v2807_v21  ;;  %v2812_v21 = vld [vmem:[%s5431_s3 + $0x3e8] sm:$0xff]  ;;  %v4721_v37 = vsel %vm745_vm3, %v736_v9, %v737_v40 }
  0x93   : > { %1513 = vmatprep.mubr.f32.mxu1 %v3821_v0  ;;  %3409 = vmatpush1.bf16.msra.mxu1 %v3408_v58  ;;  %v735_v58 = vrot.slane %v4055_v11, 7  ;;  %5587 = vst [vmem:[#allocation53_spill] sm:$0xff] %v4721_v37 }
  0x94   : > { %1104 = vmatmul.mubr.f32.gmra.mrb[34].mxu0 %v4634_v13  ;;  %3410 = vmatprep.subr.bf16.mxu1 %v5557_v47 }
  0x95   : > { %1108 = vmatprep.mubr.f32.mxu0 %v4013_v28  ;;  %v4702_v46 = vsel %vm745_vm3, %v735_v58, %v736_v9  ;;  %v2814_v9 = vld [vmem:[%s5431_s3 + $0x3f8] sm:$0xff] }
  0x96   : > { %1514 = vmatmul.mubr.f32.gmra.mrb[50].mxu1 %v4418_v43 }
  0x97   : > { %1518 = vmatprep.mubr.f32.mxu1 %v3799_v52  ;;  %3412 = vmatpush1.bf16.msra.mxu1 %v3411_v34  ;;  %v4687_v34 = vsel %vm745_vm3, %v734_v50, %v735_v58  ;;  %v2810_v50 = vld [vmem:[%s5431_s3 + $0x3d8] sm:$0xff]  ;;  %v2811_v58 = vld [vmem:[%s5431_s3 + $0x3e0] sm:$0xff] }
  0x98   : > { %1109 = vmatmul.mubr.f32.gmra.mrb[36].mxu0 %v4653_v6  ;;  %3413 = vmatprep.subr.bf16.mxu1 %v5557_v47 }
  0x99   : > { %1113 = vmatprep.mubr.f32.mxu0 %v4065_v31 }
  0x9a   : > { %1519 = vmatmul.mubr.f32.gmra.mrb[52].mxu1 %v4463_v12 }
  0x9b   : > { %1523 = vmatprep.mubr.f32.mxu1 %v3849_v17  ;;  %3415 = vmatpush1.bf16.msra.mxu1 %v3414_v1  ;;  %v2809_v1 = vld [vmem:[%s5431_s3 + $0x3d0] sm:$0xff] }
  0x9c   : > { %1114 = vmatmul.mubr.f32.gmra.mrb[38].mxu0 %v4668_v25  ;;  %3416 = vmatprep.subr.bf16.mxu1 %v5557_v47 }
  0x9d   : > { %1118 = vmatprep.mubr.f32.mxu0 %v4055_v11 }
  0x9e   : > { %1524 = vmatmul.mubr.f32.gmra.mrb[54].mxu1 %v4486_v56 }
  0x9f   : > { %1528 = vmatprep.mubr.f32.mxu1 %v3851_v18  ;;  %3418 = vmatpush1.bf16.msra.mxu1 %v3417_v33  ;;  %v3423_v33 = vpack.c.bf16 %v2810_v50, %v2809_v1  ;;  %v3426_v1 = vpack.c.bf16 %v2812_v21, %v2811_v58  ;;  %v2813_v50 = vld [vmem:[%s5431_s3 + $0x3f0] sm:$0xff]  ;;  %v672_v58 = vsel %vm640_vm2, %v4187_v39, 0.0 }
  0xa0   : > { %1119 = vmatmul.mubr.f32.gmra.mrb[40].mxu0 %v4687_v34  ;;  %3419 = vmatprep.subr.bf16.mxu1 %v5557_v47  ;;  %v3429_v21 = vpack.c.bf16 %v2814_v9, %v2813_v50 }
  0xa1   : > { %1123 = vmatprep.mubr.f32.mxu0 %v4091_v61 }
  0xa2   : > { %1529 = vmatmul.mubr.f32.gmra.mrb[56].mxu1 %v4508_v60 }
  0xa3   : > { %1533 = vmatprep.mubr.f32.mxu1 %v3877_v38  ;;  %3421 = vmatpush1.bf16.msra.mxu1 %v3420_v2  ;;  %v738_v2 = vrot.slane %v670_v7, 7 }
  0xa4   : > { %1124 = vmatmul.mubr.f32.gmra.mrb[42].mxu0 %v4702_v46  ;;  %3422 = vmatprep.subr.bf16.mxu1 %v5557_v47 }
  0xa5   : > { %1128 = vmatprep.mubr.f32.mxu0 %v4093_v57  ;;  %v4736_v7 = vsel %vm745_vm3, %v737_v40, %v738_v2 }
  0xa6   : > { %1534 = vmatmul.mubr.f32.gmra.mrb[58].mxu1 %v4526_v49  ;;  %5588 = vst [vmem:[#allocation54_spill] sm:$0xff] %v4736_v7 }
  0xa7   : > { %1538 = vmatprep.mubr.f32.mxu1 %v3896_v51  ;;  %3424 = vmatpush1.bf16.msra.mxu1 %v3423_v33  ;;  %v739_v33 = vrot.slane %v4134_v55, 7  ;;  %v740_v51 = vrot.slane %v672_v58, 7  ;;  %v5591_v58 = vld [vmem:[#allocation40_spill] sm:$0xff] }
  0xa8   : > { %1129 = vmatmul.mubr.f32.gmra.mrb[44].mxu0 %v4721_v37  ;;  %3425 = vmatprep.subr.bf16.mxu1 %v5557_v47 }
  0xa9   : > { %1133 = vmatprep.mubr.f32.mxu0 %v4132_v22  ;;  %v4749_v40 = vsel %vm745_vm3, %v738_v2, %v739_v33  ;;  %v674_v2 = vsel %vm640_vm2, %v4231_v5, 0.0 }
  0xaa   : > { %1539 = vmatmul.mubr.f32.gmra.mrb[60].mxu1 %v4544_v14  ;;  %5589 = vst [vmem:[#allocation55_spill] sm:$0xff] %v4749_v40  ;;  %v742_v9 = vrot.slane %v674_v2, 7  ;;  %v5594_v2 = vld [vmem:[#allocation44_spill] sm:$0xff] }
  0xab   : > { %1543 = vmatprep.mubr.f32.mxu1 %v3935_v15  ;;  %3427 = vmatpush1.bf16.msra.mxu1 %v3426_v1  ;;  %v4757_v1 = vsel %vm745_vm3, %v739_v33, %v740_v51 }
  0xac   : > { %1134 = vmatmul.mubr.f32.gmra.mrb[46].mxu0 %v4736_v7  ;;  %3428 = vmatprep.subr.bf16.mxu1 %v5557_v47  ;;  %5590 = vst [vmem:[#allocation56_spill] sm:$0xff] %v4757_v1  ;;  %v741_v47 = vrot.slane %v4198_v23, 7 }
  0xad   : > { %1138 = vmatprep.mubr.f32.mxu0 %v4134_v55 }
  0xae   : > { %1544 = vmatmul.mubr.f32.gmra.mrb[62].mxu1 %v4559_v16  ;;  %v4769_v50 = vsel %vm745_vm3, %v740_v51, %v741_v47  ;;  %v4777_v33 = vsel %vm745_vm3, %v741_v47, %v742_v9 }
  0xaf   : > { %1548 = vmatprep.mubr.f32.mxu1 %v3921_v8  ;;  %3430 = vmatpush1.bf16.msra.mxu1 %v3429_v21  ;;  %v743_v21 = vrot.slane %v5591_v58, 7 }
  0xb0   : > { %1139 = vmatmul.mubr.f32.gmra.mrb[48].mxu0 %v4749_v40 }
  0xb1   : > { %1143 = vmatprep.mubr.f32.mxu0 %v4187_v39  ;;  %v4786_v51 = vsel %vm745_vm3, %v742_v9, %v743_v21  ;;  %v4795_v47 = vsel %vm745_vm3, %v743_v21, %v4439_v29  ;;  %v5596_v21 = vld [vmem:[#allocation16_spill] sm:$0xff] }
  0xb2   : > { %1549 = vmatmul.mubr.f32.gmra.mrb[64].mxu1 %v4578_v48  ;;  %5592 = vst [vmem:[#allocation57_spill] sm:$0xff] %v4786_v51  ;;  %5593 = vst [vmem:[#allocation58_spill] sm:$0xff] %v4795_v47 }
  0xb3   : > { %1553 = vmatprep.mubr.f32.mxu1 %v3981_v59 }
  0xb4   : > { %1144 = vmatmul.mubr.f32.gmra.mrb[50].mxu0 %v4757_v1 }
  0xb5   : > { %1148 = vmatprep.mubr.f32.mxu0 %v4198_v23 }
  0xb6   : > { %1554 = vmatmul.mubr.f32.gmra.mrb[66].mxu1 %v4593_v63 }
  0xb7   : > { %1558 = vmatprep.mubr.f32.mxu1 %v3973_v45 }
  0xb8   : > { %1149 = vmatmul.mubr.f32.gmra.mrb[52].mxu0 %v4769_v50 }
  0xb9   : > { %1153 = vmatprep.mubr.f32.mxu0 %v4231_v5 }
  0xba   : > { %1559 = vmatmul.mubr.f32.gmra.mrb[68].mxu1 %v4619_v27 }
  0xbb   : > { %1563 = vmatprep.mubr.f32.mxu1 %v4022_v36  ;;  %v895_v36 = vrot.slane %v5594_v2, 7 }
  0xbc   : > { %1154 = vmatmul.mubr.f32.gmra.mrb[54].mxu0 %v4777_v33 }
  0xbd   : > { %1158 = vmatprep.mubr.f32.mxu0 %v5591_v58  ;;  %v4805_v9 = vsel %vm745_vm3, %v4439_v29, %v895_v36  ;;  %v2817_v29 = vld [vmem:[%s5431_s3 + $0x410] sm:$0xff] }
  0xbe   : > { %1564 = vmatmul.mubr.f32.gmra.mrb[70].mxu1 %v4634_v13  ;;  %5595 = vst [vmem:[#allocation59_spill] sm:$0xff] %v4805_v9 }
  0xbf   : > { %1568 = vmatprep.mubr.f32.mxu1 %v4013_v28 }
  0xc0   : > { %1159 = vmatmul.mubr.f32.gmra.mrb[56].mxu0 %v4786_v51 }
  0xc1   : > { %1163 = vmatprep.mubr.f32.mxu0 %v4283_v3 }
  0xc2   : > { %1569 = vmatmul.mubr.f32.gmra.mrb[72].mxu1 %v4653_v6  ;;  %v5597_v6 = vld [vmem:[#allocation23_spill] sm:$0xff] }
  0xc3   : > { %1573 = vmatprep.mubr.f32.mxu1 %v4065_v31  ;;  %v4814_v31 = vsel %vm745_vm3, %v895_v36, %v5597_v6  ;;  %v5600_v36 = vrot.slane %v4408_v24, 1 }
  0xc4   : > { %1164 = vmatmul.mubr.f32.gmra.mrb[58].mxu0 %v4795_v47  ;;  %5598 = vst [vmem:[#allocation60_spill] sm:$0xff] %v4814_v31 }
  0xc5   : > { %1168 = vmatprep.mubr.f32.mxu0 %v5594_v2  ;;  %v2818_v2 = vld [vmem:[%s5431_s3 + $0x418] sm:$0xff] }
  0xc6   : > { %1574 = vmatmul.mubr.f32.gmra.mrb[74].mxu1 %v4668_v25 }
  0xc7   : > { %1578 = vmatprep.mubr.f32.mxu1 %v4055_v11 }
  0xc8   : > { %1169 = vmatmul.mubr.f32.gmra.mrb[60].mxu0 %v4805_v9  ;;  %v3435_v9 = vpack.c.bf16 %v2818_v2, %v2817_v29  ;;  %v5603_v2 = vld [vmem:[#allocation6_spill] sm:$0xff] }
  0xc9   : > { %1173 = vmatprep.mubr.f32.mxu0 %v5596_v21  ;;  %v5599_v21 = vld [vmem:[#allocation2_spill] sm:$0xff] }
  0xca   : > { %1579 = vmatmul.mubr.f32.gmra.mrb[76].mxu1 %v4687_v34  ;;  %v840_v6 = vsel %vm810_vm1, %v5600_v36, %v5599_v21  ;;  %v622_v21 = vld [vmem:[%s4846_s22 + $0x8] sm:$0xff]  ;;  %v2823_v29 = vld [vmem:[%s5431_s3 + $0x440] sm:$0xff] }
  0xcb   : > { %1583 = vmatprep.mubr.f32.mxu1 %v4091_v61  ;;  %v2819_v61 = vld [vmem:[%s5431_s3 + $0x420] sm:$0xff]  ;;  %v2824_v36 = vld [vmem:[%s5431_s3 + $0x448] sm:$0xff] }
  0xcc   : > { %1174 = vmatmul.mubr.f32.gmra.mrb[62].mxu0 %v4814_v31  ;;  %v5601_v31 = vld [vmem:[#allocation3_spill] sm:$0xff] }
  0xcd   : > { %3095 = vmatprep.mubr.f32.mxu0 %v4458_v30  ;;  %v2820_v30 = vld [vmem:[%s5431_s3 + $0x428] sm:$0xff] }
  0xce   : > { %1584 = vmatmul.mubr.f32.gmra.mrb[78].mxu1 %v4702_v46  ;;  %v3439_v24 = vpack.c.bf16 %v2820_v30, %v2819_v61  ;;  %v5604_v30 = vld [vmem:[#allocation7_spill] sm:$0xff] }
  0xcf   : > { %1588 = vmatprep.mubr.f32.mxu1 %v4093_v57  ;;  %v5609_v57 = vld [vmem:[#allocation13_spill] sm:$0xff] }
  0xd0   : > { %3096 = vmatmul.mubr.f32.vlgmr.msra.gmra.mrb[64].mxu0 %v840_v6  ;;  %v2821_v6 = vld [vmem:[%s5431_s3 + $0x430] sm:$0xff] }
  0xd1   : > { %3098 = vmatprep.mubr.f32.mxu0 %v5601_v31  ;;  %3434 = vmatpush3.bf16.msra.mxu0 %v4489_v53  ;;  %v2822_v31 = vld [vmem:[%s5431_s3 + $0x438] sm:$0xff] }
  0xd2   : > { %1589 = vmatmul.mubr.f32.gmra.mrb[80].mxu1 %v4721_v37  ;;  %3436 = vmatprep.subr.bf16.mxu0 %v3435_v9  ;;  %v5602_v53 = vld [vmem:[#allocation5_spill] sm:$0xff]  ;;  %v3443_v61 = vpack.c.bf16 %v2822_v31, %v2821_v6  ;;  %v5605_v6 = vld [vmem:[#allocation8_spill] sm:$0xff]  ;;  %v3447_v31 = vpack.c.bf16 %v2824_v36, %v2823_v29  ;;  %v5607_v29 = vld [vmem:[#allocation10_spill] sm:$0xff] }
  0xd3   : > { %1593 = vmatprep.mubr.f32.mxu1 %v4132_v22  ;;  %v5606_v22 = vld [vmem:[#allocation9_spill] sm:$0xff]  ;;  %v5608_v37 = vld [vmem:[#allocation12_spill] sm:$0xff] }
  0xd4   : > { %3099 = vmatmul.mubr.f32.gmra.mrb[66].mxu0 %v5602_v53 }
  0xd5   : > { %3101 = vmatprep.mubr.f32.mxu0 %v5603_v2  ;;  %3438 = vmatpush3.bf16.msra.mxu0 %v3435_v9  ;;  %v4870_v9 = vld [vmem:[%s5432_s4] ss:$0 sm:$0xff] }
  0xd6   : > { %1594 = vmatmul.mubr.f32.gmra.mrb[82].mxu1 %v4736_v7  ;;  %3440 = vmatprep.subr.bf16.mxu0 %v3439_v24  ;;  %v624_v53 = vmul.f32 %v4870_v9, %v622_v21  ;;  %v2826_v7 = vld [vmem:[%s5431_s3 + $0x458] sm:$0xff] }
  0xd7   : > { %1598 = vmatprep.mubr.f32.mxu1 %v4134_v55  ;;  %v2825_v55 = vld [vmem:[%s5431_s3 + $0x450] sm:$0xff] }
  0xd8   : > { %3102 = vmatmul.mubr.f32.gmra.mrb[68].mxu0 %v5604_v30  ;;  %v3451_v36 = vpack.c.bf16 %v2826_v7, %v2825_v55  ;;  %v2829_v7 = vld [vmem:[%s5431_s3 + $0x470] sm:$0xff] }
  0xd9   : > { %3104 = vmatprep.mubr.f32.mxu0 %v5605_v6  ;;  %3442 = vmatpush3.bf16.msra.mxu0 %v3439_v24  ;;  %v4886_v24 = vld [vmem:[%s5433_s5] ss:$0 sm:$0xff] }
  0xda   : > { %1599 = vmatmul.mubr.f32.gmra.mrb[84].mxu1 %v4749_v40  ;;  %3444 = vmatprep.subr.bf16.mxu0 %v3443_v61  ;;  %v626_v21 = vadd.f32 %v4886_v24, %v624_v53  ;;  %v2828_v40 = vld [vmem:[%s5431_s3 + $0x468] sm:$0xff] }
  0xdb   : > { %1603 = vmatprep.mubr.f32.mxu1 %v4187_v39  ;;  %v2827_v39 = vld [vmem:[%s5431_s3 + $0x460] sm:$0xff] }
  0xdc   : > { %3105 = vmatmul.mubr.f32.gmra.mrb[70].mxu0 %v5606_v22  ;;  %v628_v53 = vmax.f32 %v626_v21, 0.0  ;;  %v3455_v55 = vpack.c.bf16 %v2828_v40, %v2827_v39  ;;  %v5612_v40 = vld [vmem:[#allocation17_spill] sm:$0xff] }
  0xdd   : > { %3107 = vmatprep.mubr.f32.mxu0 %v5607_v29  ;;  %3446 = vmatpush3.bf16.msra.mxu0 %v3443_v61  ;;  %v2830_v61 = vld [vmem:[%s5431_s3 + $0x478] sm:$0xff] }
  0xde   : > { %1604 = vmatmul.mubr.f32.gmra.mrb[86].mxu1 %v4757_v1  ;;  %3448 = vmatprep.subr.bf16.mxu0 %v3447_v31  ;;  %v4909_v21 = vmul.f32 0.0, %v628_v53  ;;  %v5611_v1 = vld [vmem:[#allocation15_spill] sm:$0xff]  ;;  %v3459_v39 = vpack.c.bf16 %v2830_v61, %v2829_v7  ;;  %v5615_v53 = vld [vmem:[#allocation20_spill] sm:$0xff]  ;;  %v5616_v7 = vld [vmem:[#allocation21_spill] sm:$0xff] }
  0xdf   : > { %1608 = vmatprep.mubr.f32.mxu1 %v4198_v23  ;;  %v5610_v23 = vld [vmem:[#allocation14_spill] sm:$0xff]  ;;  %v5618_v61 = vld [vmem:[#allocation24_spill] sm:$0xff] }
  0xe0   : > { %3108 = vmatmul.mubr.f32.gmra.mrb[72].mxu0 %v5608_v37 }
  0xe1   : > { %3110 = vmatprep.mubr.f32.mxu0 %v5609_v57  ;;  %3450 = vmatpush3.bf16.msra.mxu0 %v3447_v31  ;;  %v4918_v31 = vsel %vm640_vm2, %v4909_v21, 0.0 }
  0xe2   : > { %1609 = vmatmul.mubr.f32.gmra.mrb[88].mxu1 %v4769_v50  ;;  %3452 = vmatprep.subr.bf16.mxu0 %v3451_v36  ;;  %5613 = vst [vmem:[#allocation2_spill] sm:$0xff] %v4918_v31 }
  0xe3   : > { %1613 = vmatprep.mubr.f32.mxu1 %v4231_v5  ;;  %v5614_v5 = vld [vmem:[#allocation18_spill] sm:$0xff] }
  0xe4   : > { %3111 = vmatmul.mubr.f32.gmra.mrb[74].mxu0 %v5610_v23 }
  0xe5   : > { %3113 = vmatprep.mubr.f32.mxu0 %v5611_v1  ;;  %3454 = vmatpush3.bf16.msra.mxu0 %v3451_v36  ;;  %v5529_v36 = vrot.slane %v4918_v31, 7  ;;  %v5623_v31 = vld [vmem:[#allocation34_spill] sm:$0xff] }
  0xe6   : > { %1614 = vmatmul.mubr.f32.gmra.mrb[90].mxu1 %v4777_v33  ;;  %3456 = vmatprep.subr.bf16.mxu0 %v3455_v55 }
  0xe7   : > { %1618 = vmatprep.mubr.f32.mxu1 %v5591_v58 }
  0xe8   : > { %3114 = vmatmul.mubr.f32.gmra.mrb[76].mxu0 %v5612_v40 }
  0xe9   : > { %3116 = vmatprep.mubr.f32.mxu0 %v5614_v5  ;;  %3458 = vmatpush3.bf16.msra.mxu0 %v3455_v55  ;;  %v1862_v55 = vsel %vm745_vm3, %v5529_v36, %v5617_v26  ;;  %v5624_v26 = vld [vmem:[#allocation37_spill] sm:$0xff] }
  0xea   : > { %1619 = vmatmul.mubr.f32.gmra.mrb[92].mxu1 %v4786_v51  ;;  %3460 = vmatprep.subr.bf16.mxu0 %v3459_v39  ;;  %v5620_v51 = vld [vmem:[#allocation28_spill] sm:$0xff] }
  0xeb   : > { %1623 = vmatprep.mubr.f32.mxu1 %v4283_v3  ;;  %v5619_v3 = vld [vmem:[#allocation27_spill] sm:$0xff] }
  0xec   : > { %3117 = vmatmul.mubr.f32.gmra.mrb[78].mxu0 %v5615_v53 }
  0xed   : > { %3119 = vmatprep.mubr.f32.mxu0 %v5616_v7  ;;  %3462 = vmatpush3.bf16.msra.mxu0 %v3459_v39  ;;  %v5621_v39 = vld [vmem:[#allocation31_spill] sm:$0xff] }
  0xee   : > { %1624 = vmatmul.mubr.f32.gmra.mrb[94].mxu1 %v4795_v47  ;;  %v5631_v47 = vld [vmem:[#allocation48_spill] sm:$0xff] }
  0xef   : > { %1981 = vmatprep.mubr.f32.mxu1 %v3721_v4  ;;  %v5622_v4 = vld [vmem:[#allocation33_spill] sm:$0xff] }
  0xf0   : > { %3120 = vmatmul.mubr.f32.gmra.mrb[80].mxu0 %v5618_v61 }
  0xf1   : > { %3122 = vmatprep.mubr.f32.mxu0 %v5619_v3 }
  0xf2   : > { %1982 = vmatmul.mubr.f32.vlgmr.msra.gmra.mrb[96].mxu1 %v1862_v55  ;;  %v5625_v55 = vld [vmem:[#allocation38_spill] sm:$0xff] }
  0xf3   : > { %1986 = vmatprep.mubr.f32.mxu1 %v3747_v19  ;;  %v5626_v19 = vld [vmem:[#allocation41_spill] sm:$0xff] }
  0xf4   : > { %3123 = vmatmul.mubr.f32.gmra.mrb[82].mxu0 %v5620_v51 }
  0xf5   : > { %3125 = vmatprep.mubr.f32.mxu0 %v5621_v39 }
  0xf6   : > { %1987 = vmatmul.mubr.f32.gmra.mrb[98].mxu1 %v4252_v10  ;;  %v5627_v10 = vld [vmem:[#allocation42_spill] sm:$0xff] }
  0xf7   : > { %1991 = vmatprep.mubr.f32.mxu1 %v3749_v20  ;;  %v5628_v20 = vld [vmem:[#allocation45_spill] sm:$0xff] }
  0xf8   : > { %3126 = vmatmul.mubr.f32.gmra.mrb[84].mxu0 %v5622_v4 }
  0xf9   : > { %3128 = vmatprep.mubr.f32.mxu0 %v5623_v31 }
  0xfa   : > { %1992 = vmatmul.mubr.f32.gmra.mrb[100].mxu1 %v4297_v44 }
  0xfb   : > { %1996 = vmatprep.mubr.f32.mxu1 %v3779_v41  ;;  %v5629_v41 = vld [vmem:[#allocation46_spill] sm:$0xff] }
  0xfc   : > { %3129 = vmatmul.mubr.f32.gmra.mrb[86].mxu0 %v5624_v26 }
  0xfd   : > { %3131 = vmatprep.mubr.f32.mxu0 %v5625_v55 }
  0xfe   : > { %1997 = vmatmul.mubr.f32.gmra.mrb[102].mxu1 %v4335_v54  ;;  %v5630_v54 = vld [vmem:[#allocation47_spill] sm:$0xff] }
  0xff   : > { %2001 = vmatprep.mubr.f32.mxu1 %v3781_v42 }
 0x100   : > { %3132 = vmatmul.mubr.f32.gmra.mrb[88].mxu0 %v5626_v19 }
 0x101   : > { %3134 = vmatprep.mubr.f32.mxu0 %v5627_v10 }
 0x102   : > { %2002 = vmatmul.mubr.f32.gmra.mrb[104].mxu1 %v4374_v62 }
 0x103   : > { %2006 = vmatprep.mubr.f32.mxu1 %v3821_v0 }
 0x104   : > { %3135 = vmatmul.mubr.f32.gmra.mrb[90].mxu0 %v5628_v20 }
 0x105   : > { %v3017_v44 = vpop.f32.mrb[0].mxu1  ;;  %3137 = vmatprep.mubr.f32.mxu0 %v5629_v41 }
 0x106   : > { %v1245_v36 = vpop.f32.mrb[1].mxu1  ;;  %2007 = vmatmul.mubr.f32.gmra.mrb[106].mxu1 %v4418_v43 }
 0x107   : > { %2011 = vmatprep.mubr.f32.mxu1 %v3799_v52 }
 0x108   : > { %3138 = vmatmul.mubr.f32.gmra.mrb[92].mxu0 %v5630_v54 }
 0x109   : > { %v4957_v42 = vpop.f32.mrb[2].mxu1  ;;  %3140 = vmatprep.mubr.f32.mxu0 %v5631_v47 }
 0x10a   : > { %v1255_v58 = vpop.f32.mrb[3].mxu1  ;;  %2012 = vmatmul.mubr.f32.gmra.mrb[108].mxu1 %v4463_v12 }
 0x10b   : > { %2016 = vmatprep.mubr.f32.mxu1 %v3849_v17 }
 0x10c   : > { %3141 = vmatmul.mubr.f32.gmra.mrb[94].mxu0 %v4614_v35 }
 0x10d   : > { %v4963_v0 = vpop.f32.mrb[4].mxu1  ;;  %3175 = vmatprep.mubr.f32.mxu0 %v5603_v2  ;;  %v5633_v2 = vld [vmem:[#allocation19_spill] sm:$0xff] }
 0x10e   : > { %v4966_v62 = vpop.f32.mrb[5].mxu1  ;;  %2017 = vmatmul.mubr.f32.gmra.mrb[110].mxu1 %v4486_v56 }
 0x10f   : > { %2021 = vmatprep.mubr.f32.mxu1 %v3851_v18  ;;  %v5632_v18 = vld [vmem:[#allocation11_spill] sm:$0xff] }
 0x110   : > { %3176 = vmatmul.mubr.f32.vlgmr.msra.gmra.mrb[96].mxu0 %v5604_v30 }
 0x111   : > { %v4971_v52 = vpop.f32.mrb[6].mxu1  ;;  %3178 = vmatprep.mubr.f32.mxu0 %v5605_v6 }
 0x112   : > { %v4974_v12 = vpop.f32.mrb[7].mxu1  ;;  %2022 = vmatmul.mubr.f32.gmra.mrb[112].mxu1 %v4508_v60 }
 0x113   : > { %2026 = vmatprep.mubr.f32.mxu1 %v3877_v38 }
 0x114   : > { %3179 = vmatmul.mubr.f32.gmra.mrb[98].mxu0 %v5606_v22 }
 0x115   : > { %v4979_v17 = vpop.f32.mrb[8].mxu1  ;;  %3181 = vmatprep.mubr.f32.mxu0 %v5607_v29 }
 0x116   : > { %v4982_v43 = vpop.f32.mrb[9].mxu1  ;;  %2027 = vmatmul.mubr.f32.gmra.mrb[114].mxu1 %v4526_v49 }
 0x117   : > { %2031 = vmatprep.mubr.f32.mxu1 %v5632_v18  ;;  %v5636_v18 = vld [vmem:[#allocation25_spill] sm:$0xff] }
 0x118   : > { %3182 = vmatmul.mubr.f32.gmra.mrb[100].mxu0 %v5608_v37 }
 0x119   : > { %v4987_v56 = vpop.f32.mrb[10].mxu1  ;;  %3184 = vmatprep.mubr.f32.mxu0 %v5609_v57 }
 0x11a   : > { %v4990_v60 = vpop.f32.mrb[11].mxu1  ;;  %2032 = vmatmul.mubr.f32.gmra.mrb[116].mxu1 %v4544_v14 }
 0x11b   : > { %2036 = vmatprep.mubr.f32.mxu1 %v3935_v15 }
 0x11c   : > { %3185 = vmatmul.mubr.f32.gmra.mrb[102].mxu0 %v5610_v23 }
 0x11d   : > { %v4995_v38 = vpop.f32.mrb[12].mxu1  ;;  %3187 = vmatprep.mubr.f32.mxu0 %v5611_v1 }
 0x11e   : > { %v4998_v22 = vpop.f32.mrb[13].mxu1  ;;  %2037 = vmatmul.mubr.f32.gmra.mrb[118].mxu1 %v4559_v16 }
 0x11f   : > { %2041 = vmatprep.mubr.f32.mxu1 %v3921_v8 }
 0x120   : > { %3188 = vmatmul.mubr.f32.gmra.mrb[104].mxu0 %v5612_v40 }
 0x121   : > { %v5003_v57 = vpop.f32.mrb[14].mxu1  ;;  %3190 = vmatprep.mubr.f32.mxu0 %v5614_v5 }
 0x122   : > { %v5006_v49 = vpop.f32.mrb[15].mxu1  ;;  %2042 = vmatmul.mubr.f32.gmra.mrb[120].mxu1 %v4578_v48 }
 0x123   : > { %v1020_v15 = vpop.f32.mrb[0].mxu0  ;;  %2046 = vmatprep.mubr.f32.mxu1 %v3981_v59 }
 0x124   : > { %v5010_v23 = vadd.f32 %v1245_v36, %v1020_v15  ;;  %3191 = vmatmul.mubr.f32.gmra.mrb[106].mxu0 %v5615_v53  ;;  %v1022_v14 = vpop.f32.mrb[1].mxu0  ;;  %v5634_v53 = vld [vmem:[#allocation52_spill] sm:$0xff] }
 0x125   : > { %v5013_v8 = vpop.f32.mrb[16].mxu1  ;;  %3193 = vmatprep.mubr.f32.mxu0 %v5616_v7  ;;  %v5635_v7 = vld [vmem:[#allocation22_spill] sm:$0xff] }
 0x126   : > { %v5016_v16 = vpop.f32.mrb[17].mxu1  ;;  %2047 = vmatmul.mubr.f32.gmra.mrb[122].mxu1 %v4593_v63  ;;  %v621_v63 = vld [vmem:[%s4846_s22] sm:$0xff] }
 0x127   : > { %v1025_v5 = vpop.f32.mrb[2].mxu0  ;;  %2051 = vmatprep.mubr.f32.mxu1 %v3973_v45  ;;  %v5637_v14 = vld [vmem:[#allocation26_spill] sm:$0xff] }
 0x128   : > { %v5020_v48 = vadd.f32 %v3017_v44, %v1025_v5  ;;  %3194 = vmatmul.mubr.f32.gmra.mrb[108].mxu0 %v5618_v61  ;;  %v1027_v59 = vpop.f32.mrb[3].mxu0 }
 0x129   : > { %v5023_v35 = vpop.f32.mrb[18].mxu1  ;;  %3196 = vmatprep.mubr.f32.mxu0 %v5619_v3  ;;  %v623_v3 = vmul.f32 %v4870_v9, %v621_v63  ;;  %v5639_v63 = vld [vmem:[#allocation29_spill] sm:$0xff] }
 0x12a   : > { %v5026_v37 = vpop.f32.mrb[19].mxu1  ;;  %2052 = vmatmul.mubr.f32.gmra.mrb[124].mxu1 %v4619_v27 }
 0x12b   : > { %v1030_v1 = vpop.f32.mrb[4].mxu0  ;;  %2056 = vmatprep.mubr.f32.mxu1 %v5633_v2 }
 0x12c   : > { %v5031_v30 = vadd.f32 %v1255_v58, %v1030_v1  ;;  %3197 = vmatmul.mubr.f32.gmra.mrb[110].mxu0 %v5620_v51  ;;  %v1032_v45 = vpop.f32.mrb[5].mxu0  ;;  %v1864_v1 = vrot.slane %v4909_v21, 1 }
 0x12d   : > { %v5034_v6 = vpop.f32.mrb[20].mxu1  ;;  %3199 = vmatprep.mubr.f32.mxu0 %v5621_v39 }
 0x12e   : > { %v5037_v29 = vpop.f32.mrb[21].mxu1  ;;  %2057 = vmatmul.mubr.f32.gmra.mrb[126].mxu1 %v4634_v13  ;;  %v625_v13 = vadd.f32 %v4886_v24, %v623_v3  ;;  %v5640_v3 = vld [vmem:[#allocation50_spill] sm:$0xff] }
 0x12f   : > { %v1035_v27 = vpop.f32.mrb[6].mxu0  ;;  %2061 = vmatprep.mubr.f32.mxu1 %v4013_v28 }
 0x130   : > { %v5043_v40 = vadd.f32 %v4957_v42, %v1035_v27  ;;  %3200 = vmatmul.mubr.f32.gmra.mrb[112].mxu0 %v5622_v4  ;;  %v1037_v58 = vpop.f32.mrb[7].mxu0  ;;  %v627_v4 = vmax.f32 %v625_v13, 0.0  ;;  %v5641_v27 = vld [vmem:[#allocation51_spill] sm:$0xff] }
 0x131   : > { %v5046_v51 = vpop.f32.mrb[22].mxu1  ;;  %3202 = vmatprep.mubr.f32.mxu0 %v5623_v31 }
 0x132   : > { %v5049_v36 = vpop.f32.mrb[23].mxu1  ;;  %2062 = vmatmul.mubr.f32.gmra.mrb[128].mxu1 %v5634_v53 }
 0x133   : > { %v1040_v9 = vpop.f32.mrb[8].mxu0  ;;  %2066 = vmatprep.mubr.f32.mxu1 %v5635_v7 }
 0x134   : > { %v5055_v28 = vadd.f32 %v4966_v62, %v1040_v9  ;;  %v1042_v61 = vpop.f32.mrb[9].mxu0  ;;  %3203 = vmatmul.mubr.f32.gmra.mrb[114].mxu0 %v5624_v26  ;;  %v5643_v9 = vld [vmem:[#allocation54_spill] sm:$0xff] }
 0x135   : > { %v5058_v39 = vpop.f32.mrb[24].mxu1  ;;  %3205 = vmatprep.mubr.f32.mxu0 %v5625_v55  ;;  %v5075_v55 = vmul.f32 0.0, %v627_v4  ;;  %v5644_v61 = vld [vmem:[#allocation30_spill] sm:$0xff] }
 0x136   : > { %v5061_v31 = vpop.f32.mrb[25].mxu1  ;;  %2067 = vmatmul.mubr.f32.gmra.mrb[130].mxu1 %v4668_v25 }
 0x137   : > { %v1045_v44 = vpop.f32.mrb[10].mxu0  ;;  %2071 = vmatprep.mubr.f32.mxu1 %v4055_v11 }
 0x138   : > { %v5066_v24 = vadd.f32 %v4963_v0, %v1045_v44  ;;  %v1047_v42 = vpop.f32.mrb[11].mxu0  ;;  %3206 = vmatmul.mubr.f32.gmra.mrb[116].mxu0 %v5626_v19 }
 0x139   : > { %v5069_v62 = vpop.f32.mrb[26].mxu1  ;;  %3208 = vmatprep.mubr.f32.mxu0 %v5627_v10 }
 0x13a   : > { %v5072_v26 = vpop.f32.mrb[27].mxu1  ;;  %2072 = vmatmul.mubr.f32.gmra.mrb[132].mxu1 %v4687_v34  ;;  %v1856_v34 = vsel %vm637_vm0, %v5075_v55, 0.0 }
 0x13b   : > { %v1050_v25 = vpop.f32.mrb[12].mxu0  ;;  %2076 = vmatprep.mubr.f32.mxu1 %v5636_v18 }
 0x13c   : > { %v5079_v11 = vadd.f32 %v4974_v12, %v1050_v25  ;;  %v1052_v0 = vpop.f32.mrb[13].mxu0  ;;  %3209 = vmatmul.mubr.f32.gmra.mrb[118].mxu0 %v5628_v20  ;;  %v5645_v25 = vld [vmem:[#allocation4_spill] sm:$0xff] }
 0x13d   : > { %v5082_v19 = vpop.f32.mrb[28].mxu1  ;;  %3211 = vmatprep.mubr.f32.mxu0 %v5629_v41  ;;  %v1863_v41 = vrot.slane %v1856_v34, 1  ;;  %v5646_v34 = vld [vmem:[#allocation55_spill] sm:$0xff] }
 0x13e   : > { %v5085_v10 = vpop.f32.mrb[29].mxu1  ;;  %2077 = vmatmul.mubr.f32.gmra.mrb[134].mxu1 %v4702_v46  ;;  %v5638_v46 = vld [vmem:[#allocation53_spill] sm:$0xff] }
 0x13f   : > { %v1055_v15 = vpop.f32.mrb[14].mxu0  ;;  %2081 = vmatprep.mubr.f32.mxu1 %v5637_v14  ;;  %v5647_v14 = vld [vmem:[#allocation35_spill] sm:$0xff] }
 0x140   : > { %v5093_v12 = vadd.f32 %v4971_v52, %v1055_v15  ;;  %v1057_v5 = vpop.f32.mrb[15].mxu0  ;;  %3212 = vmatmul.mubr.f32.gmra.mrb[120].mxu0 %v5630_v54 }
 0x141   : > { %v5096_v20 = vpop.f32.mrb[30].mxu1  ;;  %3214 = vmatprep.mubr.f32.mxu0 %v5631_v47  ;;  %v5642_v47 = vld [vmem:[#allocation49_spill] sm:$0xff] }
 0x142   : > { %v5099_v59 = vpop.f32.mrb[31].mxu1  ;;  %2082 = vmatmul.mubr.f32.gmra.mrb[136].mxu1 %v5638_v46  ;;  %v1866_v58 = vsel %vm810_vm1, %v5642_v47, %v1863_v41 }
 0x143   : > { %v1060_v2 = vpop.f32.mrb[16].mxu0  ;;  %2086 = vmatprep.mubr.f32.mxu1 %v5639_v63  ;;  %v5649_v63 = vld [vmem:[#allocation36_spill] sm:$0xff] }
 0x144   : > { %v5105_v52 = vadd.f32 %v4982_v43, %v1060_v2  ;;  %v1062_v45 = vpop.f32.mrb[17].mxu0  ;;  %3215 = vmatmul.mubr.f32.gmra.mrb[122].mxu0 %v5640_v3  ;;  %v1865_v43 = vsel %vm810_vm1, %v1863_v41, %v1864_v1 }
 0x145   : > { %v1470_v54 = vpop.f32.mrb[32].mxu1  ;;  %3217 = vmatprep.mubr.f32.mxu0 %v5641_v27 }
 0x146   : > { %v5113_v53 = vadd.f32 %v1470_v54, %v5010_v23  ;;  %v1472_v13 = vpop.f32.mrb[33].mxu1  ;;  %2087 = vmatmul.mubr.f32.gmra.mrb[138].mxu1 %v5643_v9  ;;  %v1867_v23 = vsel %vm810_vm1, %v1864_v1, %v5645_v25  ;;  %v5648_v1 = vld [vmem:[#allocation56_spill] sm:$0xff]  ;;  %v5652_v25 = vld [vmem:[#allocation57_spill] sm:$0xff] }
 0x147   : > { %v1065_v7 = vpop.f32.mrb[18].mxu0  ;;  %2091 = vmatprep.mubr.f32.mxu1 %v5644_v61 }
 0x148   : > { %v5120_v4 = vadd.f32 %v4979_v17, %v1065_v7  ;;  %v1067_v44 = vpop.f32.mrb[19].mxu0  ;;  %3218 = vmatmul.mubr.f32.gmra.mrb[124].mxu0 %v1866_v58 }
 0x149   : > { %v1475_v42 = vpop.f32.mrb[34].mxu1  ;;  %3220 = vmatprep.mubr.f32.mxu0 %v1865_v43 }
 0x14a   : > { %v5126_v18 = vadd.f32 %v1475_v42, %v5020_v48  ;;  %v1477_v0 = vpop.f32.mrb[35].mxu1  ;;  %2092 = vmatmul.mubr.f32.gmra.mrb[140].mxu1 %v5646_v34 }
 0x14b   : > { %v1070_v15 = vpop.f32.mrb[20].mxu0  ;;  %2096 = vmatprep.mubr.f32.mxu1 %v5647_v14  ;;  %v5654_v14 = vld [vmem:[#allocation58_spill] sm:$0xff] }
 0x14c   : > { %v5131_v17 = vadd.f32 %v4990_v60, %v1070_v15  ;;  %v1072_v5 = vpop.f32.mrb[21].mxu0  ;;  %3221 = vmatmul.mubr.f32.gmra.mrb[126].mxu0 %v1867_v23 }
 0x14d   : > { %v1480_v41 = vpop.f32.mrb[36].mxu1 }
 0x14e   : > { %v5134_v46 = vadd.f32 %v1480_v41, %v5031_v30  ;;  %v1482_v2 = vpop.f32.mrb[37].mxu1  ;;  %2097 = vmatmul.mubr.f32.gmra.mrb[142].mxu1 %v5648_v1  ;;  %v5650_v30 = vld [vmem:[#allocation39_spill] sm:$0xff] }
 0x14f   : > { %v1075_v48 = vpop.f32.mrb[22].mxu0  ;;  %2101 = vmatprep.mubr.f32.mxu1 %v5649_v63  ;;  %v5656_v63 = vld [vmem:[#allocation59_spill] sm:$0xff] }
 0x150   : > { %v5139_v45 = vadd.f32 %v4987_v56, %v1075_v48  ;;  %v1077_v3 = vpop.f32.mrb[23].mxu0 }
 0x151   : > { %v1485_v54 = vpop.f32.mrb[38].mxu1 }
 0x152   : > { %v5142_v60 = vadd.f32 %v1485_v54, %v5043_v40  ;;  %v1487_v27 = vpop.f32.mrb[39].mxu1  ;;  %2102 = vmatmul.mubr.f32.gmra.mrb[144].mxu1 %v4769_v50  ;;  %v5651_v40 = vld [vmem:[#allocation40_spill] sm:$0xff] }
 0x153   : > { %v1080_v47 = vpop.f32.mrb[24].mxu0  ;;  %2106 = vmatprep.mubr.f32.mxu1 %v5650_v30  ;;  %v5657_v54 = vld [vmem:[#allocation16_spill] sm:$0xff] }
 0x154   : > { %v5147_v58 = vadd.f32 %v4998_v22, %v1080_v47  ;;  %v1082_v13 = vpop.f32.mrb[25].mxu0 }
 0x155   : > { %v1490_v9 = vpop.f32.mrb[40].mxu1 }
 0x156   : > { %v5150_v43 = vadd.f32 %v1490_v9, %v5055_v28  ;;  %v1492_v56 = vpop.f32.mrb[41].mxu1  ;;  %2107 = vmatmul.mubr.f32.gmra.mrb[146].mxu1 %v4777_v33  ;;  %v5653_v28 = vld [vmem:[#allocation43_spill] sm:$0xff]  ;;  %v5658_v9 = vld [vmem:[#allocation60_spill] sm:$0xff] }
 0x157   : > { %v1085_v7 = vpop.f32.mrb[26].mxu0  ;;  %2111 = vmatprep.mubr.f32.mxu1 %v5651_v40  ;;  %v5659_v56 = vld [vmem:[#allocation23_spill] sm:$0xff] }
 0x158   : > { %v5155_v61 = vadd.f32 %v4995_v38, %v1085_v7  ;;  %v1087_v50 = vpop.f32.mrb[27].mxu0 }
 0x159   : > { %v1495_v44 = vpop.f32.mrb[42].mxu1 }
 0x15a   : > { %v5158_v42 = vadd.f32 %v1495_v44, %v5066_v24  ;;  %v1497_v22 = vpop.f32.mrb[43].mxu1  ;;  %2112 = vmatmul.mubr.f32.gmra.mrb[148].mxu1 %v5652_v25  ;;  %v5655_v24 = vld [vmem:[#allocation44_spill] sm:$0xff]  ;;  %v5660_v25 = vld [vmem:[#allocation2_spill] sm:$0xff] }
 0x15b   : > { %v1090_v23 = vpop.f32.mrb[28].mxu0  ;;  %2116 = vmatprep.mubr.f32.mxu1 %v5653_v28 }
 0x15c   : > { %v5163_v0 = vadd.f32 %v5006_v49, %v1090_v23  ;;  %v1092_v33 = vpop.f32.mrb[29].mxu0  ;;  %v5661_v23 = vrot.slane %v5660_v25, 7 }
 0x15d   : > { %v1500_v34 = vpop.f32.mrb[44].mxu1 }
 0x15e   : > { %v5166_v15 = vadd.f32 %v1500_v34, %v5079_v11  ;;  %v1502_v38 = vpop.f32.mrb[45].mxu1  ;;  %2117 = vmatmul.mubr.f32.gmra.mrb[150].mxu1 %v5654_v14  ;;  %v1858_v11 = vrot.slane %v5075_v55, 7 }
 0x15f   : > { %v1095_v5 = vpop.f32.mrb[30].mxu0  ;;  %2121 = vmatprep.mubr.f32.mxu1 %v5655_v24 }
 0x160   : > { %v1321_v41 = vadd.f32 %v5003_v57, %v1095_v5  ;;  %v1097_v2 = vpop.f32.mrb[31].mxu0  ;;  %v1861_v7 = vsel %vm745_vm3, %v5659_v56, %v1858_v11 }
 0x161   : > { %v1505_v1 = vpop.f32.mrb[46].mxu1 }
 0x162   : > { %v5172_v48 = vadd.f32 %v1505_v1, %v5093_v12  ;;  %v1507_v49 = vpop.f32.mrb[47].mxu1  ;;  %2122 = vmatmul.mubr.f32.gmra.mrb[152].mxu1 %v5656_v63 }
 0x163   : > { %v1100_v3 = vpop.f32.mrb[32].mxu0  ;;  %2126 = vmatprep.mubr.f32.mxu1 %v5657_v54 }
 0x164   : > { %v1326_v27 = vadd.f32 %v5016_v16, %v1100_v3  ;;  %v1102_v47 = vpop.f32.mrb[33].mxu0 }
 0x165   : > { %v1510_v30 = vpop.f32.mrb[48].mxu1 }
 0x166   : > { %v5179_v13 = vadd.f32 %v1510_v30, %v5105_v52  ;;  %v1512_v57 = vpop.f32.mrb[49].mxu1  ;;  %2127 = vmatmul.mubr.f32.gmra.mrb[154].mxu1 %v5658_v9 }
 0x167   : > { %v1105_v12 = vpop.f32.mrb[34].mxu0  ;;  %2131 = vmatprep.mubr.f32.mxu1 %v5075_v55  ;;  %v1860_v55 = vsel %vm745_vm3, %v1858_v11, %v5661_v23 }
 0x168   : > { %v1331_v40 = vadd.f32 %v5013_v8, %v1105_v12  ;;  %v1107_v50 = vpop.f32.mrb[35].mxu0 }
 0x169   : > { %v1515_v44 = vpop.f32.mrb[50].mxu1 }
 0x16a   : > { %v5188_v16 = vadd.f32 %v1515_v44, %v5120_v4  ;;  %v1517_v22 = vpop.f32.mrb[51].mxu1  ;;  %2132 = vmatmul.mubr.f32.gmra.mrb[156].mxu1 %v1861_v7 }
 0x16b   : > { %v1110_v52 = vpop.f32.mrb[36].mxu0  ;;  %2136 = vmatprep.mubr.f32.mxu1 %v4909_v21 }
 0x16c   : > { %v1336_v28 = vadd.f32 %v5026_v37, %v1110_v52  ;;  %v1112_v33 = vpop.f32.mrb[37].mxu0 }
 0x16d   : > { %v1520_v34 = vpop.f32.mrb[52].mxu1 }
 0x16e   : > { %v5197_v8 = vadd.f32 %v1520_v34, %v5131_v17  ;;  %v1522_v38 = vpop.f32.mrb[53].mxu1  ;;  %2137 = vmatmul.mubr.f32.gmra.mrb[158].mxu1 %v1860_v55 }
 0x16f   : > { %v1115_v4 = vpop.f32.mrb[38].mxu0 }
 0x170   : > { %v1341_v14 = vadd.f32 %v5023_v35, %v1115_v4  ;;  %v1117_v5 = vpop.f32.mrb[39].mxu0 }
 0x171   : > { %v1525_v24 = vpop.f32.mrb[54].mxu1 }
 0x172   : > { %v5201_v21 = vadd.f32 %v1525_v24, %v5139_v45  ;;  %v1527_v2 = vpop.f32.mrb[55].mxu1 }
 0x173   : > { %v1120_v32 = vpop.f32.mrb[40].mxu0 }
 0x174   : > { %v1346_v1 = vadd.f32 %v5037_v29, %v1120_v32  ;;  %v1122_v37 = vpop.f32.mrb[41].mxu0 }
 0x175   : > { %v1530_v49 = vpop.f32.mrb[56].mxu1 }
 0x176   : > { %v5205_v63 = vadd.f32 %v1530_v49, %v5147_v58  ;;  %v1532_v17 = vpop.f32.mrb[57].mxu1 }
 0x177   : > { %v1125_v3 = vpop.f32.mrb[42].mxu0 }
 0x178   : > { %v1351_v54 = vadd.f32 %v5034_v6, %v1125_v3  ;;  %v1127_v11 = vpop.f32.mrb[43].mxu0 }
 0x179   : > { %v1535_v35 = vpop.f32.mrb[58].mxu1 }
 0x17a   : > { %v5209_v47 = vadd.f32 %v1535_v35, %v5155_v61  ;;  %v1537_v45 = vpop.f32.mrb[59].mxu1 }
 0x17b   : > { %v1130_v30 = vpop.f32.mrb[44].mxu0 }
 0x17c   : > { %v1356_v57 = vadd.f32 %v5049_v36, %v1130_v30  ;;  %v1132_v9 = vpop.f32.mrb[45].mxu0 }
 0x17d   : > { %v1540_v29 = vpop.f32.mrb[60].mxu1 }
 0x17e   : > { %v5213_v12 = vadd.f32 %v1540_v29, %v5163_v0  ;;  %v1542_v58 = vpop.f32.mrb[61].mxu1 }
 0x17f   : > { %v1135_v56 = vpop.f32.mrb[46].mxu0 }
 0x180   : > { %v1361_v7 = vadd.f32 %v5046_v51, %v1135_v56  ;;  %v1137_v50 = vpop.f32.mrb[47].mxu0 }
 0x181   : > { %v1545_v6 = vpop.f32.mrb[62].mxu1 }
 0x182   : > { %v5216_v44 = vadd.f32 %v1545_v6, %v1321_v41  ;;  %v1547_v22 = vpop.f32.mrb[63].mxu1 }
 0x183   : > { %v1140_v61 = vpop.f32.mrb[48].mxu0 }
 0x184   : > { %v1366_v52 = vadd.f32 %v5061_v31, %v1140_v61  ;;  %v1142_v25 = vpop.f32.mrb[49].mxu0 }
 0x185   : > { %v1550_v23 = vpop.f32.mrb[64].mxu1 }
 0x186   : > { %v5219_v36 = vadd.f32 %v1550_v23, %v1326_v27  ;;  %v1552_v55 = vpop.f32.mrb[65].mxu1 }
 0x187   : > { %v1145_v33 = vpop.f32.mrb[50].mxu0 }
 0x188   : > { %v1371_v0 = vadd.f32 %v5058_v39, %v1145_v33  ;;  %v1147_v34 = vpop.f32.mrb[51].mxu0 }
 0x189   : > { %v1555_v38 = vpop.f32.mrb[66].mxu1 }
 0x18a   : > { %v5222_v4 = vadd.f32 %v1555_v38, %v1331_v40  ;;  %v1557_v51 = vpop.f32.mrb[67].mxu1 }
 0x18b   : > { %v1150_v5 = vpop.f32.mrb[52].mxu0 }
 0x18c   : > { %v1376_v41 = vadd.f32 %v5072_v26, %v1150_v5  ;;  %v1152_v24 = vpop.f32.mrb[53].mxu0 }
 0x18d   : > { %v1560_v2 = vpop.f32.mrb[68].mxu1 }
 0x18e   : > { %v5225_v32 = vadd.f32 %v1560_v2, %v1336_v28  ;;  %v1562_v31 = vpop.f32.mrb[69].mxu1 }
 0x18f   : > { %v1155_v37 = vpop.f32.mrb[54].mxu0 }
 0x190   : > { %v1381_v27 = vadd.f32 %v5069_v62, %v1155_v37  ;;  %v1157_v49 = vpop.f32.mrb[55].mxu0 }
 0x191   : > { %v1565_v17 = vpop.f32.mrb[70].mxu1 }
 0x192   : > { %v5228_v3 = vadd.f32 %v1565_v17, %v1341_v14  ;;  %v1567_v39 = vpop.f32.mrb[71].mxu1 }
 0x193   : > { %v1160_v11 = vpop.f32.mrb[56].mxu0 }
 0x194   : > { %v1386_v40 = vadd.f32 %v5085_v10, %v1160_v11  ;;  %v1162_v35 = vpop.f32.mrb[57].mxu0 }
 0x195   : > { %v1570_v45 = vpop.f32.mrb[72].mxu1 }
 0x196   : > { %v5231_v30 = vadd.f32 %v1570_v45, %v1346_v1  ;;  %v1572_v26 = vpop.f32.mrb[73].mxu1 }
 0x197   : > { %v1165_v9 = vpop.f32.mrb[58].mxu0 }
 0x198   : > { %v1391_v28 = vadd.f32 %v5082_v19, %v1165_v9  ;;  %v1167_v29 = vpop.f32.mrb[59].mxu0 }
 0x199   : > { %v1575_v58 = vpop.f32.mrb[74].mxu1 }
 0x19a   : > { %v5234_v56 = vadd.f32 %v1575_v58, %v1351_v54  ;;  %v1577_v62 = vpop.f32.mrb[75].mxu1 }
 0x19b   : > { %v1170_v50 = vpop.f32.mrb[60].mxu0 }
 0x19c   : > { %v1396_v14 = vadd.f32 %v5099_v59, %v1170_v50  ;;  %v1172_v6 = vpop.f32.mrb[61].mxu0 }
 0x19d   : > { %v1580_v22 = vpop.f32.mrb[76].mxu1 }
 0x19e   : > { %v5237_v61 = vadd.f32 %v1580_v22, %v1356_v57  ;;  %v1582_v10 = vpop.f32.mrb[77].mxu1 }
 0x19f   : > { %v1175_v25 = vpop.f32.mrb[62].mxu0 }
 0x1a0   : > { %v1401_v1 = vadd.f32 %v5096_v20, %v1175_v25  ;;  %v1177_v23 = vpop.f32.mrb[63].mxu0 }
 0x1a1   : > { %v1585_v55 = vpop.f32.mrb[78].mxu1 }
 0x1a2   : > { %v5240_v33 = vadd.f32 %v1585_v55, %v1361_v7  ;;  %v1587_v19 = vpop.f32.mrb[79].mxu1 }
 0x1a3   : > { %v3097_v34 = vpop.f32.mrb[64].mxu0 }
 0x1a4   : > { %v5243_v54 = vadd.f32 %v3097_v34, %v5126_v18  ;;  %v1695_v38 = vpop.f32.mrb[65].mxu0 }
 0x1a5   : > { %v1590_v51 = vpop.f32.mrb[80].mxu1  ;;  %v5246_v59 = vadd.f32 %v1695_v38, %v5113_v53 }
 0x1a6   : > { %v5248_v57 = vadd.f32 %v1590_v51, %v1366_v52  ;;  %v1592_v5 = vpop.f32.mrb[81].mxu1 }
 0x1a7   : > { %v3100_v24 = vpop.f32.mrb[66].mxu0 }
 0x1a8   : > { %v5251_v20 = vadd.f32 %v3100_v24, %v5142_v60  ;;  %v1705_v2 = vpop.f32.mrb[67].mxu0 }
 0x1a9   : > { %v1595_v7 = vpop.f32.mrb[82].mxu1  ;;  %v5254_v31 = vadd.f32 %v1705_v2, %v5134_v46 }
 0x1aa   : > { %v5256_v37 = vadd.f32 %v1595_v7, %v1371_v0  ;;  %v1597_v18 = vpop.f32.mrb[83].mxu1 }
 0x1ab   : > { %v3103_v49 = vpop.f32.mrb[68].mxu0 }
 0x1ac   : > { %v5259_v17 = vadd.f32 %v3103_v49, %v5158_v42  ;;  %v1715_v53 = vpop.f32.mrb[69].mxu0 }
 0x1ad   : > { %v1600_v52 = vpop.f32.mrb[84].mxu1  ;;  %v5262_v39 = vadd.f32 %v1715_v53, %v5150_v43 }
 0x1ae   : > { %v5264_v11 = vadd.f32 %v1600_v52, %v1376_v41  ;;  %v1602_v60 = vpop.f32.mrb[85].mxu1 }
 0x1af   : > { %v3106_v35 = vpop.f32.mrb[70].mxu0 }
 0x1b0   : > { %v5267_v45 = vadd.f32 %v3106_v35, %v5172_v48  ;;  %v1725_v46 = vpop.f32.mrb[71].mxu0 }
 0x1b1   : > { %v1605_v0 = vpop.f32.mrb[86].mxu1  ;;  %v5270_v26 = vadd.f32 %v1725_v46, %v5166_v15 }
 0x1b2   : > { %v1606_v9 = vadd.f32 %v1605_v0, %v1381_v27  ;;  %v1607_v42 = vpop.f32.mrb[87].mxu1 }
 0x1b3   : > { %v3109_v29 = vpop.f32.mrb[72].mxu0 }
 0x1b4   : > { %v5273_v58 = vadd.f32 %v3109_v29, %v5188_v16  ;;  %v1735_v43 = vpop.f32.mrb[73].mxu0 }
 0x1b5   : > { %v1610_v62 = vpop.f32.mrb[88].mxu1  ;;  %v5276_v41 = vadd.f32 %v1735_v43, %v5179_v13 }
 0x1b6   : > { %v1611_v50 = vadd.f32 %v1610_v62, %v1386_v40  ;;  %v1612_v6 = vpop.f32.mrb[89].mxu1 }
 0x1b7   : > { %v3112_v48 = vpop.f32.mrb[74].mxu0 }
 0x1b8   : > { %v5279_v22 = vadd.f32 %v3112_v48, %v5201_v21  ;;  %v1745_v10 = vpop.f32.mrb[75].mxu0 }
 0x1b9   : > { %v1615_v15 = vpop.f32.mrb[90].mxu1  ;;  %v5282_v27 = vadd.f32 %v1745_v10, %v5197_v8 }
 0x1ba   : > { %v1616_v25 = vadd.f32 %v1615_v15, %v1391_v28  ;;  %v1617_v23 = vpop.f32.mrb[91].mxu1 }
 0x1bb   : > { %v3115_v16 = vpop.f32.mrb[76].mxu0 }
 0x1bc   : > { %v5285_v55 = vadd.f32 %v3115_v16, %v5209_v47  ;;  %v1755_v19 = vpop.f32.mrb[77].mxu0 }
 0x1bd   : > { %v1620_v13 = vpop.f32.mrb[92].mxu1  ;;  %v5288_v40 = vadd.f32 %v1755_v19, %v5205_v63 }
 0x1be   : > { %v1621_v34 = vadd.f32 %v1620_v13, %v1396_v14  ;;  %v1622_v38 = vpop.f32.mrb[93].mxu1 }
 0x1bf   : > { %v3118_v21 = vpop.f32.mrb[78].mxu0 }
 0x1c0   : > { %v5291_v51 = vadd.f32 %v3118_v21, %v5216_v44  ;;  %v1765_v5 = vpop.f32.mrb[79].mxu0 }
 0x1c1   : > { %v1625_v8 = vpop.f32.mrb[94].mxu1  ;;  %v5294_v28 = vadd.f32 %v1765_v5, %v5213_v12 }
 0x1c2   : > { %v1626_v24 = vadd.f32 %v1625_v8, %v1401_v1  ;;  %v1627_v2 = vpop.f32.mrb[95].mxu1 }
 0x1c3   : > { %v3121_v47 = vpop.f32.mrb[80].mxu0 }
 0x1c4   : > { %v5297_v7 = vadd.f32 %v3121_v47, %v5222_v4  ;;  %v1775_v18 = vpop.f32.mrb[81].mxu0 }
 0x1c5   : > { %v5300_v63 = vadd.f32 %v1775_v18, %v5219_v36  ;;  %v1983_v14 = vpop.f32.mrb[96].mxu1 }
 0x1c6   : > { %v1985_v49 = vpop.f32.mrb[97].mxu1 }
 0x1c7   : > { %v3124_v53 = vpop.f32.mrb[82].mxu0 }
 0x1c8   : > { %v5303_v44 = vadd.f32 %v3124_v53, %v5228_v3  ;;  %v1785_v52 = vpop.f32.mrb[83].mxu0 }
 0x1c9   : > { %v5306_v12 = vadd.f32 %v1785_v52, %v5225_v32  ;;  %v1988_v1 = vpop.f32.mrb[98].mxu1 }
 0x1ca   : > { %v1990_v60 = vpop.f32.mrb[99].mxu1 }
 0x1cb   : > { %v3127_v35 = vpop.f32.mrb[84].mxu0 }
 0x1cc   : > { %v5309_v4 = vadd.f32 %v3127_v35, %v5234_v56  ;;  %v1795_v46 = vpop.f32.mrb[85].mxu0 }
 0x1cd   : > { %v5312_v36 = vadd.f32 %v1795_v46, %v5231_v30  ;;  %v1993_v0 = vpop.f32.mrb[100].mxu1 }
 0x1ce   : > { %v1995_v42 = vpop.f32.mrb[101].mxu1 }
 0x1cf   : > { %v3130_v29 = vpop.f32.mrb[86].mxu0 }
 0x1d0   : > { %v5315_v3 = vadd.f32 %v3130_v29, %v5240_v33  ;;  %v1805_v43 = vpop.f32.mrb[87].mxu0 }
 0x1d1   : > { %v5318_v32 = vadd.f32 %v1805_v43, %v5237_v61  ;;  %v1998_v62 = vpop.f32.mrb[102].mxu1 }
 0x1d2   : > { %v2000_v6 = vpop.f32.mrb[103].mxu1 }
 0x1d3   : > { %v3133_v48 = vpop.f32.mrb[88].mxu0 }
 0x1d4   : > { %v5321_v56 = vadd.f32 %v3133_v48, %v5256_v37  ;;  %v1815_v10 = vpop.f32.mrb[89].mxu0 }
 0x1d5   : > { %v5324_v30 = vadd.f32 %v1815_v10, %v5248_v57  ;;  %v2003_v15 = vpop.f32.mrb[104].mxu1 }
 0x1d6   : > { %v2005_v23 = vpop.f32.mrb[105].mxu1 }
 0x1d7   : > { %v3136_v16 = vpop.f32.mrb[90].mxu0 }
 0x1d8   : > { %v5326_v19 = vadd.f32 %v3136_v16, %v1606_v9  ;;  %v1825_v33 = vpop.f32.mrb[91].mxu0 }
 0x1d9   : > { %v5329_v13 = vadd.f32 %v1825_v33, %v5264_v11  ;;  %v2008_v61 = vpop.f32.mrb[106].mxu1 }
 0x1da   : > { %v2010_v38 = vpop.f32.mrb[107].mxu1 }
 0x1db   : > { %v3139_v21 = vpop.f32.mrb[92].mxu0 }
 0x1dc   : > { %v5331_v5 = vadd.f32 %v3139_v21, %v1616_v25  ;;  %v1835_v37 = vpop.f32.mrb[93].mxu0 }
 0x1dd   : > { %v5333_v8 = vadd.f32 %v1835_v37, %v1611_v50  ;;  %v2013_v57 = vpop.f32.mrb[108].mxu1 }
 0x1de   : > { %v2015_v2 = vpop.f32.mrb[109].mxu1 }
 0x1df   : > { %v3142_v47 = vpop.f32.mrb[94].mxu0 }
 0x1e0   : > { %v5335_v18 = vadd.f32 %v3142_v47, %v1626_v24  ;;  %v1845_v9 = vpop.f32.mrb[95].mxu0 }
 0x1e1   : > { %v5337_v49 = vadd.f32 %v1845_v9, %v1621_v34  ;;  %v2018_v53 = vpop.f32.mrb[110].mxu1 }
 0x1e2   : > { %v2020_v11 = vpop.f32.mrb[111].mxu1 }
 0x1e3   : > { %v3177_v52 = vpop.f32.mrb[96].mxu0 }
 0x1e4   : > { %v2214_v60 = vadd.f32 %v3177_v52, %v1988_v1  ;;  %v2208_v35 = vpop.f32.mrb[97].mxu0 }
 0x1e5   : > { %v2023_v50 = vpop.f32.mrb[112].mxu1  ;;  %v2209_v25 = vadd.f32 %v2208_v35, %v1983_v14 }
 0x1e6   : > { %v2368_v24 = vadd.f32 %v2214_v60, %v5243_v54  ;;  %v2025_v46 = vpop.f32.mrb[113].mxu1 }
 0x1e7   : > { %v2367_v34 = vadd.f32 %v2209_v25, %v5246_v59  ;;  %v3180_v42 = vpop.f32.mrb[98].mxu0 }
 0x1e8   : > { %2400 = vst [vmem:[%s5343_s13 + $0x8] sm:$0xff] %v2368_v24  ;;  %v2469_v29 = vmul.f32 %v2368_v24, %v2368_v24  ;;  %v2224_v1 = vadd.f32 %v3180_v42, %v1998_v62  ;;  %v2218_v43 = vpop.f32.mrb[99].mxu0 }
 0x1e9   : > { %2399 = vst [vmem:[%s5343_s13] sm:$0xff] %v2367_v34  ;;  %v2431_v6 = vadd.f32 %v2368_v24, %v2367_v34  ;;  %v2468_v48 = vmul.f32 %v2367_v34, %v2367_v34  ;;  %v2028_v10 = vpop.f32.mrb[114].mxu1  ;;  %v2219_v23 = vadd.f32 %v2218_v43, %v1993_v0 }
 0x1ea   : > { %v2370_v16 = vadd.f32 %v2224_v1, %v5251_v20  ;;  %v2030_v14 = vpop.f32.mrb[115].mxu1 }
 0x1eb   : > { %v2500_v33 = vadd.f32 %v2469_v29, %v2468_v48  ;;  %v2369_v54 = vadd.f32 %v2219_v23, %v5254_v31  ;;  %v3183_v38 = vpop.f32.mrb[100].mxu0 }
 0x1ec   : > { %2402 = vst [vmem:[%s5343_s13 + $0x18] sm:$0xff] %v2370_v16  ;;  %v2234_v59 = vadd.f32 %v3183_v38, %v2008_v61  ;;  %v2228_v21 = vpop.f32.mrb[101].mxu0  ;;  %v2471_v11 = vmul.f32 %v2370_v16, %v2370_v16 }
 0x1ed   : > { %2401 = vst [vmem:[%s5343_s13 + $0x10] sm:$0xff] %v2369_v54  ;;  %v2432_v62 = vadd.f32 %v2431_v6, %v2369_v54  ;;  %v2470_v37 = vmul.f32 %v2369_v54, %v2369_v54  ;;  %v2033_v2 = vpop.f32.mrb[116].mxu1  ;;  %v2229_v47 = vadd.f32 %v2228_v21, %v2003_v15 }
 0x1ee   : > { %v2372_v9 = vadd.f32 %v2234_v59, %v5259_v17  ;;  %v2035_v0 = vpop.f32.mrb[117].mxu1 }
 0x1ef   : > { %v2501_v20 = vadd.f32 %v2500_v33, %v2470_v37  ;;  %v2371_v52 = vadd.f32 %v2229_v47, %v5262_v39  ;;  %v2433_v60 = vadd.f32 %v2432_v62, %v2370_v16  ;;  %v3186_v31 = vpop.f32.mrb[102].mxu0 }
 0x1f0   : > { %2404 = vst [vmem:[%s5343_s13 + $0x28] sm:$0xff] %v2372_v9  ;;  %v2244_v35 = vadd.f32 %v3186_v31, %v2018_v53  ;;  %v2238_v61 = vpop.f32.mrb[103].mxu0  ;;  %v2473_v29 = vmul.f32 %v2372_v9, %v2372_v9 }
 0x1f1   : > { %2403 = vst [vmem:[%s5343_s13 + $0x20] sm:$0xff] %v2371_v52  ;;  %v2434_v25 = vadd.f32 %v2433_v60, %v2371_v52  ;;  %v2472_v24 = vmul.f32 %v2371_v52, %v2371_v52  ;;  %v2502_v46 = vadd.f32 %v2501_v20, %v2471_v11  ;;  %v2038_v34 = vpop.f32.mrb[118].mxu1  ;;  %v2239_v15 = vadd.f32 %v2238_v61, %v2013_v57 }
 0x1f2   : > { %v2374_v17 = vadd.f32 %v2244_v35, %v5267_v45  ;;  %v2040_v42 = vpop.f32.mrb[119].mxu1 }
 0x1f3   : > { %v2503_v1 = vadd.f32 %v2502_v46, %v2472_v24  ;;  %v2373_v39 = vadd.f32 %v2239_v15, %v5270_v26  ;;  %v2435_v43 = vadd.f32 %v2434_v25, %v2372_v9  ;;  %v3189_v6 = vpop.f32.mrb[104].mxu0 }
 0x1f4   : > { %2406 = vst [vmem:[%s5343_s13 + $0x38] sm:$0xff] %v2374_v17  ;;  %v2254_v53 = vadd.f32 %v3189_v6, %v2028_v10  ;;  %v2248_v48 = vpop.f32.mrb[105].mxu0  ;;  %v2475_v38 = vmul.f32 %v2374_v17, %v2374_v17 }
 0x1f5   : > { %2405 = vst [vmem:[%s5343_s13 + $0x30] sm:$0xff] %v2373_v39  ;;  %v2436_v23 = vadd.f32 %v2435_v43, %v2373_v39  ;;  %v2474_v16 = vmul.f32 %v2373_v39, %v2373_v39  ;;  %v2504_v14 = vadd.f32 %v2503_v1, %v2473_v29  ;;  %v2043_v33 = vpop.f32.mrb[120].mxu1  ;;  %v2249_v57 = vadd.f32 %v2248_v48, %v2023_v50 }
 0x1f6   : > { %v2376_v45 = vadd.f32 %v2254_v53, %v5273_v58  ;;  %v2045_v54 = vpop.f32.mrb[121].mxu1 }
 0x1f7   : > { %v2505_v59 = vadd.f32 %v2504_v14, %v2474_v16  ;;  %v2375_v26 = vadd.f32 %v2249_v57, %v5276_v41  ;;  %v2437_v21 = vadd.f32 %v2436_v23, %v2374_v17  ;;  %v3192_v62 = vpop.f32.mrb[106].mxu0 }
 0x1f8   : > { %2408 = vst [vmem:[%s5343_s13 + $0x48] sm:$0xff] %v2376_v45  ;;  %v2264_v10 = vadd.f32 %v3192_v62, %v2038_v34  ;;  %v2258_v37 = vpop.f32.mrb[107].mxu0  ;;  %v2477_v52 = vmul.f32 %v2376_v45, %v2376_v45 }
 0x1f9   : > { %2407 = vst [vmem:[%s5343_s13 + $0x40] sm:$0xff] %v2375_v26  ;;  %v2438_v47 = vadd.f32 %v2437_v21, %v2375_v26  ;;  %v2476_v9 = vmul.f32 %v2375_v26, %v2375_v26  ;;  %v2506_v0 = vadd.f32 %v2505_v59, %v2475_v38  ;;  %v2048_v11 = vpop.f32.mrb[122].mxu1  ;;  %v2259_v50 = vadd.f32 %v2258_v37, %v2033_v2 }
 0x1fa   : > { %v2378_v58 = vadd.f32 %v2264_v10, %v5279_v22  ;;  %v2050_v20 = vpop.f32.mrb[123].mxu1 }
 0x1fb   : > { %v2507_v60 = vadd.f32 %v2506_v0, %v2476_v9  ;;  %v2377_v41 = vadd.f32 %v2259_v50, %v5282_v27  ;;  %v2439_v31 = vadd.f32 %v2438_v47, %v2376_v45  ;;  %v3195_v35 = vpop.f32.mrb[108].mxu0 }
 0x1fc   : > { %2410 = vst [vmem:[%s5343_s13 + $0x58] sm:$0xff] %v2378_v58  ;;  %v2274_v61 = vadd.f32 %v3195_v35, %v2048_v11  ;;  %v2268_v25 = vpop.f32.mrb[109].mxu0  ;;  %v2479_v42 = vmul.f32 %v2378_v58, %v2378_v58 }
 0x1fd   : > { %2409 = vst [vmem:[%s5343_s13 + $0x50] sm:$0xff] %v2377_v41  ;;  %v2440_v24 = vadd.f32 %v2439_v31, %v2377_v41  ;;  %v2478_v46 = vmul.f32 %v2377_v41, %v2377_v41  ;;  %v2508_v34 = vadd.f32 %v2507_v60, %v2477_v52  ;;  %v2053_v15 = vpop.f32.mrb[124].mxu1  ;;  %v2269_v2 = vadd.f32 %v2268_v25, %v2043_v33 }
 0x1fe   : > { %v2380_v22 = vadd.f32 %v2274_v61, %v5285_v55  ;;  %v2055_v17 = vpop.f32.mrb[125].mxu1 }
 0x1ff   : > { %v2509_v29 = vadd.f32 %v2508_v34, %v2478_v46  ;;  %v2379_v27 = vadd.f32 %v2269_v2, %v5288_v40  ;;  %v2441_v1 = vadd.f32 %v2440_v24, %v2378_v58  ;;  %v3198_v39 = vpop.f32.mrb[110].mxu0 }
 0x200   : > { %2412 = vst [vmem:[%s5343_s13 + $0x68] sm:$0xff] %v2380_v22  ;;  %v2278_v43 = vpop.f32.mrb[111].mxu0  ;;  %v2481_v55 = vmul.f32 %v2380_v22, %v2380_v22 }
 0x201   : > { %2411 = vst [vmem:[%s5343_s13 + $0x60] sm:$0xff] %v2379_v27  ;;  %v2442_v6 = vadd.f32 %v2441_v1, %v2379_v27  ;;  %v2480_v53 = vmul.f32 %v2379_v27, %v2379_v27  ;;  %v2510_v48 = vadd.f32 %v2509_v29, %v2479_v42  ;;  %v2058_v23 = vpop.f32.mrb[126].mxu1  ;;  %v2279_v16 = vadd.f32 %v2278_v43, %v2053_v15 }
 0x202   : > { %v2284_v14 = vadd.f32 %v3198_v39, %v2058_v23  ;;  %v2060_v33 = vpop.f32.mrb[127].mxu1 }
 0x203   : > { %v2511_v57 = vadd.f32 %v2510_v48, %v2480_v53  ;;  %v2381_v45 = vadd.f32 %v2279_v16, %v5294_v28  ;;  %v2443_v54 = vadd.f32 %v2442_v6, %v2380_v22  ;;  %v3201_v40 = vpop.f32.mrb[112].mxu0 }
 0x204   : > { %v2382_v38 = vadd.f32 %v2284_v14, %v5291_v51  ;;  %v2288_v59 = vpop.f32.mrb[113].mxu0 }
 0x205   : > { %2413 = vst [vmem:[%s5343_s13 + $0x70] sm:$0xff] %v2381_v45  ;;  %v2444_v26 = vadd.f32 %v2443_v54, %v2381_v45  ;;  %v2482_v21 = vmul.f32 %v2381_v45, %v2381_v45  ;;  %v2512_v62 = vadd.f32 %v2511_v57, %v2481_v55  ;;  %v2063_v10 = vpop.f32.mrb[128].mxu1 }
 0x206   : > { %2414 = vst [vmem:[%s5343_s13 + $0x78] sm:$0xff] %v2382_v38  ;;  %v2289_v37 = vadd.f32 %v2288_v59, %v2063_v10  ;;  %v2065_v47 = vpop.f32.mrb[129].mxu1  ;;  %v2483_v9 = vmul.f32 %v2382_v38, %v2382_v38 }
 0x207   : > { %v2513_v0 = vadd.f32 %v2512_v62, %v2482_v21  ;;  %v2445_v11 = vadd.f32 %v2444_v26, %v2382_v38  ;;  %v3204_v50 = vpop.f32.mrb[114].mxu0 }
 0x208   : > { %v2383_v28 = vadd.f32 %v2289_v37, %v5300_v63  ;;  %v2298_v58 = vpop.f32.mrb[115].mxu0 }
 0x209   : > { %v2514_v20 = vadd.f32 %v2513_v0, %v2483_v9  ;;  %v2068_v51 = vpop.f32.mrb[130].mxu1 }
 0x20a   : > { %2415 = vst [vmem:[%s5343_s13 + $0x80] sm:$0xff] %v2383_v28  ;;  %v2446_v52 = vadd.f32 %v2445_v11, %v2383_v28  ;;  %v2484_v60 = vmul.f32 %v2383_v28, %v2383_v28  ;;  %v2294_v41 = vadd.f32 %v3201_v40, %v2068_v51  ;;  %v2070_v31 = vpop.f32.mrb[131].mxu1 }
 0x20b   : > { %v3207_v35 = vpop.f32.mrb[116].mxu0 }
 0x20c   : > { %v2515_v61 = vadd.f32 %v2514_v20, %v2484_v60  ;;  %v2384_v25 = vadd.f32 %v2294_v41, %v5297_v7  ;;  %v2308_v24 = vpop.f32.mrb[117].mxu0 }
 0x20d   : > { %v2073_v46 = vpop.f32.mrb[132].mxu1 }
 0x20e   : > { %2416 = vst [vmem:[%s5343_s13 + $0x88] sm:$0xff] %v2384_v25  ;;  %v2447_v34 = vadd.f32 %v2446_v52, %v2384_v25  ;;  %v2485_v15 = vmul.f32 %v2384_v25, %v2384_v25  ;;  %v2299_v2 = vadd.f32 %v2298_v58, %v2073_v46  ;;  %v2075_v63 = vpop.f32.mrb[133].mxu1 }
 0x20f   : > { %v3210_v22 = vpop.f32.mrb[118].mxu0 }
 0x210   : > { %v2516_v17 = vadd.f32 %v2515_v61, %v2485_v15  ;;  %v2385_v42 = vadd.f32 %v2299_v2, %v5306_v12  ;;  %v2318_v29 = vpop.f32.mrb[119].mxu0 }
 0x211   : > { %v2078_v27 = vpop.f32.mrb[134].mxu1 }
 0x212   : > { %2417 = vst [vmem:[%s5343_s13 + $0x90] sm:$0xff] %v2385_v42  ;;  %v2448_v1 = vadd.f32 %v2447_v34, %v2385_v42  ;;  %v2486_v39 = vmul.f32 %v2385_v42, %v2385_v42  ;;  %v2304_v43 = vadd.f32 %v3204_v50, %v2078_v27  ;;  %v2080_v6 = vpop.f32.mrb[135].mxu1 }
 0x213   : > { %v3213_v7 = vpop.f32.mrb[120].mxu0 }
 0x214   : > { %v2517_v53 = vadd.f32 %v2516_v17, %v2486_v39  ;;  %v2386_v48 = vadd.f32 %v2304_v43, %v5303_v44  ;;  %v2328_v23 = vpop.f32.mrb[121].mxu0 }
 0x215   : > { %v2083_v16 = vpop.f32.mrb[136].mxu1 }
 0x216   : > { %2418 = vst [vmem:[%s5343_s13 + $0x98] sm:$0xff] %v2386_v48  ;;  %v2449_v14 = vadd.f32 %v2448_v1, %v2386_v48  ;;  %v2487_v33 = vmul.f32 %v2386_v48, %v2386_v48  ;;  %v2309_v55 = vadd.f32 %v2308_v24, %v2083_v16  ;;  %v2085_v57 = vpop.f32.mrb[137].mxu1 }
 0x217   : > { %v3216_v12 = vpop.f32.mrb[122].mxu0 }
 0x218   : > { %v2518_v45 = vadd.f32 %v2517_v53, %v2487_v33  ;;  %v2387_v54 = vadd.f32 %v2309_v55, %v5312_v36  ;;  %v2338_v40 = vpop.f32.mrb[123].mxu0 }
 0x219   : > { %v2088_v38 = vpop.f32.mrb[138].mxu1 }
 0x21a   : > { %2419 = vst [vmem:[%s5343_s13 + $0xa0] sm:$0xff] %v2387_v54  ;;  %v2450_v59 = vadd.f32 %v2449_v14, %v2387_v54  ;;  %v2488_v26 = vmul.f32 %v2387_v54, %v2387_v54  ;;  %v2314_v21 = vadd.f32 %v3207_v35, %v2088_v38  ;;  %v2090_v62 = vpop.f32.mrb[139].mxu1 }
 0x21b   : > { %v5387_v44 = vpop.f32.mrb[124].mxu0 }
 0x21c   : > { %v2519_v10 = vadd.f32 %v2518_v45, %v2488_v26  ;;  %v2388_v37 = vadd.f32 %v2314_v21, %v5309_v4  ;;  %v2348_v47 = vpop.f32.mrb[125].mxu0 }
 0x21d   : > { %v2093_v9 = vpop.f32.mrb[140].mxu1 }
 0x21e   : > { %2420 = vst [vmem:[%s5343_s13 + $0xa8] sm:$0xff] %v2388_v37  ;;  %v2451_v0 = vadd.f32 %v2450_v59, %v2388_v37  ;;  %v2489_v11 = vmul.f32 %v2388_v37, %v2388_v37  ;;  %v2319_v36 = vadd.f32 %v2318_v29, %v2093_v9  ;;  %v2095_v50 = vpop.f32.mrb[141].mxu1 }
 0x21f   : > { %v5391_v28 = vpop.f32.mrb[126].mxu0 }
 0x220   : > { %v2520_v58 = vadd.f32 %v2519_v10, %v2489_v11  ;;  %v2389_v20 = vadd.f32 %v2319_v36, %v5318_v32  ;;  %v2358_v51 = vpop.f32.mrb[127].mxu0 }
 0x221   : > { %v2098_v52 = vpop.f32.mrb[142].mxu1 }
 0x222   : > { %2421 = vst [vmem:[%s5343_s13 + $0xb0] sm:$0xff] %v2389_v20  ;;  %v2452_v60 = vadd.f32 %v2451_v0, %v2389_v20  ;;  %v2490_v41 = vmul.f32 %v2389_v20, %v2389_v20  ;;  %v2324_v4 = vadd.f32 %v3210_v22, %v2098_v52  ;;  %v2100_v31 = vpop.f32.mrb[143].mxu1 }
 0x224   : > { %v2521_v35 = vadd.f32 %v2520_v58, %v2490_v41  ;;  %v2390_v61 = vadd.f32 %v2324_v4, %v5315_v3 }
 0x225   : > { %v2103_v25 = vpop.f32.mrb[144].mxu1 }
 0x226   : > { %2422 = vst [vmem:[%s5343_s13 + $0xb8] sm:$0xff] %v2390_v61  ;;  %v2453_v24 = vadd.f32 %v2452_v60, %v2390_v61  ;;  %v2491_v46 = vmul.f32 %v2390_v61, %v2390_v61  ;;  %v2329_v34 = vadd.f32 %v2328_v23, %v2103_v25  ;;  %v2105_v15 = vpop.f32.mrb[145].mxu1 }
 0x228   : > { %v2522_v2 = vadd.f32 %v2521_v35, %v2491_v46  ;;  %v2391_v32 = vadd.f32 %v2329_v34, %v5324_v30 }
 0x229   : > { %v2108_v63 = vpop.f32.mrb[146].mxu1 }
 0x22a   : > { %2423 = vst [vmem:[%s5343_s13 + $0xc0] sm:$0xff] %v2391_v32  ;;  %v2454_v17 = vadd.f32 %v2453_v24, %v2391_v32  ;;  %v2492_v42 = vmul.f32 %v2391_v32, %v2391_v32  ;;  %v2334_v22 = vadd.f32 %v3213_v7, %v2108_v63  ;;  %v2110_v29 = vpop.f32.mrb[147].mxu1 }
 0x22c   : > { %v2523_v27 = vadd.f32 %v2522_v2, %v2492_v42  ;;  %v2392_v3 = vadd.f32 %v2334_v22, %v5321_v56 }
 0x22d   : > { %v2113_v1 = vpop.f32.mrb[148].mxu1 }
 0x22e   : > { %2424 = vst [vmem:[%s5343_s13 + $0xc8] sm:$0xff] %v2392_v3  ;;  %v2455_v39 = vadd.f32 %v2454_v17, %v2392_v3  ;;  %v2493_v43 = vmul.f32 %v2392_v3, %v2392_v3  ;;  %v2339_v6 = vadd.f32 %v2338_v40, %v2113_v1  ;;  %v2115_v53 = vpop.f32.mrb[149].mxu1 }
 0x230   : > { %v2524_v48 = vadd.f32 %v2523_v27, %v2493_v43  ;;  %v2393_v30 = vadd.f32 %v2339_v6, %v5329_v13 }
 0x231   : > { %v2118_v23 = vpop.f32.mrb[150].mxu1 }
 0x232   : > { %2425 = vst [vmem:[%s5343_s13 + $0xd0] sm:$0xff] %v2393_v30  ;;  %v2456_v16 = vadd.f32 %v2455_v39, %v2393_v30  ;;  %v2494_v14 = vmul.f32 %v2393_v30, %v2393_v30  ;;  %v2344_v7 = vadd.f32 %v3216_v12, %v2118_v23  ;;  %v2120_v33 = vpop.f32.mrb[151].mxu1 }
 0x234   : > { %v2525_v55 = vadd.f32 %v2524_v48, %v2494_v14  ;;  %v2394_v56 = vadd.f32 %v2344_v7, %v5326_v19 }
 0x235   : > { %v2123_v57 = vpop.f32.mrb[152].mxu1 }
 0x236   : > { %2426 = vst [vmem:[%s5343_s13 + $0xd8] sm:$0xff] %v2394_v56  ;;  %v2457_v45 = vadd.f32 %v2456_v16, %v2394_v56  ;;  %v2495_v54 = vmul.f32 %v2394_v56, %v2394_v56  ;;  %v2349_v40 = vadd.f32 %v2348_v47, %v2123_v57  ;;  %v2125_v38 = vpop.f32.mrb[153].mxu1 }
 0x238   : > { %v2526_v59 = vadd.f32 %v2525_v55, %v2495_v54  ;;  %v2395_v13 = vadd.f32 %v2349_v40, %v5333_v8 }
 0x239   : > { %v2128_v26 = vpop.f32.mrb[154].mxu1 }
 0x23a   : > { %2427 = vst [vmem:[%s5343_s13 + $0xe0] sm:$0xff] %v2395_v13  ;;  %v2458_v21 = vadd.f32 %v2457_v45, %v2395_v13  ;;  %v2496_v62 = vmul.f32 %v2395_v13, %v2395_v13  ;;  %v2354_v12 = vadd.f32 %v5387_v44, %v2128_v26  ;;  %v2130_v10 = vpop.f32.mrb[155].mxu1 }
 0x23c   : > { %v2527_v37 = vadd.f32 %v2526_v59, %v2496_v62  ;;  %v2396_v19 = vadd.f32 %v2354_v12, %v5331_v5 }
 0x23d   : > { %v2133_v9 = vpop.f32.mrb[156].mxu1 }
 0x23e   : > { %2428 = vst [vmem:[%s5343_s13 + $0xe8] sm:$0xff] %v2396_v19  ;;  %v2459_v0 = vadd.f32 %v2458_v21, %v2396_v19  ;;  %v2497_v47 = vmul.f32 %v2396_v19, %v2396_v19  ;;  %v2359_v11 = vadd.f32 %v2358_v51, %v2133_v9  ;;  %v2135_v36 = vpop.f32.mrb[157].mxu1 }
 0x240   : > { %v2528_v50 = vadd.f32 %v2527_v37, %v2497_v47  ;;  %v2397_v8 = vadd.f32 %v2359_v11, %v5337_v49 }
 0x241   : > { %v2138_v58 = vpop.f32.mrb[158].mxu1 }
 0x242   : > { %2429 = vst [vmem:[%s5343_s13 + $0xf0] sm:$0xff] %v2397_v8  ;;  %v2460_v20 = vadd.f32 %v2459_v0, %v2397_v8  ;;  %v2498_v52 = vmul.f32 %v2397_v8, %v2397_v8  ;;  %v2364_v44 = vadd.f32 %v5391_v28, %v2138_v58  ;;  %v2140_v60 = vpop.f32.mrb[159].mxu1 }
 0x244   : > { %v2529_v41 = vadd.f32 %v2528_v50, %v2498_v52  ;;  %v2398_v5 = vadd.f32 %v2364_v44, %v5335_v18 }
 0x246   : > { %2430 = vst [vmem:[%s5343_s13 + $0xf8] sm:$0xff] %v2398_v5  ;;  %v2461_v4 = vadd.f32 %v2460_v20, %v2398_v5  ;;  %v2499_v31 = vmul.f32 %v2398_v5, %v2398_v5 }
 0x248   : > { %v2462_v35 = vrot.slane %v2461_v4, 4  ;;  %v2530_v51 = vadd.f32 %v2529_v41, %v2499_v31 }
 0x24a   : > { %v2463_v61 = vadd.f32 %v2462_v35, %v2461_v4  ;;  %v2531_v25 = vrot.slane %v2530_v51, 4 }
 0x24c   : > { %v2464_v24 = vrot.slane %v2463_v61, 2  ;;  %v2532_v49 = vadd.f32 %v2531_v25, %v2530_v51 }
 0x24e   : > { %v2465_v46 = vadd.f32 %v2464_v24, %v2463_v61  ;;  %v2533_v34 = vrot.slane %v2532_v49, 2 }
 0x250   : > { %v2466_v15 = vrot.slane %v2465_v46, 1  ;;  %v2534_v2 = vadd.f32 %v2533_v34, %v2532_v49 }
 0x252   : > { %v2535_v28 = vrot.slane %v2534_v2, 1  ;;  %v2467_v18 = vadd.f32 %v2466_v15, %v2465_v46 }
 0x254   : > { %v2536_v32 = vadd.f32 %v2535_v28, %v2534_v2 }
 0x256   : > { %v2538_v63 = vsel %vm2537_vm4, %v2467_v18, %v2536_v32 }
 0x257   : > { %2539 = vst [vmem:[%s465_s21] sm:$0x3] %v2538_v63 }
 0x258 PF: > { %s18_s26 = sadd.s32 1, %s3512_s26   ;;  %s5662_s24 = smov %s3508_s25 }
 0x259   : > { %p15_p5 = scmp.ge.s32.totalorder %s18_s26, 4   ;;  %s5663_s25 = smov %s5665_s27 }
 0x25b   :  { %17 = sbr.rel (!%p15_p5) target bundleno = 2 (0x2), region = 94 }

</bundles_post_ra>
